<compile_context>
chip_gen: v7x
topology: tpu7x:2x2x1
jax: 0.10.0
libtpu: 0.0.40
codegen_flags: <defaults>
</compile_context>

<pallas_src>
import jax
import jax.numpy as jnp
from jax import lax
from jax.experimental import pallas as pl
from jax.experimental.pallas import tpu as pltpu

EPS = 1e-5
STATS_ROWS = 8          # stats block sublane height; rows 0/1 = sum / sum-of-squares
ELEM_TILE_CAP = 2048    # max row-tile for the HBM-bound elementwise finalize pass


def _cparams():
    return pltpu.CompilerParams(
        dimension_semantics=("parallel",),
        vmem_limit_bytes=32 * 1024 * 1024,   # safe on v5e/v6e/v7x
    )


# --------------------------------- kernels -----------------------------------

def _stats_rows(acc):
    """(2, C) block: row0 = sum over rows, row1 = sum of squares (f32 acc)."""
    s1 = jnp.sum(acc, axis=0, keepdims=True)
    s2 = jnp.sum(acc * acc, axis=0, keepdims=True)
    return jnp.concatenate([s1, s2], axis=0)


def _make_conv1_kernel(stride, ho, wo, c_in, c_out, has_proj):
    """conv1: 3x3/stride-s conv of one image from a VMEM-resident phase tile.

    Inputs : x_ref  (1, nphase, Hs, Ws, Cin) bf16   (pre-padded / phase-split)
             w_ref  (9, Cin, Cout)           bf16   (VMEM-resident)
            [ws_ref (Cin, Cout)              bf16]  (projection shortcut)
    Outputs: y_ref  (1, Ho, Wo, Cout)  bf16  pre-BN conv1 output
             st_ref (1, 8, Cout)       f32   BN1 partial sums (rows 0/1)
            [sc_ref (Ho*Wo, Cout)      bf16  pre-BN shortcut output]
            [sts_ref(1, 8, Cout)       f32   shortcut-BN partial sums]
    """
    m = ho * wo

    def tap_slab(x_ref, dy, dx):
        if stride == 1:
            return x_ref[0, 0, dy:dy + ho, dx:dx + wo, :]
        p = (dy % 2) * 2 + (dx % 2)
        r, c = dy // 2, dx // 2
        return x_ref[0, p, r:r + ho, c:c + wo, :]

    def body(x_ref, w_ref, ws_ref, y_ref, st_ref, sc_ref, sts_ref):
        acc = jnp.zeros((m, c_out), jnp.float32)
        for dy in range(3):
            for dx in range(3):
                a = tap_slab(x_ref, dy, dx).reshape(m, c_in)
                acc = acc + jnp.dot(a, w_ref[dy * 3 + dx],
                                    preferred_element_type=jnp.float32)
        y_ref[0] = acc.reshape(ho, wo, c_out).astype(y_ref.dtype)
        st_ref[0, 0:2, :] = _stats_rows(acc)
        if has_proj:
            # 1x1 stride-s shortcut conv: its input slab is already in VMEM.
            if stride == 1:
                xs = x_ref[0, 0, 1:1 + ho, 1:1 + wo, :]
            else:
                xs = x_ref[0, 3, 0:ho, 0:wo, :]          # phase (1,1)
            sacc = jnp.dot(xs.reshape(m, c_in), ws_ref[...],
                           preferred_element_type=jnp.float32)
            sc_ref[...] = sacc.astype(sc_ref.dtype)
            sts_ref[0, 0:2, :] = _stats_rows(sacc)

    if has_proj:
        return body

    def body_noproj(x_ref, w_ref, y_ref, st_ref):
        body(x_ref, w_ref, None, y_ref, st_ref, None, None)
    return body_noproj


def _make_conv2_kernel(ho, wo, c_in, c_out):
    """conv2: fused BN1-apply + ReLU prologue, then 3x3/stride-1 conv.

    The prologue writes relu(y1*scale1+shift1) once into a zero-bordered VMEM
    scratch, which realizes conv2's spatial zero padding in post-BN space.
    """
    m = ho * wo
    hp, wp = ho + 2, wo + 2

    def body(y1_ref, scale_ref, shift_ref, w_ref, y_ref, st_ref, hpad):
        # Zero the whole scratch every step (required: with a "parallel" grid
        # each TensorCore owns its own scratch instance).
        hpad[...] = jnp.zeros((hp, wp, c_in), jnp.bfloat16)
        act = jnp.maximum(
            y1_ref[0].astype(jnp.float32) * scale_ref[...].reshape(1, 1, c_in)
            + shift_ref[...].reshape(1, 1, c_in), 0.0)
        hpad[1:ho + 1, 1:wo + 1, :] = act.astype(jnp.bfloat16)

        acc = jnp.zeros((m, c_out), jnp.float32)
        for dy in range(3):
            for dx in range(3):
                a = hpad[dy:dy + ho, dx:dx + wo, :].reshape(m, c_in)
                acc = acc + jnp.dot(a, w_ref[dy * 3 + dx],
                                    preferred_element_type=jnp.float32)
        y_ref[...] = acc.astype(y_ref.dtype)
        st_ref[0, 0:2, :] = _stats_rows(acc)

    return body


def _finalize_id_kernel(y_ref, scale_ref, shift_ref, res_ref, o_ref):
    """out = relu(bn2(conv2) + x)   (identity shortcut); f32 VPU math."""
    o_ref[...] = jnp.maximum(
        y_ref[...].astype(jnp.float32) * scale_ref[...] + shift_ref[...]
        + res_ref[...].astype(jnp.float32), 0.0)


def _finalize_proj_kernel(y_ref, scale_ref, shift_ref, sc_ref, ss_ref, ts_ref,
                          o_ref):
    """out = relu(bn2(conv2) + bn_s(conv1x1_s(x)))   (projection shortcut)."""
    sc = sc_ref[...].astype(jnp.float32) * ss_ref[...] + ts_ref[...]
    o_ref[...] = jnp.maximum(
        y_ref[...].astype(jnp.float32) * scale_ref[...] + shift_ref[...] + sc,
        0.0)


# ---------------------------- pallas_call wrappers ----------------------------

def _conv1(phases, w1, w_sc, stride, ho, wo):
    n, nph, ph_h, ph_w, c_in = phases.shape
    c_out = w1.shape[-1]
    m = ho * wo
    has_proj = w_sc is not None
    kernel = _make_conv1_kernel(stride, ho, wo, c_in, c_out, has_proj)

    in_specs = [
        pl.BlockSpec((1, nph, ph_h, ph_w, c_in), lambda i: (i, 0, 0, 0, 0)),
        pl.BlockSpec((9, c_in, c_out), lambda i: (0, 0, 0)),
    ]
    out_specs = [
        pl.BlockSpec((1, ho, wo, c_out), lambda i: (i, 0, 0, 0)),
        pl.BlockSpec((1, STATS_ROWS, c_out), lambda i: (i, 0, 0)),
    ]
    out_shape = [
        jax.ShapeDtypeStruct((n, ho, wo, c_out), jnp.bfloat16),
        jax.ShapeDtypeStruct((n, STATS_ROWS, c_out), jnp.float32),
    ]
    args = [phases, w1]
    if has_proj:
        in_specs.append(pl.BlockSpec((c_in, c_out), lambda i: (0, 0)))
        out_specs += [pl.BlockSpec((m, c_out), lambda i: (i, 0)),
                      pl.BlockSpec((1, STATS_ROWS, c_out), lambda i: (i, 0, 0))]
        out_shape += [jax.ShapeDtypeStruct((n * m, c_out), jnp.bfloat16),
                      jax.ShapeDtypeStruct((n, STATS_ROWS, c_out), jnp.float32)]
        args.append(w_sc)

    return pl.pallas_call(
        kernel,
        grid=(n,),
        in_specs=in_specs,
        out_specs=tuple(out_specs),
        out_shape=tuple(out_shape),
        compiler_params=_cparams(),
    )(*args)


def _conv2(y1, scale1, shift1, w2):
    n, ho, wo, c_in = y1.shape
    c_out = w2.shape[-1]
    m = ho * wo
    kernel = _make_conv2_kernel(ho, wo, c_in, c_out)
    return pl.pallas_call(
        kernel,
        grid=(n,),
        in_specs=[
            pl.BlockSpec((1, ho, wo, c_in), lambda i: (i, 0, 0, 0)),
            pl.BlockSpec((1, c_in), lambda i: (0, 0)),
            pl.BlockSpec((1, c_in), lambda i: (0, 0)),
            pl.BlockSpec((9, c_in, c_out), lambda i: (0, 0, 0)),
        ],
        out_specs=(pl.BlockSpec((m, c_out), lambda i: (i, 0)),
                   pl.BlockSpec((1, STATS_ROWS, c_out), lambda i: (i, 0, 0))),
        out_shape=(jax.ShapeDtypeStruct((n * m, c_out), jnp.bfloat16),
                   jax.ShapeDtypeStruct((n, STATS_ROWS, c_out), jnp.float32)),
        scratch_shapes=[pltpu.VMEM((ho + 2, wo + 2, c_in), jnp.bfloat16)],
        compiler_params=_cparams(),
    )(y1, scale1, shift1, w2)


def _pick_row_tile(m, cap=ELEM_TILE_CAP):
    """Largest row tile <= cap that exactly divides m (full array if m <= cap)."""
    if m <= cap:
        return m
    best, t = m, 8
    while t <= cap:
        if m % t == 0:
            best = t
        t += 8
    return best if best <= cap else m


def _finalize_id(y2, scale2, shift2, res):
    m, c = y2.shape
    t = _pick_row_tile(m)
    row = lambda: pl.BlockSpec((t, c), lambda i: (i, 0))
    vec = lambda: pl.BlockSpec((1, c), lambda i: (0, 0))
    return pl.pallas_call(
        _finalize_id_kernel,
        grid=(m // t,),
        in_specs=[row(), vec(), vec(), row()],
        out_specs=row(),
        out_shape=jax.ShapeDtypeStruct((m, c), jnp.float32),
        compiler_params=_cparams(),
    )(y2, scale2, shift2, res)


def _finalize_proj(y2, scale2, shift2, sc, scale_s, shift_s):
    m, c = y2.shape
    t = _pick_row_tile(m)
    row = lambda: pl.BlockSpec((t, c), lambda i: (i, 0))
    vec = lambda: pl.BlockSpec((1, c), lambda i: (0, 0))
    return pl.pallas_call(
        _finalize_proj_kernel,
        grid=(m // t,),
        in_specs=[row(), vec(), vec(), row(), vec(), vec()],
        out_specs=row(),
        out_shape=jax.ShapeDtypeStruct((m, c), jnp.float32),
        compiler_params=_cparams(),
    )(y2, scale2, shift2, sc, scale_s, shift_s)


# ------------------------------ glue / wrapper --------------------------------

def _fold_bn(stats, m, gamma, beta):
    """Fold per-image partial sums into BN scale/shift (exact biased batch stats).

    NOTE: one-pass E[x^2]-E[x]^2 variance; fine here (near-zero-mean conv
    outputs), would need a shifted/two-pass form for large-mean activations.
    """
    s1 = jnp.sum(stats[:, 0, :], axis=0)
    s2 = jnp.sum(stats[:, 1, :], axis=0)
    mean = s1 / m
    var = jnp.maximum(s2 / m - mean * mean, 0.0)
    scale = gamma.astype(jnp.float32) * lax.rsqrt(var + EPS)
    shift = beta.astype(jnp.float32) - mean * scale
    return scale.reshape(1, -1), shift.reshape(1, -1)


def basic_block_forward(x_nchw, params, stride=1):
    n, c_in, h, w = x_nchw.shape
    c1 = params["w1"].shape[-1]
    ho = (h + 2 - 3) // stride + 1
    wo = (w + 2 - 3) // stride + 1
    m = n * ho * wo
    has_proj = (stride != 1) or (c_in != c1)

    x_nhwc = jnp.transpose(x_nchw, (0, 2, 3, 1))
    x_bf = x_nhwc.astype(jnp.bfloat16)

    # conv1 input: padded NHWC; for stride 2 split into 4 even/odd phases so
    # every in-kernel tap is a contiguous static slice (no strided VMEM reads).
    if stride == 1:
        xpad = jnp.pad(x_bf, ((0, 0), (1, 1), (1, 1), (0, 0)))
        phases = xpad[:, None]                                   # (N,1,H+2,W+2,C)
    else:
        assert stride == 2, "BasicBlock only uses stride 1 or 2"
        xpad = jnp.pad(x_bf, ((0, 0),
                              (1, 1 + (h % 2)), (1, 1 + (w % 2)), (0, 0)))
        phases = jnp.stack([xpad[:, a::2, b::2, :]
                            for a in range(2) for b in range(2)], axis=1)

    w1 = params["w1"].reshape(9, c_in, c1).astype(jnp.bfloat16)
    w_sc = (params["ws"].reshape(c_in, c1).astype(jnp.bfloat16)
            if has_proj else None)

    # ---- conv1 (+ fused projection-shortcut conv) + BN partial stats ---------
    outs = _conv1(phases, w1, w_sc, stride, ho, wo)
    if has_proj:
        y1, st1, sc, sts = outs
    else:
        y1, st1 = outs
    scale1, shift1 = _fold_bn(st1, m, params["g1"], params["b1"])

    # ---- conv2 with fused BN1-apply + ReLU prologue + BN2 partial stats ------
    w2 = params["w2"].reshape(9, c1, c1).astype(jnp.bfloat16)
    y2, st2 = _conv2(y1, scale1, shift1, w2)
    scale2, shift2 = _fold_bn(st2, m, params["g2"], params["b2"])

    # ---- BN2 apply + residual add + ReLU --------------------------------------
    if has_proj:
        scale_s, shift_s = _fold_bn(sts, m, params["gs"], params["bs"])
        out = _finalize_proj(y2, scale2, shift2, sc, scale_s, shift_s)
    else:
        res = x_bf.reshape(m, c_in)
        out = _finalize_id(y2, scale2, shift2, res)

    out = out.reshape(n, ho, wo, c1)
    # TODO(synk): keep bf16/NHWC when chaining blocks; NCHW f32 kept here to
    # match the standalone module interface.
    return jnp.transpose(out, (0, 3, 1, 2))


# ---------------------------- pure-JAX f32 reference ---------------------------

def _ref_bn(x_nchw, g, b):
    mu = jnp.mean(x_nchw, axis=(0, 2, 3), keepdims=True)
    var = jnp.mean((x_nchw - mu) ** 2, axis=(0, 2, 3), keepdims=True)
    return ((x_nchw - mu) * lax.rsqrt(var + EPS)
            * g.reshape(1, -1, 1, 1) + b.reshape(1, -1, 1, 1))


def basic_block_reference(x, params, stride=1):
    dn = ("NCHW", "OIHW", "NCHW")
    w1 = jnp.transpose(params["w1"], (3, 2, 0, 1))   # HWIO -> OIHW
    w2 = jnp.transpose(params["w2"], (3, 2, 0, 1))
    out = lax.conv_general_dilated(x, w1, (stride, stride), ((1, 1), (1, 1)),
                                   dimension_numbers=dn)
    out = jax.nn.relu(_ref_bn(out, params["g1"], params["b1"]))
    out = lax.conv_general_dilated(out, w2, (1, 1), ((1, 1), (1, 1)),
                                   dimension_numbers=dn)
    out = _ref_bn(out, params["g2"], params["b2"])
    c_in = x.shape[1]
    c_out = params["w1"].shape[-1]
    if stride != 1 or c_in != c_out:
        ws = jnp.transpose(params["ws"], (3, 2, 0, 1))
        sc = lax.conv_general_dilated(x, ws, (stride, stride), ((0, 0), (0, 0)),
                                      dimension_numbers=dn)
        sc = _ref_bn(sc, params["gs"], params["bs"])
    else:
        sc = x
    return jax.nn.relu(out + sc)


# ----------------------------------- main --------------------------------------

if __name__ == "__main__":
    def make_params(key, c_in, planes):
        ks = jax.random.split(key, 9)
        return {
            "w1": jax.random.normal(ks[0], (3, 3, c_in, planes), jnp.float32) * 0.1,
            "g1": 1.0 + 0.1 * jax.random.normal(ks[1], (planes,), jnp.float32),
            "b1": 0.1 * jax.random.normal(ks[2], (planes,), jnp.float32),
            "w2": jax.random.normal(ks[3], (3, 3, planes, planes), jnp.float32) * 0.1,
            "g2": 1.0 + 0.1 * jax.random.normal(ks[4], (planes,), jnp.float32),
            "b2": 0.1 * jax.random.normal(ks[5], (planes,), jnp.float32),
            "ws": jax.random.normal(ks[6], (1, 1, c_in, planes), jnp.float32) * 0.1,
            "gs": 1.0 + 0.1 * jax.random.normal(ks[7], (planes,), jnp.float32),
            "bs": 0.1 * jax.random.normal(ks[8], (planes,), jnp.float32),
        }

    fwd = jax.jit(basic_block_forward, static_argnames=("stride",))

    key = jax.random.PRNGKey(0)
    configs = [
        # (N, Cin, H, W, planes, stride)
        (2, 4, 16, 16, 8, 1),    # projection shortcut (Cin != planes)
        (2, 8, 16, 16, 8, 1),    # identity shortcut
        (2, 8, 16, 16, 16, 2),   # projection shortcut, stride 2 (phase path)
    ]
    for idx, (n, c_in, h, w, planes, stride) in enumerate(configs):
        kp, kx = jax.random.split(jax.random.fold_in(key, idx))
        params = make_params(kp, c_in, planes)
        x = jax.random.normal(kx, (n, c_in, h, w), jnp.float32)

        out = jax.block_until_ready(fwd(x, params, stride=stride))
        ref = jax.block_until_ready(basic_block_reference(x, params, stride))

        assert out.shape == ref.shape, (out.shape, ref.shape)
        max_err = float(jnp.max(jnp.abs(out - ref)))
        # bf16 MXU operands + bf16 intermediates (f32 accumulation / BN math)
        # vs. the all-f32 reference: tolerance sized for bf16 rounding through
        # two chained convs, two BN applies and the residual add.
        assert jnp.allclose(out, ref, atol=2e-1, rtol=1e-1), (idx, max_err)
    print("KERNEL_OK")
</pallas_src>

<mosaic_0001>
module attributes {stable_mosaic.version = 11 : i64} {
  func.func @body(%arg0: i32, %arg1: memref<1x1x18x18x4xbf16, #tpu.memory_space<vmem>>, %arg2: memref<9x4x8xbf16, #tpu.memory_space<vmem>>, %arg3: memref<4x8xbf16, #tpu.memory_space<vmem>>, %arg4: memref<1x16x16x8xbf16, #tpu.memory_space<vmem>>, %arg5: memref<1x8x8xf32, #tpu.memory_space<vmem>>, %arg6: memref<256x8xbf16, #tpu.memory_space<vmem>>, %arg7: memref<1x8x8xf32, #tpu.memory_space<vmem>>) attributes {dimension_semantics = [#tpu.dimension_semantics<parallel>], iteration_bounds = array<i64: 2>, scalar_prefetch = 0 : i64, scratch_operands = 0 : i64, tpu.core_type = #tpu.core_type<tc>, window_params = [{transform_indices = @transform_0, window_bounds = array<i64: 1, 1, 18, 18, 4>}, {pipeline_mode = #tpu.pipeline_mode<synchronous>, transform_indices = @transform_1, window_bounds = array<i64: 9, 4, 8>}, {pipeline_mode = #tpu.pipeline_mode<synchronous>, transform_indices = @transform_2, window_bounds = array<i64: 4, 8>}, {transform_indices = @transform_3, window_bounds = array<i64: 1, 16, 16, 8>}, {transform_indices = @transform_4, window_bounds = array<i64: 1, 8, 8>}, {transform_indices = @transform_5, window_bounds = array<i64: 256, 8>}, {transform_indices = @transform_6, window_bounds = array<i64: 1, 8, 8>}]} {
    %cst = arith.constant 0.000000e+00 : f32
    %0 = vector.broadcast %cst : f32 to vector<256x8xf32>
    %c0 = arith.constant 0 : index
    %c0_0 = arith.constant 0 : index
    %c0_1 = arith.constant 0 : index
    %c0_2 = arith.constant 0 : index
    %c0_3 = arith.constant 0 : index
    %1 = vector.load %arg1[%c0, %c0_0, %c0_1, %c0_2, %c0_3] : memref<1x1x18x18x4xbf16, #tpu.memory_space<vmem>>, vector<1x1x16x16x4xbf16>
    %2 = vector.shape_cast %1 : vector<1x1x16x16x4xbf16> to vector<16x16x4xbf16>
    %3 = vector.shape_cast %2 : vector<16x16x4xbf16> to vector<256x4xbf16>
    %c0_4 = arith.constant 0 : index
    %c0_5 = arith.constant 0 : index
    %c0_6 = arith.constant 0 : index
    %4 = vector.load %arg2[%c0_4, %c0_5, %c0_6] : memref<9x4x8xbf16, #tpu.memory_space<vmem>>, vector<1x4x8xbf16>
    %5 = vector.shape_cast %4 : vector<1x4x8xbf16> to vector<4x8xbf16>
    %cst_7 = arith.constant dense<0.000000e+00> : vector<256x8xf32>
    %6 = tpu.matmul %3, %5, %cst_7 {dimension_numbers = #tpu.dot_dimension_numbers<[1], [0], [0], [1], [0, 0, 1, 1], [], []>} : vector<256x4xbf16>, vector<4x8xbf16>, vector<256x8xf32> -> vector<256x8xf32>
    %7 = arith.addf %0, %6 : vector<256x8xf32>
    %c0_8 = arith.constant 0 : index
    %c0_9 = arith.constant 0 : index
    %c0_10 = arith.constant 0 : index
    %c1 = arith.constant 1 : index
    %c0_11 = arith.constant 0 : index
    %8 = vector.load %arg1[%c0_8, %c0_9, %c0_10, %c1, %c0_11] : memref<1x1x18x18x4xbf16, #tpu.memory_space<vmem>>, vector<1x1x16x16x4xbf16>
    %9 = vector.shape_cast %8 : vector<1x1x16x16x4xbf16> to vector<16x16x4xbf16>
    %10 = vector.shape_cast %9 : vector<16x16x4xbf16> to vector<256x4xbf16>
    %c1_12 = arith.constant 1 : index
    %c0_13 = arith.constant 0 : index
    %c0_14 = arith.constant 0 : index
    %11 = vector.load %arg2[%c1_12, %c0_13, %c0_14] : memref<9x4x8xbf16, #tpu.memory_space<vmem>>, vector<1x4x8xbf16>
    %12 = vector.shape_cast %11 : vector<1x4x8xbf16> to vector<4x8xbf16>
    %cst_15 = arith.constant dense<0.000000e+00> : vector<256x8xf32>
    %13 = tpu.matmul %10, %12, %cst_15 {dimension_numbers = #tpu.dot_dimension_numbers<[1], [0], [0], [1], [0, 0, 1, 1], [], []>} : vector<256x4xbf16>, vector<4x8xbf16>, vector<256x8xf32> -> vector<256x8xf32>
    %14 = arith.addf %7, %13 : vector<256x8xf32>
    %c0_16 = arith.constant 0 : index
    %c0_17 = arith.constant 0 : index
    %c0_18 = arith.constant 0 : index
    %c2 = arith.constant 2 : index
    %c0_19 = arith.constant 0 : index
    %15 = vector.load %arg1[%c0_16, %c0_17, %c0_18, %c2, %c0_19] : memref<1x1x18x18x4xbf16, #tpu.memory_space<vmem>>, vector<1x1x16x16x4xbf16>
    %16 = vector.shape_cast %15 : vector<1x1x16x16x4xbf16> to vector<16x16x4xbf16>
    %17 = vector.shape_cast %16 : vector<16x16x4xbf16> to vector<256x4xbf16>
    %c2_20 = arith.constant 2 : index
    %c0_21 = arith.constant 0 : index
    %c0_22 = arith.constant 0 : index
    %18 = vector.load %arg2[%c2_20, %c0_21, %c0_22] : memref<9x4x8xbf16, #tpu.memory_space<vmem>>, vector<1x4x8xbf16>
    %19 = vector.shape_cast %18 : vector<1x4x8xbf16> to vector<4x8xbf16>
    %cst_23 = arith.constant dense<0.000000e+00> : vector<256x8xf32>
    %20 = tpu.matmul %17, %19, %cst_23 {dimension_numbers = #tpu.dot_dimension_numbers<[1], [0], [0], [1], [0, 0, 1, 1], [], []>} : vector<256x4xbf16>, vector<4x8xbf16>, vector<256x8xf32> -> vector<256x8xf32>
    %21 = arith.addf %14, %20 : vector<256x8xf32>
    %c0_24 = arith.constant 0 : index
    %c0_25 = arith.constant 0 : index
    %c1_26 = arith.constant 1 : index
    %c0_27 = arith.constant 0 : index
    %c0_28 = arith.constant 0 : index
    %22 = vector.load %arg1[%c0_24, %c0_25, %c1_26, %c0_27, %c0_28] : memref<1x1x18x18x4xbf16, #tpu.memory_space<vmem>>, vector<1x1x16x16x4xbf16>
    %23 = vector.shape_cast %22 : vector<1x1x16x16x4xbf16> to vector<16x16x4xbf16>
    %24 = vector.shape_cast %23 : vector<16x16x4xbf16> to vector<256x4xbf16>
    %c3 = arith.constant 3 : index
    %c0_29 = arith.constant 0 : index
    %c0_30 = arith.constant 0 : index
    %25 = vector.load %arg2[%c3, %c0_29, %c0_30] : memref<9x4x8xbf16, #tpu.memory_space<vmem>>, vector<1x4x8xbf16>
    %26 = vector.shape_cast %25 : vector<1x4x8xbf16> to vector<4x8xbf16>
    %cst_31 = arith.constant dense<0.000000e+00> : vector<256x8xf32>
    %27 = tpu.matmul %24, %26, %cst_31 {dimension_numbers = #tpu.dot_dimension_numbers<[1], [0], [0], [1], [0, 0, 1, 1], [], []>} : vector<256x4xbf16>, vector<4x8xbf16>, vector<256x8xf32> -> vector<256x8xf32>
    %28 = arith.addf %21, %27 : vector<256x8xf32>
    %c0_32 = arith.constant 0 : index
    %c0_33 = arith.constant 0 : index
    %c1_34 = arith.constant 1 : index
    %c1_35 = arith.constant 1 : index
    %c0_36 = arith.constant 0 : index
    %29 = vector.load %arg1[%c0_32, %c0_33, %c1_34, %c1_35, %c0_36] : memref<1x1x18x18x4xbf16, #tpu.memory_space<vmem>>, vector<1x1x16x16x4xbf16>
    %30 = vector.shape_cast %29 : vector<1x1x16x16x4xbf16> to vector<16x16x4xbf16>
    %31 = vector.shape_cast %30 : vector<16x16x4xbf16> to vector<256x4xbf16>
    %c4 = arith.constant 4 : index
    %c0_37 = arith.constant 0 : index
    %c0_38 = arith.constant 0 : index
    %32 = vector.load %arg2[%c4, %c0_37, %c0_38] : memref<9x4x8xbf16, #tpu.memory_space<vmem>>, vector<1x4x8xbf16>
    %33 = vector.shape_cast %32 : vector<1x4x8xbf16> to vector<4x8xbf16>
    %cst_39 = arith.constant dense<0.000000e+00> : vector<256x8xf32>
    %34 = tpu.matmul %31, %33, %cst_39 {dimension_numbers = #tpu.dot_dimension_numbers<[1], [0], [0], [1], [0, 0, 1, 1], [], []>} : vector<256x4xbf16>, vector<4x8xbf16>, vector<256x8xf32> -> vector<256x8xf32>
    %35 = arith.addf %28, %34 : vector<256x8xf32>
    %c0_40 = arith.constant 0 : index
    %c0_41 = arith.constant 0 : index
    %c1_42 = arith.constant 1 : index
    %c2_43 = arith.constant 2 : index
    %c0_44 = arith.constant 0 : index
    %36 = vector.load %arg1[%c0_40, %c0_41, %c1_42, %c2_43, %c0_44] : memref<1x1x18x18x4xbf16, #tpu.memory_space<vmem>>, vector<1x1x16x16x4xbf16>
    %37 = vector.shape_cast %36 : vector<1x1x16x16x4xbf16> to vector<16x16x4xbf16>
    %38 = vector.shape_cast %37 : vector<16x16x4xbf16> to vector<256x4xbf16>
    %c5 = arith.constant 5 : index
    %c0_45 = arith.constant 0 : index
    %c0_46 = arith.constant 0 : index
    %39 = vector.load %arg2[%c5, %c0_45, %c0_46] : memref<9x4x8xbf16, #tpu.memory_space<vmem>>, vector<1x4x8xbf16>
    %40 = vector.shape_cast %39 : vector<1x4x8xbf16> to vector<4x8xbf16>
    %cst_47 = arith.constant dense<0.000000e+00> : vector<256x8xf32>
    %41 = tpu.matmul %38, %40, %cst_47 {dimension_numbers = #tpu.dot_dimension_numbers<[1], [0], [0], [1], [0, 0, 1, 1], [], []>} : vector<256x4xbf16>, vector<4x8xbf16>, vector<256x8xf32> -> vector<256x8xf32>
    %42 = arith.addf %35, %41 : vector<256x8xf32>
    %c0_48 = arith.constant 0 : index
    %c0_49 = arith.constant 0 : index
    %c2_50 = arith.constant 2 : index
    %c0_51 = arith.constant 0 : index
    %c0_52 = arith.constant 0 : index
    %43 = vector.load %arg1[%c0_48, %c0_49, %c2_50, %c0_51, %c0_52] : memref<1x1x18x18x4xbf16, #tpu.memory_space<vmem>>, vector<1x1x16x16x4xbf16>
    %44 = vector.shape_cast %43 : vector<1x1x16x16x4xbf16> to vector<16x16x4xbf16>
    %45 = vector.shape_cast %44 : vector<16x16x4xbf16> to vector<256x4xbf16>
    %c6 = arith.constant 6 : index
    %c0_53 = arith.constant 0 : index
    %c0_54 = arith.constant 0 : index
    %46 = vector.load %arg2[%c6, %c0_53, %c0_54] : memref<9x4x8xbf16, #tpu.memory_space<vmem>>, vector<1x4x8xbf16>
    %47 = vector.shape_cast %46 : vector<1x4x8xbf16> to vector<4x8xbf16>
    %cst_55 = arith.constant dense<0.000000e+00> : vector<256x8xf32>
    %48 = tpu.matmul %45, %47, %cst_55 {dimension_numbers = #tpu.dot_dimension_numbers<[1], [0], [0], [1], [0, 0, 1, 1], [], []>} : vector<256x4xbf16>, vector<4x8xbf16>, vector<256x8xf32> -> vector<256x8xf32>
    %49 = arith.addf %42, %48 : vector<256x8xf32>
    %c0_56 = arith.constant 0 : index
    %c0_57 = arith.constant 0 : index
    %c2_58 = arith.constant 2 : index
    %c1_59 = arith.constant 1 : index
    %c0_60 = arith.constant 0 : index
    %50 = vector.load %arg1[%c0_56, %c0_57, %c2_58, %c1_59, %c0_60] : memref<1x1x18x18x4xbf16, #tpu.memory_space<vmem>>, vector<1x1x16x16x4xbf16>
    %51 = vector.shape_cast %50 : vector<1x1x16x16x4xbf16> to vector<16x16x4xbf16>
    %52 = vector.shape_cast %51 : vector<16x16x4xbf16> to vector<256x4xbf16>
    %c7 = arith.constant 7 : index
    %c0_61 = arith.constant 0 : index
    %c0_62 = arith.constant 0 : index
    %53 = vector.load %arg2[%c7, %c0_61, %c0_62] : memref<9x4x8xbf16, #tpu.memory_space<vmem>>, vector<1x4x8xbf16>
    %54 = vector.shape_cast %53 : vector<1x4x8xbf16> to vector<4x8xbf16>
    %cst_63 = arith.constant dense<0.000000e+00> : vector<256x8xf32>
    %55 = tpu.matmul %52, %54, %cst_63 {dimension_numbers = #tpu.dot_dimension_numbers<[1], [0], [0], [1], [0, 0, 1, 1], [], []>} : vector<256x4xbf16>, vector<4x8xbf16>, vector<256x8xf32> -> vector<256x8xf32>
    %56 = arith.addf %49, %55 : vector<256x8xf32>
    %c0_64 = arith.constant 0 : index
    %c0_65 = arith.constant 0 : index
    %c2_66 = arith.constant 2 : index
    %c2_67 = arith.constant 2 : index
    %c0_68 = arith.constant 0 : index
    %57 = vector.load %arg1[%c0_64, %c0_65, %c2_66, %c2_67, %c0_68] : memref<1x1x18x18x4xbf16, #tpu.memory_space<vmem>>, vector<1x1x16x16x4xbf16>
    %58 = vector.shape_cast %57 : vector<1x1x16x16x4xbf16> to vector<16x16x4xbf16>
    %59 = vector.shape_cast %58 : vector<16x16x4xbf16> to vector<256x4xbf16>
    %c8 = arith.constant 8 : index
    %c0_69 = arith.constant 0 : index
    %c0_70 = arith.constant 0 : index
    %60 = vector.load %arg2[%c8, %c0_69, %c0_70] : memref<9x4x8xbf16, #tpu.memory_space<vmem>>, vector<1x4x8xbf16>
    %61 = vector.shape_cast %60 : vector<1x4x8xbf16> to vector<4x8xbf16>
    %cst_71 = arith.constant dense<0.000000e+00> : vector<256x8xf32>
    %62 = tpu.matmul %59, %61, %cst_71 {dimension_numbers = #tpu.dot_dimension_numbers<[1], [0], [0], [1], [0, 0, 1, 1], [], []>} : vector<256x4xbf16>, vector<4x8xbf16>, vector<256x8xf32> -> vector<256x8xf32>
    %63 = arith.addf %56, %62 : vector<256x8xf32>
    %64 = vector.shape_cast %63 : vector<256x8xf32> to vector<16x16x8xf32>
    %65 = arith.truncf %64 : vector<16x16x8xf32> to vector<16x16x8xbf16>
    %c0_72 = arith.constant 0 : index
    %c0_73 = arith.constant 0 : index
    %c0_74 = arith.constant 0 : index
    %c0_75 = arith.constant 0 : index
    %66 = vector.load %arg4[%c0_72, %c0_73, %c0_74, %c0_75] : memref<1x16x16x8xbf16, #tpu.memory_space<vmem>>, vector<1x16x16x8xbf16>
    %67 = vector.shape_cast %66 : vector<1x16x16x8xbf16> to vector<16x16x8xbf16>
    %68 = vector.shape_cast %65 : vector<16x16x8xbf16> to vector<1x16x16x8xbf16>
    tpu.vector_store %arg4[%c0_72, %c0_73, %c0_74, %c0_75], %68 {strides = array<i32>} : memref<1x16x16x8xbf16, #tpu.memory_space<vmem>>, vector<1x16x16x8xbf16>,
    %cst_76 = arith.constant dense<0.000000e+00> : vector<8xf32>
    %69 = vector.multi_reduction <add>, %63, %cst_76 [0] : vector<256x8xf32> to vector<8xf32>
    %70 = vector.shape_cast %69 : vector<8xf32> to vector<1x8xf32>
    %71 = arith.mulf %63, %63 : vector<256x8xf32>
    %cst_77 = arith.constant dense<0.000000e+00> : vector<8xf32>
    %72 = vector.multi_reduction <add>, %71, %cst_77 [0] : vector<256x8xf32> to vector<8xf32>
    %73 = vector.shape_cast %72 : vector<8xf32> to vector<1x8xf32>
    %74 = tpu.concatenate %70, %73 in 0 : vector<1x8xf32>, vector<1x8xf32> -> vector<2x8xf32>
    %c0_78 = arith.constant 0 : index
    %c0_79 = arith.constant 0 : index
    %c0_80 = arith.constant 0 : index
    %75 = vector.load %arg5[%c0_78, %c0_79, %c0_80] : memref<1x8x8xf32, #tpu.memory_space<vmem>>, vector<1x2x8xf32>
    %76 = vector.shape_cast %75 : vector<1x2x8xf32> to vector<2x8xf32>
    %77 = vector.shape_cast %74 : vector<2x8xf32> to vector<1x2x8xf32>
    tpu.vector_store %arg5[%c0_78, %c0_79, %c0_80], %77 {strides = array<i32>} : memref<1x8x8xf32, #tpu.memory_space<vmem>>, vector<1x2x8xf32>,
    %c0_81 = arith.constant 0 : index
    %c0_82 = arith.constant 0 : index
    %c1_83 = arith.constant 1 : index
    %c1_84 = arith.constant 1 : index
    %c0_85 = arith.constant 0 : index
    %78 = vector.load %arg1[%c0_81, %c0_82, %c1_83, %c1_84, %c0_85] : memref<1x1x18x18x4xbf16, #tpu.memory_space<vmem>>, vector<1x1x16x16x4xbf16>
    %79 = vector.shape_cast %78 : vector<1x1x16x16x4xbf16> to vector<16x16x4xbf16>
    %80 = vector.shape_cast %79 : vector<16x16x4xbf16> to vector<256x4xbf16>
    %c0_86 = arith.constant 0 : index
    %c0_87 = arith.constant 0 : index
    %81 = vector.load %arg3[%c0_86, %c0_87] : memref<4x8xbf16, #tpu.memory_space<vmem>>, vector<4x8xbf16>
    %cst_88 = arith.constant dense<0.000000e+00> : vector<256x8xf32>
    %82 = tpu.matmul %80, %81, %cst_88 {dimension_numbers = #tpu.dot_dimension_numbers<[1], [0], [0], [1], [0, 0, 1, 1], [], []>} : vector<256x4xbf16>, vector<4x8xbf16>, vector<256x8xf32> -> vector<256x8xf32>
    %83 = arith.truncf %82 : vector<256x8xf32> to vector<256x8xbf16>
    %c0_89 = arith.constant 0 : index
    %c0_90 = arith.constant 0 : index
    %84 = vector.load %arg6[%c0_89, %c0_90] : memref<256x8xbf16, #tpu.memory_space<vmem>>, vector<256x8xbf16>
    tpu.vector_store %arg6[%c0_89, %c0_90], %83 {strides = array<i32>} : memref<256x8xbf16, #tpu.memory_space<vmem>>, vector<256x8xbf16>,
    %cst_91 = arith.constant dense<0.000000e+00> : vector<8xf32>
    %85 = vector.multi_reduction <add>, %82, %cst_91 [0] : vector<256x8xf32> to vector<8xf32>
    %86 = vector.shape_cast %85 : vector<8xf32> to vector<1x8xf32>
    %87 = arith.mulf %82, %82 : vector<256x8xf32>
    %cst_92 = arith.constant dense<0.000000e+00> : vector<8xf32>
    %88 = vector.multi_reduction <add>, %87, %cst_92 [0] : vector<256x8xf32> to vector<8xf32>
    %89 = vector.shape_cast %88 : vector<8xf32> to vector<1x8xf32>
    %90 = tpu.concatenate %86, %89 in 0 : vector<1x8xf32>, vector<1x8xf32> -> vector<2x8xf32>
    %c0_93 = arith.constant 0 : index
    %c0_94 = arith.constant 0 : index
    %c0_95 = arith.constant 0 : index
    %91 = vector.load %arg7[%c0_93, %c0_94, %c0_95] : memref<1x8x8xf32, #tpu.memory_space<vmem>>, vector<1x2x8xf32>
    %92 = vector.shape_cast %91 : vector<1x2x8xf32> to vector<2x8xf32>
    %93 = vector.shape_cast %90 : vector<2x8xf32> to vector<1x2x8xf32>
    tpu.vector_store %arg7[%c0_93, %c0_94, %c0_95], %93 {strides = array<i32>} : memref<1x8x8xf32, #tpu.memory_space<vmem>>, vector<1x2x8xf32>,
    return
  }
  func.func @transform_0(%arg0: i32) -> (i32, i32, i32, i32, i32) {
    %c0_i32 = arith.constant 0 : i32
    %c0_i32_0 = arith.constant 0 : i32
    %c0_i32_1 = arith.constant 0 : i32
    %c0_i32_2 = arith.constant 0 : i32
    %c0_i32_3 = arith.constant 0 : i32
    return %arg0, %c0_i32, %c0_i32_0, %c0_i32_1, %c0_i32_2 : i32, i32, i32, i32, i32
  }
  func.func @transform_1(%arg0: i32) -> (i32, i32, i32) {
    %c0_i32 = arith.constant 0 : i32
    %c0_i32_0 = arith.constant 0 : i32
    %c0_i32_1 = arith.constant 0 : i32
    %c0_i32_2 = arith.constant 0 : i32
    return %c0_i32, %c0_i32_0, %c0_i32_1 : i32, i32, i32
  }
  func.func @transform_2(%arg0: i32) -> (i32, i32) {
    %c0_i32 = arith.constant 0 : i32
    %c0_i32_0 = arith.constant 0 : i32
    %c0_i32_1 = arith.constant 0 : i32
    return %c0_i32, %c0_i32_0 : i32, i32
  }
  func.func @transform_3(%arg0: i32) -> (i32, i32, i32, i32) {
    %c0_i32 = arith.constant 0 : i32
    %c0_i32_0 = arith.constant 0 : i32
    %c0_i32_1 = arith.constant 0 : i32
    %c0_i32_2 = arith.constant 0 : i32
    return %arg0, %c0_i32, %c0_i32_0, %c0_i32_1 : i32, i32, i32, i32
  }
  func.func @transform_4(%arg0: i32) -> (i32, i32, i32) {
    %c0_i32 = arith.constant 0 : i32
    %c0_i32_0 = arith.constant 0 : i32
    %c0_i32_1 = arith.constant 0 : i32
    return %arg0, %c0_i32, %c0_i32_0 : i32, i32, i32
  }
  func.func @transform_5(%arg0: i32) -> (i32, i32) {
    %c0_i32 = arith.constant 0 : i32
    %c0_i32_0 = arith.constant 0 : i32
    return %arg0, %c0_i32 : i32, i32
  }
  func.func @transform_6(%arg0: i32) -> (i32, i32, i32) {
    %c0_i32 = arith.constant 0 : i32
    %c0_i32_0 = arith.constant 0 : i32
    %c0_i32_1 = arith.constant 0 : i32
    return %arg0, %c0_i32, %c0_i32_0 : i32, i32, i32
  }
}

module attributes {stable_mosaic.version = 11 : i64} {
  func.func @_finalize_proj_kernel(%arg0: i32, %arg1: memref<512x8xbf16, #tpu.memory_space<vmem>>, %arg2: memref<1x8xf32, #tpu.memory_space<vmem>>, %arg3: memref<1x8xf32, #tpu.memory_space<vmem>>, %arg4: memref<512x8xbf16, #tpu.memory_space<vmem>>, %arg5: memref<1x8xf32, #tpu.memory_space<vmem>>, %arg6: memref<1x8xf32, #tpu.memory_space<vmem>>, %arg7: memref<512x8xf32, #tpu.memory_space<vmem>>) attributes {dimension_semantics = [#tpu.dimension_semantics<parallel>], iteration_bounds = array<i64: 1>, scalar_prefetch = 0 : i64, scratch_operands = 0 : i64, tpu.core_type = #tpu.core_type<tc>, window_params = [{transform_indices = @transform_0, window_bounds = array<i64: 512, 8>}, {pipeline_mode = #tpu.pipeline_mode<synchronous>, transform_indices = @transform_1, window_bounds = array<i64: 1, 8>}, {pipeline_mode = #tpu.pipeline_mode<synchronous>, transform_indices = @transform_2, window_bounds = array<i64: 1, 8>}, {transform_indices = @transform_3, window_bounds = array<i64: 512, 8>}, {pipeline_mode = #tpu.pipeline_mode<synchronous>, transform_indices = @transform_4, window_bounds = array<i64: 1, 8>}, {pipeline_mode = #tpu.pipeline_mode<synchronous>, transform_indices = @transform_5, window_bounds = array<i64: 1, 8>}, {transform_indices = @transform_6, window_bounds = array<i64: 512, 8>}]} {
    %c0 = arith.constant 0 : index
    %c0_0 = arith.constant 0 : index
    %0 = vector.load %arg4[%c0, %c0_0] : memref<512x8xbf16, #tpu.memory_space<vmem>>, vector<512x8xbf16>
    %1 = arith.extf %0 : vector<512x8xbf16> to vector<512x8xf32>
    %c0_1 = arith.constant 0 : index
    %c0_2 = arith.constant 0 : index
    %2 = vector.load %arg5[%c0_1, %c0_2] : memref<1x8xf32, #tpu.memory_space<vmem>>, vector<1x8xf32>
    %3 = vector.broadcast %2 : vector<1x8xf32> to vector<512x8xf32>
    %4 = arith.mulf %1, %3 : vector<512x8xf32>
    %c0_3 = arith.constant 0 : index
    %c0_4 = arith.constant 0 : index
    %5 = vector.load %arg6[%c0_3, %c0_4] : memref<1x8xf32, #tpu.memory_space<vmem>>, vector<1x8xf32>
    %6 = vector.broadcast %5 : vector<1x8xf32> to vector<512x8xf32>
    %7 = arith.addf %4, %6 : vector<512x8xf32>
    %c0_5 = arith.constant 0 : index
    %c0_6 = arith.constant 0 : index
    %8 = vector.load %arg1[%c0_5, %c0_6] : memref<512x8xbf16, #tpu.memory_space<vmem>>, vector<512x8xbf16>
    %9 = arith.extf %8 : vector<512x8xbf16> to vector<512x8xf32>
    %c0_7 = arith.constant 0 : index
    %c0_8 = arith.constant 0 : index
    %10 = vector.load %arg2[%c0_7, %c0_8] : memref<1x8xf32, #tpu.memory_space<vmem>>, vector<1x8xf32>
    %11 = vector.broadcast %10 : vector<1x8xf32> to vector<512x8xf32>
    %12 = arith.mulf %9, %11 : vector<512x8xf32>
    %c0_9 = arith.constant 0 : index
    %c0_10 = arith.constant 0 : index
    %13 = vector.load %arg3[%c0_9, %c0_10] : memref<1x8xf32, #tpu.memory_space<vmem>>, vector<1x8xf32>
    %14 = vector.broadcast %13 : vector<1x8xf32> to vector<512x8xf32>
    %15 = arith.addf %12, %14 : vector<512x8xf32>
    %16 = arith.addf %15, %7 : vector<512x8xf32>
    %cst = arith.constant 0.000000e+00 : f32
    %17 = vector.broadcast %cst : f32 to vector<512x8xf32>
    %18 = arith.maximumf %16, %17 : vector<512x8xf32>
    %c0_11 = arith.constant 0 : index
    %c0_12 = arith.constant 0 : index
    %19 = vector.load %arg7[%c0_11, %c0_12] : memref<512x8xf32, #tpu.memory_space<vmem>>, vector<512x8xf32>
    tpu.vector_store %arg7[%c0_11, %c0_12], %18 {strides = array<i32>} : memref<512x8xf32, #tpu.memory_space<vmem>>, vector<512x8xf32>,
    return
  }
  func.func @transform_0(%arg0: i32) -> (i32, i32) {
    %c0_i32 = arith.constant 0 : i32
    %c0_i32_0 = arith.constant 0 : i32
    return %arg0, %c0_i32 : i32, i32
  }
  func.func @transform_1(%arg0: i32) -> (i32, i32) {
    %c0_i32 = arith.constant 0 : i32
    %c0_i32_0 = arith.constant 0 : i32
    %c0_i32_1 = arith.constant 0 : i32
    return %c0_i32, %c0_i32_0 : i32, i32
  }
  func.func @transform_2(%arg0: i32) -> (i32, i32) {
    %c0_i32 = arith.constant 0 : i32
    %c0_i32_0 = arith.constant 0 : i32
    %c0_i32_1 = arith.constant 0 : i32
    return %c0_i32, %c0_i32_0 : i32, i32
  }
  func.func @transform_3(%arg0: i32) -> (i32, i32) {
    %c0_i32 = arith.constant 0 : i32
    %c0_i32_0 = arith.constant 0 : i32
    return %arg0, %c0_i32 : i32, i32
  }
  func.func @transform_4(%arg0: i32) -> (i32, i32) {
    %c0_i32 = arith.constant 0 : i32
    %c0_i32_0 = arith.constant 0 : i32
    %c0_i32_1 = arith.constant 0 : i32
    return %c0_i32, %c0_i32_0 : i32, i32
  }
  func.func @transform_5(%arg0: i32) -> (i32, i32) {
    %c0_i32 = arith.constant 0 : i32
    %c0_i32_0 = arith.constant 0 : i32
    %c0_i32_1 = arith.constant 0 : i32
    return %c0_i32, %c0_i32_0 : i32, i32
  }
  func.func @transform_6(%arg0: i32) -> (i32, i32) {
    %c0_i32 = arith.constant 0 : i32
    %c0_i32_0 = arith.constant 0 : i32
    return %arg0, %c0_i32 : i32, i32
  }
}

module attributes {stable_mosaic.version = 11 : i64} {
  func.func @body(%arg0: i32, %arg1: memref<1x16x16x8xbf16, #tpu.memory_space<vmem>>, %arg2: memref<1x8xf32, #tpu.memory_space<vmem>>, %arg3: memref<1x8xf32, #tpu.memory_space<vmem>>, %arg4: memref<9x8x8xbf16, #tpu.memory_space<vmem>>, %arg5: memref<256x8xbf16, #tpu.memory_space<vmem>>, %arg6: memref<1x8x8xf32, #tpu.memory_space<vmem>>, %arg7: memref<18x18x8xbf16, #tpu.memory_space<vmem>>) attributes {dimension_semantics = [#tpu.dimension_semantics<parallel>], iteration_bounds = array<i64: 2>, scalar_prefetch = 0 : i64, scratch_operands = 1 : i64, tpu.core_type = #tpu.core_type<tc>, window_params = [{transform_indices = @transform_0, window_bounds = array<i64: 1, 16, 16, 8>}, {pipeline_mode = #tpu.pipeline_mode<synchronous>, transform_indices = @transform_1, window_bounds = array<i64: 1, 8>}, {pipeline_mode = #tpu.pipeline_mode<synchronous>, transform_indices = @transform_2, window_bounds = array<i64: 1, 8>}, {pipeline_mode = #tpu.pipeline_mode<synchronous>, transform_indices = @transform_3, window_bounds = array<i64: 9, 8, 8>}, {transform_indices = @transform_4, window_bounds = array<i64: 256, 8>}, {transform_indices = @transform_5, window_bounds = array<i64: 1, 8, 8>}]} {
    %cst = arith.constant 0.000000e+00 : bf16
    %0 = vector.broadcast %cst : bf16 to vector<18x18x8xbf16>
    %c0 = arith.constant 0 : index
    %c0_0 = arith.constant 0 : index
    %c0_1 = arith.constant 0 : index
    %1 = vector.load %arg7[%c0, %c0_0, %c0_1] : memref<18x18x8xbf16, #tpu.memory_space<vmem>>, vector<18x18x8xbf16>
    tpu.vector_store %arg7[%c0, %c0_0, %c0_1], %0 {strides = array<i32>} : memref<18x18x8xbf16, #tpu.memory_space<vmem>>, vector<18x18x8xbf16>,
    %c0_2 = arith.constant 0 : index
    %c0_3 = arith.constant 0 : index
    %c0_4 = arith.constant 0 : index
    %c0_5 = arith.constant 0 : index
    %2 = vector.load %arg1[%c0_2, %c0_3, %c0_4, %c0_5] : memref<1x16x16x8xbf16, #tpu.memory_space<vmem>>, vector<1x16x16x8xbf16>
    %3 = vector.shape_cast %2 : vector<1x16x16x8xbf16> to vector<16x16x8xbf16>
    %4 = arith.extf %3 : vector<16x16x8xbf16> to vector<16x16x8xf32>
    %c0_6 = arith.constant 0 : index
    %c0_7 = arith.constant 0 : index
    %5 = vector.load %arg2[%c0_6, %c0_7] : memref<1x8xf32, #tpu.memory_space<vmem>>, vector<1x8xf32>
    %6 = vector.shape_cast %5 : vector<1x8xf32> to vector<1x1x8xf32>
    %7 = vector.broadcast %6 : vector<1x1x8xf32> to vector<16x16x8xf32>
    %8 = arith.mulf %4, %7 : vector<16x16x8xf32>
    %c0_8 = arith.constant 0 : index
    %c0_9 = arith.constant 0 : index
    %9 = vector.load %arg3[%c0_8, %c0_9] : memref<1x8xf32, #tpu.memory_space<vmem>>, vector<1x8xf32>
    %10 = vector.shape_cast %9 : vector<1x8xf32> to vector<1x1x8xf32>
    %11 = vector.broadcast %10 : vector<1x1x8xf32> to vector<16x16x8xf32>
    %12 = arith.addf %8, %11 : vector<16x16x8xf32>
    %cst_10 = arith.constant 0.000000e+00 : f32
    %13 = vector.broadcast %cst_10 : f32 to vector<16x16x8xf32>
    %14 = arith.maximumf %12, %13 : vector<16x16x8xf32>
    %15 = arith.truncf %14 : vector<16x16x8xf32> to vector<16x16x8xbf16>
    %c1 = arith.constant 1 : index
    %c1_11 = arith.constant 1 : index
    %c0_12 = arith.constant 0 : index
    %16 = vector.load %arg7[%c1, %c1_11, %c0_12] : memref<18x18x8xbf16, #tpu.memory_space<vmem>>, vector<16x16x8xbf16>
    tpu.vector_store %arg7[%c1, %c1_11, %c0_12], %15 {strides = array<i32>} : memref<18x18x8xbf16, #tpu.memory_space<vmem>>, vector<16x16x8xbf16>,
    %cst_13 = arith.constant 0.000000e+00 : f32
    %17 = vector.broadcast %cst_13 : f32 to vector<256x8xf32>
    %c0_14 = arith.constant 0 : index
    %c0_15 = arith.constant 0 : index
    %c0_16 = arith.constant 0 : index
    %18 = vector.load %arg7[%c0_14, %c0_15, %c0_16] : memref<18x18x8xbf16, #tpu.memory_space<vmem>>, vector<16x16x8xbf16>
    %19 = vector.shape_cast %18 : vector<16x16x8xbf16> to vector<256x8xbf16>
    %c0_17 = arith.constant 0 : index
    %c0_18 = arith.constant 0 : index
    %c0_19 = arith.constant 0 : index
    %20 = vector.load %arg4[%c0_17, %c0_18, %c0_19] : memref<9x8x8xbf16, #tpu.memory_space<vmem>>, vector<1x8x8xbf16>
    %21 = vector.shape_cast %20 : vector<1x8x8xbf16> to vector<8x8xbf16>
    %cst_20 = arith.constant dense<0.000000e+00> : vector<256x8xf32>
    %22 = tpu.matmul %19, %21, %cst_20 {dimension_numbers = #tpu.dot_dimension_numbers<[1], [0], [0], [1], [0, 0, 1, 1], [], []>} : vector<256x8xbf16>, vector<8x8xbf16>, vector<256x8xf32> -> vector<256x8xf32>
    %23 = arith.addf %17, %22 : vector<256x8xf32>
    %c0_21 = arith.constant 0 : index
    %c1_22 = arith.constant 1 : index
    %c0_23 = arith.constant 0 : index
    %24 = vector.load %arg7[%c0_21, %c1_22, %c0_23] : memref<18x18x8xbf16, #tpu.memory_space<vmem>>, vector<16x16x8xbf16>
    %25 = vector.shape_cast %24 : vector<16x16x8xbf16> to vector<256x8xbf16>
    %c1_24 = arith.constant 1 : index
    %c0_25 = arith.constant 0 : index
    %c0_26 = arith.constant 0 : index
    %26 = vector.load %arg4[%c1_24, %c0_25, %c0_26] : memref<9x8x8xbf16, #tpu.memory_space<vmem>>, vector<1x8x8xbf16>
    %27 = vector.shape_cast %26 : vector<1x8x8xbf16> to vector<8x8xbf16>
    %cst_27 = arith.constant dense<0.000000e+00> : vector<256x8xf32>
    %28 = tpu.matmul %25, %27, %cst_27 {dimension_numbers = #tpu.dot_dimension_numbers<[1], [0], [0], [1], [0, 0, 1, 1], [], []>} : vector<256x8xbf16>, vector<8x8xbf16>, vector<256x8xf32> -> vector<256x8xf32>
    %29 = arith.addf %23, %28 : vector<256x8xf32>
    %c0_28 = arith.constant 0 : index
    %c2 = arith.constant 2 : index
    %c0_29 = arith.constant 0 : index
    %30 = vector.load %arg7[%c0_28, %c2, %c0_29] : memref<18x18x8xbf16, #tpu.memory_space<vmem>>, vector<16x16x8xbf16>
    %31 = vector.shape_cast %30 : vector<16x16x8xbf16> to vector<256x8xbf16>
    %c2_30 = arith.constant 2 : index
    %c0_31 = arith.constant 0 : index
    %c0_32 = arith.constant 0 : index
    %32 = vector.load %arg4[%c2_30, %c0_31, %c0_32] : memref<9x8x8xbf16, #tpu.memory_space<vmem>>, vector<1x8x8xbf16>
    %33 = vector.shape_cast %32 : vector<1x8x8xbf16> to vector<8x8xbf16>
    %cst_33 = arith.constant dense<0.000000e+00> : vector<256x8xf32>
    %34 = tpu.matmul %31, %33, %cst_33 {dimension_numbers = #tpu.dot_dimension_numbers<[1], [0], [0], [1], [0, 0, 1, 1], [], []>} : vector<256x8xbf16>, vector<8x8xbf16>, vector<256x8xf32> -> vector<256x8xf32>
    %35 = arith.addf %29, %34 : vector<256x8xf32>
    %c1_34 = arith.constant 1 : index
    %c0_35 = arith.constant 0 : index
    %c0_36 = arith.constant 0 : index
    %36 = vector.load %arg7[%c1_34, %c0_35, %c0_36] : memref<18x18x8xbf16, #tpu.memory_space<vmem>>, vector<16x16x8xbf16>
    %37 = vector.shape_cast %36 : vector<16x16x8xbf16> to vector<256x8xbf16>
    %c3 = arith.constant 3 : index
    %c0_37 = arith.constant 0 : index
    %c0_38 = arith.constant 0 : index
    %38 = vector.load %arg4[%c3, %c0_37, %c0_38] : memref<9x8x8xbf16, #tpu.memory_space<vmem>>, vector<1x8x8xbf16>
    %39 = vector.shape_cast %38 : vector<1x8x8xbf16> to vector<8x8xbf16>
    %cst_39 = arith.constant dense<0.000000e+00> : vector<256x8xf32>
    %40 = tpu.matmul %37, %39, %cst_39 {dimension_numbers = #tpu.dot_dimension_numbers<[1], [0], [0], [1], [0, 0, 1, 1], [], []>} : vector<256x8xbf16>, vector<8x8xbf16>, vector<256x8xf32> -> vector<256x8xf32>
    %41 = arith.addf %35, %40 : vector<256x8xf32>
    %c1_40 = arith.constant 1 : index
    %c1_41 = arith.constant 1 : index
    %c0_42 = arith.constant 0 : index
    %42 = vector.load %arg7[%c1_40, %c1_41, %c0_42] : memref<18x18x8xbf16, #tpu.memory_space<vmem>>, vector<16x16x8xbf16>
    %43 = vector.shape_cast %42 : vector<16x16x8xbf16> to vector<256x8xbf16>
    %c4 = arith.constant 4 : index
    %c0_43 = arith.constant 0 : index
    %c0_44 = arith.constant 0 : index
    %44 = vector.load %arg4[%c4, %c0_43, %c0_44] : memref<9x8x8xbf16, #tpu.memory_space<vmem>>, vector<1x8x8xbf16>
    %45 = vector.shape_cast %44 : vector<1x8x8xbf16> to vector<8x8xbf16>
    %cst_45 = arith.constant dense<0.000000e+00> : vector<256x8xf32>
    %46 = tpu.matmul %43, %45, %cst_45 {dimension_numbers = #tpu.dot_dimension_numbers<[1], [0], [0], [1], [0, 0, 1, 1], [], []>} : vector<256x8xbf16>, vector<8x8xbf16>, vector<256x8xf32> -> vector<256x8xf32>
    %47 = arith.addf %41, %46 : vector<256x8xf32>
    %c1_46 = arith.constant 1 : index
    %c2_47 = arith.constant 2 : index
    %c0_48 = arith.constant 0 : index
    %48 = vector.load %arg7[%c1_46, %c2_47, %c0_48] : memref<18x18x8xbf16, #tpu.memory_space<vmem>>, vector<16x16x8xbf16>
    %49 = vector.shape_cast %48 : vector<16x16x8xbf16> to vector<256x8xbf16>
    %c5 = arith.constant 5 : index
    %c0_49 = arith.constant 0 : index
    %c0_50 = arith.constant 0 : index
    %50 = vector.load %arg4[%c5, %c0_49, %c0_50] : memref<9x8x8xbf16, #tpu.memory_space<vmem>>, vector<1x8x8xbf16>
    %51 = vector.shape_cast %50 : vector<1x8x8xbf16> to vector<8x8xbf16>
    %cst_51 = arith.constant dense<0.000000e+00> : vector<256x8xf32>
    %52 = tpu.matmul %49, %51, %cst_51 {dimension_numbers = #tpu.dot_dimension_numbers<[1], [0], [0], [1], [0, 0, 1, 1], [], []>} : vector<256x8xbf16>, vector<8x8xbf16>, vector<256x8xf32> -> vector<256x8xf32>
    %53 = arith.addf %47, %52 : vector<256x8xf32>
    %c2_52 = arith.constant 2 : index
    %c0_53 = arith.constant 0 : index
    %c0_54 = arith.constant 0 : index
    %54 = vector.load %arg7[%c2_52, %c0_53, %c0_54] : memref<18x18x8xbf16, #tpu.memory_space<vmem>>, vector<16x16x8xbf16>
    %55 = vector.shape_cast %54 : vector<16x16x8xbf16> to vector<256x8xbf16>
    %c6 = arith.constant 6 : index
    %c0_55 = arith.constant 0 : index
    %c0_56 = arith.constant 0 : index
    %56 = vector.load %arg4[%c6, %c0_55, %c0_56] : memref<9x8x8xbf16, #tpu.memory_space<vmem>>, vector<1x8x8xbf16>
    %57 = vector.shape_cast %56 : vector<1x8x8xbf16> to vector<8x8xbf16>
    %cst_57 = arith.constant dense<0.000000e+00> : vector<256x8xf32>
    %58 = tpu.matmul %55, %57, %cst_57 {dimension_numbers = #tpu.dot_dimension_numbers<[1], [0], [0], [1], [0, 0, 1, 1], [], []>} : vector<256x8xbf16>, vector<8x8xbf16>, vector<256x8xf32> -> vector<256x8xf32>
    %59 = arith.addf %53, %58 : vector<256x8xf32>
    %c2_58 = arith.constant 2 : index
    %c1_59 = arith.constant 1 : index
    %c0_60 = arith.constant 0 : index
    %60 = vector.load %arg7[%c2_58, %c1_59, %c0_60] : memref<18x18x8xbf16, #tpu.memory_space<vmem>>, vector<16x16x8xbf16>
    %61 = vector.shape_cast %60 : vector<16x16x8xbf16> to vector<256x8xbf16>
    %c7 = arith.constant 7 : index
    %c0_61 = arith.constant 0 : index
    %c0_62 = arith.constant 0 : index
    %62 = vector.load %arg4[%c7, %c0_61, %c0_62] : memref<9x8x8xbf16, #tpu.memory_space<vmem>>, vector<1x8x8xbf16>
    %63 = vector.shape_cast %62 : vector<1x8x8xbf16> to vector<8x8xbf16>
    %cst_63 = arith.constant dense<0.000000e+00> : vector<256x8xf32>
    %64 = tpu.matmul %61, %63, %cst_63 {dimension_numbers = #tpu.dot_dimension_numbers<[1], [0], [0], [1], [0, 0, 1, 1], [], []>} : vector<256x8xbf16>, vector<8x8xbf16>, vector<256x8xf32> -> vector<256x8xf32>
    %65 = arith.addf %59, %64 : vector<256x8xf32>
    %c2_64 = arith.constant 2 : index
    %c2_65 = arith.constant 2 : index
    %c0_66 = arith.constant 0 : index
    %66 = vector.load %arg7[%c2_64, %c2_65, %c0_66] : memref<18x18x8xbf16, #tpu.memory_space<vmem>>, vector<16x16x8xbf16>
    %67 = vector.shape_cast %66 : vector<16x16x8xbf16> to vector<256x8xbf16>
    %c8 = arith.constant 8 : index
    %c0_67 = arith.constant 0 : index
    %c0_68 = arith.constant 0 : index
    %68 = vector.load %arg4[%c8, %c0_67, %c0_68] : memref<9x8x8xbf16, #tpu.memory_space<vmem>>, vector<1x8x8xbf16>
    %69 = vector.shape_cast %68 : vector<1x8x8xbf16> to vector<8x8xbf16>
    %cst_69 = arith.constant dense<0.000000e+00> : vector<256x8xf32>
    %70 = tpu.matmul %67, %69, %cst_69 {dimension_numbers = #tpu.dot_dimension_numbers<[1], [0], [0], [1], [0, 0, 1, 1], [], []>} : vector<256x8xbf16>, vector<8x8xbf16>, vector<256x8xf32> -> vector<256x8xf32>
    %71 = arith.addf %65, %70 : vector<256x8xf32>
    %72 = arith.truncf %71 : vector<256x8xf32> to vector<256x8xbf16>
    %c0_70 = arith.constant 0 : index
    %c0_71 = arith.constant 0 : index
    %73 = vector.load %arg5[%c0_70, %c0_71] : memref<256x8xbf16, #tpu.memory_space<vmem>>, vector<256x8xbf16>
    tpu.vector_store %arg5[%c0_70, %c0_71], %72 {strides = array<i32>} : memref<256x8xbf16, #tpu.memory_space<vmem>>, vector<256x8xbf16>,
    %cst_72 = arith.constant dense<0.000000e+00> : vector<8xf32>
    %74 = vector.multi_reduction <add>, %71, %cst_72 [0] : vector<256x8xf32> to vector<8xf32>
    %75 = vector.shape_cast %74 : vector<8xf32> to vector<1x8xf32>
    %76 = arith.mulf %71, %71 : vector<256x8xf32>
    %cst_73 = arith.constant dense<0.000000e+00> : vector<8xf32>
    %77 = vector.multi_reduction <add>, %76, %cst_73 [0] : vector<256x8xf32> to vector<8xf32>
    %78 = vector.shape_cast %77 : vector<8xf32> to vector<1x8xf32>
    %79 = tpu.concatenate %75, %78 in 0 : vector<1x8xf32>, vector<1x8xf32> -> vector<2x8xf32>
    %c0_74 = arith.constant 0 : index
    %c0_75 = arith.constant 0 : index
    %c0_76 = arith.constant 0 : index
    %80 = vector.load %arg6[%c0_74, %c0_75, %c0_76] : memref<1x8x8xf32, #tpu.memory_space<vmem>>, vector<1x2x8xf32>
    %81 = vector.shape_cast %80 : vector<1x2x8xf32> to vector<2x8xf32>
    %82 = vector.shape_cast %79 : vector<2x8xf32> to vector<1x2x8xf32>
    tpu.vector_store %arg6[%c0_74, %c0_75, %c0_76], %82 {strides = array<i32>} : memref<1x8x8xf32, #tpu.memory_space<vmem>>, vector<1x2x8xf32>,
    return
  }
  func.func @transform_0(%arg0: i32) -> (i32, i32, i32, i32) {
    %c0_i32 = arith.constant 0 : i32
    %c0_i32_0 = arith.constant 0 : i32
    %c0_i32_1 = arith.constant 0 : i32
    %c0_i32_2 = arith.constant 0 : i32
    return %arg0, %c0_i32, %c0_i32_0, %c0_i32_1 : i32, i32, i32, i32
  }
  func.func @transform_1(%arg0: i32) -> (i32, i32) {
    %c0_i32 = arith.constant 0 : i32
    %c0_i32_0 = arith.constant 0 : i32
    %c0_i32_1 = arith.constant 0 : i32
    return %c0_i32, %c0_i32_0 : i32, i32
  }
  func.func @transform_2(%arg0: i32) -> (i32, i32) {
    %c0_i32 = arith.constant 0 : i32
    %c0_i32_0 = arith.constant 0 : i32
    %c0_i32_1 = arith.constant 0 : i32
    return %c0_i32, %c0_i32_0 : i32, i32
  }
  func.func @transform_3(%arg0: i32) -> (i32, i32, i32) {
    %c0_i32 = arith.constant 0 : i32
    %c0_i32_0 = arith.constant 0 : i32
    %c0_i32_1 = arith.constant 0 : i32
    %c0_i32_2 = arith.constant 0 : i32
    return %c0_i32, %c0_i32_0, %c0_i32_1 : i32, i32, i32
  }
  func.func @transform_4(%arg0: i32) -> (i32, i32) {
    %c0_i32 = arith.constant 0 : i32
    %c0_i32_0 = arith.constant 0 : i32
    return %arg0, %c0_i32 : i32, i32
  }
  func.func @transform_5(%arg0: i32) -> (i32, i32, i32) {
    %c0_i32 = arith.constant 0 : i32
    %c0_i32_0 = arith.constant 0 : i32
    %c0_i32_1 = arith.constant 0 : i32
    return %arg0, %c0_i32, %c0_i32_0 : i32, i32, i32
  }
}

</mosaic_0001>

<bundles_post_ra>
// kernel: basic_block_forward.5
= control target key start
LH: loop header
LB: loop body
LE: loop exit
PB: predicated region body
PF: predicated region fallthrough
CT: control target
= control target key end

     0   :  { %vm691_vm0 = vcmask 64512   ;;  %s1865_s0 = inlined_call_operand.vmem [shape: bf16[512,8], index: 0, kind: input, shape index: {}]   ;;  %s1866_s1 = inlined_call_operand.vmem [shape: f32[1,8], index: 1, kind: input, shape index: {}]   ;;  %s1867_s3 = inlined_call_operand.vmem [shape: bf16[512,8], index: 3, kind: input, shape index: {}]   ;;  %s1868_s4 = inlined_call_operand.vmem [shape: f32[1,8], index: 4, kind: input, shape index: {}]   ;;  %s1869_s5 = inlined_call_operand.vmem [shape: f32[1,8], index: 5, kind: input, shape index: {}]   ;;  %s1870_s2 = inlined_call_operand.vmem [shape: f32[1,8], index: 2, kind: input, shape index: {}]   ;;  %s1871_s6 = inlined_call_operand.vmem [shape: f32[512,8], index: 6, kind: output, shape index: {}]  }
   0x1   :  { %v765_v0 = vld [vmem:[%s1867_s3] sm:$0xff]   ;;  %v1020_v9 = vld [vmem:[%s1867_s3 + $0x8] sm:$0xff]   ;;  %v1021_v20 = vld [vmem:[%s1867_s3 + $0x10] sm:$0xff]  }
   0x2   :  { %v1127_v1 = vld [vmem:[%s1868_s4] ss:$0 sm:$0xff]  ;;  %v766_v2 = vunpack.c.l.bf16 %v765_v0  ;;  %v767_v5 = vunpack.c.h.bf16 %v765_v0  ;;  %v1051_v10 = vld [vmem:[%s1865_s0 + $0x8] sm:$0xff]   ;;  %v770_v14 = vunpack.c.l.bf16 %v1020_v9  ;;  %v771_v18 = vunpack.c.h.bf16 %v1020_v9  ;;  %v1052_v21 = vld [vmem:[%s1865_s0 + $0x10] sm:$0xff]  }
   0x3   :  { %v893_v3 = vld [vmem:[%s1865_s0] sm:$0xff]   ;;  %v898_v15 = vunpack.c.l.bf16 %v1051_v10  ;;  %v899_v19 = vunpack.c.h.bf16 %v1051_v10  ;;  %v774_v32 = vunpack.c.l.bf16 %v1021_v20  ;;  %v902_v33 = vunpack.c.l.bf16 %v1052_v21  ;;  %v1022_v42 = vld [vmem:[%s1867_s3 + $0x18] sm:$0xff]  }
   0x4   :  { %v1135_v4 = vld [vmem:[%s1866_s1] ss:$0 sm:$0xff]  ;;  %v894_v7 = vunpack.c.l.bf16 %v893_v3  ;;  %v895_v8 = vunpack.c.h.bf16 %v893_v3  ;;  %v158_v11 = vmul.f32 %v766_v2, %v1127_v1  ;;  %v159_v13 = vmul.f32 %v767_v5, %v1127_v1  ;;  %v1053_v43 = vld [vmem:[%s1865_s0 + $0x18] sm:$0xff]  }
   0x5   :  { %v1140_v6 = vld [vmem:[%s1869_s5] ss:$0 sm:$0xff]  ;;  %v160_v24 = vmul.f32 %v770_v14, %v1127_v1  ;;  %v430_v25 = vmul.f32 %v898_v15, %v1135_v4  ;;  %v161_v28 = vmul.f32 %v771_v18, %v1127_v1  ;;  %v431_v29 = vmul.f32 %v899_v19, %v1135_v4  ;;  %v1024_v14 = vld [vmem:[%s1867_s3 + $0x28] sm:$0xff]  }
   0x6   :  { %v1152_v12 = vld [vmem:[%s1870_s2] ss:$0 sm:$0xff]  ;;  %v428_v16 = vmul.f32 %v894_v7, %v1135_v4  ;;  %v429_v17 = vmul.f32 %v895_v8, %v1135_v4  ;;  %v229_v22 = vadd.f32 %v1140_v6, %v158_v11  ;;  %v230_v23 = vadd.f32 %v1140_v6, %v159_v13  ;;  %v1055_v19 = vld [vmem:[%s1865_s0 + $0x28] sm:$0xff]  }
   0x7   :  { %v231_v30 = vadd.f32 %v1140_v6, %v160_v24  ;;  %v501_v31 = vadd.f32 %v1152_v12, %v430_v25  ;;  %v232_v36 = vadd.f32 %v1140_v6, %v161_v28  ;;  %v502_v37 = vadd.f32 %v1152_v12, %v431_v29  ;;  %v1023_v52 = vld [vmem:[%s1867_s3 + $0x20] sm:$0xff]  }
   0x8   :  { %v499_v26 = vadd.f32 %v1152_v12, %v428_v16  ;;  %v500_v27 = vadd.f32 %v1152_v12, %v429_v17  ;;  %v162_v39 = vmul.f32 %v774_v32, %v1127_v1  ;;  %v432_v40 = vmul.f32 %v902_v33, %v1135_v4  ;;  %v1054_v57 = vld [vmem:[%s1865_s0 + $0x20] sm:$0xff]   ;;  %v1025_v32 = vld [vmem:[%s1867_s3 + $0x30] sm:$0xff]  }
   0x9   :  { %v565_v38 = vadd.f32 %v501_v31, %v231_v30  ;;  %v775_v41 = vunpack.c.h.bf16 %v1021_v20  ;;  %v566_v46 = vadd.f32 %v502_v37, %v232_v36  ;;  %v903_v47 = vunpack.c.h.bf16 %v1052_v21  ;;  %v1056_v33 = vld [vmem:[%s1865_s0 + $0x30] sm:$0xff]  }
   0xa   :  { %v563_v34 = vadd.f32 %v499_v26, %v229_v22  ;;  %v564_v35 = vadd.f32 %v500_v27, %v230_v23  ;;  %v233_v49 = vadd.f32 %v1140_v6, %v162_v39  ;;  %v503_v50 = vadd.f32 %v1152_v12, %v432_v40 }
   0xb   :  { %v629_v48 = vmax.f32 %v565_v38, 0.0  ;;  %v163_v51 = vmul.f32 %v775_v41, %v1127_v1  ;;  %v630_v53 = vmax.f32 %v566_v46, 0.0  ;;  %v433_v54 = vmul.f32 %v903_v47, %v1135_v4  ;;  %v1026_v46 = vld [vmem:[%s1867_s3 + $0x38] sm:$0xff]  }
   0xc   :  { %v627_v44 = vmax.f32 %v563_v34, 0.0  ;;  %v628_v45 = vmax.f32 %v564_v35, 0.0  ;;  %v778_v55 = vunpack.c.l.bf16 %v1022_v42  ;;  %v906_v56 = vunpack.c.l.bf16 %v1053_v43 }
   0xd   :  { %694 = vst.msk [vmem:[%s1871_s6 + $0x10] sm:$0xff] %vm691_vm0, %v629_v48  ;;  %v567_v58 = vadd.f32 %v503_v50, %v233_v49  ;;  %v234_v59 = vadd.f32 %v1140_v6, %v163_v51  ;;  %v779_v60 = vunpack.c.h.bf16 %v1022_v42  ;;  %v907_v61 = vunpack.c.h.bf16 %v1053_v43  ;;  %695 = vst.msk [vmem:[%s1871_s6 + $0x18] sm:$0xff] %vm691_vm0, %v630_v53 }
   0xe   :  { %692 = vst.msk [vmem:[%s1871_s6] sm:$0xff] %vm691_vm0, %v627_v44  ;;  %693 = vst.msk [vmem:[%s1871_s6 + $0x8] sm:$0xff] %vm691_vm0, %v628_v45  ;;  %v504_v62 = vadd.f32 %v1152_v12, %v433_v54  ;;  %v164_v63 = vmul.f32 %v778_v55, %v1127_v1  ;;  %v434_v0 = vmul.f32 %v906_v56, %v1135_v4  ;;  %v782_v2 = vunpack.c.l.bf16 %v1023_v52  ;;  %v1057_v55 = vld [vmem:[%s1865_s0 + $0x38] sm:$0xff]  }
   0xf   :  { %v631_v3 = vmax.f32 %v567_v58, 0.0  ;;  %v165_v5 = vmul.f32 %v779_v60, %v1127_v1  ;;  %v435_v7 = vmul.f32 %v907_v61, %v1135_v4  ;;  %v910_v8 = vunpack.c.l.bf16 %v1054_v57 }
  0x10   :  { %v568_v9 = vadd.f32 %v504_v62, %v234_v59  ;;  %v235_v10 = vadd.f32 %v1140_v6, %v164_v63  ;;  %v505_v11 = vadd.f32 %v1152_v12, %v434_v0  ;;  %v166_v13 = vmul.f32 %v782_v2, %v1127_v1 }
  0x11   :  { %696 = vst.msk [vmem:[%s1871_s6 + $0x20] sm:$0xff] %vm691_vm0, %v631_v3  ;;  %v236_v15 = vadd.f32 %v1140_v6, %v165_v5  ;;  %v506_v16 = vadd.f32 %v1152_v12, %v435_v7  ;;  %v436_v17 = vmul.f32 %v910_v8, %v1135_v4  ;;  %v783_v18 = vunpack.c.h.bf16 %v1023_v52  ;;  %v1027_v7 = vld [vmem:[%s1867_s3 + $0x40] sm:$0xff]  }
  0x12   :  { %v632_v20 = vmax.f32 %v568_v9, 0.0  ;;  %v569_v21 = vadd.f32 %v505_v11, %v235_v10  ;;  %v237_v22 = vadd.f32 %v1140_v6, %v166_v13  ;;  %v911_v23 = vunpack.c.h.bf16 %v1054_v57  ;;  %v1058_v13 = vld [vmem:[%s1865_s0 + $0x40] sm:$0xff]  }
  0x13   :  { %v570_v24 = vadd.f32 %v506_v16, %v236_v15  ;;  %v507_v25 = vadd.f32 %v1152_v12, %v436_v17  ;;  %v167_v26 = vmul.f32 %v783_v18, %v1127_v1  ;;  %v786_v27 = vunpack.c.l.bf16 %v1024_v14 }
  0x14   :  { %697 = vst.msk [vmem:[%s1871_s6 + $0x28] sm:$0xff] %vm691_vm0, %v632_v20  ;;  %v633_v28 = vmax.f32 %v569_v21, 0.0  ;;  %v437_v29 = vmul.f32 %v911_v23, %v1135_v4  ;;  %v914_v30 = vunpack.c.l.bf16 %v1055_v19  ;;  %v787_v31 = vunpack.c.h.bf16 %v1024_v14 }
  0x15   :  { %v634_v34 = vmax.f32 %v570_v24, 0.0  ;;  %v571_v35 = vadd.f32 %v507_v25, %v237_v22  ;;  %v238_v36 = vadd.f32 %v1140_v6, %v167_v26  ;;  %v168_v37 = vmul.f32 %v786_v27, %v1127_v1  ;;  %v1028_v26 = vld [vmem:[%s1867_s3 + $0x48] sm:$0xff]  }
  0x16   :  { %698 = vst.msk [vmem:[%s1871_s6 + $0x30] sm:$0xff] %vm691_vm0, %v633_v28  ;;  %v508_v38 = vadd.f32 %v1152_v12, %v437_v29  ;;  %v438_v39 = vmul.f32 %v914_v30, %v1135_v4  ;;  %v169_v40 = vmul.f32 %v787_v31, %v1127_v1  ;;  %v915_v41 = vunpack.c.h.bf16 %v1055_v19  ;;  %v1059_v27 = vld [vmem:[%s1865_s0 + $0x48] sm:$0xff]  }
  0x17   :  { %699 = vst.msk [vmem:[%s1871_s6 + $0x38] sm:$0xff] %vm691_vm0, %v634_v34  ;;  %v635_v42 = vmax.f32 %v571_v35, 0.0  ;;  %v239_v43 = vadd.f32 %v1140_v6, %v168_v37  ;;  %v790_v44 = vunpack.c.l.bf16 %v1025_v32  ;;  %v918_v45 = vunpack.c.l.bf16 %v1056_v33 }
  0x18   :  { %v572_v47 = vadd.f32 %v508_v38, %v238_v36  ;;  %v509_v48 = vadd.f32 %v1152_v12, %v438_v39  ;;  %v240_v49 = vadd.f32 %v1140_v6, %v169_v40  ;;  %v439_v50 = vmul.f32 %v915_v41, %v1135_v4  ;;  %v1029_v40 = vld [vmem:[%s1867_s3 + $0x50] sm:$0xff]  }
  0x19   :  { %700 = vst.msk [vmem:[%s1871_s6 + $0x40] sm:$0xff] %vm691_vm0, %v635_v42  ;;  %v170_v51 = vmul.f32 %v790_v44, %v1127_v1  ;;  %v440_v52 = vmul.f32 %v918_v45, %v1135_v4  ;;  %v791_v53 = vunpack.c.h.bf16 %v1025_v32  ;;  %v919_v54 = vunpack.c.h.bf16 %v1056_v33 }
  0x1a   :  { %v636_v56 = vmax.f32 %v572_v47, 0.0  ;;  %v573_v57 = vadd.f32 %v509_v48, %v239_v43  ;;  %v510_v58 = vadd.f32 %v1152_v12, %v439_v50  ;;  %v794_v59 = vunpack.c.l.bf16 %v1026_v46 }
  0x1b   :  { %v241_v60 = vadd.f32 %v1140_v6, %v170_v51  ;;  %v511_v61 = vadd.f32 %v1152_v12, %v440_v52  ;;  %v171_v62 = vmul.f32 %v791_v53, %v1127_v1  ;;  %v441_v63 = vmul.f32 %v919_v54, %v1135_v4 }
  0x1c   :  { %701 = vst.msk [vmem:[%s1871_s6 + $0x48] sm:$0xff] %vm691_vm0, %v636_v56  ;;  %v637_v0 = vmax.f32 %v573_v57, 0.0  ;;  %v574_v2 = vadd.f32 %v510_v58, %v240_v49  ;;  %v172_v3 = vmul.f32 %v794_v59, %v1127_v1  ;;  %v922_v5 = vunpack.c.l.bf16 %v1057_v55  ;;  %v1060_v49 = vld [vmem:[%s1865_s0 + $0x50] sm:$0xff]  }
  0x1d   :  { %v575_v8 = vadd.f32 %v511_v61, %v241_v60  ;;  %v242_v9 = vadd.f32 %v1140_v6, %v171_v62  ;;  %v512_v10 = vadd.f32 %v1152_v12, %v441_v63  ;;  %v795_v11 = vunpack.c.h.bf16 %v1026_v46  ;;  %v1030_v62 = vld [vmem:[%s1867_s3 + $0x58] sm:$0xff]  }
  0x1e   :  { %702 = vst.msk [vmem:[%s1871_s6 + $0x50] sm:$0xff] %vm691_vm0, %v637_v0  ;;  %v638_v14 = vmax.f32 %v574_v2, 0.0  ;;  %v243_v15 = vadd.f32 %v1140_v6, %v172_v3  ;;  %v442_v16 = vmul.f32 %v922_v5, %v1135_v4  ;;  %v923_v17 = vunpack.c.h.bf16 %v1057_v55  ;;  %v1061_v63 = vld [vmem:[%s1865_s0 + $0x58] sm:$0xff]  }
  0x1f   :  { %v639_v18 = vmax.f32 %v575_v8, 0.0  ;;  %v576_v19 = vadd.f32 %v512_v10, %v242_v9  ;;  %v173_v20 = vmul.f32 %v795_v11, %v1127_v1  ;;  %v798_v21 = vunpack.c.l.bf16 %v1027_v7 }
  0x20   :  { %703 = vst.msk [vmem:[%s1871_s6 + $0x58] sm:$0xff] %vm691_vm0, %v638_v14  ;;  %v513_v22 = vadd.f32 %v1152_v12, %v442_v16  ;;  %v443_v23 = vmul.f32 %v923_v17, %v1135_v4  ;;  %v926_v24 = vunpack.c.l.bf16 %v1058_v13  ;;  %v799_v25 = vunpack.c.h.bf16 %v1027_v7 }
  0x21   :  { %704 = vst.msk [vmem:[%s1871_s6 + $0x60] sm:$0xff] %vm691_vm0, %v639_v18  ;;  %v640_v28 = vmax.f32 %v576_v19, 0.0  ;;  %v244_v29 = vadd.f32 %v1140_v6, %v173_v20  ;;  %v174_v30 = vmul.f32 %v798_v21, %v1127_v1  ;;  %v927_v31 = vunpack.c.h.bf16 %v1058_v13  ;;  %v1031_v20 = vld [vmem:[%s1867_s3 + $0x60] sm:$0xff]  }
  0x22   :  { %v577_v32 = vadd.f32 %v513_v22, %v243_v15  ;;  %v514_v33 = vadd.f32 %v1152_v12, %v443_v23  ;;  %v444_v34 = vmul.f32 %v926_v24, %v1135_v4  ;;  %v175_v35 = vmul.f32 %v799_v25, %v1127_v1  ;;  %v1062_v25 = vld [vmem:[%s1865_s0 + $0x60] sm:$0xff]  }
  0x23   :  { %705 = vst.msk [vmem:[%s1871_s6 + $0x68] sm:$0xff] %vm691_vm0, %v640_v28  ;;  %v245_v36 = vadd.f32 %v1140_v6, %v174_v30  ;;  %v445_v37 = vmul.f32 %v927_v31, %v1135_v4  ;;  %v802_v38 = vunpack.c.l.bf16 %v1028_v26  ;;  %v930_v39 = vunpack.c.l.bf16 %v1059_v27 }
  0x24   :  { %v641_v41 = vmax.f32 %v577_v32, 0.0  ;;  %v578_v42 = vadd.f32 %v514_v33, %v244_v29  ;;  %v515_v43 = vadd.f32 %v1152_v12, %v444_v34  ;;  %v246_v44 = vadd.f32 %v1140_v6, %v175_v35  ;;  %v1032_v34 = vld [vmem:[%s1867_s3 + $0x68] sm:$0xff]  }
  0x25   :  { %v516_v45 = vadd.f32 %v1152_v12, %v445_v37  ;;  %v176_v46 = vmul.f32 %v802_v38, %v1127_v1  ;;  %v446_v47 = vmul.f32 %v930_v39, %v1135_v4  ;;  %v803_v48 = vunpack.c.h.bf16 %v1028_v26 }
  0x26   :  { %706 = vst.msk [vmem:[%s1871_s6 + $0x70] sm:$0xff] %vm691_vm0, %v641_v41  ;;  %v642_v50 = vmax.f32 %v578_v42, 0.0  ;;  %v579_v51 = vadd.f32 %v515_v43, %v245_v36  ;;  %v931_v52 = vunpack.c.h.bf16 %v1059_v27  ;;  %v806_v53 = vunpack.c.l.bf16 %v1029_v40  ;;  %v1063_v43 = vld [vmem:[%s1865_s0 + $0x68] sm:$0xff]  }
  0x27   :  { %v580_v54 = vadd.f32 %v516_v45, %v246_v44  ;;  %v247_v55 = vadd.f32 %v1140_v6, %v176_v46  ;;  %v517_v56 = vadd.f32 %v1152_v12, %v446_v47  ;;  %v177_v57 = vmul.f32 %v803_v48, %v1127_v1 }
  0x28   :  { %707 = vst.msk [vmem:[%s1871_s6 + $0x78] sm:$0xff] %vm691_vm0, %v642_v50  ;;  %v643_v58 = vmax.f32 %v579_v51, 0.0  ;;  %v447_v59 = vmul.f32 %v931_v52, %v1135_v4  ;;  %v178_v60 = vmul.f32 %v806_v53, %v1127_v1  ;;  %v934_v61 = vunpack.c.l.bf16 %v1060_v49 }
  0x29   :  { %v644_v0 = vmax.f32 %v580_v54, 0.0  ;;  %v581_v2 = vadd.f32 %v517_v56, %v247_v55  ;;  %v248_v3 = vadd.f32 %v1140_v6, %v177_v57  ;;  %v807_v5 = vunpack.c.h.bf16 %v1029_v40  ;;  %v1033_v56 = vld [vmem:[%s1867_s3 + $0x70] sm:$0xff]  }
  0x2a   :  { %708 = vst.msk [vmem:[%s1871_s6 + $0x80] sm:$0xff] %vm691_vm0, %v643_v58  ;;  %v518_v7 = vadd.f32 %v1152_v12, %v447_v59  ;;  %v249_v8 = vadd.f32 %v1140_v6, %v178_v60  ;;  %v448_v9 = vmul.f32 %v934_v61, %v1135_v4  ;;  %v935_v10 = vunpack.c.h.bf16 %v1060_v49  ;;  %v1064_v57 = vld [vmem:[%s1865_s0 + $0x70] sm:$0xff]  }
  0x2b   :  { %709 = vst.msk [vmem:[%s1871_s6 + $0x88] sm:$0xff] %vm691_vm0, %v644_v0  ;;  %v645_v11 = vmax.f32 %v581_v2, 0.0  ;;  %v179_v13 = vmul.f32 %v807_v5, %v1127_v1  ;;  %v810_v14 = vunpack.c.l.bf16 %v1030_v62  ;;  %v938_v15 = vunpack.c.l.bf16 %v1061_v63 }
  0x2c   :  { %v582_v16 = vadd.f32 %v518_v7, %v248_v3  ;;  %v519_v17 = vadd.f32 %v1152_v12, %v448_v9  ;;  %v449_v18 = vmul.f32 %v935_v10, %v1135_v4  ;;  %v811_v19 = vunpack.c.h.bf16 %v1030_v62 }
  0x2d   :  { %710 = vst.msk [vmem:[%s1871_s6 + $0x90] sm:$0xff] %vm691_vm0, %v645_v11  ;;  %v250_v21 = vadd.f32 %v1140_v6, %v179_v13  ;;  %v180_v22 = vmul.f32 %v810_v14, %v1127_v1  ;;  %v450_v23 = vmul.f32 %v938_v15, %v1135_v4  ;;  %v939_v24 = vunpack.c.h.bf16 %v1061_v63  ;;  %v1034_v14 = vld [vmem:[%s1867_s3 + $0x78] sm:$0xff]  }
  0x2e   :  { %v646_v26 = vmax.f32 %v582_v16, 0.0  ;;  %v583_v27 = vadd.f32 %v519_v17, %v249_v8  ;;  %v520_v28 = vadd.f32 %v1152_v12, %v449_v18  ;;  %v181_v29 = vmul.f32 %v811_v19, %v1127_v1  ;;  %v1065_v19 = vld [vmem:[%s1865_s0 + $0x78] sm:$0xff]  }
  0x2f   :  { %v251_v30 = vadd.f32 %v1140_v6, %v180_v22  ;;  %v521_v31 = vadd.f32 %v1152_v12, %v450_v23  ;;  %v451_v32 = vmul.f32 %v939_v24, %v1135_v4  ;;  %v814_v33 = vunpack.c.l.bf16 %v1031_v20 }
  0x30   :  { %711 = vst.msk [vmem:[%s1871_s6 + $0x98] sm:$0xff] %vm691_vm0, %v646_v26  ;;  %v647_v35 = vmax.f32 %v583_v27, 0.0  ;;  %v584_v36 = vadd.f32 %v520_v28, %v250_v21  ;;  %v252_v37 = vadd.f32 %v1140_v6, %v181_v29  ;;  %v942_v38 = vunpack.c.l.bf16 %v1062_v25  ;;  %v1035_v28 = vld [vmem:[%s1867_s3 + $0x80] sm:$0xff]  }
  0x31   :  { %v585_v39 = vadd.f32 %v521_v31, %v251_v30  ;;  %v522_v40 = vadd.f32 %v1152_v12, %v451_v32  ;;  %v182_v41 = vmul.f32 %v814_v33, %v1127_v1  ;;  %v815_v42 = vunpack.c.h.bf16 %v1031_v20  ;;  %v1066_v33 = vld [vmem:[%s1865_s0 + $0x80] sm:$0xff]  }
  0x32   :  { %712 = vst.msk [vmem:[%s1871_s6 + $0xa0] sm:$0xff] %vm691_vm0, %v647_v35  ;;  %v648_v44 = vmax.f32 %v584_v36, 0.0  ;;  %v452_v45 = vmul.f32 %v942_v38, %v1135_v4  ;;  %v943_v46 = vunpack.c.h.bf16 %v1062_v25  ;;  %v818_v47 = vunpack.c.l.bf16 %v1032_v34 }
  0x33   :  { %v649_v48 = vmax.f32 %v585_v39, 0.0  ;;  %v586_v49 = vadd.f32 %v522_v40, %v252_v37  ;;  %v253_v50 = vadd.f32 %v1140_v6, %v182_v41  ;;  %v183_v51 = vmul.f32 %v815_v42, %v1127_v1 }
  0x34   :  { %713 = vst.msk [vmem:[%s1871_s6 + $0xa8] sm:$0xff] %vm691_vm0, %v648_v44  ;;  %v523_v52 = vadd.f32 %v1152_v12, %v452_v45  ;;  %v453_v53 = vmul.f32 %v943_v46, %v1135_v4  ;;  %v184_v54 = vmul.f32 %v818_v47, %v1127_v1  ;;  %v946_v55 = vunpack.c.l.bf16 %v1063_v43 }
  0x35   :  { %714 = vst.msk [vmem:[%s1871_s6 + $0xb0] sm:$0xff] %vm691_vm0, %v649_v48  ;;  %v650_v58 = vmax.f32 %v586_v49, 0.0  ;;  %v254_v59 = vadd.f32 %v1140_v6, %v183_v51  ;;  %v819_v60 = vunpack.c.h.bf16 %v1032_v34  ;;  %v947_v61 = vunpack.c.h.bf16 %v1063_v43 }
  0x36   :  { %v587_v62 = vadd.f32 %v523_v52, %v253_v50  ;;  %v524_v63 = vadd.f32 %v1152_v12, %v453_v53  ;;  %v255_v0 = vadd.f32 %v1140_v6, %v184_v54  ;;  %v454_v2 = vmul.f32 %v946_v55, %v1135_v4  ;;  %v1036_v50 = vld [vmem:[%s1867_s3 + $0x88] sm:$0xff]  }
  0x37   :  { %715 = vst.msk [vmem:[%s1871_s6 + $0xb8] sm:$0xff] %vm691_vm0, %v650_v58  ;;  %v185_v3 = vmul.f32 %v819_v60, %v1127_v1  ;;  %v455_v5 = vmul.f32 %v947_v61, %v1135_v4  ;;  %v822_v7 = vunpack.c.l.bf16 %v1033_v56  ;;  %v950_v8 = vunpack.c.l.bf16 %v1064_v57  ;;  %v1067_v55 = vld [vmem:[%s1865_s0 + $0x88] sm:$0xff]  }
  0x38   :  { %v651_v9 = vmax.f32 %v587_v62, 0.0  ;;  %v588_v10 = vadd.f32 %v524_v63, %v254_v59  ;;  %v525_v11 = vadd.f32 %v1152_v12, %v454_v2  ;;  %v823_v13 = vunpack.c.h.bf16 %v1033_v56 }
  0x39   :  { %v256_v15 = vadd.f32 %v1140_v6, %v185_v3  ;;  %v526_v16 = vadd.f32 %v1152_v12, %v455_v5  ;;  %v186_v17 = vmul.f32 %v822_v7, %v1127_v1  ;;  %v456_v18 = vmul.f32 %v950_v8, %v1135_v4  ;;  %v1037_v7 = vld [vmem:[%s1867_s3 + $0x90] sm:$0xff]  }
  0x3a   :  { %716 = vst.msk [vmem:[%s1871_s6 + $0xc0] sm:$0xff] %vm691_vm0, %v651_v9  ;;  %v652_v20 = vmax.f32 %v588_v10, 0.0  ;;  %v589_v21 = vadd.f32 %v525_v11, %v255_v0  ;;  %v187_v22 = vmul.f32 %v823_v13, %v1127_v1  ;;  %v951_v23 = vunpack.c.h.bf16 %v1064_v57  ;;  %v1068_v13 = vld [vmem:[%s1865_s0 + $0x90] sm:$0xff]  }
  0x3b   :  { %v590_v24 = vadd.f32 %v526_v16, %v256_v15  ;;  %v257_v25 = vadd.f32 %v1140_v6, %v186_v17  ;;  %v527_v26 = vadd.f32 %v1152_v12, %v456_v18  ;;  %v826_v27 = vunpack.c.l.bf16 %v1034_v14 }
  0x3c   :  { %717 = vst.msk [vmem:[%s1871_s6 + $0xc8] sm:$0xff] %vm691_vm0, %v652_v20  ;;  %v653_v29 = vmax.f32 %v589_v21, 0.0  ;;  %v258_v30 = vadd.f32 %v1140_v6, %v187_v22  ;;  %v457_v31 = vmul.f32 %v951_v23, %v1135_v4  ;;  %v954_v32 = vunpack.c.l.bf16 %v1065_v19  ;;  %v1038_v22 = vld [vmem:[%s1867_s3 + $0x98] sm:$0xff]  }
  0x3d   :  { %v654_v34 = vmax.f32 %v590_v24, 0.0  ;;  %v591_v35 = vadd.f32 %v527_v26, %v257_v25  ;;  %v188_v36 = vmul.f32 %v826_v27, %v1127_v1  ;;  %v827_v37 = vunpack.c.h.bf16 %v1034_v14  ;;  %v1069_v27 = vld [vmem:[%s1865_s0 + $0x98] sm:$0xff]  }
  0x3e   :  { %718 = vst.msk [vmem:[%s1871_s6 + $0xd0] sm:$0xff] %vm691_vm0, %v653_v29  ;;  %v528_v38 = vadd.f32 %v1152_v12, %v457_v31  ;;  %v458_v39 = vmul.f32 %v954_v32, %v1135_v4  ;;  %v955_v40 = vunpack.c.h.bf16 %v1065_v19  ;;  %v830_v41 = vunpack.c.l.bf16 %v1035_v28 }
  0x3f   :  { %719 = vst.msk [vmem:[%s1871_s6 + $0xd8] sm:$0xff] %vm691_vm0, %v654_v34  ;;  %v655_v42 = vmax.f32 %v591_v35, 0.0  ;;  %v259_v43 = vadd.f32 %v1140_v6, %v188_v36  ;;  %v189_v44 = vmul.f32 %v827_v37, %v1127_v1  ;;  %v958_v45 = vunpack.c.l.bf16 %v1066_v33 }
  0x40   :  { %v592_v46 = vadd.f32 %v528_v38, %v258_v30  ;;  %v529_v47 = vadd.f32 %v1152_v12, %v458_v39  ;;  %v459_v48 = vmul.f32 %v955_v40, %v1135_v4  ;;  %v190_v49 = vmul.f32 %v830_v41, %v1127_v1 }
  0x41   :  { %720 = vst.msk [vmem:[%s1871_s6 + $0xe0] sm:$0xff] %vm691_vm0, %v655_v42  ;;  %v260_v51 = vadd.f32 %v1140_v6, %v189_v44  ;;  %v460_v52 = vmul.f32 %v958_v45, %v1135_v4  ;;  %v831_v53 = vunpack.c.h.bf16 %v1035_v28  ;;  %v959_v54 = vunpack.c.h.bf16 %v1066_v33  ;;  %v1039_v44 = vld [vmem:[%s1867_s3 + $0xa0] sm:$0xff]  }
  0x42   :  { %v656_v56 = vmax.f32 %v592_v46, 0.0  ;;  %v593_v57 = vadd.f32 %v529_v47, %v259_v43  ;;  %v530_v58 = vadd.f32 %v1152_v12, %v459_v48  ;;  %v261_v59 = vadd.f32 %v1140_v6, %v190_v49  ;;  %v1070_v49 = vld [vmem:[%s1865_s0 + $0xa0] sm:$0xff]  }
  0x43   :  { %v531_v60 = vadd.f32 %v1152_v12, %v460_v52  ;;  %v191_v61 = vmul.f32 %v831_v53, %v1127_v1  ;;  %v461_v62 = vmul.f32 %v959_v54, %v1135_v4  ;;  %v834_v63 = vunpack.c.l.bf16 %v1036_v50 }
  0x44   :  { %721 = vst.msk [vmem:[%s1871_s6 + $0xe8] sm:$0xff] %vm691_vm0, %v656_v56  ;;  %v657_v0 = vmax.f32 %v593_v57, 0.0  ;;  %v594_v2 = vadd.f32 %v530_v58, %v260_v51  ;;  %v962_v3 = vunpack.c.l.bf16 %v1067_v55  ;;  %v835_v5 = vunpack.c.h.bf16 %v1036_v50 }
  0x45   :  { %v595_v8 = vadd.f32 %v531_v60, %v261_v59  ;;  %v262_v9 = vadd.f32 %v1140_v6, %v191_v61  ;;  %v532_v10 = vadd.f32 %v1152_v12, %v461_v62  ;;  %v192_v11 = vmul.f32 %v834_v63, %v1127_v1  ;;  %v1040_v62 = vld [vmem:[%s1867_s3 + $0xa8] sm:$0xff]  }
  0x46   :  { %722 = vst.msk [vmem:[%s1871_s6 + $0xf0] sm:$0xff] %vm691_vm0, %v657_v0  ;;  %v658_v14 = vmax.f32 %v594_v2, 0.0  ;;  %v462_v15 = vmul.f32 %v962_v3, %v1135_v4  ;;  %v193_v16 = vmul.f32 %v835_v5, %v1127_v1  ;;  %v963_v17 = vunpack.c.h.bf16 %v1067_v55  ;;  %v1071_v63 = vld [vmem:[%s1865_s0 + $0xa8] sm:$0xff]  }
  0x47   :  { %v659_v18 = vmax.f32 %v595_v8, 0.0  ;;  %v596_v19 = vadd.f32 %v532_v10, %v262_v9  ;;  %v263_v20 = vadd.f32 %v1140_v6, %v192_v11  ;;  %v838_v21 = vunpack.c.l.bf16 %v1037_v7 }
  0x48   :  { %723 = vst.msk [vmem:[%s1871_s6 + $0xf8] sm:$0xff] %vm691_vm0, %v658_v14  ;;  %v533_v23 = vadd.f32 %v1152_v12, %v462_v15  ;;  %v264_v24 = vadd.f32 %v1140_v6, %v193_v16  ;;  %v463_v25 = vmul.f32 %v963_v17, %v1135_v4  ;;  %v966_v26 = vunpack.c.l.bf16 %v1068_v13  ;;  %v1041_v16 = vld [vmem:[%s1867_s3 + $0xb0] sm:$0xff]  }
  0x49   :  { %724 = vst.msk [vmem:[%s1871_s6 + $0x100] sm:$0xff] %vm691_vm0, %v659_v18  ;;  %v660_v28 = vmax.f32 %v596_v19, 0.0  ;;  %v194_v29 = vmul.f32 %v838_v21, %v1127_v1  ;;  %v839_v30 = vunpack.c.h.bf16 %v1037_v7  ;;  %v967_v31 = vunpack.c.h.bf16 %v1068_v13 }
  0x4a   :  { %v597_v32 = vadd.f32 %v533_v23, %v263_v20  ;;  %v534_v33 = vadd.f32 %v1152_v12, %v463_v25  ;;  %v464_v34 = vmul.f32 %v966_v26, %v1135_v4  ;;  %v842_v35 = vunpack.c.l.bf16 %v1038_v22  ;;  %v1072_v25 = vld [vmem:[%s1865_s0 + $0xb0] sm:$0xff]  }
  0x4b   :  { %725 = vst.msk [vmem:[%s1871_s6 + $0x108] sm:$0xff] %vm691_vm0, %v660_v28  ;;  %v265_v36 = vadd.f32 %v1140_v6, %v194_v29  ;;  %v195_v37 = vmul.f32 %v839_v30, %v1127_v1  ;;  %v465_v38 = vmul.f32 %v967_v31, %v1135_v4  ;;  %v970_v39 = vunpack.c.l.bf16 %v1069_v27 }
  0x4c   :  { %v661_v40 = vmax.f32 %v597_v32, 0.0  ;;  %v598_v41 = vadd.f32 %v534_v33, %v264_v24  ;;  %v535_v42 = vadd.f32 %v1152_v12, %v464_v34  ;;  %v196_v43 = vmul.f32 %v842_v35, %v1127_v1 }
  0x4d   :  { %v266_v45 = vadd.f32 %v1140_v6, %v195_v37  ;;  %v536_v46 = vadd.f32 %v1152_v12, %v465_v38  ;;  %v466_v47 = vmul.f32 %v970_v39, %v1135_v4  ;;  %v843_v48 = vunpack.c.h.bf16 %v1038_v22  ;;  %v1042_v38 = vld [vmem:[%s1867_s3 + $0xb8] sm:$0xff]  }
  0x4e   :  { %726 = vst.msk [vmem:[%s1871_s6 + $0x110] sm:$0xff] %vm691_vm0, %v661_v40  ;;  %v662_v50 = vmax.f32 %v598_v41, 0.0  ;;  %v599_v51 = vadd.f32 %v535_v42, %v265_v36  ;;  %v267_v52 = vadd.f32 %v1140_v6, %v196_v43  ;;  %v971_v53 = vunpack.c.h.bf16 %v1069_v27  ;;  %v1073_v43 = vld [vmem:[%s1865_s0 + $0xb8] sm:$0xff]  }
  0x4f   :  { %v600_v54 = vadd.f32 %v536_v46, %v266_v45  ;;  %v537_v55 = vadd.f32 %v1152_v12, %v466_v47  ;;  %v197_v56 = vmul.f32 %v843_v48, %v1127_v1  ;;  %v846_v57 = vunpack.c.l.bf16 %v1039_v44 }
  0x50   :  { %727 = vst.msk [vmem:[%s1871_s6 + $0x118] sm:$0xff] %vm691_vm0, %v662_v50  ;;  %v663_v58 = vmax.f32 %v599_v51, 0.0  ;;  %v467_v59 = vmul.f32 %v971_v53, %v1135_v4  ;;  %v974_v60 = vunpack.c.l.bf16 %v1070_v49  ;;  %v847_v61 = vunpack.c.h.bf16 %v1039_v44 }
  0x51   :  { %v664_v0 = vmax.f32 %v600_v54, 0.0  ;;  %v601_v2 = vadd.f32 %v537_v55, %v267_v52  ;;  %v268_v3 = vadd.f32 %v1140_v6, %v197_v56  ;;  %v198_v5 = vmul.f32 %v846_v57, %v1127_v1  ;;  %v1043_v56 = vld [vmem:[%s1867_s3 + $0xc0] sm:$0xff]  }
  0x52   :  { %728 = vst.msk [vmem:[%s1871_s6 + $0x120] sm:$0xff] %vm691_vm0, %v663_v58  ;;  %v538_v7 = vadd.f32 %v1152_v12, %v467_v59  ;;  %v468_v8 = vmul.f32 %v974_v60, %v1135_v4  ;;  %v199_v9 = vmul.f32 %v847_v61, %v1127_v1  ;;  %v975_v10 = vunpack.c.h.bf16 %v1070_v49  ;;  %v1074_v57 = vld [vmem:[%s1865_s0 + $0xc0] sm:$0xff]  }
  0x53   :  { %729 = vst.msk [vmem:[%s1871_s6 + $0x128] sm:$0xff] %vm691_vm0, %v664_v0  ;;  %v665_v11 = vmax.f32 %v601_v2, 0.0  ;;  %v269_v13 = vadd.f32 %v1140_v6, %v198_v5  ;;  %v850_v14 = vunpack.c.l.bf16 %v1040_v62  ;;  %v978_v15 = vunpack.c.l.bf16 %v1071_v63 }
  0x54   :  { %v602_v17 = vadd.f32 %v538_v7, %v268_v3  ;;  %v539_v18 = vadd.f32 %v1152_v12, %v468_v8  ;;  %v270_v19 = vadd.f32 %v1140_v6, %v199_v9  ;;  %v469_v20 = vmul.f32 %v975_v10, %v1135_v4  ;;  %v1044_v9 = vld [vmem:[%s1867_s3 + $0xc8] sm:$0xff]  }
  0x55   :  { %730 = vst.msk [vmem:[%s1871_s6 + $0x130] sm:$0xff] %vm691_vm0, %v665_v11  ;;  %v200_v21 = vmul.f32 %v850_v14, %v1127_v1  ;;  %v470_v22 = vmul.f32 %v978_v15, %v1135_v4  ;;  %v851_v23 = vunpack.c.h.bf16 %v1040_v62  ;;  %v979_v24 = vunpack.c.h.bf16 %v1071_v63 }
  0x56   :  { %v666_v26 = vmax.f32 %v602_v17, 0.0  ;;  %v603_v27 = vadd.f32 %v539_v18, %v269_v13  ;;  %v540_v28 = vadd.f32 %v1152_v12, %v469_v20  ;;  %v854_v29 = vunpack.c.l.bf16 %v1041_v16 }
  0x57   :  { %v271_v30 = vadd.f32 %v1140_v6, %v200_v21  ;;  %v541_v31 = vadd.f32 %v1152_v12, %v470_v22  ;;  %v201_v32 = vmul.f32 %v851_v23, %v1127_v1  ;;  %v471_v33 = vmul.f32 %v979_v24, %v1135_v4 }
  0x58   :  { %731 = vst.msk [vmem:[%s1871_s6 + $0x138] sm:$0xff] %vm691_vm0, %v666_v26  ;;  %v667_v34 = vmax.f32 %v603_v27, 0.0  ;;  %v604_v35 = vadd.f32 %v540_v28, %v270_v19  ;;  %v202_v36 = vmul.f32 %v854_v29, %v1127_v1  ;;  %v982_v37 = vunpack.c.l.bf16 %v1072_v25  ;;  %v1075_v19 = vld [vmem:[%s1865_s0 + $0xc8] sm:$0xff]  }
  0x59   :  { %v605_v39 = vadd.f32 %v541_v31, %v271_v30  ;;  %v272_v40 = vadd.f32 %v1140_v6, %v201_v32  ;;  %v542_v41 = vadd.f32 %v1152_v12, %v471_v33  ;;  %v855_v42 = vunpack.c.h.bf16 %v1041_v16  ;;  %v1045_v32 = vld [vmem:[%s1867_s3 + $0xd0] sm:$0xff]  }
  0x5a   :  { %732 = vst.msk [vmem:[%s1871_s6 + $0x140] sm:$0xff] %vm691_vm0, %v667_v34  ;;  %v668_v44 = vmax.f32 %v604_v35, 0.0  ;;  %v273_v45 = vadd.f32 %v1140_v6, %v202_v36  ;;  %v472_v46 = vmul.f32 %v982_v37, %v1135_v4  ;;  %v983_v47 = vunpack.c.h.bf16 %v1072_v25  ;;  %v1076_v33 = vld [vmem:[%s1865_s0 + $0xd0] sm:$0xff]  }
  0x5b   :  { %v669_v48 = vmax.f32 %v605_v39, 0.0  ;;  %v606_v49 = vadd.f32 %v542_v41, %v272_v40  ;;  %v203_v50 = vmul.f32 %v855_v42, %v1127_v1  ;;  %v858_v51 = vunpack.c.l.bf16 %v1042_v38  ;;  %v1701_v42 = vld [vmem:[%s1868_s4] ss:$0 sm:$0xff] }
  0x5c   :  { %733 = vst.msk [vmem:[%s1871_s6 + $0x148] sm:$0xff] %vm691_vm0, %v668_v44  ;;  %v543_v52 = vadd.f32 %v1152_v12, %v472_v46  ;;  %v473_v53 = vmul.f32 %v983_v47, %v1135_v4  ;;  %v986_v54 = vunpack.c.l.bf16 %v1073_v43  ;;  %v859_v55 = vunpack.c.h.bf16 %v1042_v38 }
  0x5d   :  { %734 = vst.msk [vmem:[%s1871_s6 + $0x150] sm:$0xff] %vm691_vm0, %v669_v48  ;;  %v670_v58 = vmax.f32 %v606_v49, 0.0  ;;  %v274_v59 = vadd.f32 %v1140_v6, %v203_v50  ;;  %v204_v60 = vmul.f32 %v858_v51, %v1127_v1  ;;  %v987_v61 = vunpack.c.h.bf16 %v1073_v43  ;;  %v1046_v49 = vld [vmem:[%s1867_s3 + $0xd8] sm:$0xff]  }
  0x5e   :  { %v607_v62 = vadd.f32 %v543_v52, %v273_v45  ;;  %v544_v63 = vadd.f32 %v1152_v12, %v473_v53  ;;  %v474_v0 = vmul.f32 %v986_v54, %v1135_v4  ;;  %v205_v2 = vmul.f32 %v859_v55, %v1127_v1  ;;  %v1077_v54 = vld [vmem:[%s1865_s0 + $0xd8] sm:$0xff]  }
  0x5f   :  { %735 = vst.msk [vmem:[%s1871_s6 + $0x158] sm:$0xff] %vm691_vm0, %v670_v58  ;;  %v275_v3 = vadd.f32 %v1140_v6, %v204_v60  ;;  %v475_v5 = vmul.f32 %v987_v61, %v1135_v4  ;;  %v862_v7 = vunpack.c.l.bf16 %v1043_v56  ;;  %v990_v8 = vunpack.c.l.bf16 %v1074_v57 }
  0x60   :  { %v671_v10 = vmax.f32 %v607_v62, 0.0  ;;  %v608_v11 = vadd.f32 %v544_v63, %v274_v59  ;;  %v545_v13 = vadd.f32 %v1152_v12, %v474_v0  ;;  %v276_v14 = vadd.f32 %v1140_v6, %v205_v2  ;;  %v1047_v0 = vld [vmem:[%s1867_s3 + $0xe0] sm:$0xff]  }
  0x61   :  { %v546_v15 = vadd.f32 %v1152_v12, %v475_v5  ;;  %v206_v16 = vmul.f32 %v862_v7, %v1127_v1  ;;  %v476_v17 = vmul.f32 %v990_v8, %v1135_v4  ;;  %v863_v18 = vunpack.c.h.bf16 %v1043_v56 }
  0x62   :  { %736 = vst.msk [vmem:[%s1871_s6 + $0x160] sm:$0xff] %vm691_vm0, %v671_v10  ;;  %v672_v20 = vmax.f32 %v608_v11, 0.0  ;;  %v609_v21 = vadd.f32 %v545_v13, %v275_v3  ;;  %v991_v22 = vunpack.c.h.bf16 %v1074_v57  ;;  %v866_v23 = vunpack.c.l.bf16 %v1044_v9  ;;  %v1732_v57 = vld [vmem:[%s1870_s2] ss:$0 sm:$0xff] }
  0x63   :  { %v610_v24 = vadd.f32 %v546_v15, %v276_v14  ;;  %v277_v25 = vadd.f32 %v1140_v6, %v206_v16  ;;  %v547_v26 = vadd.f32 %v1152_v12, %v476_v17  ;;  %v207_v27 = vmul.f32 %v863_v18, %v1127_v1  ;;  %v1078_v13 = vld [vmem:[%s1865_s0 + $0xe0] sm:$0xff]  }
  0x64   :  { %737 = vst.msk [vmem:[%s1871_s6 + $0x168] sm:$0xff] %vm691_vm0, %v672_v20  ;;  %v673_v28 = vmax.f32 %v609_v21, 0.0  ;;  %v477_v29 = vmul.f32 %v991_v22, %v1135_v4  ;;  %v208_v30 = vmul.f32 %v866_v23, %v1127_v1  ;;  %v994_v31 = vunpack.c.l.bf16 %v1075_v19 }
  0x65   :  { %v674_v34 = vmax.f32 %v610_v24, 0.0  ;;  %v611_v35 = vadd.f32 %v547_v26, %v277_v25  ;;  %v278_v36 = vadd.f32 %v1140_v6, %v207_v27  ;;  %v867_v37 = vunpack.c.h.bf16 %v1044_v9  ;;  %v1048_v26 = vld [vmem:[%s1867_s3 + $0xe8] sm:$0xff]  }
  0x66   :  { %738 = vst.msk [vmem:[%s1871_s6 + $0x170] sm:$0xff] %vm691_vm0, %v673_v28  ;;  %v548_v1 = vadd.f32 %v1152_v12, %v477_v29  ;;  %v279_v38 = vadd.f32 %v1140_v6, %v208_v30  ;;  %v478_v39 = vmul.f32 %v994_v31, %v1135_v4  ;;  %v995_v40 = vunpack.c.h.bf16 %v1075_v19  ;;  %v1708_v4 = vld [vmem:[%s1866_s1] ss:$0 sm:$0xff]  ;;  %v1079_v27 = vld [vmem:[%s1865_s0 + $0xe8] sm:$0xff]  }
  0x67   :  { %739 = vst.msk [vmem:[%s1871_s6 + $0x178] sm:$0xff] %vm691_vm0, %v674_v34  ;;  %v675_v41 = vmax.f32 %v611_v35, 0.0  ;;  %v209_v43 = vmul.f32 %v1701_v42, %v867_v37  ;;  %v870_v44 = vunpack.c.l.bf16 %v1045_v32  ;;  %v998_v45 = vunpack.c.l.bf16 %v1076_v33 }
  0x68   :  { %v612_v46 = vadd.f32 %v548_v1, %v278_v36  ;;  %v549_v6 = vadd.f32 %v1152_v12, %v478_v39  ;;  %v479_v47 = vmul.f32 %v1708_v4, %v995_v40  ;;  %v871_v48 = vunpack.c.h.bf16 %v1045_v32  ;;  %v1721_v12 = vld [vmem:[%s1869_s5] ss:$0 sm:$0xff] }
  0x69   :  { %740 = vst.msk [vmem:[%s1871_s6 + $0x180] sm:$0xff] %vm691_vm0, %v675_v41  ;;  %v280_v50 = vadd.f32 %v1721_v12, %v209_v43  ;;  %v210_v51 = vmul.f32 %v1701_v42, %v870_v44  ;;  %v480_v52 = vmul.f32 %v1708_v4, %v998_v45  ;;  %v999_v53 = vunpack.c.h.bf16 %v1076_v33  ;;  %v1049_v44 = vld [vmem:[%s1867_s3 + $0xf0] sm:$0xff]  }
  0x6a   :  { %v676_v55 = vmax.f32 %v612_v46, 0.0  ;;  %v613_v56 = vadd.f32 %v549_v6, %v279_v38  ;;  %v550_v58 = vadd.f32 %v1732_v57, %v479_v47  ;;  %v211_v59 = vmul.f32 %v1701_v42, %v871_v48  ;;  %v1080_v48 = vld [vmem:[%s1865_s0 + $0xf0] sm:$0xff]  }
  0x6b   :  { %v281_v60 = vadd.f32 %v1721_v12, %v210_v51  ;;  %v551_v61 = vadd.f32 %v1732_v57, %v480_v52  ;;  %v481_v62 = vmul.f32 %v1708_v4, %v999_v53  ;;  %v874_v63 = vunpack.c.l.bf16 %v1046_v49 }
  0x6c   :  { %741 = vst.msk [vmem:[%s1871_s6 + $0x188] sm:$0xff] %vm691_vm0, %v676_v55  ;;  %v677_v2 = vmax.f32 %v613_v56, 0.0  ;;  %v614_v3 = vadd.f32 %v550_v58, %v280_v50  ;;  %v282_v5 = vadd.f32 %v1721_v12, %v211_v59  ;;  %v1002_v7 = vunpack.c.l.bf16 %v1077_v54  ;;  %v1050_v58 = vld [vmem:[%s1867_s3 + $0xf8] sm:$0xff]  }
  0x6d   :  { %v615_v8 = vadd.f32 %v551_v61, %v281_v60  ;;  %v552_v9 = vadd.f32 %v1732_v57, %v481_v62  ;;  %v212_v10 = vmul.f32 %v1701_v42, %v874_v63  ;;  %v875_v11 = vunpack.c.h.bf16 %v1046_v49  ;;  %v1081_v63 = vld [vmem:[%s1865_s0 + $0xf8] sm:$0xff]  }
  0x6e   :  { %742 = vst.msk [vmem:[%s1871_s6 + $0x190] sm:$0xff] %vm691_vm0, %v677_v2  ;;  %v678_v14 = vmax.f32 %v614_v3, 0.0  ;;  %v482_v15 = vmul.f32 %v1708_v4, %v1002_v7  ;;  %v1003_v16 = vunpack.c.h.bf16 %v1077_v54  ;;  %v878_v17 = vunpack.c.l.bf16 %v1047_v0 }
  0x6f   :  { %v679_v18 = vmax.f32 %v615_v8, 0.0  ;;  %v616_v19 = vadd.f32 %v552_v9, %v282_v5  ;;  %v283_v20 = vadd.f32 %v1721_v12, %v212_v10  ;;  %v213_v21 = vmul.f32 %v1701_v42, %v875_v11 }
  0x70   :  { %743 = vst.msk [vmem:[%s1871_s6 + $0x198] sm:$0xff] %vm691_vm0, %v678_v14  ;;  %v553_v22 = vadd.f32 %v1732_v57, %v482_v15  ;;  %v483_v23 = vmul.f32 %v1708_v4, %v1003_v16  ;;  %v214_v24 = vmul.f32 %v1701_v42, %v878_v17  ;;  %v1006_v25 = vunpack.c.l.bf16 %v1078_v13 }
  0x71   :  { %744 = vst.msk [vmem:[%s1871_s6 + $0x1a0] sm:$0xff] %vm691_vm0, %v679_v18  ;;  %v680_v28 = vmax.f32 %v616_v19, 0.0  ;;  %v284_v29 = vadd.f32 %v1721_v12, %v213_v21  ;;  %v879_v30 = vunpack.c.h.bf16 %v1047_v0  ;;  %v1007_v31 = vunpack.c.h.bf16 %v1078_v13 }
  0x72   :  { %v617_v32 = vadd.f32 %v553_v22, %v283_v20  ;;  %v554_v33 = vadd.f32 %v1732_v57, %v483_v23  ;;  %v285_v34 = vadd.f32 %v1721_v12, %v214_v24  ;;  %v484_v35 = vmul.f32 %v1708_v4, %v1006_v25 }
  0x73   :  { %745 = vst.msk [vmem:[%s1871_s6 + $0x1a8] sm:$0xff] %vm691_vm0, %v680_v28  ;;  %v215_v36 = vmul.f32 %v1701_v42, %v879_v30  ;;  %v485_v37 = vmul.f32 %v1708_v4, %v1007_v31  ;;  %v882_v1 = vunpack.c.l.bf16 %v1048_v26  ;;  %v1010_v38 = vunpack.c.l.bf16 %v1079_v27 }
  0x74   :  { %v681_v39 = vmax.f32 %v617_v32, 0.0  ;;  %v618_v40 = vadd.f32 %v554_v33, %v284_v29  ;;  %v555_v41 = vadd.f32 %v1732_v57, %v484_v35  ;;  %v883_v43 = vunpack.c.h.bf16 %v1048_v26 }
  0x75   :  { %v286_v45 = vadd.f32 %v1721_v12, %v215_v36  ;;  %v556_v46 = vadd.f32 %v1732_v57, %v485_v37  ;;  %v216_v6 = vmul.f32 %v1701_v42, %v882_v1  ;;  %v486_v47 = vmul.f32 %v1708_v4, %v1010_v38 }
  0x76   :  { %746 = vst.msk [vmem:[%s1871_s6 + $0x1b0] sm:$0xff] %vm691_vm0, %v681_v39  ;;  %v682_v49 = vmax.f32 %v618_v40, 0.0  ;;  %v619_v50 = vadd.f32 %v555_v41, %v285_v34  ;;  %v217_v51 = vmul.f32 %v1701_v42, %v883_v43  ;;  %v1011_v52 = vunpack.c.h.bf16 %v1079_v27 }
  0x77   :  { %v620_v53 = vadd.f32 %v556_v46, %v286_v45  ;;  %v287_v54 = vadd.f32 %v1721_v12, %v216_v6  ;;  %v557_v55 = vadd.f32 %v1732_v57, %v486_v47  ;;  %v886_v56 = vunpack.c.l.bf16 %v1049_v44 }
  0x78   :  { %747 = vst.msk [vmem:[%s1871_s6 + $0x1b8] sm:$0xff] %vm691_vm0, %v682_v49  ;;  %v683_v59 = vmax.f32 %v619_v50, 0.0  ;;  %v288_v60 = vadd.f32 %v1721_v12, %v217_v51  ;;  %v487_v61 = vmul.f32 %v1708_v4, %v1011_v52  ;;  %v1014_v62 = vunpack.c.l.bf16 %v1080_v48 }
  0x79   :  { %v684_v0 = vmax.f32 %v620_v53, 0.0  ;;  %v621_v2 = vadd.f32 %v557_v55, %v287_v54  ;;  %v218_v3 = vmul.f32 %v1701_v42, %v886_v56  ;;  %v887_v5 = vunpack.c.h.bf16 %v1049_v44 }
  0x7a   :  { %748 = vst.msk [vmem:[%s1871_s6 + $0x1c0] sm:$0xff] %vm691_vm0, %v683_v59  ;;  %v558_v7 = vadd.f32 %v1732_v57, %v487_v61  ;;  %v488_v8 = vmul.f32 %v1708_v4, %v1014_v62  ;;  %v1015_v9 = vunpack.c.h.bf16 %v1080_v48  ;;  %v890_v10 = vunpack.c.l.bf16 %v1050_v58 }
  0x7b   :  { %749 = vst.msk [vmem:[%s1871_s6 + $0x1c8] sm:$0xff] %vm691_vm0, %v684_v0  ;;  %v685_v11 = vmax.f32 %v621_v2, 0.0  ;;  %v289_v13 = vadd.f32 %v1721_v12, %v218_v3  ;;  %v219_v14 = vmul.f32 %v1701_v42, %v887_v5  ;;  %v1018_v15 = vunpack.c.l.bf16 %v1081_v63 }
  0x7c   :  { %v622_v16 = vadd.f32 %v558_v7, %v288_v60  ;;  %v559_v17 = vadd.f32 %v1732_v57, %v488_v8  ;;  %v489_v18 = vmul.f32 %v1708_v4, %v1015_v9  ;;  %v220_v19 = vmul.f32 %v1701_v42, %v890_v10 }
  0x7d   :  { %750 = vst.msk [vmem:[%s1871_s6 + $0x1d0] sm:$0xff] %vm691_vm0, %v685_v11  ;;  %v290_v20 = vadd.f32 %v1721_v12, %v219_v14  ;;  %v490_v21 = vmul.f32 %v1708_v4, %v1018_v15  ;;  %v891_v22 = vunpack.c.h.bf16 %v1050_v58  ;;  %v1019_v23 = vunpack.c.h.bf16 %v1081_v63 }
  0x7e   :  { %v686_v24 = vmax.f32 %v622_v16, 0.0  ;;  %v623_v25 = vadd.f32 %v559_v17, %v289_v13  ;;  %v560_v26 = vadd.f32 %v1732_v57, %v489_v18  ;;  %v291_v27 = vadd.f32 %v1721_v12, %v220_v19 }
  0x7f   :  { %v561_v28 = vadd.f32 %v1732_v57, %v490_v21  ;;  %v221_v29 = vmul.f32 %v1701_v42, %v891_v22  ;;  %v491_v30 = vmul.f32 %v1708_v4, %v1019_v23 }
  0x80   :  { %751 = vst.msk [vmem:[%s1871_s6 + $0x1d8] sm:$0xff] %vm691_vm0, %v686_v24  ;;  %v687_v31 = vmax.f32 %v623_v25, 0.0  ;;  %v624_v32 = vadd.f32 %v560_v26, %v290_v20 }
  0x81   :  { %v625_v33 = vadd.f32 %v561_v28, %v291_v27  ;;  %v292_v34 = vadd.f32 %v1721_v12, %v221_v29  ;;  %v562_v35 = vadd.f32 %v1732_v57, %v491_v30 }
  0x82   :  { %752 = vst.msk [vmem:[%s1871_s6 + $0x1e0] sm:$0xff] %vm691_vm0, %v687_v31  ;;  %v688_v42 = vmax.f32 %v624_v32, 0.0 }
  0x83   :  { %v689_v36 = vmax.f32 %v625_v33, 0.0  ;;  %v626_v4 = vadd.f32 %v562_v35, %v292_v34 }
  0x84   :  { %753 = vst.msk [vmem:[%s1871_s6 + $0x1e8] sm:$0xff] %vm691_vm0, %v688_v42 }
  0x85   :  { %754 = vst.msk [vmem:[%s1871_s6 + $0x1f0] sm:$0xff] %vm691_vm0, %v689_v36  ;;  %v690_v12 = vmax.f32 %v626_v4, 0.0 }
  0x87   :  { %755 = vst.msk [vmem:[%s1871_s6 + $0x1f8] sm:$0xff] %vm691_vm0, %v690_v12 }

// kernel: basic_block_forward.4
= control target key start
LH: loop header
LB: loop body
LE: loop exit
PB: predicated region body
PF: predicated region fallthrough
CT: control target
= control target key end

     0   :  { %s7420_s18 = smov 0   ;;  %s9415_s0 = inlined_call_operand.vmem [shape: bf16[2,16,16,8], index: 0, kind: input, shape index: {}]   ;;  %s9416_s1 = inlined_call_operand.vmem [shape: f32[1,8], index: 1, kind: input, shape index: {}]   ;;  %s9417_s2 = inlined_call_operand.vmem [shape: f32[1,8], index: 2, kind: input, shape index: {}]   ;;  %s9418_s3 = inlined_call_operand.vmem [shape: bf16[9,8,8], index: 3, kind: input, shape index: {}]   ;;  %s9419_s4 = inlined_call_operand.vmem [shape: bf16[512,8], index: 4, kind: output, shape index: {0}]   ;;  %s9420_s5 = inlined_call_operand.vmem [shape: f32[2,8,8], index: 5, kind: output, shape index: {1}]  }
   0x1 LB: > { %s7426_s19 = sadd.s32 4294967295, %s7387_s18   ;;  %p5988_p0 = scmp.ge.s32.totalorder %s7387_s18, 1  ;;  %s7387_s18 = sphi %s7420_s18, %s16_s18  }
   0x2   : > { %p190_p1 = scmp.lt.s32.totalorder %s7387_s18, 3 }
   0x4   : > { %p191_p2 = pnand %p5988_p0, %p190_p1 }
   0x6   : > { %194 = sbr.rel (%p191_p2) target bundleno = 710 (0x2c6), region = 36 }
   0xd   : > { %v6028_v0 = vld [vmem:[%s9418_s3 + $0x4] sm:$0xf]  ;;  %vm1540_vm0 = vcmask 1043456   ;;  %v6175_v1 = vld [vmem:[%s9418_s3 + $0x10] sm:$0xf]  ;;  %vm238_vm1 = vcmask 60416  }
   0xe   : > { %7267 = vmatprep.subr.msk.bf16.mxu1 %vm1540_vm0, %v6028_v0  ;;  %7271 = vmatprep.subr.msk.bf16.mxu0 %vm1540_vm0, %v6175_v1  ;;  %v1542_v2 = vsel %vm1540_vm0, %v6028_v0, 0  ;;  %v7440_v3 = vsel %vm1540_vm0, %v6175_v1, 0  ;;  %vm241_vm2 = vcmask 57344   ;;  %p222_p3 = scmp.lt.s32.totalorder %s7426_s19, 1  ;;  %v7389_v4 = vmov 0   ;;  %s5991_s14 = sshll.u32 %s7426_s19, 5 }
   0xf   : > { %9437 = vst [vmem:[#allocation3_spill] sm:$0xff] %v7440_v3  ;;  %6704 = vmatpush3.bf16.msra.mxu1 %v1542_v2  ;;  %6840 = vmatpush3.bf16.msra.mxu0 %v7440_v3  ;;  %239 = vst.msk [vmem:[#allocation2] sm:$0xf] %vm238_vm1, %v7389_v4  ;;  %v7507_v5 = vld [vmem:[%s9418_s3] sm:$0xf]  ;;  %vm1491_vm7 = vcmask 64512  }
  0x10   : > { %240 = vst.msk [vmem:[#allocation2 + $0x4] sm:$0xf] %vm238_vm1, %v7389_v4  ;;  %243 = vst.msk [vmem:[#allocation2 + $0xc] sm:$0xf] %vm238_vm1, %v7389_v4  ;;  %s7501_s24 = scalar_select %p222_p3, %s7426_s19, 1  ;;  %7268 = vmatprep.subr.msk.bf16.mxu1 %vm1540_vm0, %v7507_v5  ;;  %vm2045_vm13 = vcmask 1042432  }
  0x11   : > { %242 = vst.msk [vmem:[#allocation2 + $0x8] sm:$0x1] %vm241_vm2, %v7389_v4  ;;  %245 = vst.msk [vmem:[#allocation2 + $0x14] sm:$0x1] %vm241_vm2, %v7389_v4  ;;  %v7512_v6 = vld [vmem:[%s9418_s3 + $0x14] sm:$0xf] }
  0x12   : > { %244 = vst.msk [vmem:[#allocation2 + $0x10] sm:$0xf] %vm238_vm1, %v7389_v4  ;;  %246 = vst.msk [vmem:[#allocation2 + $0x18] sm:$0xf] %vm238_vm1, %v7389_v4  ;;  %s6406_s25 = sshll.u32 %s7501_s24, 7  ;;  %7273 = vmatprep.subr.msk.bf16.mxu0 %vm1540_vm0, %v7512_v6  ;;  %vm2046_vm14 = vcmask 1046532  }
  0x13   : > { %247 = vst.msk [vmem:[#allocation2 + $0x1c] sm:$0xf] %vm238_vm1, %v7389_v4  ;;  %249 = vst.msk [vmem:[#allocation2 + $0x24] sm:$0xf] %vm238_vm1, %v7389_v4  ;;  %s7517_s7 = scalar_lea.vmem %s9415_s0, %s6406_s25  ;;  %vm1054_vm3 = vsmask.f32 3328 }
  0x14   : > { %248 = vst.msk [vmem:[#allocation2 + $0x20] sm:$0x1] %vm241_vm2, %v7389_v4  ;;  %251 = vst.msk [vmem:[#allocation2 + $0x2c] sm:$0x1] %vm241_vm2, %v7389_v4  ;;  %v6472_v7 = vld [vmem:[%s7517_s7] sm:$0xff]   ;;  %v6535_v8 = vld [vmem:[%s7517_s7 + $0x8] sm:$0xff]  }
  0x15   : > { %250 = vst.msk [vmem:[#allocation2 + $0x28] sm:$0xf] %vm238_vm1, %v7389_v4  ;;  %252 = vst.msk [vmem:[#allocation2 + $0x30] sm:$0xf] %vm238_vm1, %v7389_v4  ;;  %vm1055_vm4 = vsmask.f32 7440  ;;  %v6473_v9 = vunpack.c.l.bf16 %v6472_v7  ;;  %v6474_v10 = vunpack.c.h.bf16 %v6472_v7  ;;  %v6477_v12 = vunpack.c.l.bf16 %v6535_v8 }
  0x16   : > { %253 = vst.msk [vmem:[#allocation2 + $0x34] sm:$0xf] %vm238_vm1, %v7389_v4  ;;  %255 = vst.msk [vmem:[#allocation2 + $0x3c] sm:$0xf] %vm238_vm1, %v7389_v4  ;;  %v7528_v11 = vld [vmem:[%s9416_s1] ss:$0 sm:$0xff]  ;;  %v6478_v18 = vunpack.c.h.bf16 %v6535_v8 }
  0x17   : > { %254 = vst.msk [vmem:[#allocation2 + $0x38] sm:$0x1] %vm241_vm2, %v7389_v4  ;;  %257 = vst.msk [vmem:[#allocation2 + $0x44] sm:$0x1] %vm241_vm2, %v7389_v4  ;;  %v6536_v13 = vld [vmem:[%s7517_s7 + $0x10] sm:$0xff]   ;;  %v7532_v14 = vld [vmem:[%s7517_s7 + $0x18] sm:$0xff]   ;;  %v365_v28 = vmul.f32 %v6473_v9, %v7528_v11  ;;  %v366_v29 = vmul.f32 %v6474_v10, %v7528_v11  ;;  %v367_v38 = vmul.f32 %v6477_v12, %v7528_v11 }
  0x18   : > { %256 = vst.msk [vmem:[#allocation2 + $0x40] sm:$0xf] %vm238_vm1, %v7389_v4  ;;  %258 = vst.msk [vmem:[#allocation2 + $0x48] sm:$0xf] %vm238_vm1, %v7389_v4  ;;  %v1005_v15 = vld [vmem:[#allocation2] sm:$0xf]  ;;  %v6481_v19 = vunpack.c.l.bf16 %v6536_v13  ;;  %v6482_v20 = vunpack.c.h.bf16 %v6536_v13  ;;  %v6485_v21 = vunpack.c.l.bf16 %v7532_v14  ;;  %v6486_v30 = vunpack.c.h.bf16 %v7532_v14 }
  0x19   : > { %259 = vst.msk [vmem:[#allocation2 + $0x4c] sm:$0xf] %vm238_vm1, %v7389_v4  ;;  %261 = vst.msk [vmem:[#allocation2 + $0x54] sm:$0xf] %vm238_vm1, %v7389_v4  ;;  %v1006_v16 = vld [vmem:[#allocation2 + $0x4] sm:$0xf]  ;;  %v368_v41 = vmul.f32 %v6478_v18, %v7528_v11 }
  0x1a   : > { %260 = vst.msk [vmem:[#allocation2 + $0x50] sm:$0x1] %vm241_vm2, %v7389_v4  ;;  %263 = vst.msk [vmem:[#allocation2 + $0x5c] sm:$0x1] %vm241_vm2, %v7389_v4  ;;  %v1038_v17 = vld [vmem:[#allocation2 + $0x8] sm:$0x1]  ;;  %v369_v42 = vmul.f32 %v6481_v19, %v7528_v11  ;;  %v370_v47 = vmul.f32 %v6482_v20, %v7528_v11 }
  0x1b   : > { %262 = vst.msk [vmem:[#allocation2 + $0x58] sm:$0xf] %vm238_vm1, %v7389_v4  ;;  %264 = vst.msk [vmem:[#allocation2 + $0x60] sm:$0xf] %vm238_vm1, %v7389_v4  ;;  %vm564_vm5 = vsmask.f32 256 }
  0x1c   : > { %265 = vst.msk [vmem:[#allocation2 + $0x64] sm:$0xf] %vm238_vm1, %v7389_v4  ;;  %267 = vst.msk [vmem:[#allocation2 + $0x6c] sm:$0xf] %vm238_vm1, %v7389_v4  ;;  %vm565_vm6 = vsmask.f32 4368 }
  0x1d   : > { %266 = vst.msk [vmem:[#allocation2 + $0x68] sm:$0x1] %vm241_vm2, %v7389_v4  ;;  %269 = vst.msk [vmem:[#allocation2 + $0x74] sm:$0x1] %vm241_vm2, %v7389_v4  ;;  %v1058_v22 = vshrl.u32 %v1005_v15, 16  ;;  %v1061_v23 = vshll.u32 %v1005_v15, 16 }
  0x1e   : > { %268 = vst.msk [vmem:[#allocation2 + $0x70] sm:$0xf] %vm238_vm1, %v7389_v4  ;;  %270 = vst.msk [vmem:[#allocation2 + $0x78] sm:$0xf] %vm238_vm1, %v7389_v4  ;;  %v1067_v24 = vshll.u32 %v1006_v16, 16  ;;  %v1071_v25 = vshrl.u32 %v1006_v16, 16  ;;  %v371_v16 = vmul.f32 %v6485_v21, %v7528_v11 }
  0x1f   : > { %271 = vst.msk [vmem:[#allocation2 + $0x7c] sm:$0xf] %vm238_vm1, %v7389_v4  ;;  %273 = vst.msk [vmem:[#allocation2 + $0x84] sm:$0xf] %vm238_vm1, %v7389_v4  ;;  %v7538_v26 = vld [vmem:[%s9417_s2] ss:$0 sm:$0xff] }
  0x20   : > { %272 = vst.msk [vmem:[#allocation2 + $0x80] sm:$0x1] %vm241_vm2, %v7389_v4  ;;  %275 = vst.msk [vmem:[#allocation2 + $0x8c] sm:$0x1] %vm241_vm2, %v7389_v4  ;;  %vm889_vm8 = vsmask.f32 7938  ;;  %v404_v36 = vadd.f32 %v7538_v26, %v365_v28  ;;  %v405_v37 = vadd.f32 %v7538_v26, %v366_v29  ;;  %v406_v46 = vadd.f32 %v7538_v26, %v367_v38 }
  0x21   : > { %274 = vst.msk [vmem:[#allocation2 + $0x88] sm:$0xf] %vm238_vm1, %v7389_v4  ;;  %276 = vst.msk [vmem:[#allocation2 + $0x90] sm:$0xf] %vm238_vm1, %v7389_v4  ;;  %v1077_v27 = vshll.u32 %v1038_v17, 16  ;;  %v1060_v31 = vrot.slane %v1058_v22, 4  ;;  %v407_v50 = vadd.f32 %v7538_v26, %v368_v41  ;;  %v408_v51 = vadd.f32 %v7538_v26, %v369_v42 }
  0x22   : > { %277 = vst.msk [vmem:[#allocation2 + $0x94] sm:$0xf] %vm238_vm1, %v7389_v4  ;;  %279 = vst.msk [vmem:[#allocation2 + $0x9c] sm:$0xf] %vm238_vm1, %v7389_v4  ;;  %v1063_v32 = vrot.slane %v1061_v23, 5  ;;  %v1069_v33 = vrot.slane %v1067_v24, 5  ;;  %v409_v55 = vadd.f32 %v7538_v26, %v370_v47 }
  0x23   : > { %278 = vst.msk [vmem:[#allocation2 + $0x98] sm:$0x1] %vm241_vm2, %v7389_v4  ;;  %281 = vst.msk [vmem:[#allocation2 + $0xa4] sm:$0x1] %vm241_vm2, %v7389_v4  ;;  %v1073_v34 = vrot.slane %v1071_v25, 4  ;;  %v1079_v35 = vrot.slane %v1077_v27, 5 }
  0x24   : > { %280 = vst.msk [vmem:[#allocation2 + $0xa0] sm:$0xf] %vm238_vm1, %v7389_v4  ;;  %282 = vst.msk [vmem:[#allocation2 + $0xa8] sm:$0xf] %vm238_vm1, %v7389_v4  ;;  %v1064_v39 = vor.u32 %v1063_v32, %v1060_v31  ;;  %v436_v44 = vmax.f32 %v404_v36, 0.0  ;;  %v437_v45 = vmax.f32 %v405_v37, 0.0 }
  0x25   : > { %283 = vst.msk [vmem:[#allocation2 + $0xac] sm:$0xf] %vm238_vm1, %v7389_v4  ;;  %285 = vst.msk [vmem:[#allocation2 + $0xb4] sm:$0xf] %vm238_vm1, %v7389_v4  ;;  %v1074_v40 = vor.u32 %v1073_v34, %v1069_v33  ;;  %v438_v54 = vmax.f32 %v406_v46, 0.0  ;;  %v439_v58 = vmax.f32 %v407_v50, 0.0  ;;  %v372_v46 = vmul.f32 %v6486_v30, %v7528_v11 }
  0x26   : > { %284 = vst.msk [vmem:[#allocation2 + $0xb0] sm:$0x1] %vm241_vm2, %v7389_v4  ;;  %287 = vst.msk [vmem:[#allocation2 + $0xbc] sm:$0x1] %vm241_vm2, %v7389_v4  ;;  %v1065_v48 = vrot.slane %v1064_v39, 4  ;;  %v6407_v52 = vpack.c.bf16 %v436_v44, %v436_v44  ;;  %v6408_v53 = vpack.c.bf16 %v437_v45, %v437_v45  ;;  %v440_v59 = vmax.f32 %v408_v51, 0.0 }
  0x27   : > { %286 = vst.msk [vmem:[#allocation2 + $0xb8] sm:$0xf] %vm238_vm1, %v7389_v4  ;;  %288 = vst.msk [vmem:[#allocation2 + $0xc0] sm:$0xf] %vm238_vm1, %v7389_v4  ;;  %v1075_v49 = vrot.slane %v1074_v40, 4  ;;  %v6410_v7 = vpack.c.bf16 %v439_v58, %v439_v58  ;;  %v441_v8 = vmax.f32 %v409_v55, 0.0  ;;  %v411_v55 = vadd.f32 %v7538_v26, %v372_v46 }
  0x28   : > { %289 = vst.msk [vmem:[#allocation2 + $0xc4] sm:$0xf] %vm238_vm1, %v7389_v4  ;;  %291 = vst.msk [vmem:[#allocation2 + $0xcc] sm:$0xf] %vm238_vm1, %v7389_v4  ;;  %v568_v61 = vshrl.u32 %v6407_v52, 16  ;;  %v571_v62 = vshll.u32 %v6407_v52, 16  ;;  %v6411_v15 = vpack.c.bf16 %v440_v59, %v440_v59 }
  0x29   : > { %290 = vst.msk [vmem:[#allocation2 + $0xc8] sm:$0x1] %vm241_vm2, %v7389_v4  ;;  %293 = vst.msk [vmem:[#allocation2 + $0xd4] sm:$0x1] %vm241_vm2, %v7389_v4  ;;  %v576_v63 = vshrl.u32 %v6408_v53, 16  ;;  %v579_v1 = vshll.u32 %v6408_v53, 16  ;;  %v6412_v31 = vpack.c.bf16 %v441_v8, %v441_v8  ;;  %v410_v53 = vadd.f32 %v7538_v26, %v371_v16 }
  0x2a   : > { %292 = vst.msk [vmem:[#allocation2 + $0xd0] sm:$0xf] %vm238_vm1, %v7389_v4  ;;  %vm7550_vm9 = vmor %vm1054_vm3, %vm1055_vm4  ;;  %v891_v2 = vld [vmem:[#allocation2 + $0xc] sm:$0xf]  ;;  %v6409_v4 = vpack.c.bf16 %v438_v54, %v438_v54  ;;  %v570_v9 = vrot.slane %v568_v61, 7  ;;  %v593_v20 = vshrl.u32 %v6410_v7, 16 }
  0x2b   : > { %v1070_v56 = vsel %vm7550_vm9, %v1065_v48, %v1069_v33  ;;  %v1080_v57 = vsel %vm7550_vm9, %v1075_v49, %v1079_v35  ;;  %vm7565_vm10 = vmor %vm564_vm5, %vm565_vm6  ;;  %v578_v10 = vrot.slane %v576_v63, 7  ;;  %v897_v13 = vld [vmem:[#allocation2 + $0x14] sm:$0x1]  ;;  %v596_v22 = vshll.u32 %v6410_v7, 16  ;;  %v900_v35 = vld [vmem:[#allocation2 + $0x18] sm:$0xf] }
  0x2c   : > { %v6029_v60 = vcombine.low %v1070_v56, %v1080_v57  ;;  %vm7572_vm11 = vmand %vm238_vm1, %vm889_vm8  ;;  %v585_v18 = vshrl.u32 %v6409_v4, 16  ;;  %v588_v19 = vshll.u32 %v6409_v4, 16  ;;  %v573_v23 = vor.u32 %v571_v62, %v570_v9  ;;  %v904_v36 = vld [vmem:[#allocation2 + $0x20] sm:$0x1]  ;;  %v7595_v48 = vld [vmem:[%s7517_s7 + $0x28] sm:$0xff]   ;;  %p228_p4 = scmp.lt.s32.totalorder %s5991_s14, 63 }
  0x2d   : > { %vm7579_vm12 = vmand %vm241_vm2, %vm564_vm5  ;;  %v574_v24 = vrot.slane %v570_v9, 4  ;;  %v581_v25 = vor.u32 %v579_v1, %v578_v10  ;;  %v583_v27 = vrot.slane %v578_v10, 4  ;;  %v595_v29 = vrot.slane %v593_v20, 7  ;;  %v6538_v47 = vld [vmem:[%s7517_s7 + $0x20] sm:$0xff]   ;;  %v911_v56 = vld [vmem:[#allocation2 + $0x2c] sm:$0x1] }
  0x2e   : > { %6705 = vmatprep.mubr.msk.bf16.mxu1 %vm1491_vm7, %v6029_v60  ;;  %v587_v28 = vrot.slane %v585_v18, 7  ;;  %v602_v32 = vshrl.u32 %v6411_v15, 16  ;;  %v892_v33 = vsel %vm7572_vm11, %v573_v23, %v891_v2  ;;  %v605_v37 = vshll.u32 %v6411_v15, 16  ;;  %v907_v52 = vld [vmem:[#allocation2 + $0x24] sm:$0xf]  ;;  %vm7857_vm15 = vmor %vm2045_vm13, %vm2046_vm14  ;;  %s9505_s14 = smov (!%p228_p4, %s5991_s14), 63 }
  0x2f   : > { %v582_v21 = vsel %vm7565_vm10, %v574_v24, %v581_v25  ;;  %v898_v34 = vsel %vm7579_vm12, %v583_v27, %v897_v13  ;;  %893 = vst [vmem:[#allocation2 + $0xc] sm:$0xf] %v892_v33  ;;  %v598_v40 = vor.u32 %v596_v22, %v595_v29  ;;  %v600_v41 = vrot.slane %v595_v29, 4  ;;  %s5992_s15 = sshll.u32 %s9505_s14, 2  ;;  %s5993_s19 = sshll.u32 %s7501_s24, 3 }
  0x30   : > { %894 = vst.msk [vmem:[#allocation2 + $0x10] sm:$0xf] %vm238_vm1, %v582_v21  ;;  %899 = vst [vmem:[#allocation2 + $0x14] sm:$0x1] %v898_v34  ;;  %v590_v38 = vor.u32 %v588_v19, %v587_v28  ;;  %v591_v39 = vrot.slane %v587_v28, 4  ;;  %v604_v42 = vrot.slane %v602_v32, 7  ;;  %v6489_v58 = vunpack.c.l.bf16 %v6538_v47  ;;  %s9270_s20 = scalar_lea.vmem %s9419_s4, %s5992_s15  ;;  %s236_s23 = scalar_lea.vmem %s9420_s5, %s5993_s19 }
  0x31   : > { %v610_v44 = vshrl.u32 %v6412_v31, 16  ;;  %v613_v45 = vshll.u32 %v6412_v31, 16  ;;  %v905_v51 = vsel %vm7579_vm12, %v600_v41, %v904_v36  ;;  %v442_v57 = vmax.f32 %v410_v53, 0.0 }
  0x32   : > { %v599_v49 = vsel %vm7565_vm10, %v591_v39, %v598_v40  ;;  %v901_v50 = vsel %vm7572_vm11, %v590_v38, %v900_v35  ;;  %906 = vst [vmem:[#allocation2 + $0x20] sm:$0x1] %v905_v51  ;;  %v607_v14 = vor.u32 %v605_v37, %v604_v42  ;;  %v608_v30 = vrot.slane %v604_v42, 4 }
  0x33   : > { %902 = vst [vmem:[#allocation2 + $0x18] sm:$0xf] %v901_v50  ;;  %903 = vst.msk [vmem:[#allocation2 + $0x1c] sm:$0xf] %vm238_vm1, %v599_v49  ;;  %v612_v54 = vrot.slane %v610_v44, 7  ;;  %v6490_v59 = vunpack.c.h.bf16 %v6538_v47  ;;  %v6493_v60 = vunpack.c.l.bf16 %v7595_v48  ;;  %v443_v1 = vmax.f32 %v411_v55, 0.0 }
  0x34   : > { %v908_v63 = vsel %vm7572_vm11, %v607_v14, %v907_v52  ;;  %v7611_v2 = vsel %vm1540_vm0, %v7507_v5, 0  ;;  %v7615_v4 = vsel %vm1540_vm0, %v7512_v6, 0  ;;  %v7617_v7 = vpack.c.bf16 %v442_v57, %v442_v57 }
  0x35   : > { %v615_v61 = vor.u32 %v613_v45, %v612_v54  ;;  %v617_v62 = vrot.slane %v612_v54, 4  ;;  %909 = vst [vmem:[#allocation2 + $0x24] sm:$0xf] %v908_v63  ;;  %v7620_v8 = vmul.f32 %v6489_v58, %v7528_v11  ;;  %v7627_v16 = vmul.f32 %v6490_v59, %v7528_v11 }
  0x36   : > { %v1007_v9 = vld [vmem:[#allocation2 + $0xc] sm:$0xf]  ;;  %v6494_v6 = vunpack.c.h.bf16 %v7595_v48  ;;  %v7633_v28 = vpack.c.bf16 %v443_v1, %v443_v1  ;;  %v7636_v29 = vmul.f32 %v6493_v60, %v7528_v11  ;;  %v6540_v48 = vld [vmem:[%s7517_s7 + $0x30] sm:$0xff]  }
  0x37   : > { %v1008_v10 = vld [vmem:[#allocation2 + $0x10] sm:$0xf]  ;;  %v1039_v13 = vld [vmem:[#allocation2 + $0x14] sm:$0x1]  ;;  %v616_v15 = vsel %vm7565_vm10, %v608_v30, %v615_v61  ;;  %v912_v5 = vsel %vm7579_vm12, %v617_v62, %v911_v56  ;;  %v1082_v18 = vshrl.u32 %v1007_v9, 16  ;;  %v1085_v19 = vshll.u32 %v1007_v9, 16 }
  0x38   : > { %v1091_v20 = vshll.u32 %v1008_v10, 16  ;;  %v1095_v22 = vshrl.u32 %v1008_v10, 16  ;;  %v2812_v23 = vld [vmem:[#allocation2 + $0xc] sm:$0xf]  ;;  %910 = vst.msk [vmem:[#allocation2 + $0x28] sm:$0xf] %vm238_vm1, %v616_v15 }
  0x39   : > { %913 = vst [vmem:[#allocation2 + $0x2c] sm:$0x1] %v912_v5  ;;  %v1101_v24 = vshll.u32 %v1039_v13, 16  ;;  %v7631_v25 = vld [vmem:[#allocation2 + $0x10] sm:$0xf]  ;;  %v2861_v27 = vshrl.u32 %v2812_v23, 16 }
  0x3a   : > { %v1084_v31 = vrot.slane %v1082_v18, 4  ;;  %v1087_v32 = vrot.slane %v1085_v19, 5  ;;  %v1093_v21 = vrot.slane %v1091_v20, 5  ;;  %v1097_v33 = vrot.slane %v1095_v22, 4  ;;  %v7638_v34 = vld [vmem:[#allocation2 + $0x14] sm:$0x1] }
  0x3b   : > { %v1103_v35 = vrot.slane %v1101_v24, 5  ;;  %v2863_v36 = vrot.slane %v2861_v27, 4  ;;  %v2864_v37 = vshll.u32 %v2812_v23, 16  ;;  %v2870_v38 = vshll.u32 %v7631_v25, 16  ;;  %v2815_v44 = vld [vmem:[#allocation2 + $0x18] sm:$0xf] }
  0x3c   : > { %v1088_v39 = vor.u32 %v1087_v32, %v1084_v31  ;;  %v1098_v40 = vor.u32 %v1097_v33, %v1093_v21  ;;  %v2874_v41 = vshrl.u32 %v7631_v25, 16  ;;  %v2880_v42 = vshll.u32 %v7638_v34, 16  ;;  %v7643_v45 = vld [vmem:[#allocation2 + $0x1c] sm:$0xf]  ;;  %v7647_v54 = vld [vmem:[#allocation2 + $0x20] sm:$0x1] }
  0x3d   : > { %v2866_v46 = vrot.slane %v2864_v37, 5  ;;  %v2872_v47 = vrot.slane %v2870_v38, 5  ;;  %v3604_v49 = vrot.slane %v7631_v25, 5  ;;  %v3607_v50 = vrot.slane %v7638_v34, 5  ;;  %v1009_v10 = vld [vmem:[#allocation2 + $0x18] sm:$0xf] }
  0x3e   : > { %v1089_v51 = vrot.slane %v1088_v39, 4  ;;  %v1099_v52 = vrot.slane %v1098_v40, 4  ;;  %v2876_v53 = vrot.slane %v2874_v41, 4  ;;  %v2882_v14 = vrot.slane %v2880_v42, 5  ;;  %v1010_v24 = vld [vmem:[#allocation2 + $0x1c] sm:$0xf] }
  0x3f   : > { %v2867_v30 = vor.u32 %v2866_v46, %v2863_v36  ;;  %v2885_v55 = vshrl.u32 %v2815_v44, 16  ;;  %v2888_v56 = vshll.u32 %v2815_v44, 16  ;;  %v2894_v57 = vshll.u32 %v7643_v45, 16  ;;  %v1012_v46 = vld [vmem:[#allocation2 + $0x28] sm:$0xf] }
  0x40   : > { %v1094_v58 = vsel %vm7550_vm9, %v1089_v51, %v1093_v21  ;;  %v1104_v59 = vsel %vm7550_vm9, %v1099_v52, %v1103_v35  ;;  %v2877_v60 = vor.u32 %v2876_v53, %v2872_v47  ;;  %v2898_v61 = vshrl.u32 %v7643_v45, 16  ;;  %v1040_v21 = vld [vmem:[#allocation2 + $0x20] sm:$0x1]  ;;  %v1011_v35 = vld [vmem:[#allocation2 + $0x24] sm:$0xf] }
  0x41   : > { %v6030_v62 = vcombine.low %v1094_v58, %v1104_v59  ;;  %v2868_v63 = vrot.slane %v2867_v30, 4  ;;  %v2887_v1 = vrot.slane %v2885_v55, 4  ;;  %v2890_v9 = vrot.slane %v2888_v56, 5  ;;  %v1041_v52 = vld [vmem:[#allocation2 + $0x2c] sm:$0x1] }
  0x42   : > { %v2878_v13 = vrot.slane %v2877_v60, 4  ;;  %v2896_v15 = vrot.slane %v2894_v57, 5  ;;  %v2900_v5 = vrot.slane %v2898_v61, 4  ;;  %v2904_v18 = vshll.u32 %v7647_v54, 16  ;;  %v2818_v57 = vld [vmem:[#allocation2 + $0x24] sm:$0xf] }
  0x43   : > { %6706 = vmatmul.mubr.msk.bf16.vlgmr.msra.gmra.mrb[0].mxu1 %vm1491_vm7, %v6030_v62  ;;  %v2873_v19 = vsel %vm7550_vm9, %v2868_v63, %v2872_v47  ;;  %v2891_v20 = vor.u32 %v2890_v9, %v2887_v1  ;;  %v3611_v22 = vrot.slane %v7643_v45, 5  ;;  %v3614_v23 = vrot.slane %v7647_v54, 5  ;;  %v7676_v58 = vld [vmem:[%s9418_s3 + $0x18] sm:$0xf]  ;;  %v7678_v63 = vld [vmem:[#allocation2 + $0x28] sm:$0xf] }
  0x44   : > { %v2883_v27 = vsel %vm7550_vm9, %v2878_v13, %v2882_v14  ;;  %6738 = vmatpush3.bf16.msra.mxu1 %v7611_v2  ;;  %v2901_v31 = vor.u32 %v2900_v5, %v2896_v15  ;;  %v2906_v32 = vrot.slane %v2904_v18, 5  ;;  %v1106_v33 = vshrl.u32 %v1009_v10, 16 }
  0x45   : > { %v6176_v36 = vcombine.low %v2873_v19, %v2883_v27  ;;  %v2892_v37 = vrot.slane %v2891_v20, 4  ;;  %v7666_v38 = vrot.slane %v3611_v22, 4  ;;  %v1109_v39 = vshll.u32 %v1009_v10, 16 }
  0x46   : > { %v2902_v40 = vrot.slane %v2901_v31, 4  ;;  %v1108_v41 = vrot.slane %v1106_v33, 4  ;;  %v1115_v42 = vshll.u32 %v1010_v24, 16  ;;  %v1119_v44 = vshrl.u32 %v1010_v24, 16 }
  0x47   : > { %6841 = vmatprep.mubr.msk.bf16.mxu0 %vm1491_vm7, %v6176_v36  ;;  %v2897_v2 = vsel %vm7550_vm9, %v2892_v37, %v2896_v15  ;;  %v1111_v47 = vrot.slane %v1109_v39, 5  ;;  %v1125_v51 = vshll.u32 %v1040_v21, 16  ;;  %v1130_v53 = vshrl.u32 %v1011_v35, 16  ;;  %v7680_v15 = vld [vmem:[#allocation2 + $0x2c] sm:$0x1] }
  0x48   : > { %v2907_v14 = vsel %vm7550_vm9, %v2902_v40, %v2906_v32  ;;  %v1117_v30 = vrot.slane %v1115_v42, 5  ;;  %v1121_v55 = vrot.slane %v1119_v44, 4  ;;  %v1133_v56 = vshll.u32 %v1011_v35, 16 }
  0x49   : > { %v6177_v59 = vcombine.low %v2897_v2, %v2907_v14  ;;  %v1112_v60 = vor.u32 %v1111_v47, %v1108_v41  ;;  %v1127_v61 = vrot.slane %v1125_v51, 5  ;;  %v1132_v62 = vrot.slane %v1130_v53, 4 }
  0x4a   : > { %v1122_v1 = vor.u32 %v1121_v55, %v1117_v30  ;;  %v1135_v9 = vrot.slane %v1133_v56, 5  ;;  %v1139_v10 = vshll.u32 %v1012_v46, 16  ;;  %v1143_v13 = vshrl.u32 %v1012_v46, 16 }
  0x4b   : > { %6842 = vmatmul.mubr.msk.bf16.vlgmr.msra.gmra.mrb[0].mxu0 %vm1491_vm7, %v6177_v59  ;;  %v1113_v5 = vrot.slane %v1112_v60, 4  ;;  %v1149_v18 = vshll.u32 %v1041_v52, 16  ;;  %v2909_v19 = vshrl.u32 %v2818_v57, 16  ;;  %v2912_v20 = vshll.u32 %v2818_v57, 16 }
  0x4c   : > { %6874 = vmatpush3.bf16.msra.mxu0 %v7615_v4  ;;  %v1123_v24 = vrot.slane %v1122_v1, 4  ;;  %v1136_v27 = vor.u32 %v1135_v9, %v1132_v62  ;;  %v1141_v31 = vrot.slane %v1139_v10, 5  ;;  %v1145_v32 = vrot.slane %v1143_v13, 4  ;;  %v914_v9 = vld [vmem:[#allocation2 + $0x30] sm:$0xf] }
  0x4d   : > { %v1118_v21 = vsel %vm7550_vm9, %v1113_v5, %v1117_v30  ;;  %v1151_v33 = vrot.slane %v1149_v18, 5  ;;  %v2911_v35 = vrot.slane %v2909_v19, 4  ;;  %v2914_v36 = vrot.slane %v2912_v20, 5  ;;  %7274 = vmatprep.subr.msk.bf16.mxu0 %vm1540_vm0, %v7676_v58 }
  0x4e   : > { %v1128_v37 = vsel %vm7550_vm9, %v1123_v24, %v1127_v61  ;;  %v1137_v39 = vrot.slane %v1136_v27, 4  ;;  %v1146_v40 = vor.u32 %v1145_v32, %v1141_v31  ;;  %v2918_v4 = vshll.u32 %v7678_v63, 16 }
  0x4f   : > { %v6031_v41 = vcombine.low %v1118_v21, %v1128_v37  ;;  %v2915_v42 = vor.u32 %v2914_v36, %v2911_v35  ;;  %v2922_v44 = vshrl.u32 %v7678_v63, 16  ;;  %v2928_v46 = vshll.u32 %v7680_v15, 16 }
  0x50   : > { %v1142_v2 = vsel %vm7550_vm9, %v1137_v39, %v1141_v31  ;;  %v1147_v47 = vrot.slane %v1146_v40, 4  ;;  %v2920_v51 = vrot.slane %v2918_v4, 5  ;;  %v619_v52 = vshrl.u32 %v7617_v7, 16 }
  0x51   : > { %6709 = vmatprep.mubr.msk.bf16.mxu1 %vm1491_vm7, %v6031_v41  ;;  %v2916_v53 = vrot.slane %v2915_v42, 4  ;;  %v2924_v14 = vrot.slane %v2922_v44, 4  ;;  %v2930_v30 = vrot.slane %v2928_v46, 5  ;;  %v622_v55 = vshll.u32 %v7617_v7, 16  ;;  %v7726_v44 = vld [vmem:[%s7517_s7 + $0x38] sm:$0xff]  }
  0x52   : > { %v1152_v56 = vsel %vm7550_vm9, %v1147_v47, %v1151_v33  ;;  %v621_v57 = vrot.slane %v619_v52, 7  ;;  %v627_v59 = vshrl.u32 %v7633_v28, 16  ;;  %v630_v60 = vshll.u32 %v7633_v28, 16  ;;  %v918_v28 = vld [vmem:[#allocation2 + $0x38] sm:$0x1] }
  0x53   : > { %v6032_v61 = vcombine.low %v1142_v2, %v1152_v56  ;;  %v2921_v62 = vsel %vm7550_vm9, %v2916_v53, %v2920_v51  ;;  %v2925_v1 = vor.u32 %v2924_v14, %v2920_v51  ;;  %v412_v10 = vadd.f32 %v7538_v26, %v7620_v8  ;;  %v921_v56 = vld [vmem:[#allocation2 + $0x3c] sm:$0xf] }
  0x54   : > { %v624_v13 = vor.u32 %v622_v55, %v621_v57  ;;  %v625_v5 = vrot.slane %v621_v57, 4  ;;  %v629_v7 = vrot.slane %v627_v59, 7  ;;  %v413_v18 = vadd.f32 %v7538_v26, %v7627_v16 }
  0x55   : > { %6710 = vmatmul.mubr.msk.bf16.gmra.mrb[4].mxu1 %vm1491_vm7, %v6032_v61  ;;  %v2926_v19 = vrot.slane %v2925_v1, 4  ;;  %v444_v20 = vmax.f32 %v412_v10, 0.0  ;;  %v376_v24 = vmul.f32 %v6494_v6, %v7528_v11  ;;  %v414_v27 = vadd.f32 %v7538_v26, %v7636_v29  ;;  %v925_v1 = vld [vmem:[#allocation2 + $0x44] sm:$0x1] }
  0x56   : > { %v632_v8 = vor.u32 %v630_v60, %v629_v7  ;;  %v634_v31 = vrot.slane %v629_v7, 4  ;;  %v915_v32 = vsel %vm7572_vm11, %v624_v13, %v914_v9  ;;  %v445_v21 = vmax.f32 %v413_v18, 0.0 }
  0x57   : > { %v2931_v16 = vsel %vm7550_vm9, %v2926_v19, %v2930_v30  ;;  %916 = vst [vmem:[#allocation2 + $0x30] sm:$0xf] %v915_v32  ;;  %v6415_v33 = vpack.c.bf16 %v444_v20, %v444_v20  ;;  %v415_v35 = vadd.f32 %v7538_v26, %v376_v24  ;;  %v446_v36 = vmax.f32 %v414_v27, 0.0 }
  0x58   : > { %v6178_v6 = vcombine.low %v2921_v62, %v2931_v16  ;;  %v633_v29 = vsel %vm7565_vm10, %v625_v5, %v632_v8  ;;  %v919_v37 = vsel %vm7579_vm12, %v634_v31, %v918_v28  ;;  %v6416_v39 = vpack.c.bf16 %v445_v21, %v445_v21 }
  0x59   : > { %917 = vst.msk [vmem:[#allocation2 + $0x34] sm:$0xf] %vm238_vm1, %v633_v29  ;;  %920 = vst [vmem:[#allocation2 + $0x38] sm:$0x1] %v919_v37  ;;  %v636_v40 = vshrl.u32 %v6415_v33, 16  ;;  %v639_v4 = vshll.u32 %v6415_v33, 16  ;;  %v6417_v42 = vpack.c.bf16 %v446_v36, %v446_v36  ;;  %v6497_v47 = vunpack.c.l.bf16 %v6540_v48 }
  0x5a   : > { %v447_v41 = vmax.f32 %v415_v35, 0.0  ;;  %6845 = vmatprep.mubr.msk.bf16.mxu0 %vm1491_vm7, %v6178_v6  ;;  %v644_v46 = vshrl.u32 %v6416_v39, 16  ;;  %v647_v2 = vshll.u32 %v6416_v39, 16  ;;  %v6498_v51 = vunpack.c.h.bf16 %v6540_v48 }
  0x5b   : > { %v638_v52 = vrot.slane %v636_v40, 7  ;;  %v653_v14 = vshrl.u32 %v6417_v42, 16  ;;  %v656_v30 = vshll.u32 %v6417_v42, 16  ;;  %v377_v57 = vmul.f32 %v6497_v47, %v7528_v11 }
  0x5c   : > { %v7729_v53 = vpack.c.bf16 %v447_v41, %v447_v41  ;;  %v646_v55 = vrot.slane %v644_v46, 7  ;;  %v378_v59 = vmul.f32 %v6498_v51, %v7528_v11  ;;  %v6501_v60 = vunpack.c.l.bf16 %v7726_v44 }
  0x5d   : > { %v641_v61 = vor.u32 %v639_v4, %v638_v52  ;;  %v642_v62 = vrot.slane %v638_v52, 4  ;;  %v7734_v9 = vrot.slane %v653_v14, 7  ;;  %v7739_v28 = vadd.f32 %v7538_v26, %v377_v57  ;;  %v928_v52 = vld [vmem:[#allocation2 + $0x48] sm:$0xf] }
  0x5e   : > { %v661_v10 = vshrl.u32 %v7729_v53, 16  ;;  %v2821_v13 = vld [vmem:[#allocation2 + $0x30] sm:$0xf]  ;;  %v649_v7 = vor.u32 %v647_v2, %v646_v55  ;;  %v651_v18 = vrot.slane %v646_v55, 4  ;;  %v664_v19 = vshll.u32 %v7729_v53, 16 }
  0x5f   : > { %v1013_v5 = vld [vmem:[#allocation2 + $0x30] sm:$0xf]  ;;  %v2933_v20 = vshrl.u32 %v2821_v13, 16  ;;  %v2936_v24 = vshll.u32 %v2821_v13, 16  ;;  %v922_v33 = vsel %vm7572_vm11, %v641_v61, %v921_v56  ;;  %v658_v36 = vor.u32 %v656_v30, %v7734_v9 }
  0x60   : > { %v1154_v27 = vshrl.u32 %v1013_v5, 16  ;;  %v1157_v8 = vshll.u32 %v1013_v5, 16  ;;  %v7741_v31 = vld [vmem:[#allocation2 + $0x34] sm:$0xf]  ;;  %v7743_v32 = vld [vmem:[#allocation2 + $0x38] sm:$0x1]  ;;  %v650_v16 = vsel %vm7565_vm10, %v642_v62, %v649_v7  ;;  %v926_v35 = vsel %vm7579_vm12, %v651_v18, %v925_v1 }
  0x61   : > { %v1014_v21 = vld [vmem:[#allocation2 + $0x34] sm:$0xf]  ;;  %v2935_v48 = vrot.slane %v2933_v20, 4  ;;  %v2938_v6 = vrot.slane %v2936_v24, 5  ;;  %v2942_v29 = vshll.u32 %v7741_v31, 16  ;;  %v2946_v37 = vshrl.u32 %v7741_v31, 16 }
  0x62   : > { %v1042_v39 = vld [vmem:[#allocation2 + $0x38] sm:$0x1]  ;;  %923 = vst [vmem:[#allocation2 + $0x3c] sm:$0xf] %v922_v33  ;;  %924 = vst.msk [vmem:[#allocation2 + $0x40] sm:$0xf] %vm238_vm1, %v650_v16  ;;  %v929_v7 = vsel %vm7572_vm11, %v658_v36, %v928_v52 }
  0x63   : > { %927 = vst [vmem:[#allocation2 + $0x44] sm:$0x1] %v926_v35  ;;  %v2952_v40 = vshll.u32 %v7743_v32, 16  ;;  %v1156_v4 = vrot.slane %v1154_v27, 4  ;;  %v1159_v41 = vrot.slane %v1157_v8, 5  ;;  %v1163_v42 = vshll.u32 %v1014_v21, 16 }
  0x64   : > { %v2939_v46 = vor.u32 %v2938_v6, %v2935_v48  ;;  %v2944_v2 = vrot.slane %v2942_v29, 5  ;;  %v2948_v47 = vrot.slane %v2946_v37, 4  ;;  %v1167_v51 = vshrl.u32 %v1014_v21, 16  ;;  %930 = vst [vmem:[#allocation2 + $0x48] sm:$0xf] %v929_v7 }
  0x65   : > { %v2954_v53 = vrot.slane %v2952_v40, 5  ;;  %v1160_v14 = vor.u32 %v1159_v41, %v1156_v4  ;;  %v1165_v30 = vrot.slane %v1163_v42, 5  ;;  %v1173_v55 = vshll.u32 %v1042_v39, 16  ;;  %v932_v7 = vld [vmem:[#allocation2 + $0x50] sm:$0x1] }
  0x66   : > { %v2940_v56 = vrot.slane %v2939_v46, 4  ;;  %v2949_v57 = vor.u32 %v2948_v47, %v2944_v2  ;;  %v1169_v61 = vrot.slane %v1167_v51, 4  ;;  %v659_v62 = vrot.slane %v7734_v9, 4 }
  0x67   : > { %v1161_v1 = vrot.slane %v1160_v14, 4  ;;  %v1175_v13 = vrot.slane %v1173_v55, 5  ;;  %v663_v5 = vrot.slane %v661_v10, 7  ;;  %v7762_v27 = vadd.f32 %v7538_v26, %v378_v59 }
  0x68   : > { %v2945_v18 = vsel %vm7550_vm9, %v2940_v56, %v2944_v2  ;;  %v2950_v20 = vrot.slane %v2949_v57, 4  ;;  %v1170_v24 = vor.u32 %v1169_v61, %v1165_v30  ;;  %v6502_v10 = vunpack.c.h.bf16 %v7726_v44 }
  0x69   : > { %v1166_v8 = vsel %vm7550_vm9, %v1161_v1, %v1165_v30  ;;  %v1015_v21 = vld [vmem:[#allocation2 + $0x3c] sm:$0xf]  ;;  %v1016_v9 = vld [vmem:[#allocation2 + $0x40] sm:$0xf]  ;;  %v666_v33 = vor.u32 %v664_v19, %v663_v5  ;;  %v7770_v35 = vmul.f32 %v6501_v60, %v7528_v11 }
  0x6a   : > { %v1043_v16 = vld [vmem:[#allocation2 + $0x44] sm:$0x1]  ;;  %v2955_v36 = vsel %vm7550_vm9, %v2950_v20, %v2954_v53  ;;  %v1171_v48 = vrot.slane %v1170_v24, 4  ;;  %v1178_v59 = vshrl.u32 %v1015_v21, 16  ;;  %v1181_v6 = vshll.u32 %v1015_v21, 16 }
  0x6b   : > { %v2824_v29 = vld [vmem:[#allocation2 + $0x3c] sm:$0xf]  ;;  %v6179_v37 = vcombine.low %v2945_v18, %v2955_v36  ;;  %v1187_v39 = vshll.u32 %v1016_v9, 16  ;;  %v1191_v40 = vshrl.u32 %v1016_v9, 16  ;;  %v1197_v4 = vshll.u32 %v1043_v16, 16 }
  0x6c   : > { %v7774_v41 = vld [vmem:[#allocation2 + $0x40] sm:$0xf]  ;;  %v1176_v19 = vsel %vm7550_vm9, %v1171_v48, %v1175_v13  ;;  %v1180_v42 = vrot.slane %v1178_v59, 4  ;;  %v1183_v46 = vrot.slane %v1181_v6, 5  ;;  %v7778_v60 = vld [vmem:[#allocation2 + $0x44] sm:$0x1]  ;;  %v667_v13 = vsel %vm7565_vm10, %v659_v62, %v666_v33 }
  0x6d   : > { %v2957_v2 = vshrl.u32 %v2824_v29, 16  ;;  %6846 = vmatmul.mubr.msk.bf16.gmra.mrb[4].mxu0 %vm1491_vm7, %v6179_v37  ;;  %v6033_v47 = vcombine.low %v1166_v8, %v1176_v19  ;;  %v1189_v51 = vrot.slane %v1187_v39, 5  ;;  %v1193_v52 = vrot.slane %v1191_v40, 4  ;;  %v2827_v18 = vld [vmem:[#allocation2 + $0x48] sm:$0xf] }
  0x6e   : > { %v1199_v53 = vrot.slane %v1197_v4, 5  ;;  %v1184_v14 = vor.u32 %v1183_v46, %v1180_v42  ;;  %v2960_v55 = vshll.u32 %v2824_v29, 16  ;;  %v2966_v56 = vshll.u32 %v7774_v41, 16  ;;  %931 = vst.msk [vmem:[#allocation2 + $0x4c] sm:$0xf] %vm238_vm1, %v667_v13 }
  0x6f   : > { %v2959_v30 = vrot.slane %v2957_v2, 4  ;;  %6713 = vmatprep.mubr.msk.bf16.mxu1 %vm1491_vm7, %v6033_v47  ;;  %v1194_v57 = vor.u32 %v1193_v52, %v1189_v51  ;;  %v2970_v61 = vshrl.u32 %v7774_v41, 16  ;;  %v2976_v1 = vshll.u32 %v7778_v60, 16  ;;  %v1017_v9 = vld [vmem:[#allocation2 + $0x48] sm:$0xf] }
  0x70   : > { %v1185_v20 = vrot.slane %v1184_v14, 4  ;;  %v2962_v24 = vrot.slane %v2960_v55, 5  ;;  %v2968_v8 = vrot.slane %v2966_v56, 5  ;;  %v668_v21 = vrot.slane %v663_v5, 4  ;;  %v7803_v56 = vld [vmem:[%s7517_s7 + $0x40] sm:$0xff]  }
  0x71   : > { %v1195_v16 = vrot.slane %v1194_v57, 4  ;;  %v2972_v36 = vrot.slane %v2970_v61, 4  ;;  %v2978_v48 = vrot.slane %v2976_v1, 5  ;;  %v2981_v59 = vshrl.u32 %v2827_v18, 16 }
  0x72   : > { %v1190_v6 = vsel %vm7550_vm9, %v1185_v20, %v1189_v51  ;;  %v2963_v29 = vor.u32 %v2962_v24, %v2959_v30  ;;  %v933_v62 = vsel %vm7579_vm12, %v668_v21, %v932_v7  ;;  %v2984_v33 = vshll.u32 %v2827_v18, 16 }
  0x73   : > { %v1200_v37 = vsel %vm7550_vm9, %v1195_v16, %v1199_v53  ;;  %v2973_v39 = vor.u32 %v2972_v36, %v2968_v8  ;;  %934 = vst [vmem:[#allocation2 + $0x50] sm:$0x1] %v933_v62  ;;  %v2983_v5 = vrot.slane %v2981_v59, 4  ;;  %v1202_v40 = vshrl.u32 %v1017_v9, 16 }
  0x74   : > { %v6034_v4 = vcombine.low %v1190_v6, %v1200_v37  ;;  %v2964_v19 = vrot.slane %v2963_v29, 4  ;;  %v2986_v42 = vrot.slane %v2984_v33, 5  ;;  %v1205_v46 = vshll.u32 %v1017_v9, 16 }
  0x75   : > { %v2974_v2 = vrot.slane %v2973_v39, 4  ;;  %v1204_v47 = vrot.slane %v1202_v40, 4  ;;  %v448_v51 = vmax.f32 %v7739_v28, 0.0  ;;  %v449_v52 = vmax.f32 %v7762_v27, 0.0  ;;  %v7807_v61 = vld [vmem:[#allocation2 + $0x4c] sm:$0xf] }
  0x76   : > { %6714 = vmatmul.mubr.msk.bf16.gmra.mrb[8].mxu1 %vm1491_vm7, %v6034_v4  ;;  %v2969_v53 = vsel %vm7550_vm9, %v2964_v19, %v2968_v8  ;;  %v2987_v14 = vor.u32 %v2986_v42, %v2983_v5  ;;  %v1207_v30 = vrot.slane %v1205_v46, 5  ;;  %v380_v55 = vmul.f32 %v6502_v10, %v7528_v11  ;;  %v1018_v28 = vld [vmem:[#allocation2 + $0x4c] sm:$0xf] }
  0x77   : > { %v2979_v57 = vsel %vm7550_vm9, %v2974_v2, %v2978_v48  ;;  %v6419_v27 = vpack.c.bf16 %v448_v51, %v448_v51  ;;  %v6420_v1 = vpack.c.bf16 %v449_v52, %v449_v52  ;;  %v418_v13 = vadd.f32 %v7538_v26, %v7770_v35  ;;  %v6109_v52 = vld [vmem:[%s9418_s3 + $0x8] sm:$0xf] }
  0x78   : > { %v6180_v7 = vcombine.low %v2969_v53, %v2979_v57  ;;  %v2988_v18 = vrot.slane %v2987_v14, 4  ;;  %v2990_v20 = vshll.u32 %v7807_v61, 16  ;;  %v2994_v44 = vshrl.u32 %v7807_v61, 16  ;;  %7269 = vmatprep.subr.msk.bf16.mxu1 %vm1540_vm0, %v6109_v52 }
  0x79   : > { %v1208_v11 = vor.u32 %v1207_v30, %v1204_v47  ;;  %v1211_v10 = vshll.u32 %v1018_v28, 16  ;;  %v1215_v24 = vshrl.u32 %v1018_v28, 16  ;;  %v670_v8 = vshrl.u32 %v6419_v27, 16 }
  0x7a   : > { %6849 = vmatprep.mubr.msk.bf16.mxu0 %vm1491_vm7, %v6180_v7  ;;  %v7814_v21 = vld [vmem:[#allocation2 + $0x50] sm:$0x1]  ;;  %v2992_v9 = vrot.slane %v2990_v20, 5  ;;  %v2996_v16 = vrot.slane %v2994_v44, 4  ;;  %v419_v48 = vadd.f32 %v7538_v26, %v380_v55  ;;  %v6505_v35 = vunpack.c.l.bf16 %v7803_v56  ;;  %v935_v26 = vld [vmem:[#allocation2 + $0x54] sm:$0xf] }
  0x7b   : > { %v1044_v36 = vld [vmem:[#allocation2 + $0x50] sm:$0x1]  ;;  %v3000_v59 = vshll.u32 %v7814_v21, 16  ;;  %v1209_v6 = vrot.slane %v1208_v11, 4  ;;  %v1213_v29 = vrot.slane %v1211_v10, 5  ;;  %v1217_v62 = vrot.slane %v1215_v24, 4 }
  0x7c   : > { %v2993_v33 = vsel %vm7550_vm9, %v2988_v18, %v2992_v9  ;;  %v2997_v37 = vor.u32 %v2996_v16, %v2992_v9  ;;  %v1221_v39 = vshll.u32 %v1044_v36, 16  ;;  %v672_v5 = vrot.slane %v670_v8, 7  ;;  %v939_v11 = vld [vmem:[#allocation2 + $0x5c] sm:$0x1] }
  0x7d   : > { %v3002_v40 = vrot.slane %v3000_v59, 5  ;;  %v1214_v4 = vsel %vm7550_vm9, %v1209_v6, %v1213_v29  ;;  %v1218_v19 = vor.u32 %v1217_v62, %v1213_v29  ;;  %v673_v42 = vshll.u32 %v6419_v27, 16  ;;  %v3538_v59 = vld [vmem:[#allocation2 + $0xc] sm:$0xe] }
  0x7e   : > { %v2998_v46 = vrot.slane %v2997_v37, 4  ;;  %v1223_v2 = vrot.slane %v1221_v39, 5  ;;  %v676_v47 = vrot.slane %v672_v5, 4  ;;  %v678_v51 = vshrl.u32 %v6420_v1, 16 }
  0x7f   : > { %v1219_v53 = vrot.slane %v1218_v19, 4  ;;  %v675_v14 = vor.u32 %v673_v42, %v672_v5  ;;  %v681_v30 = vshll.u32 %v6420_v1, 16  ;;  %v450_v55 = vmax.f32 %v418_v13, 0.0 }
  0x80   : > { %v3003_v57 = vsel %vm7550_vm9, %v2998_v46, %v3002_v40  ;;  %v680_v28 = vrot.slane %v678_v51, 7  ;;  %v451_v27 = vmax.f32 %v419_v48, 0.0  ;;  %v6506_v7 = vunpack.c.h.bf16 %v7803_v56  ;;  %v7838_v56 = vld [vmem:[%s9416_s1] ss:$0 sm:$0xff] }
  0x81   : > { %v6181_v18 = vcombine.low %v2993_v33, %v3003_v57  ;;  %v1224_v20 = vsel %vm7550_vm9, %v1219_v53, %v1223_v2  ;;  %v936_v44 = vsel %vm7572_vm11, %v675_v14, %v935_v26  ;;  %v6421_v10 = vpack.c.bf16 %v450_v55, %v450_v55  ;;  %v946_v14 = vld [vmem:[#allocation2 + $0x68] sm:$0x1] }
  0x82   : > { %v6035_v1 = vcombine.low %v1214_v4, %v1224_v20  ;;  %v683_v13 = vor.u32 %v681_v30, %v680_v28  ;;  %v685_v24 = vrot.slane %v680_v28, 4  ;;  %937 = vst [vmem:[#allocation2 + $0x54] sm:$0xf] %v936_v44  ;;  %v6422_v8 = vpack.c.bf16 %v451_v27, %v451_v27  ;;  %v942_v4 = vld [vmem:[#allocation2 + $0x60] sm:$0xf]  ;;  %v7880_v20 = vld [vmem:[%s7517_s7 + $0x48] sm:$0xff]  }
  0x83   : > { %6850 = vmatmul.mubr.msk.bf16.gmra.mrb[8].mxu0 %vm1491_vm7, %v6181_v18  ;;  %v687_v9 = vshrl.u32 %v6421_v10, 16  ;;  %v690_v16 = vshll.u32 %v6421_v10, 16  ;;  %v381_v36 = vmul.f32 %v7838_v56, %v6505_v35  ;;  %v382_v48 = vmul.f32 %v7838_v56, %v6506_v7  ;;  %v7851_v35 = vld [vmem:[%s9417_s2] ss:$0 sm:$0xff] }
  0x84   : > { %6717 = vmatprep.mubr.msk.bf16.mxu1 %vm1491_vm7, %v6035_v1  ;;  %v684_v6 = vsel %vm7565_vm10, %v676_v47, %v683_v13  ;;  %v940_v29 = vsel %vm7579_vm12, %v685_v24, %v939_v11  ;;  %v695_v62 = vshrl.u32 %v6422_v8, 16  ;;  %v698_v33 = vshll.u32 %v6422_v8, 16 }
  0x85   : > { %938 = vst.msk [vmem:[#allocation2 + $0x58] sm:$0xf] %vm238_vm1, %v684_v6  ;;  %941 = vst [vmem:[#allocation2 + $0x5c] sm:$0x1] %v940_v29  ;;  %v689_v37 = vrot.slane %v687_v9, 7  ;;  %v420_v39 = vadd.f32 %v7851_v35, %v381_v36  ;;  %v421_v5 = vadd.f32 %v7851_v35, %v382_v48  ;;  %v6208_v19 = vrot.slane %v3538_v59, 9 }
  0x86   : > { %v697_v40 = vrot.slane %v695_v62, 7  ;;  %v3606_v42 = vrot.slane %v3604_v49, 4  ;;  %v7892_v36 = vsel %vm7857_vm15, %v7666_v38, %v3614_v23  ;;  %v6509_v48 = vunpack.c.l.bf16 %v7880_v20 }
  0x87   : > { %v692_v26 = vor.u32 %v690_v16, %v689_v37  ;;  %v693_v46 = vrot.slane %v689_v37, 4  ;;  %v452_v2 = vmax.f32 %v420_v39, 0.0  ;;  %v453_v47 = vmax.f32 %v421_v5, 0.0 }
  0x88   : > { %v700_v52 = vor.u32 %v698_v33, %v697_v40  ;;  %v702_v53 = vrot.slane %v697_v40, 4  ;;  %v7865_v30 = vsel %vm7857_vm15, %v6208_v19, %v3604_v49  ;;  %v7871_v55 = vsel %vm7857_vm15, %v3606_v42, %v3607_v50 }
  0x89   : > { %v1019_v57 = vld [vmem:[#allocation2 + $0x54] sm:$0xf]  ;;  %v943_v27 = vsel %vm7572_vm11, %v692_v26, %v942_v4  ;;  %v6423_v7 = vpack.c.bf16 %v452_v2, %v452_v2  ;;  %v7875_v18 = vpack.c.bf16 %v453_v47, %v453_v47  ;;  %v6225_v25 = vcombine.low %v7865_v30, %v7871_v55 }
  0x8a   : > { %v2830_v28 = vld [vmem:[#allocation2 + $0x54] sm:$0xf]  ;;  %v1226_v49 = vshrl.u32 %v1019_v57, 16  ;;  %v1229_v44 = vshll.u32 %v1019_v57, 16  ;;  %944 = vst [vmem:[#allocation2 + $0x60] sm:$0xf] %v943_v27  ;;  %v701_v50 = vsel %vm7565_vm10, %v693_v46, %v700_v52  ;;  %v947_v10 = vsel %vm7579_vm12, %v702_v53, %v946_v14 }
  0x8b   : > { %v3005_v34 = vshrl.u32 %v2830_v28, 16  ;;  %v3008_v11 = vshll.u32 %v2830_v28, 16  ;;  %v704_v1 = vshrl.u32 %v6423_v7, 16  ;;  %v707_v13 = vshll.u32 %v6423_v7, 16  ;;  %945 = vst.msk [vmem:[#allocation2 + $0x64] sm:$0xf] %vm238_vm1, %v701_v50 }
  0x8c   : > { %v1020_v24 = vld [vmem:[#allocation2 + $0x58] sm:$0xf]  ;;  %v1045_v8 = vld [vmem:[#allocation2 + $0x5c] sm:$0x1]  ;;  %v1228_v9 = vrot.slane %v1226_v49, 4  ;;  %v1231_v16 = vrot.slane %v1229_v44, 5  ;;  %v6510_v57 = vunpack.c.h.bf16 %v7880_v20 }
  0x8d   : > { %948 = vst [vmem:[#allocation2 + $0x68] sm:$0x1] %v947_v10  ;;  %v1235_v59 = vshll.u32 %v1020_v24, 16  ;;  %v1239_v6 = vshrl.u32 %v1020_v24, 16  ;;  %v1245_v29 = vshll.u32 %v1045_v8, 16  ;;  %v3007_v33 = vrot.slane %v3005_v34, 4 }
  0x8e   : > { %v7895_v62 = vld [vmem:[#allocation2 + $0x58] sm:$0xf]  ;;  %v1232_v37 = vor.u32 %v1231_v16, %v1228_v9  ;;  %v7897_v39 = vld [vmem:[#allocation2 + $0x5c] sm:$0x1]  ;;  %v3010_v5 = vrot.slane %v3008_v11, 5  ;;  %v7902_v14 = vrot.slane %v704_v1, 7  ;;  %v383_v1 = vmul.f32 %v7838_v56, %v6509_v48 }
  0x8f   : > { %v3014_v40 = vshll.u32 %v7895_v62, 16  ;;  %v3018_v54 = vshrl.u32 %v7895_v62, 16  ;;  %v1237_v4 = vrot.slane %v1235_v59, 5  ;;  %v1241_v19 = vrot.slane %v1239_v6, 4  ;;  %v8573_v3 = vld [vmem:[#allocation2 + $0x5c] sm:$0x1] }
  0x90   : > { %v1247_v23 = vrot.slane %v1245_v29, 5  ;;  %v3024_v38 = vshll.u32 %v7897_v39, 16  ;;  %v1233_v42 = vrot.slane %v1232_v37, 4  ;;  %v3011_v26 = vor.u32 %v3010_v5, %v3007_v33 }
  0x91   : > { %v3016_v46 = vrot.slane %v3014_v40, 5  ;;  %v3020_v2 = vrot.slane %v3018_v54, 4  ;;  %v1242_v47 = vor.u32 %v1241_v19, %v1237_v4  ;;  %v2833_v53 = vld [vmem:[#allocation2 + $0x60] sm:$0xf]  ;;  %v709_v24 = vor.u32 %v707_v13, %v7902_v14 }
  0x92   : > { %v3026_v52 = vrot.slane %v3024_v38, 5  ;;  %v1238_v28 = vsel %vm7550_vm9, %v1233_v42, %v1237_v4  ;;  %v3012_v27 = vrot.slane %v3011_v26, 4  ;;  %v3029_v49 = vshrl.u32 %v2833_v53, 16  ;;  %v1021_v44 = vld [vmem:[#allocation2 + $0x60] sm:$0xf] }
  0x93   : > { %v3021_v7 = vor.u32 %v3020_v2, %v3016_v46  ;;  %v1243_v34 = vrot.slane %v1242_v47, 4  ;;  %v7907_v11 = vld [vmem:[#allocation2 + $0x64] sm:$0xf]  ;;  %v3032_v10 = vshll.u32 %v2833_v53, 16  ;;  %v1250_v54 = vshrl.u32 %v1021_v44, 16 }
  0x94   : > { %v7909_v50 = vld [vmem:[#allocation2 + $0x68] sm:$0x1]  ;;  %v3017_v20 = vsel %vm7550_vm9, %v3012_v27, %v3016_v46  ;;  %v3031_v9 = vrot.slane %v3029_v49, 4  ;;  %v3038_v16 = vshll.u32 %v7907_v11, 16  ;;  %v1022_v59 = vld [vmem:[#allocation2 + $0x64] sm:$0xf] }
  0x95   : > { %v3022_v8 = vrot.slane %v3021_v7, 4  ;;  %v1248_v6 = vsel %vm7550_vm9, %v1243_v34, %v1247_v23  ;;  %v3034_v29 = vrot.slane %v3032_v10, 5  ;;  %v3042_v33 = vshrl.u32 %v7907_v11, 16  ;;  %v1046_v5 = vld [vmem:[#allocation2 + $0x68] sm:$0x1] }
  0x96   : > { %v3048_v37 = vshll.u32 %v7909_v50, 16  ;;  %v6036_v13 = vcombine.low %v1238_v28, %v1248_v6  ;;  %v3040_v40 = vrot.slane %v3038_v16, 5  ;;  %v1252_v26 = vrot.slane %v1250_v54, 4 }
  0x97   : > { %v3027_v48 = vsel %vm7550_vm9, %v3022_v8, %v3026_v52  ;;  %v3035_v19 = vor.u32 %v3034_v29, %v3031_v9  ;;  %v3044_v38 = vrot.slane %v3042_v33, 4  ;;  %v1253_v23 = vshll.u32 %v1021_v44, 16  ;;  %v949_v52 = vld [vmem:[#allocation2 + $0x6c] sm:$0xf] }
  0x98   : > { %v6182_v4 = vcombine.low %v3017_v20, %v3027_v48  ;;  %v3050_v42 = vrot.slane %v3048_v37, 5  ;;  %6718 = vmatmul.mubr.msk.bf16.gmra.mrb[12].mxu1 %vm1491_vm7, %v6036_v13  ;;  %v1259_v46 = vshll.u32 %v1022_v59, 16  ;;  %v1263_v2 = vshrl.u32 %v1022_v59, 16  ;;  %v3539_v20 = vld [vmem:[#allocation2 + $0x18] sm:$0xe] }
  0x99   : > { %v3036_v47 = vrot.slane %v3035_v19, 4  ;;  %v3045_v53 = vor.u32 %v3044_v38, %v3040_v40  ;;  %v1269_v28 = vshll.u32 %v1046_v5, 16  ;;  %v710_v27 = vrot.slane %v7902_v14, 4 }
  0x9a   : > { %6853 = vmatprep.mubr.msk.bf16.mxu0 %vm1491_vm7, %v6182_v4  ;;  %v1255_v7 = vrot.slane %v1253_v23, 5  ;;  %v1261_v49 = vrot.slane %v1259_v46, 5  ;;  %v1265_v34 = vrot.slane %v1263_v2, 4  ;;  %v712_v10 = vshrl.u32 %v7875_v18, 16  ;;  %v953_v4 = vld [vmem:[#allocation2 + $0x74] sm:$0x1] }
  0x9b   : > { %v3041_v8 = vsel %vm7550_vm9, %v3036_v47, %v3040_v40  ;;  %v3046_v44 = vrot.slane %v3045_v53, 4  ;;  %v1271_v9 = vrot.slane %v1269_v28, 5  ;;  %v715_v16 = vshll.u32 %v7875_v18, 16 }
  0x9c   : > { %v1256_v59 = vor.u32 %v1255_v7, %v1252_v26  ;;  %v1266_v6 = vor.u32 %v1265_v34, %v1261_v49  ;;  %v714_v29 = vrot.slane %v712_v10, 7  ;;  %v950_v14 = vsel %vm7572_vm11, %v709_v24, %v949_v52  ;;  %v6544_v26 = vld [vmem:[%s7517_s7 + $0x50] sm:$0xff]  }
  0x9d   : > { %v3051_v33 = vsel %vm7550_vm9, %v3046_v44, %v3050_v42  ;;  %951 = vst [vmem:[#allocation2 + $0x6c] sm:$0xf] %v950_v14  ;;  %v6209_v37 = vrot.slane %v3539_v20, 9  ;;  %v7935_v5 = vsel %vm1540_vm0, %v7676_v58, 0  ;;  %v384_v13 = vmul.f32 %v7838_v56, %v6510_v57  ;;  %v3540_v58 = vld [vmem:[#allocation2 + $0x24] sm:$0xe] }
  0x9e   : > { %v6183_v48 = vcombine.low %v3041_v8, %v3051_v33  ;;  %v1257_v18 = vrot.slane %v1256_v59, 4  ;;  %v1267_v40 = vrot.slane %v1266_v6, 4  ;;  %v717_v54 = vor.u32 %v715_v16, %v714_v29 }
  0x9f   : > { %v719_v19 = vrot.slane %v714_v29, 4  ;;  %v3612_v24 = vsel %vm7857_vm15, %v6209_v37, %v3611_v22  ;;  %v422_v38 = vadd.f32 %v7851_v35, %v383_v1  ;;  %v423_v42 = vadd.f32 %v7851_v35, %v384_v13  ;;  %v7953_v22 = vld [vmem:[#allocation2 + $0x30] sm:$0xe]  ;;  %v956_v29 = vld [vmem:[#allocation2 + $0x78] sm:$0xf] }
  0xa0   : > { %6854 = vmatmul.mubr.msk.bf16.gmra.mrb[12].mxu0 %vm1491_vm7, %v6183_v48  ;;  %v1262_v57 = vsel %vm7550_vm9, %v1257_v18, %v1261_v49  ;;  %v1272_v23 = vsel %vm7550_vm9, %v1267_v40, %v1271_v9  ;;  %v718_v45 = vsel %vm7565_vm10, %v710_v27, %v717_v54  ;;  %v6226_v46 = vcombine.low %v3612_v24, %v7892_v36  ;;  %v6290_v18 = vld [vmem:[%s9418_s3 + $0x1c] sm:$0xf] }
  0xa1   : > { %v6037_v1 = vcombine.low %v1262_v57, %v1272_v23  ;;  %952 = vst.msk [vmem:[#allocation2 + $0x70] sm:$0xf] %vm238_vm1, %v718_v45  ;;  %v954_v2 = vsel %vm7579_vm12, %v719_v19, %v953_v4  ;;  %6875 = vmatprep.mubr.msk.bf16.mxu0 %vm1491_vm7, %v6225_v25  ;;  %v454_v47 = vmax.f32 %v422_v38, 0.0  ;;  %v455_v53 = vmax.f32 %v423_v42, 0.0  ;;  %v960_v23 = vld [vmem:[#allocation2 + $0x80] sm:$0x1] }
  0xa2   : > { %955 = vst [vmem:[#allocation2 + $0x74] sm:$0x1] %v954_v2  ;;  %v6513_v28 = vunpack.c.l.bf16 %v6544_v26  ;;  %v6514_v27 = vunpack.c.h.bf16 %v6544_v26  ;;  %v6210_v52 = vrot.slane %v3540_v58, 9  ;;  %v3618_v36 = vrot.slane %v7678_v63, 5 }
  0xa3   : > { %6721 = vmatprep.mubr.msk.bf16.mxu1 %vm1491_vm7, %v6037_v1  ;;  %v6425_v7 = vpack.c.bf16 %v454_v47, %v454_v47  ;;  %v6426_v49 = vpack.c.bf16 %v455_v53, %v455_v53  ;;  %v3621_v34 = vrot.slane %v7680_v15, 5  ;;  %v6211_v10 = vrot.slane %v7953_v22, 9 }
  0xa4   : > { %v1023_v20 = vld [vmem:[#allocation2 + $0x6c] sm:$0xf]  ;;  %v385_v30 = vmul.f32 %v7838_v56, %v6513_v28  ;;  %v386_v55 = vmul.f32 %v7838_v56, %v6514_v27  ;;  %v3619_v25 = vsel %vm7857_vm15, %v6210_v52, %v3618_v36  ;;  %v3620_v8 = vrot.slane %v3618_v36, 4  ;;  %v6545_v52 = vld [vmem:[%s7517_s7 + $0x58] sm:$0xff]  }
  0xa5   : > { %v1274_v44 = vshrl.u32 %v1023_v20, 16  ;;  %v1277_v9 = vshll.u32 %v1023_v20, 16  ;;  %v721_v63 = vshrl.u32 %v6425_v7, 16  ;;  %v724_v16 = vshll.u32 %v6425_v7, 16 }
  0xa6   : > { %v729_v59 = vshrl.u32 %v6426_v49, 16  ;;  %v732_v6 = vshll.u32 %v6426_v49, 16  ;;  %v424_v15 = vadd.f32 %v7851_v35, %v385_v30  ;;  %v425_v14 = vadd.f32 %v7851_v35, %v386_v55 }
  0xa7   : > { %v1276_v33 = vrot.slane %v1274_v44, 4  ;;  %v1279_v37 = vrot.slane %v1277_v9, 5  ;;  %v723_v13 = vrot.slane %v721_v63, 7  ;;  %v3622_v48 = vsel %vm7857_vm15, %v3620_v8, %v3621_v34  ;;  %v6546_v63 = vld [vmem:[%s7517_s7 + $0x60] sm:$0xff]  }
  0xa8   : > { %v1024_v40 = vld [vmem:[#allocation2 + $0x70] sm:$0xf]  ;;  %6876 = vmatmul.mubr.msk.bf16.vlgmr.msra.gmra.mrb[0].mxu0 %vm1491_vm7, %v6226_v46  ;;  %v731_v54 = vrot.slane %v729_v59, 7  ;;  %v456_v4 = vmax.f32 %v424_v15, 0.0  ;;  %v457_v19 = vmax.f32 %v425_v14, 0.0  ;;  %v6227_v24 = vcombine.low %v3619_v25, %v3622_v48 }
  0xa9   : > { %v1047_v38 = vld [vmem:[#allocation2 + $0x74] sm:$0x1]  ;;  %v1280_v42 = vor.u32 %v1279_v37, %v1276_v33  ;;  %v1283_v26 = vshll.u32 %v1024_v40, 16  ;;  %v1287_v58 = vshrl.u32 %v1024_v40, 16  ;;  %6908 = vmatpush3.bf16.msra.mxu0 %v7935_v5  ;;  %v726_v57 = vor.u32 %v724_v16, %v723_v13 }
  0xaa   : > { %v1293_v45 = vshll.u32 %v1047_v38, 16  ;;  %v727_v1 = vrot.slane %v723_v13, 4  ;;  %v734_v2 = vor.u32 %v732_v6, %v731_v54  ;;  %v736_v47 = vrot.slane %v731_v54, 4  ;;  %6879 = vmatprep.mubr.msk.bf16.mxu0 %vm1491_vm7, %v6227_v24  ;;  %7275 = vmatprep.subr.msk.bf16.mxu0 %vm1540_vm0, %v6290_v18  ;;  %v967_v38 = vld [vmem:[#allocation2 + $0x8c] sm:$0x1] }
  0xab   : > { %v1281_v46 = vrot.slane %v1280_v42, 4  ;;  %v1285_v53 = vrot.slane %v1283_v26, 5  ;;  %v1289_v28 = vrot.slane %v1287_v58, 4  ;;  %v957_v27 = vsel %vm7572_vm11, %v726_v57, %v956_v29 }
  0xac   : > { %v1295_v36 = vrot.slane %v1293_v45, 5  ;;  %v735_v5 = vsel %vm7565_vm10, %v727_v1, %v734_v2  ;;  %958 = vst [vmem:[#allocation2 + $0x78] sm:$0xf] %v957_v27  ;;  %v961_v7 = vsel %vm7579_vm12, %v736_v47, %v960_v23  ;;  %v6427_v49 = vpack.c.bf16 %v456_v4, %v456_v4 }
  0xad   : > { %v1286_v34 = vsel %vm7550_vm9, %v1281_v46, %v1285_v53  ;;  %v1290_v20 = vor.u32 %v1289_v28, %v1285_v53  ;;  %959 = vst.msk [vmem:[#allocation2 + $0x7c] sm:$0xf] %vm238_vm1, %v735_v5  ;;  %962 = vst [vmem:[#allocation2 + $0x80] sm:$0x1] %v961_v7  ;;  %v6428_v30 = vpack.c.bf16 %v457_v19, %v457_v19  ;;  %v3625_v55 = vrot.slane %v7741_v31, 5 }
  0xae   : > { %v738_v25 = vshrl.u32 %v6427_v49, 16  ;;  %v741_v8 = vshll.u32 %v6427_v49, 16  ;;  %v3628_v44 = vrot.slane %v7743_v32, 5  ;;  %v6517_v9 = vunpack.c.l.bf16 %v6545_v52  ;;  %v963_v32 = vld [vmem:[#allocation2 + $0x84] sm:$0xf] }
  0xaf   : > { %v1291_v16 = vrot.slane %v1290_v20, 4  ;;  %v746_v59 = vshrl.u32 %v6428_v30, 16  ;;  %v749_v6 = vshll.u32 %v6428_v30, 16  ;;  %v3626_v29 = vsel %vm7857_vm15, %v6211_v10, %v3625_v55  ;;  %v3542_v7 = vld [vmem:[#allocation2 + $0x3c] sm:$0xe] }
  0xb0   : > { %v740_v15 = vrot.slane %v738_v25, 7  ;;  %v3627_v14 = vrot.slane %v3625_v55, 4  ;;  %v6518_v33 = vunpack.c.h.bf16 %v6545_v52  ;;  %v387_v37 = vmul.f32 %v7838_v56, %v6517_v9 }
  0xb1   : > { %v1296_v31 = vsel %vm7550_vm9, %v1291_v16, %v1295_v36  ;;  %v748_v13 = vrot.slane %v746_v59, 7  ;;  %v6521_v48 = vunpack.c.l.bf16 %v6546_v63  ;;  %v6522_v18 = vunpack.c.h.bf16 %v6546_v63 }
  0xb2   : > { %v6038_v40 = vcombine.low %v1286_v34, %v1296_v31  ;;  %v743_v54 = vor.u32 %v741_v8, %v740_v15  ;;  %v744_v4 = vrot.slane %v740_v15, 4  ;;  %v3629_v22 = vsel %vm7857_vm15, %v3627_v14, %v3628_v44 }
  0xb3   : > { %v8003_v19 = vld [vmem:[#allocation2 + $0x78] sm:$0xf]  ;;  %v751_v10 = vor.u32 %v749_v6, %v748_v13  ;;  %v753_v24 = vrot.slane %v748_v13, 4  ;;  %v6228_v42 = vcombine.low %v3626_v29, %v3629_v22  ;;  %v388_v26 = vmul.f32 %v7838_v56, %v6518_v33 }
  0xb4   : > { %6722 = vmatmul.mubr.msk.bf16.gmra.mrb[16].mxu1 %vm1491_vm7, %v6038_v40  ;;  %v8007_v58 = vld [vmem:[#allocation2 + $0x7c] sm:$0xf]  ;;  %v1048_v57 = vld [vmem:[#allocation2 + $0x80] sm:$0x1]  ;;  %v1298_v23 = vshrl.u32 %v8003_v19, 16  ;;  %v1301_v45 = vshll.u32 %v8003_v19, 16  ;;  %v964_v1 = vsel %vm7572_vm11, %v743_v54, %v963_v32  ;;  %v426_v2 = vadd.f32 %v7851_v35, %v387_v37 }
  0xb5   : > { %v1307_v47 = vshll.u32 %v8007_v58, 16  ;;  %v1311_v46 = vshrl.u32 %v8007_v58, 16  ;;  %v1317_v53 = vshll.u32 %v1048_v57, 16  ;;  %v752_v28 = vsel %vm7565_vm10, %v744_v4, %v751_v10  ;;  %965 = vst [vmem:[#allocation2 + $0x84] sm:$0xf] %v964_v1  ;;  %6880 = vmatmul.mubr.msk.bf16.gmra.mrb[4].mxu0 %vm1491_vm7, %v6228_v42 }
  0xb6   : > { %v1300_v27 = vrot.slane %v1298_v23, 4  ;;  %v1303_v52 = vrot.slane %v1301_v45, 5  ;;  %966 = vst.msk [vmem:[#allocation2 + $0x88] sm:$0xf] %vm238_vm1, %v752_v28  ;;  %v968_v36 = vsel %vm7579_vm12, %v753_v24, %v967_v38  ;;  %v427_v5 = vadd.f32 %v7851_v35, %v388_v26  ;;  %v970_v40 = vld [vmem:[#allocation2 + $0x90] sm:$0xf] }
  0xb7   : > { %v1309_v49 = vrot.slane %v1307_v47, 5  ;;  %v1313_v34 = vrot.slane %v1311_v46, 4  ;;  %v1319_v20 = vrot.slane %v1317_v53, 5  ;;  %969 = vst [vmem:[#allocation2 + $0x8c] sm:$0x1] %v968_v36  ;;  %v458_v30 = vmax.f32 %v426_v2, 0.0 }
  0xb8   : > { %v1304_v55 = vor.u32 %v1303_v52, %v1300_v27  ;;  %v459_v25 = vmax.f32 %v427_v5, 0.0  ;;  %v389_v8 = vmul.f32 %v7838_v56, %v6521_v48  ;;  %v390_v44 = vmul.f32 %v7838_v56, %v6522_v18  ;;  %v974_v36 = vld [vmem:[#allocation2 + $0x98] sm:$0x1] }
  0xb9   : > { %v1314_v9 = vor.u32 %v1313_v34, %v1309_v49  ;;  %v6429_v63 = vpack.c.bf16 %v458_v30, %v458_v30  ;;  %v6212_v16 = vrot.slane %v3542_v7, 9  ;;  %v3632_v59 = vrot.slane %v7774_v41, 5 }
  0xba   : > { %v1305_v6 = vrot.slane %v1304_v55, 4  ;;  %v6430_v29 = vpack.c.bf16 %v459_v25, %v459_v25  ;;  %v428_v15 = vadd.f32 %v7851_v35, %v389_v8  ;;  %v429_v14 = vadd.f32 %v7851_v35, %v390_v44 }
  0xbb   : > { %v1315_v33 = vrot.slane %v1314_v9, 4  ;;  %v755_v37 = vshrl.u32 %v6429_v63, 16  ;;  %v758_v31 = vshll.u32 %v6429_v63, 16  ;;  %v8030_v13 = vsel %vm7857_vm15, %v6212_v16, %v3632_v59 }
  0xbc   : > { %v1310_v32 = vsel %vm7550_vm9, %v1305_v6, %v1309_v49  ;;  %v8034_v48 = vld [vmem:[#allocation2 + $0x84] sm:$0xf]  ;;  %v763_v18 = vshrl.u32 %v6430_v29, 16  ;;  %v766_v41 = vshll.u32 %v6430_v29, 16  ;;  %v460_v54 = vmax.f32 %v428_v15, 0.0 }
  0xbd   : > { %v1320_v4 = vsel %vm7550_vm9, %v1315_v33, %v1319_v20  ;;  %v8038_v22 = vld [vmem:[#allocation2 + $0x88] sm:$0xf]  ;;  %v1322_v10 = vshrl.u32 %v8034_v48, 16  ;;  %v1325_v24 = vshll.u32 %v8034_v48, 16  ;;  %v757_v38 = vrot.slane %v755_v37, 7 }
  0xbe   : > { %v6039_v42 = vcombine.low %v1310_v32, %v1320_v4  ;;  %v1049_v26 = vld [vmem:[#allocation2 + $0x8c] sm:$0x1]  ;;  %v1331_v57 = vshll.u32 %v8038_v22, 16  ;;  %v1335_v23 = vshrl.u32 %v8038_v22, 16  ;;  %v765_v45 = vrot.slane %v763_v18, 7 }
  0xbf   : > { %v1324_v1 = vrot.slane %v1322_v10, 4  ;;  %v1327_v2 = vrot.slane %v1325_v24, 5  ;;  %v1341_v47 = vshll.u32 %v1049_v26, 16  ;;  %v760_v46 = vor.u32 %v758_v31, %v757_v38  ;;  %v3543_v20 = vld [vmem:[#allocation2 + $0x48] sm:$0xe] }
  0xc0   : > { %6725 = vmatprep.mubr.msk.bf16.mxu1 %vm1491_vm7, %v6039_v42  ;;  %v1333_v53 = vrot.slane %v1331_v57, 5  ;;  %v1337_v28 = vrot.slane %v1335_v23, 4  ;;  %v761_v27 = vrot.slane %v757_v38, 4  ;;  %v768_v52 = vor.u32 %v766_v41, %v765_v45  ;;  %v977_v23 = vld [vmem:[#allocation2 + $0x9c] sm:$0xf] }
  0xc1   : > { %v1328_v5 = vor.u32 %v1327_v2, %v1324_v1  ;;  %v1343_v7 = vrot.slane %v1341_v47, 5  ;;  %v770_v49 = vrot.slane %v765_v45, 4  ;;  %v971_v34 = vsel %vm7572_vm11, %v760_v46, %v970_v40  ;;  %v6547_v40 = vld [vmem:[%s7517_s7 + $0x68] sm:$0xff]   ;;  %v981_v1 = vld [vmem:[#allocation2 + $0xa4] sm:$0x1] }
  0xc2   : > { %v1338_v30 = vor.u32 %v1337_v28, %v1333_v53  ;;  %v769_v55 = vsel %vm7565_vm10, %v761_v27, %v768_v52  ;;  %972 = vst [vmem:[#allocation2 + $0x90] sm:$0xf] %v971_v34  ;;  %v461_v25 = vmax.f32 %v429_v14, 0.0  ;;  %v6431_v8 = vpack.c.bf16 %v460_v54, %v460_v54  ;;  %v6548_v54 = vld [vmem:[%s7517_s7 + $0x70] sm:$0xff]  }
  0xc3   : > { %v1329_v44 = vrot.slane %v1328_v5, 4  ;;  %973 = vst.msk [vmem:[#allocation2 + $0x94] sm:$0xf] %vm238_vm1, %v769_v55  ;;  %v975_v9 = vsel %vm7579_vm12, %v770_v49, %v974_v36  ;;  %v3634_v63 = vrot.slane %v3632_v59, 4  ;;  %v3635_v16 = vrot.slane %v7778_v60, 5 }
  0xc4   : > { %v1339_v6 = vrot.slane %v1338_v30, 4  ;;  %976 = vst [vmem:[#allocation2 + $0x98] sm:$0x1] %v975_v9  ;;  %v6432_v29 = vpack.c.bf16 %v461_v25, %v461_v25  ;;  %v772_v15 = vshrl.u32 %v6431_v8, 16  ;;  %v775_v33 = vshll.u32 %v6431_v8, 16 }
  0xc5   : > { %v1334_v14 = vsel %vm7550_vm9, %v1329_v44, %v1333_v53  ;;  %v3636_v37 = vsel %vm7857_vm15, %v3634_v63, %v3635_v16  ;;  %v6213_v31 = vrot.slane %v3543_v20, 9  ;;  %v3639_v32 = vrot.slane %v7807_v61, 5  ;;  %v3544_v8 = vld [vmem:[#allocation2 + $0x54] sm:$0xe] }
  0xc6   : > { %v1344_v59 = vsel %vm7550_vm9, %v1339_v6, %v1343_v7  ;;  %v774_v18 = vrot.slane %v772_v15, 7  ;;  %v780_v41 = vshrl.u32 %v6432_v29, 16  ;;  %v783_v60 = vshll.u32 %v6432_v29, 16 }
  0xc7   : > { %v6040_v4 = vcombine.low %v1334_v14, %v1344_v59  ;;  %v6229_v10 = vcombine.low %v8030_v13, %v3636_v37  ;;  %v3640_v24 = vsel %vm7857_vm15, %v6213_v31, %v3639_v32  ;;  %v3641_v38 = vrot.slane %v3639_v32, 4 }
  0xc8   : > { %v777_v42 = vor.u32 %v775_v33, %v774_v18  ;;  %v778_v26 = vrot.slane %v774_v18, 4  ;;  %v782_v57 = vrot.slane %v780_v41, 7  ;;  %v3642_v61 = vrot.slane %v7814_v21, 5 }
  0xc9   : > { %6726 = vmatmul.mubr.msk.bf16.gmra.mrb[20].mxu1 %vm1491_vm7, %v6040_v4  ;;  %v8067_v45 = vld [vmem:[#allocation2 + $0x90] sm:$0xf]  ;;  %6883 = vmatprep.mubr.msk.bf16.mxu0 %vm1491_vm7, %v6229_v10  ;;  %v6525_v2 = vunpack.c.l.bf16 %v6547_v40  ;;  %v6526_v47 = vunpack.c.h.bf16 %v6547_v40  ;;  %v6529_v13 = vunpack.c.l.bf16 %v6548_v54  ;;  %v6530_v46 = vunpack.c.h.bf16 %v6548_v54 }
  0xca   : > { %v8070_v53 = vld [vmem:[#allocation2 + $0x94] sm:$0xf]  ;;  %v1346_v28 = vshrl.u32 %v8067_v45, 16  ;;  %v1349_v27 = vshll.u32 %v8067_v45, 16  ;;  %v785_v52 = vor.u32 %v783_v60, %v782_v57  ;;  %v787_v36 = vrot.slane %v782_v57, 4 }
  0xcb   : > { %v1050_v21 = vld [vmem:[#allocation2 + $0x98] sm:$0x1]  ;;  %v1355_v5 = vshll.u32 %v8070_v53, 16  ;;  %v1359_v7 = vshrl.u32 %v8070_v53, 16  ;;  %v978_v49 = vsel %vm7572_vm11, %v777_v42, %v977_v23  ;;  %v3643_v34 = vsel %vm7857_vm15, %v3641_v38, %v3642_v61 }
  0xcc   : > { %v1348_v20 = vrot.slane %v1346_v28, 4  ;;  %v1351_v30 = vrot.slane %v1349_v27, 5  ;;  %v1365_v55 = vshll.u32 %v1050_v21, 16  ;;  %v786_v25 = vsel %vm7565_vm10, %v778_v26, %v785_v52  ;;  %979 = vst [vmem:[#allocation2 + $0x9c] sm:$0xf] %v978_v49 }
  0xcd   : > { %v1357_v44 = vrot.slane %v1355_v5, 5  ;;  %v1361_v9 = vrot.slane %v1359_v7, 4  ;;  %980 = vst.msk [vmem:[#allocation2 + $0xa0] sm:$0xf] %vm238_vm1, %v786_v25  ;;  %v982_v63 = vsel %vm7579_vm12, %v787_v36, %v981_v1  ;;  %v6230_v16 = vcombine.low %v3640_v24, %v3643_v34 }
  0xce   : > { %v1352_v6 = vor.u32 %v1351_v30, %v1348_v20  ;;  %v1367_v29 = vrot.slane %v1365_v55, 5  ;;  %983 = vst [vmem:[#allocation2 + $0xa4] sm:$0x1] %v982_v63  ;;  %v391_v15 = vmul.f32 %v7838_v56, %v6525_v2  ;;  %v392_v33 = vmul.f32 %v7838_v56, %v6526_v47 }
  0xcf   : > { %v1362_v14 = vor.u32 %v1361_v9, %v1357_v44  ;;  %6884 = vmatmul.mubr.msk.bf16.gmra.mrb[8].mxu0 %vm1491_vm7, %v6230_v16  ;;  %v393_v37 = vmul.f32 %v7838_v56, %v6529_v13  ;;  %v394_v31 = vmul.f32 %v7838_v56, %v6530_v46  ;;  %v6214_v32 = vrot.slane %v3544_v8, 9 }
  0xd0   : > { %v1353_v59 = vrot.slane %v1352_v6, 4  ;;  %v430_v18 = vadd.f32 %v7851_v35, %v391_v15  ;;  %v431_v41 = vadd.f32 %v7851_v35, %v392_v33  ;;  %v3646_v60 = vrot.slane %v7895_v62, 5  ;;  %v984_v6 = vld [vmem:[#allocation2 + $0xa8] sm:$0xf] }
  0xd1   : > { %v1363_v40 = vrot.slane %v1362_v14, 4  ;;  %v432_v54 = vadd.f32 %v7851_v35, %v393_v37  ;;  %v433_v4 = vadd.f32 %v7851_v35, %v394_v31  ;;  %v3649_v10 = vrot.slane %v7897_v39, 5  ;;  %v988_v31 = vld [vmem:[#allocation2 + $0xb0] sm:$0x1] }
  0xd2   : > { %v1358_v24 = vsel %vm7550_vm9, %v1353_v59, %v1357_v44  ;;  %v462_v38 = vmax.f32 %v430_v18, 0.0  ;;  %v463_v56 = vmax.f32 %v431_v41, 0.0  ;;  %v8100_v42 = vsel %vm7857_vm15, %v6214_v32, %v3646_v60 }
  0xd3   : > { %v1368_v26 = vsel %vm7550_vm9, %v1363_v40, %v1367_v29  ;;  %v8104_v62 = vld [vmem:[#allocation2 + $0x9c] sm:$0xf]  ;;  %v464_v57 = vmax.f32 %v432_v54, 0.0  ;;  %v465_v23 = vmax.f32 %v433_v4, 0.0  ;;  %v3648_v61 = vrot.slane %v3646_v60, 4 }
  0xd4   : > { %v6041_v35 = vcombine.low %v1358_v24, %v1368_v26  ;;  %v8106_v1 = vld [vmem:[#allocation2 + $0xa0] sm:$0xf]  ;;  %v1370_v2 = vshrl.u32 %v8104_v62, 16  ;;  %v1373_v47 = vshll.u32 %v8104_v62, 16  ;;  %v6433_v13 = vpack.c.bf16 %v462_v38, %v462_v38  ;;  %v991_v38 = vld [vmem:[#allocation2 + $0xb4] sm:$0xf] }
  0xd5   : > { %v1051_v46 = vld [vmem:[#allocation2 + $0xa4] sm:$0x1]  ;;  %v1379_v28 = vshll.u32 %v8106_v1, 16  ;;  %v1383_v27 = vshrl.u32 %v8106_v1, 16  ;;  %v6434_v52 = vpack.c.bf16 %v463_v56, %v463_v56  ;;  %v6435_v36 = vpack.c.bf16 %v464_v57, %v464_v57  ;;  %v3545_v56 = vld [vmem:[#allocation2 + $0x60] sm:$0xe] }
  0xd6   : > { %6729 = vmatprep.mubr.msk.bf16.mxu1 %vm1491_vm7, %v6041_v35  ;;  %v1372_v21 = vrot.slane %v1370_v2, 4  ;;  %v1375_v5 = vrot.slane %v1373_v47, 5  ;;  %v1389_v7 = vshll.u32 %v1051_v46, 16  ;;  %v789_v49 = vshrl.u32 %v6433_v13, 16  ;;  %v995_v46 = vld [vmem:[#allocation2 + $0xbc] sm:$0x1] }
  0xd7   : > { %v1381_v34 = vrot.slane %v1379_v28, 5  ;;  %v1385_v20 = vrot.slane %v1383_v27, 4  ;;  %v792_v30 = vshll.u32 %v6433_v13, 16  ;;  %v797_v55 = vshrl.u32 %v6434_v52, 16  ;;  %v3546_v27 = vld [vmem:[#allocation2 + $0x6c] sm:$0xe] }
  0xd8   : > { %v1376_v25 = vor.u32 %v1375_v5, %v1372_v21  ;;  %v1391_v8 = vrot.slane %v1389_v7, 5  ;;  %v791_v44 = vrot.slane %v789_v49, 7  ;;  %v800_v9 = vshll.u32 %v6434_v52, 16  ;;  %v2837_v7 = vld [vmem:[#allocation2 + $0x70] sm:$0xf] }
  0xd9   : > { %v1386_v63 = vor.u32 %v1385_v20, %v1381_v34  ;;  %v799_v16 = vrot.slane %v797_v55, 7  ;;  %v6436_v29 = vpack.c.bf16 %v465_v23, %v465_v23  ;;  %v806_v15 = vshrl.u32 %v6435_v36, 16  ;;  %v2838_v49 = vld [vmem:[#allocation2 + $0x74] sm:$0x1] }
  0xda   : > { %v1377_v33 = vrot.slane %v1376_v25, 4  ;;  %v794_v14 = vor.u32 %v792_v30, %v791_v44  ;;  %v795_v37 = vrot.slane %v791_v44, 4  ;;  %v809_v32 = vshll.u32 %v6435_v36, 16 }
  0xdb   : > { %v1387_v59 = vrot.slane %v1386_v63, 4  ;;  %v802_v18 = vor.u32 %v800_v9, %v799_v16  ;;  %v804_v41 = vrot.slane %v799_v16, 4  ;;  %v808_v60 = vrot.slane %v806_v15, 7 }
  0xdc   : > { %v1382_v40 = vsel %vm7550_vm9, %v1377_v33, %v1381_v34  ;;  %v985_v54 = vsel %vm7572_vm11, %v794_v14, %v984_v6  ;;  %v814_v4 = vshrl.u32 %v6436_v29, 16  ;;  %v817_v24 = vshll.u32 %v6436_v29, 16 }
  0xdd   : > { %v1392_v26 = vsel %vm7550_vm9, %v1387_v59, %v1391_v8  ;;  %v803_v57 = vsel %vm7565_vm10, %v795_v37, %v802_v18  ;;  %986 = vst [vmem:[#allocation2 + $0xa8] sm:$0xf] %v985_v54  ;;  %v989_v23 = vsel %vm7579_vm12, %v804_v41, %v988_v31  ;;  %v811_v35 = vor.u32 %v809_v32, %v808_v60 }
  0xde   : > { %v6042_v2 = vcombine.low %v1382_v40, %v1392_v26  ;;  %987 = vst.msk [vmem:[#allocation2 + $0xac] sm:$0xf] %vm238_vm1, %v803_v57  ;;  %990 = vst [vmem:[#allocation2 + $0xb0] sm:$0x1] %v989_v23  ;;  %v812_v47 = vrot.slane %v808_v60, 4  ;;  %v816_v13 = vrot.slane %v814_v4, 7  ;;  %v3650_v28 = vsel %vm7857_vm15, %v3648_v61, %v3649_v10 }
  0xdf   : > { %v992_v52 = vsel %vm7572_vm11, %v811_v35, %v991_v38  ;;  %v6231_v36 = vcombine.low %v8100_v42, %v3650_v28  ;;  %v6215_v21 = vrot.slane %v3545_v56, 9  ;;  %v3653_v5 = vrot.slane %v7907_v11, 5  ;;  %v3547_v60 = vld [vmem:[#allocation2 + $0x78] sm:$0xe]  ;;  %v8165_v26 = vld [vmem:[#allocation2 + $0x7c] sm:$0xf] }
  0xe0   : > { %6730 = vmatmul.mubr.msk.bf16.gmra.mrb[24].mxu1 %vm1491_vm7, %v6042_v2  ;;  %v819_v34 = vor.u32 %v817_v24, %v816_v13  ;;  %v821_v20 = vrot.slane %v816_v13, 4  ;;  %993 = vst [vmem:[#allocation2 + $0xb4] sm:$0xf] %v992_v52  ;;  %v3656_v39 = vrot.slane %v7909_v50, 5  ;;  %v6216_v30 = vrot.slane %v3546_v27, 9 }
  0xe1   : > { %6887 = vmatprep.mubr.msk.bf16.mxu0 %vm1491_vm7, %v6231_v36  ;;  %v3654_v10 = vsel %vm7857_vm15, %v6215_v21, %v3653_v5  ;;  %v3655_v61 = vrot.slane %v3653_v5, 4  ;;  %v3660_v55 = vrot.slane %v2837_v7, 5  ;;  %v3663_v25 = vrot.slane %v2838_v49, 5  ;;  %v8173_v52 = vld [vmem:[#allocation2 + $0x80] sm:$0x1] }
  0xe2   : > { %v820_v42 = vsel %vm7565_vm10, %v812_v47, %v819_v34  ;;  %v996_v11 = vsel %vm7579_vm12, %v821_v20, %v995_v46  ;;  %v6217_v47 = vrot.slane %v3547_v60, 9  ;;  %v2843_v36 = vld [vmem:[#allocation2 + $0x88] sm:$0xf]  ;;  %v2844_v21 = vld [vmem:[#allocation2 + $0x8c] sm:$0x1]  ;;  %v3667_v34 = vrot.slane %v8165_v26, 5 }
  0xe3   : > { %994 = vst.msk [vmem:[#allocation2 + $0xb8] sm:$0xf] %vm238_vm1, %v820_v42  ;;  %997 = vst [vmem:[#allocation2 + $0xbc] sm:$0x1] %v996_v11  ;;  %v3657_v50 = vsel %vm7857_vm15, %v3655_v61, %v3656_v39  ;;  %v3661_v9 = vsel %vm7857_vm15, %v6216_v30, %v3660_v55  ;;  %v3662_v63 = vrot.slane %v3660_v55, 4  ;;  %v3086_v12 = vshll.u32 %v8165_v26, 16 }
  0xe4   : > { %v8144_v8 = vld [vmem:[#allocation2 + $0xa8] sm:$0xf]  ;;  %v6232_v44 = vcombine.low %v3654_v10, %v3657_v50  ;;  %v3548_v5 = vld [vmem:[#allocation2 + $0x84] sm:$0xe]  ;;  %v2846_v20 = vld [vmem:[#allocation2 + $0x94] sm:$0xf] }
  0xe5   : > { %v8148_v16 = vld [vmem:[#allocation2 + $0xac] sm:$0xf]  ;;  %v8150_v6 = vld [vmem:[#allocation2 + $0xb0] sm:$0x1]  ;;  %v1394_v29 = vshrl.u32 %v8144_v8, 16  ;;  %v1397_v15 = vshll.u32 %v8144_v8, 16  ;;  %v3664_v31 = vsel %vm7857_vm15, %v3662_v63, %v3663_v25  ;;  %v3668_v25 = vsel %vm7857_vm15, %v6217_v47, %v3667_v34 }
  0xe6   : > { %v1403_v33 = vshll.u32 %v8148_v16, 16  ;;  %v1407_v14 = vshrl.u32 %v8148_v16, 16  ;;  %v1413_v37 = vshll.u32 %v8150_v6, 16  ;;  %6888 = vmatmul.mubr.msk.bf16.gmra.mrb[12].mxu0 %vm1491_vm7, %v6232_v44  ;;  %v6233_v41 = vcombine.low %v3661_v9, %v3664_v31  ;;  %v3549_v39 = vld [vmem:[#allocation2 + $0x90] sm:$0xe] }
  0xe7   : > { %v1396_v32 = vrot.slane %v1394_v29, 4  ;;  %v1399_v59 = vrot.slane %v1397_v15, 5  ;;  %v8160_v18 = vld [vmem:[#allocation2 + $0xb4] sm:$0xf]  ;;  %v3669_v63 = vrot.slane %v3667_v34, 4  ;;  %v3670_v15 = vrot.slane %v8173_v52, 5 }
  0xe8   : > { %v1405_v40 = vrot.slane %v1403_v33, 5  ;;  %v1409_v54 = vrot.slane %v1407_v14, 4  ;;  %v1418_v4 = vshrl.u32 %v8160_v18, 16  ;;  %v1415_v38 = vrot.slane %v1413_v37, 5  ;;  %6891 = vmatprep.mubr.msk.bf16.mxu0 %vm1491_vm7, %v6233_v41  ;;  %v2847_v29 = vld [vmem:[#allocation2 + $0x98] sm:$0x1] }
  0xe9   : > { %v1400_v24 = vor.u32 %v1399_v59, %v1396_v32  ;;  %v1421_v56 = vshll.u32 %v8160_v18, 16  ;;  %v6218_v33 = vrot.slane %v3548_v5, 9  ;;  %v3674_v14 = vrot.slane %v2843_v36, 5  ;;  %v3550_v60 = vld [vmem:[#allocation2 + $0x9c] sm:$0xe] }
  0xea   : > { %v1410_v57 = vor.u32 %v1409_v54, %v1405_v40  ;;  %v8167_v23 = vld [vmem:[#allocation2 + $0xb8] sm:$0xf]  ;;  %v8169_v35 = vld [vmem:[#allocation2 + $0xbc] sm:$0x1]  ;;  %v1420_v2 = vrot.slane %v1418_v4, 4  ;;  %v3677_v37 = vrot.slane %v2844_v21, 5 }
  0xeb   : > { %v1401_v13 = vrot.slane %v1400_v24, 4  ;;  %v1423_v46 = vrot.slane %v1421_v56, 5  ;;  %v1427_v28 = vshll.u32 %v8167_v23, 16  ;;  %v1431_v27 = vshrl.u32 %v8167_v23, 16  ;;  %v2850_v56 = vld [vmem:[#allocation2 + $0xa4] sm:$0x1] }
  0xec   : > { %v1411_v7 = vrot.slane %v1410_v57, 4  ;;  %v1437_v49 = vshll.u32 %v8169_v35, 16  ;;  %v6219_v59 = vrot.slane %v3549_v39, 9  ;;  %v3681_v41 = vrot.slane %v2846_v20, 5  ;;  %v8193_v47 = vld [vmem:[#allocation2 + $0x4] sm:$0xf] }
  0xed   : > { %v1406_v10 = vsel %vm7550_vm9, %v1401_v13, %v1405_v40  ;;  %v1424_v61 = vor.u32 %v1423_v46, %v1420_v2  ;;  %v1429_v30 = vrot.slane %v1427_v28, 5  ;;  %v1433_v42 = vrot.slane %v1431_v27, 4  ;;  %v7320_v2 = vld [vmem:[#allocation2] sm:$0xf]  ;;  %v2852_v27 = vld [vmem:[#allocation2 + $0xac] sm:$0xf] }
  0xee   : > { %v1416_v11 = vsel %vm7550_vm9, %v1411_v7, %v1415_v38  ;;  %v1439_v55 = vrot.slane %v1437_v49, 5  ;;  %v3671_v40 = vsel %vm7857_vm15, %v3669_v63, %v3670_v15  ;;  %v3675_v54 = vsel %vm7857_vm15, %v6218_v33, %v3674_v14  ;;  %v2849_v38 = vld [vmem:[#allocation2 + $0xa0] sm:$0xf]  ;;  %v8212_v15 = vld [vmem:[#allocation2 + $0x1c] sm:$0xf] }
  0xef   : > { %v6043_v50 = vcombine.low %v1406_v10, %v1416_v11  ;;  %v1425_v44 = vrot.slane %v1424_v61, 4  ;;  %v1434_v9 = vor.u32 %v1433_v42, %v1429_v30  ;;  %v3676_v4 = vrot.slane %v3674_v14, 4  ;;  %v2855_v10 = vld [vmem:[#allocation2 + $0xb8] sm:$0xf]  ;;  %v3551_v61 = vld [vmem:[#allocation2 + $0xa8] sm:$0xe] }
  0xf0   : > { %v3684_v24 = vrot.slane %v2847_v29, 5  ;;  %v6061_v13 = vcombine.low %v7320_v2, %v8193_v47  ;;  %v6234_v46 = vcombine.low %v3668_v25, %v3671_v40  ;;  %v3683_v28 = vrot.slane %v3681_v41, 4  ;;  %v6549_v42 = vld [vmem:[%s7517_s7 + $0x78] sm:$0xff]   ;;  %v2853_v25 = vld [vmem:[#allocation2 + $0xb0] sm:$0x1] }
  0xf1   : > { %6733 = vmatprep.mubr.msk.bf16.mxu1 %vm1491_vm7, %v6043_v50  ;;  %v1430_v31 = vsel %vm7550_vm9, %v1425_v44, %v1429_v30  ;;  %v1435_v32 = vrot.slane %v1434_v9, 4  ;;  %v3678_v21 = vsel %vm7857_vm15, %v3676_v4, %v3677_v37  ;;  %v3682_v5 = vsel %vm7857_vm15, %v6219_v59, %v3681_v41  ;;  %v3552_v50 = vld [vmem:[#allocation2 + $0xb4] sm:$0xe]  ;;  %v7322_v44 = vld [vmem:[#allocation2 + $0xc] sm:$0xf] }
  0xf2   : > { %v6220_v7 = vrot.slane %v3550_v60, 9  ;;  %6892 = vmatmul.mubr.msk.bf16.gmra.mrb[16].mxu0 %vm1491_vm7, %v6234_v46  ;;  %v6235_v49 = vcombine.low %v3675_v54, %v3678_v21  ;;  %v3685_v34 = vsel %vm7857_vm15, %v3683_v28, %v3684_v24  ;;  %v3688_v20 = vrot.slane %v2849_v38, 5  ;;  %v8209_v9 = vld [vmem:[#allocation2 + $0x10] sm:$0xf]  ;;  %v7324_v29 = vld [vmem:[#allocation2 + $0x18] sm:$0xf] }
  0xf3   : > { %v1440_v57 = vsel %vm7550_vm9, %v1435_v32, %v1439_v55  ;;  %v3691_v39 = vrot.slane %v2850_v56, 5  ;;  %v3695_v30 = vrot.slane %v2852_v27, 5  ;;  %v6062_v63 = vcombine.low %v7322_v44, %v8209_v9  ;;  %v2856_v37 = vld [vmem:[#allocation2 + $0xbc] sm:$0x1]  ;;  %v7327_v46 = vld [vmem:[%s9418_s3 + $0x8] sm:$0xf] }
  0xf4   : > { %v6044_v36 = vcombine.low %v1430_v31, %v1440_v57  ;;  %6895 = vmatprep.mubr.msk.bf16.mxu0 %vm1491_vm7, %v6235_v49  ;;  %v3689_v11 = vsel %vm7857_vm15, %v6220_v7, %v3688_v20  ;;  %v3690_v55 = vrot.slane %v3688_v20, 4  ;;  %v6063_v33 = vcombine.low %v7324_v29, %v8212_v15  ;;  %v7326_v57 = vld [vmem:[%s9416_s1] ss:$0 sm:$0xff]  ;;  %v8249_v44 = vld [vmem:[#allocation2 + $0x34] sm:$0xf] }
  0xf5   : > { %v6236_v14 = vcombine.low %v3682_v5, %v3685_v34  ;;  %v3702_v31 = vrot.slane %v2855_v10, 5  ;;  %v6221_v59 = vrot.slane %v3551_v61, 9  ;;  %v6533_v41 = vunpack.c.l.bf16 %v6549_v42  ;;  %v7328_v27 = vld [vmem:[%s9417_s2] ss:$0 sm:$0xff]  ;;  %v8231_v5 = vld [vmem:[%s9418_s3 + $0xc] sm:$0xf] }
  0xf6   : > { %6734 = vmatmul.mubr.msk.bf16.gmra.mrb[28].mxu1 %vm1491_vm7, %v6044_v36  ;;  %v3692_v32 = vsel %vm7857_vm15, %v3690_v55, %v3691_v39  ;;  %v6534_v60 = vunpack.c.h.bf16 %v6549_v42  ;;  %v3697_v54 = vrot.slane %v3695_v30, 4  ;;  %v3698_v4 = vrot.slane %v2853_v25, 5  ;;  %v8246_v55 = vld [vmem:[#allocation2 + $0x28] sm:$0xf] }
  0xf7   : > { %6739 = vmatprep.mubr.msk.bf16.mxu1 %vm1491_vm7, %v6061_v13  ;;  %v6237_v40 = vcombine.low %v3689_v11, %v3692_v32  ;;  %v6222_v24 = vrot.slane %v3552_v50, 9  ;;  %v3704_v38 = vrot.slane %v3702_v31, 4  ;;  %v3705_v56 = vrot.slane %v2856_v37, 5  ;;  %v7329_v11 = vld [vmem:[#allocation2 + $0x24] sm:$0xf] }
  0xf8   : > { %v395_v2 = vmul.f32 %v7326_v57, %v6533_v41  ;;  %v396_v13 = vmul.f32 %v7326_v57, %v6534_v60  ;;  %v2259_v28 = vsel %vm1540_vm0, %v7327_v46, 0  ;;  %v3696_v7 = vsel %vm7857_vm15, %v6221_v59, %v3695_v30  ;;  %v7331_v50 = vld [vmem:[#allocation2 + $0x30] sm:$0xf]  ;;  %v998_v41 = vld [vmem:[#allocation2 + $0xc0] sm:$0xf] }
  0xf9   : > { %v3699_v49 = vsel %vm7857_vm15, %v3697_v54, %v3698_v4  ;;  %v3703_v34 = vsel %vm7857_vm15, %v6222_v24, %v3702_v31  ;;  %v3706_v20 = vsel %vm7857_vm15, %v3704_v38, %v3705_v56  ;;  %v6064_v25 = vcombine.low %v7329_v11, %v8246_v55  ;;  %v1002_v60 = vld [vmem:[#allocation2 + $0xc8] sm:$0x1]  ;;  %v7339_v11 = vld [vmem:[#allocation2 + $0x60] sm:$0xf] }
  0xfa   : > { %6896 = vmatmul.mubr.msk.bf16.gmra.mrb[20].mxu0 %vm1491_vm7, %v6236_v14  ;;  %v434_v36 = vadd.f32 %v7328_v27, %v395_v2  ;;  %v435_v21 = vadd.f32 %v7328_v27, %v396_v13  ;;  %v6238_v61 = vcombine.low %v3696_v7, %v3699_v49  ;;  %v6239_v29 = vcombine.low %v3703_v34, %v3706_v20  ;;  %v7333_v2 = vld [vmem:[#allocation2 + $0x3c] sm:$0xf]  ;;  %v8262_v13 = vld [vmem:[#allocation2 + $0x40] sm:$0xf]  ;;  %v8266_v27 = vld [vmem:[#allocation2 + $0x4c] sm:$0xf] }
  0xfb   : > { %6899 = vmatprep.mubr.msk.bf16.mxu0 %vm1491_vm7, %v6237_v40  ;;  %v6066_v46 = vcombine.low %v7333_v2, %v8262_v13  ;;  %v8273_v17 = vrot.slane %v3086_v12, 5  ;;  %v7337_v20 = vld [vmem:[#allocation2 + $0x54] sm:$0xf] }
  0xfc   : > { %v466_v39 = vmax.f32 %v434_v36, 0.0  ;;  %v467_v10 = vmax.f32 %v435_v21, 0.0  ;;  %v3090_v36 = vshrl.u32 %v8165_v26, 16  ;;  %v8278_v26 = vld [vmem:[#allocation2 + $0x64] sm:$0xf] }
  0xfd   : > { %9448 = vst [vmem:[#allocation4_spill] sm:$0xff] %v8273_v17 }
  0xfe   : > { %6740 = vmatmul.mubr.msk.bf16.vlgmr.msra.gmra.mrb[0].mxu1 %vm1491_vm7, %v6062_v63  ;;  %v6437_v42 = vpack.c.bf16 %v466_v39, %v466_v39  ;;  %v6438_v30 = vpack.c.bf16 %v467_v10, %v467_v10  ;;  %v6065_v63 = vcombine.low %v7331_v50, %v8249_v44  ;;  %v3092_v21 = vrot.slane %v3090_v36, 4  ;;  %v8275_v39 = vld [vmem:[#allocation2 + $0x58] sm:$0xf] }
  0xff   : > { %6772 = vmatpush3.bf16.msra.mxu1 %v2259_v28  ;;  %6743 = vmatprep.mubr.msk.bf16.mxu1 %vm1491_vm7, %v6063_v33  ;;  %v7335_v28 = vld [vmem:[#allocation2 + $0x48] sm:$0xf]  ;;  %v6068_v10 = vcombine.low %v7337_v20, %v8275_v39 }
 0x100   : > { %7270 = vmatprep.subr.msk.bf16.mxu1 %vm1540_vm0, %v8231_v5  ;;  %v823_v33 = vshrl.u32 %v6437_v42, 16  ;;  %v826_v14 = vshll.u32 %v6437_v42, 16  ;;  %v831_v37 = vshrl.u32 %v6438_v30, 16  ;;  %v834_v31 = vshll.u32 %v6438_v30, 16 }
 0x101   : > { %v6067_v0 = vcombine.low %v7335_v28, %v8266_v27  ;;  %v7345_v28 = vld [vmem:[%s9418_s3 + $0x1c] sm:$0xf] }
 0x102   : > { %6900 = vmatmul.mubr.msk.bf16.gmra.mrb[24].mxu0 %vm1491_vm7, %v6238_v61  ;;  %v825_v32 = vrot.slane %v823_v33, 7  ;;  %v833_v59 = vrot.slane %v831_v37, 7  ;;  %v3096_v33 = vshll.u32 %v8173_v52, 16  ;;  %v7286_v37 = vld [vmem:[#allocation2 + $0x18] sm:$0xff]   ;;  %v1997_v52 = vld [vmem:[#allocation2] sm:$0xe] }
 0x103   : > { %6903 = vmatprep.mubr.msk.bf16.mxu0 %vm1491_vm7, %v6239_v29  ;;  %v3093_v29 = vor.u32 %v3092_v21, %v8273_v17  ;;  %v2000_v21 = vld [vmem:[#allocation2 + $0x24] sm:$0xe] }
 0x104   : > { %v828_v40 = vor.u32 %v826_v14, %v825_v32  ;;  %v829_v54 = vrot.slane %v825_v32, 4  ;;  %v836_v4 = vor.u32 %v834_v31, %v833_v59  ;;  %v838_v24 = vrot.slane %v833_v59, 4 }
 0x105   : > { %v2057_v31 = vrot.slane %v8209_v9, 5  ;;  %v2050_v59 = vrot.slane %v8193_v47, 5  ;;  %v7343_v9 = vld [vmem:[#allocation2 + $0x6c] sm:$0xf]  ;;  %v1999_v47 = vld [vmem:[#allocation2 + $0x18] sm:$0xe] }
 0x106   : > { %6744 = vmatmul.mubr.msk.bf16.gmra.mrb[4].mxu1 %vm1491_vm7, %v6064_v25  ;;  %v837_v38 = vsel %vm7565_vm10, %v829_v54, %v836_v4  ;;  %v999_v56 = vsel %vm7572_vm11, %v828_v40, %v998_v41  ;;  %v1003_v57 = vsel %vm7579_vm12, %v838_v24, %v1002_v60  ;;  %v6069_v25 = vcombine.low %v7339_v11, %v8278_v26  ;;  %v1998_v41 = vld [vmem:[#allocation2 + $0xc] sm:$0xe]  ;;  %v7341_v60 = vld [vmem:[#allocation2 + $0x8] sm:$0x1]  ;;  %v7342_v54 = vld [vmem:[#allocation2 + $0x14] sm:$0x1] }
 0x107   : > { %6747 = vmatprep.mubr.msk.bf16.mxu1 %vm1491_vm7, %v6065_v63  ;;  %1000 = vst [vmem:[#allocation2 + $0xc0] sm:$0xf] %v999_v56  ;;  %1001 = vst.msk [vmem:[#allocation2 + $0xc4] sm:$0xf] %vm238_vm1, %v837_v38  ;;  %v2053_v40 = vrot.slane %v7341_v60, 5  ;;  %v2060_v4 = vrot.slane %v7342_v54, 5 }
 0x108   : > { %1004 = vst [vmem:[#allocation2 + $0xc8] sm:$0x1] %v1003_v57  ;;  %v2064_v24 = vrot.slane %v8212_v15, 5  ;;  %v8293_v38 = vrot.slane %v3093_v29, 4  ;;  %v8295_v56 = vrot.slane %v3096_v33, 5  ;;  %v4898_v15 = vsel %vm1540_vm0, %v7345_v28, 0 }
 0x109   : > { %v8297_v57 = vld [vmem:[#allocation2 + $0x70] sm:$0xf]  ;;  %v6094_v12 = vrot.slane %v1998_v41, 9  ;;  %v2059_v36 = vrot.slane %v2057_v31, 4  ;;  %v2052_v20 = vrot.slane %v2050_v59, 4  ;;  %v8339_v60 = vsel %vm1540_vm0, %v8231_v5, 0 }
 0x10a   : > { %9449 = vst [vmem:[#allocation5_spill] sm:$0xff] %v8293_v38  ;;  %9450 = vst [vmem:[#allocation6_spill] sm:$0xff] %v8295_v56  ;;  %v6070_v2 = vcombine.low %v7343_v9, %v8297_v57  ;;  %v2001_v11 = vld [vmem:[#allocation2 + $0x30] sm:$0xe]  ;;  %v7348_v5 = vld [vmem:[#allocation2 + $0x38] sm:$0x1] }
 0x10b   : > { %v8335_v41 = vsel %vm7857_vm15, %v2052_v20, %v2053_v40  ;;  %v6097_v54 = vrot.slane %v2001_v11, 9  ;;  %v2081_v9 = vrot.slane %v7348_v5, 5  ;;  %v7297_v38 = vld [vmem:[#allocation2 + $0x9c] sm:$0xff]  }
 0x10e   : > { %6748 = vmatmul.mubr.msk.bf16.gmra.mrb[8].mxu1 %vm1491_vm7, %v6066_v46  ;;  %v2858_v7 = vld [vmem:[#allocation2 + $0xc4] sm:$0xf]  ;;  %v3553_v34 = vld [vmem:[#allocation2 + $0xc0] sm:$0xe]  ;;  %v2071_v46 = vrot.slane %v8246_v55, 5  ;;  %v6093_v55 = vrot.slane %v1997_v52, 9 }
 0x10f   : > { %6751 = vmatprep.mubr.msk.bf16.mxu1 %vm1491_vm7, %v6067_v0  ;;  %v2859_v49 = vld [vmem:[#allocation2 + $0xc8] sm:$0x1]  ;;  %v6223_v61 = vrot.slane %v3553_v34, 9  ;;  %v3709_v42 = vrot.slane %v2858_v7, 5  ;;  %v6071_v0 = vcombine.low %v8003_v19, %v8007_v58  ;;  %v6073_v34 = vcombine.low %v8067_v45, %v8070_v53  ;;  %v7288_v19 = vld [vmem:[#allocation2 + $0x30] sm:$0xff]  }
 0x110   : > { %v3712_v30 = vrot.slane %v2859_v49, 5  ;;  %v7287_v7 = vld [vmem:[#allocation2 + $0x24] sm:$0xff]   ;;  %v6072_v49 = vcombine.low %v8034_v48, %v8038_v22  ;;  %v6074_v58 = vcombine.low %v8104_v62, %v8106_v1  ;;  %v2073_v48 = vrot.slane %v2071_v46, 4  ;;  %v7347_v22 = vld [vmem:[#allocation2 + $0x2c] sm:$0x1] }
 0x111   : > { %v3710_v50 = vsel %vm7857_vm15, %v6223_v61, %v3709_v42  ;;  %v3711_v63 = vrot.slane %v3709_v42, 4  ;;  %v2066_v61 = vrot.slane %v2064_v24, 4  ;;  %v7346_v42 = vld [vmem:[#allocation2 + $0x20] sm:$0x1]  ;;  %v2099_v53 = vrot.slane %v8275_v39, 5 }
 0x113   : > { %v3713_v14 = vsel %vm7857_vm15, %v3711_v63, %v3712_v30  ;;  %v2067_v30 = vrot.slane %v7346_v42, 5  ;;  %v2074_v63 = vrot.slane %v7347_v22, 5  ;;  %v7289_v42 = vld [vmem:[#allocation2 + $0x3c] sm:$0xff]   ;;  %v4371_v22 = vld [vmem:[#allocation2 + $0x28] sm:$0xf] }
 0x114   : > { %v6240_v32 = vcombine.low %v3710_v50, %v3713_v14  ;;  %v6096_v50 = vrot.slane %v2000_v21, 9  ;;  %v8327_v14 = vsel %vm7857_vm15, %v2059_v36, %v2060_v4  ;;  %v8344_v4 = vld [vmem:[%s9418_s3 + $0x20] sm:$0xf] }
 0x115   : > { %v8353_v40 = vsel %vm7857_vm15, %v2066_v61, %v2067_v30  ;;  %v4370_v61 = vld [vmem:[#allocation2 + $0x24] sm:$0xf] }
 0x116   : > { %6752 = vmatmul.mubr.msk.bf16.gmra.mrb[12].mxu1 %vm1491_vm7, %v6068_v10  ;;  %6904 = vmatmul.mubr.msk.bf16.gmra.mrb[28].mxu0 %vm1491_vm7, %v6240_v32  ;;  %v6095_v10 = vrot.slane %v1999_v47, 9  ;;  %v8331_v32 = vsel %vm7857_vm15, %v6093_v55, %v2050_v59  ;;  %v8360_v28 = vsel %vm7857_vm15, %v6096_v50, %v2071_v46  ;;  %v4443_v30 = vshll.u32 %v4370_v61, 16  ;;  %v7291_v47 = vld [vmem:[#allocation2 + $0x54] sm:$0xff]  }
 0x117   : > { %6755 = vmatprep.mubr.msk.bf16.mxu1 %vm1491_vm7, %v6069_v25  ;;  %6909 = vmatprep.mubr.msk.bf16.mxu0 %vm1491_vm7, %v7286_v37  ;;  %v2078_v25 = vrot.slane %v8249_v44, 5  ;;  %v8323_v44 = vsel %vm7857_vm15, %v6094_v12, %v2057_v31  ;;  %v4367_v37 = vld [vmem:[#allocation2 + $0x18] sm:$0xf]  ;;  %v4368_v31 = vld [vmem:[#allocation2 + $0x1c] sm:$0xf]  ;;  %v4453_v46 = vshrl.u32 %v4371_v22, 16 }
 0x118   : > { %v8349_v59 = vsel %vm7857_vm15, %v6095_v10, %v2064_v24  ;;  %v8364_v24 = vsel %vm7857_vm15, %v2073_v48, %v2074_v63  ;;  %v2003_v12 = vld [vmem:[#allocation2 + $0x48] sm:$0xe]  ;;  %v4416_v21 = vshrl.u32 %v4367_v37, 16  ;;  %v4425_v55 = vshll.u32 %v4368_v31, 16 }
 0x119   : > { %v2080_v52 = vrot.slane %v2078_v25, 4  ;;  %v8377_v20 = vsel %vm7857_vm15, %v6097_v54, %v2078_v25  ;;  %v4429_v10 = vshrl.u32 %v4368_v31, 16  ;;  %v6099_v48 = vrot.slane %v2003_v12, 9  ;;  %v7290_v63 = vld [vmem:[#allocation2 + $0x48] sm:$0xff]   ;;  %v8387_v54 = vld [vmem:[#allocation2 + $0x50] sm:$0x1] }
 0x11a   : > { %v2095_v31 = vrot.slane %v8387_v54, 5  ;;  %v4369_v12 = vld [vmem:[#allocation2 + $0x20] sm:$0x1]  ;;  %v4372_v54 = vld [vmem:[#allocation2 + $0x2c] sm:$0x1] }
 0x11b   : > { %v8383_v11 = vsel %vm7857_vm15, %v2080_v52, %v2081_v9  ;;  %v4418_v52 = vrot.slane %v4416_v21, 4 }
 0x11e   : > { %6756 = vmatmul.mubr.msk.bf16.gmra.mrb[16].mxu1 %vm1491_vm7, %v6070_v2  ;;  %6910 = vmatmul.mubr.msk.bf16.vlgmr.msra.gmra.mrb[0].mxu0 %vm1491_vm7, %v7287_v7  ;;  %v2002_v2 = vld [vmem:[#allocation2 + $0x3c] sm:$0xe]  ;;  %v4419_v7 = vshll.u32 %v4367_v37, 16  ;;  %v2092_v37 = vrot.slane %v8266_v27, 5  ;;  %v4449_v27 = vshll.u32 %v4371_v22, 16  ;;  %v4435_v22 = vshll.u32 %v4369_v12, 16 }
 0x11f   : > { %6759 = vmatprep.mubr.msk.bf16.mxu1 %vm1491_vm7, %v6071_v0  ;;  %6942 = vmatpush3.bf16.msra.mxu0 %v4898_v15  ;;  %v2085_v0 = vrot.slane %v8262_v13, 5  ;;  %v8369_v15 = vld [vmem:[#allocation2 + $0x54] sm:$0xe]  ;;  %v6098_v13 = vrot.slane %v2002_v2, 9  ;;  %v8395_v2 = vrot.slane %v4425_v55, 5 }
 0x120   : > { %6913 = vmatprep.mubr.msk.bf16.mxu0 %vm1491_vm7, %v7288_v19  ;;  %7276 = vmatprep.subr.msk.bf16.mxu0 %vm1540_vm0, %v8344_v4  ;;  %v7349_v19 = vld [vmem:[#allocation2 + $0x44] sm:$0x1]  ;;  %v6100_v5 = vrot.slane %v8369_v15, 9  ;;  %v4421_v9 = vrot.slane %v4419_v7, 5  ;;  %v8409_v21 = vsel %vm7857_vm15, %v6099_v48, %v2092_v37  ;;  %v2094_v7 = vrot.slane %v2092_v37, 4 }
 0x121   : > { %v2088_v50 = vrot.slane %v7349_v19, 5  ;;  %v2087_v25 = vrot.slane %v2085_v0, 4  ;;  %v4431_v19 = vrot.slane %v4429_v10, 4  ;;  %v8402_v45 = vsel %vm7857_vm15, %v6098_v13, %v2085_v0  ;;  %v7351_v55 = vld [vmem:[#allocation2 + $0x5c] sm:$0x1] }
 0x122   : > { %v2102_v10 = vrot.slane %v7351_v55, 5  ;;  %v2006_v13 = vld [vmem:[#allocation2 + $0x6c] sm:$0xe]  ;;  %v4422_v39 = vor.u32 %v4421_v9, %v4418_v52  ;;  %v4445_v15 = vrot.slane %v4443_v30, 5  ;;  %v8417_v48 = vrot.slane %v4449_v27, 5 }
 0x123   : > { %v8414_v0 = vsel %vm7857_vm15, %v2087_v25, %v2088_v50  ;;  %v4455_v37 = vrot.slane %v4453_v46, 4  ;;  %v2101_v55 = vrot.slane %v2099_v53, 4  ;;  %v7292_v50 = vld [vmem:[#allocation2 + $0x60] sm:$0xff]   ;;  %v8425_v25 = vsel %vm7857_vm15, %v6100_v5, %v2099_v53  ;;  %v7353_v9 = vld [vmem:[#allocation2 + $0x74] sm:$0x1] }
 0x124   : > { %v6102_v30 = vrot.slane %v2006_v13, 9  ;;  %v2116_v46 = vrot.slane %v7353_v9, 5  ;;  %v4423_v62 = vrot.slane %v4422_v39, 4  ;;  %v4437_v1 = vrot.slane %v4435_v22, 5  ;;  %v2007_v53 = vld [vmem:[#allocation2 + $0x78] sm:$0xe] }
 0x125   : > { %v4456_v5 = vor.u32 %v4455_v37, %v8417_v48  ;;  %v7354_v13 = vld [vmem:[#allocation2 + $0x7c] sm:$0xf]  ;;  %v8441_v9 = vsel %vm7857_vm15, %v2101_v55, %v2102_v10  ;;  %v7293_v55 = vld [vmem:[#allocation2 + $0x6c] sm:$0xff]  }
 0x126   : > { %6760 = vmatmul.mubr.msk.bf16.gmra.mrb[20].mxu1 %vm1491_vm7, %v6072_v49  ;;  %v4440_v49 = vshrl.u32 %v4370_v61, 16  ;;  %6914 = vmatmul.mubr.msk.bf16.gmra.mrb[4].mxu0 %vm1491_vm7, %v7289_v42  ;;  %v2005_v61 = vld [vmem:[#allocation2 + $0x60] sm:$0xe]  ;;  %v2113_v42 = vrot.slane %v8297_v57, 5  ;;  %v7352_v57 = vld [vmem:[#allocation2 + $0x68] sm:$0x1] }
 0x127   : > { %6763 = vmatprep.mubr.msk.bf16.mxu1 %vm1491_vm7, %v6073_v34  ;;  %v2106_v34 = vrot.slane %v8278_v26, 5  ;;  %6917 = vmatprep.mubr.msk.bf16.mxu0 %vm1491_vm7, %v7290_v63  ;;  %v4432_v63 = vor.u32 %v4431_v19, %v8395_v2  ;;  %v6101_v36 = vrot.slane %v2005_v61, 9  ;;  %v2109_v29 = vrot.slane %v7352_v57, 5  ;;  %v4373_v19 = vld [vmem:[#allocation2 + $0x30] sm:$0xf] }
 0x128   : > { %v4442_v26 = vrot.slane %v4440_v49, 4  ;;  %v2115_v52 = vrot.slane %v2113_v42, 4  ;;  %v9451_v49 = vcombine.low %v8144_v8, %v8148_v16  ;;  %v2120_v57 = vrot.slane %v7354_v13, 5 }
 0x129   : > { %v2108_v33 = vrot.slane %v2106_v34, 4  ;;  %v4433_v27 = vrot.slane %v4432_v63, 4  ;;  %v8437_v8 = vsel %vm7857_vm15, %v2094_v7, %v2095_v31  ;;  %v8445_v39 = vsel %vm7857_vm15, %v6101_v36, %v2106_v34  ;;  %v2008_v7 = vld [vmem:[#allocation2 + $0x84] sm:$0xe] }
 0x12a   : > { %v4446_v61 = vor.u32 %v4445_v15, %v4442_v26  ;;  %v8458_v31 = vsel %vm7857_vm15, %v2115_v52, %v2116_v46  ;;  %v4464_v10 = vshrl.u32 %v4373_v19, 16  ;;  %v4467_v22 = vshll.u32 %v4373_v19, 16  ;;  %v8471_v46 = vld [vmem:[#allocation2 + $0x34] sm:$0xf] }
 0x12b   : > { %v8449_v15 = vsel %vm7857_vm15, %v2108_v33, %v2109_v29  ;;  %v4428_v36 = vsel %vm7550_vm9, %v4423_v62, %v8395_v2  ;;  %v6103_v29 = vrot.slane %v2007_v53, 9  ;;  %v7355_v33 = vld [vmem:[#allocation2 + $0x80] sm:$0x1]  ;;  %v4438_v63 = vsel %vm7550_vm9, %v4433_v27, %v4437_v1  ;;  %9452 = vst [vmem:[#allocation7_spill] sm:$0xff] %v8471_v46  ;;  %v7294_v62 = vld [vmem:[#allocation2 + $0x78] sm:$0xff]  }
 0x12c   : > { %v2123_v26 = vrot.slane %v7355_v33, 5  ;;  %v2122_v37 = vrot.slane %v2120_v57, 4  ;;  %v6104_v52 = vrot.slane %v2008_v7, 9  ;;  %v4466_v27 = vrot.slane %v4464_v10, 4  ;;  %v7357_v33 = vld [vmem:[#allocation2 + $0x8c] sm:$0x1] }
 0x12d   : > { %v9454_v53 = vcombine.low %v8331_v32, %v8335_v41  ;;  %v8483_v13 = vcombine.low %v4428_v36, %v4438_v63  ;;  %v8491_v7 = vsel %vm7857_vm15, %v6103_v29, %v2120_v57  ;;  %v8493_v10 = vld [vmem:[#allocation2 + $0x40] sm:$0xf]  ;;  %v4473_v57 = vshll.u32 %v8471_v46, 16  ;;  %v4379_v36 = vld [vmem:[#allocation2 + $0x48] sm:$0xf] }
 0x12e   : > { %6764 = vmatmul.mubr.msk.bf16.gmra.mrb[24].mxu1 %vm1491_vm7, %v6074_v58  ;;  %v4459_v58 = vshll.u32 %v4372_v54, 16  ;;  %6918 = vmatmul.mubr.msk.bf16.gmra.mrb[8].mxu0 %vm1491_vm7, %v7291_v47  ;;  %v8454_v47 = vsel %vm7857_vm15, %v6102_v30, %v2113_v42  ;;  %v4447_v42 = vrot.slane %v4446_v61, 4  ;;  %v4457_v54 = vrot.slane %v4456_v5, 4  ;;  %v4376_v5 = vld [vmem:[#allocation2 + $0x3c] sm:$0xf]  ;;  %9455 = vst [vmem:[#allocation8_spill] sm:$0xff] %v8493_v10 }
 0x12f   : > { %6767 = vmatprep.mubr.msk.bf16.mxu1 %vm1491_vm7, %v9451_v49  ;;  %6921 = vmatprep.mubr.msk.bf16.mxu0 %vm1491_vm7, %v7292_v50  ;;  %v9453_v49 = vcombine.low %v8160_v18, %v8167_v23  ;;  %v4469_v61 = vrot.slane %v4467_v22, 5  ;;  %v8487_v18 = vsel %vm1540_vm0, %v8344_v4, 0  ;;  %v8502_v22 = vsel %vm7857_vm15, %v2122_v37, %v2123_v26  ;;  %v8504_v4 = vld [vmem:[#allocation2 + $0x38] sm:$0x1]  ;;  %v8516_v37 = vld [vmem:[#allocation2 + $0x44] sm:$0x1] }
 0x130   : > { %v4461_v34 = vrot.slane %v4459_v58, 5  ;;  %v7356_v58 = vld [vmem:[#allocation2 + $0x88] sm:$0xf]  ;;  %v4452_v32 = vsel %vm7550_vm9, %v4447_v42, %v8417_v48  ;;  %9456 = vst [vmem:[#allocation9_spill] sm:$0xff] %v8504_v4  ;;  %v4477_v48 = vshrl.u32 %v8471_v46, 16  ;;  %v4488_v63 = vshrl.u32 %v4376_v5, 16 }
 0x131   : > { %v2127_v19 = vrot.slane %v7356_v58, 5  ;;  %v4491_v42 = vshll.u32 %v4376_v5, 16  ;;  %9457 = vst [vmem:[#allocation10_spill] sm:$0xff] %v8516_v37  ;;  %v4497_v58 = vshll.u32 %v8493_v10, 16  ;;  %v4512_v1 = vshrl.u32 %v4379_v36, 16 }
 0x132   : > { %v4462_v41 = vsel %vm7550_vm9, %v4457_v54, %v4461_v34  ;;  %v8513_v34 = vld [vmem:[#allocation2 + $0x4c] sm:$0xf]  ;;  %v4470_v54 = vor.u32 %v4469_v61, %v4466_v27  ;;  %v4515_v5 = vshll.u32 %v4379_v36, 16  ;;  %v8524_v2 = vrot.slane %v4473_v57, 5  ;;  %v4382_v61 = vld [vmem:[#allocation2 + $0x54] sm:$0xf] }
 0x133   : > { %v8510_v29 = vsel %vm7857_vm15, %v6104_v52, %v2127_v19  ;;  %v2129_v26 = vrot.slane %v2127_v19, 4  ;;  %v4521_v19 = vshll.u32 %v8513_v34, 16  ;;  %v4525_v27 = vshrl.u32 %v8513_v34, 16  ;;  %v7296_v57 = vld [vmem:[#allocation2 + $0x90] sm:$0xff]  }
 0x134   : > { %v4479_v30 = vrot.slane %v4477_v48, 4  ;;  %v4490_v50 = vrot.slane %v4488_v63, 4  ;;  %v4493_v12 = vrot.slane %v4491_v42, 5  ;;  %v9459_v52 = vcombine.low %v8323_v44, %v8327_v14  ;;  %v2009_v44 = vld [vmem:[#allocation2 + $0x90] sm:$0xe] }
 0x135   : > { %v9460_v63 = vcombine.low %v8349_v59, %v8353_v40  ;;  %v4514_v14 = vrot.slane %v4512_v1, 4  ;;  %v4517_v42 = vrot.slane %v4515_v5, 5  ;;  %v8549_v46 = vrot.slane %v4521_v19, 5 }
 0x136   : > { %6768 = vmatmul.mubr.msk.bf16.gmra.mrb[28].mxu1 %vm1491_vm7, %v9453_v49  ;;  %v2130_v49 = vrot.slane %v7357_v33, 5  ;;  %6922 = vmatmul.mubr.msk.bf16.gmra.mrb[12].mxu0 %vm1491_vm7, %v7293_v55  ;;  %v4501_v55 = vshrl.u32 %v8493_v10, 16  ;;  %v8520_v33 = vcombine.low %v4452_v32, %v4462_v41  ;;  %v4507_v32 = vshll.u32 %v8516_v37, 16  ;;  %v8530_v41 = vld [vmem:[#allocation2 + $0x58] sm:$0xf] }
 0x137   : > { %6773 = vmatprep.mubr.msk.bf16.mxu1 %vm1491_vm7, %v9454_v53  ;;  %6925 = vmatprep.mubr.msk.bf16.mxu0 %vm1491_vm7, %v7294_v62  ;;  %v7295_v53 = vld [vmem:[#allocation2 + $0x84] sm:$0xff]   ;;  %v4483_v62 = vshll.u32 %v8504_v4, 16  ;;  %9458 = vst [vmem:[#allocation11_spill] sm:$0xff] %v8530_v41  ;;  %v8540_v10 = vrot.slane %v4470_v54, 4  ;;  %v8542_v4 = vrot.slane %v4497_v58, 5  ;;  %v4539_v37 = vshll.u32 %v4382_v61, 16 }
 0x138   : > { %v8538_v36 = vsel %vm7857_vm15, %v2129_v26, %v2130_v49  ;;  %v4503_v48 = vrot.slane %v4501_v55, 4  ;;  %v4527_v49 = vrot.slane %v4525_v27, 4  ;;  %v4545_v26 = vshll.u32 %v8530_v41, 16  ;;  %v8563_v55 = vld [vmem:[#allocation2 + $0x50] sm:$0x1] }
 0x139   : > { %v4549_v54 = vshrl.u32 %v8530_v41, 16  ;;  %v4480_v59 = vor.u32 %v4479_v30, %v8524_v2  ;;  %v8559_v40 = vrot.slane %v4483_v62, 5  ;;  %v4494_v1 = vor.u32 %v4493_v12, %v4490_v50  ;;  %9461 = vst [vmem:[#allocation12_spill] sm:$0xff] %v8563_v55  ;;  %v2010_v30 = vld [vmem:[#allocation2 + $0x9c] sm:$0xe] }
 0x13a   : > { %v8561_v58 = vrot.slane %v4507_v32, 5  ;;  %v4504_v19 = vor.u32 %v4503_v48, %v8542_v4  ;;  %v6105_v27 = vrot.slane %v2009_v44, 9  ;;  %v7360_v62 = vld [vmem:[#allocation2 + $0xa0] sm:$0xf]  ;;  %v4518_v12 = vor.u32 %v4517_v42, %v4514_v14  ;;  %v7298_v48 = vld [vmem:[#allocation2 + $0xa8] sm:$0xff]  }
 0x13b   : > { %v4541_v32 = vrot.slane %v4539_v37, 5  ;;  %v8575_v17 = vrot.slane %v4545_v26, 5  ;;  %v4551_v5 = vrot.slane %v4549_v54, 4  ;;  %v4481_v44 = vrot.slane %v4480_v59, 4 }
 0x13c   : > { %v4495_v56 = vrot.slane %v4494_v1, 4  ;;  %v9462_v37 = vcombine.low %v8360_v28, %v8364_v24  ;;  %v4505_v14 = vrot.slane %v4504_v19, 4  ;;  %v9463_v54 = vcombine.low %v8377_v20, %v8383_v11 }
 0x13d   : > { %v4519_v1 = vrot.slane %v4518_v12, 4  ;;  %v4486_v20 = vsel %vm7550_vm9, %v4481_v44, %v8559_v40  ;;  %v2151_v12 = vrot.slane %v8150_v6, 5  ;;  %v4385_v6 = vld [vmem:[#allocation2 + $0x60] sm:$0xf] }
 0x13e   : > { %6774 = vmatmul.mubr.msk.bf16.vlgmr.msra.gmra.mrb[0].mxu1 %vm1491_vm7, %v9459_v52  ;;  %v4536_v52 = vshrl.u32 %v4382_v61, 16  ;;  %6926 = vmatmul.mubr.msk.bf16.gmra.mrb[16].mxu0 %vm1491_vm7, %v7295_v53  ;;  %v7359_v53 = vld [vmem:[#allocation2 + $0x94] sm:$0xf]  ;;  %v4563_v44 = vshll.u32 %v4385_v6, 16 }
 0x13f   : > { %6806 = vmatpush3.bf16.msra.mxu1 %v8339_v60  ;;  %6777 = vmatprep.mubr.msk.bf16.mxu1 %vm1491_vm7, %v9460_v63  ;;  %v7358_v60 = vld [vmem:[%s9418_s3 + $0x10] sm:$0xf]  ;;  %v2134_v61 = vrot.slane %v7359_v53, 5  ;;  %v2141_v63 = vrot.slane %v7360_v62, 5  ;;  %v7361_v53 = vld [vmem:[#allocation2 + $0x98] sm:$0x1] }
 0x140   : > { %7272 = vmatprep.subr.msk.bf16.mxu1 %vm1540_vm0, %v7358_v60  ;;  %6929 = vmatprep.mubr.msk.bf16.mxu0 %vm1491_vm7, %v7296_v57  ;;  %v4538_v50 = vrot.slane %v4536_v52, 4  ;;  %v4528_v60 = vor.u32 %v4527_v49, %v8549_v46  ;;  %v4531_v57 = vshll.u32 %v8563_v55, 16  ;;  %v2137_v41 = vrot.slane %v7361_v53, 5  ;;  %v7362_v49 = vld [vmem:[#allocation2 + $0xa4] sm:$0x1] }
 0x141   : > { %v2148_v62 = vrot.slane %v8148_v16, 5  ;;  %v2136_v42 = vrot.slane %v2134_v61, 4  ;;  %v6106_v52 = vrot.slane %v2010_v30, 9  ;;  %v2144_v26 = vrot.slane %v7362_v49, 5  ;;  %v2011_v55 = vld [vmem:[#allocation2 + $0xa8] sm:$0xe] }
 0x142   : > { %v2143_v59 = vrot.slane %v2141_v63, 4  ;;  %v4542_v53 = vor.u32 %v4541_v32, %v4538_v50  ;;  %v4555_v16 = vshll.u32 %v8573_v3, 16  ;;  %v8589_v28 = vsel %vm7857_vm15, %v6105_v27, %v2134_v61  ;;  %v2012_v50 = vld [vmem:[#allocation2 + $0xb4] sm:$0xe] }
 0x143   : > { %v4529_v24 = vrot.slane %v4528_v60, 4  ;;  %v4533_v19 = vrot.slane %v4531_v57, 5  ;;  %v4552_v30 = vor.u32 %v4551_v5, %v8575_v17  ;;  %v6107_v11 = vrot.slane %v2011_v55, 9  ;;  %v7299_v60 = vld [vmem:[#allocation2 + $0xb4] sm:$0xff]  }
 0x144   : > { %v4500_v27 = vsel %vm7550_vm9, %v4495_v56, %v8542_v4  ;;  %v4510_v5 = vsel %vm7550_vm9, %v4505_v14, %v8561_v58  ;;  %v8610_v40 = vsel %vm7857_vm15, %v6106_v52, %v2141_v63  ;;  %v8614_v55 = vsel %vm7857_vm15, %v2143_v59, %v2144_v26 }
 0x145   : > { %v4524_v56 = vsel %vm7550_vm9, %v4519_v1, %v8549_v46  ;;  %v8619_v4 = vrot.slane %v4542_v53, 4  ;;  %v8621_v58 = vrot.slane %v4555_v16, 5  ;;  %v8625_v61 = vrot.slane %v4552_v30, 4  ;;  %v8668_v53 = vld [vmem:[#allocation2 + $0x70] sm:$0xf] }
 0x146   : > { %6778 = vmatmul.mubr.msk.bf16.gmra.mrb[4].mxu1 %vm1491_vm7, %v9462_v37  ;;  %6930 = vmatmul.mubr.msk.bf16.gmra.mrb[20].mxu0 %vm1491_vm7, %v7297_v38  ;;  %v2150_v37 = vrot.slane %v2148_v62, 4  ;;  %v8606_v38 = vsel %vm7857_vm15, %v2136_v42, %v2137_v41  ;;  %v4534_v41 = vsel %vm7550_vm9, %v4529_v24, %v4533_v19  ;;  %v6108_v63 = vrot.slane %v2012_v50, 9  ;;  %v7300_v42 = vld [vmem:[#allocation2 + $0xc0] sm:$0xff]   ;;  %9469 = vst [vmem:[#allocation15_spill] sm:$0xff] %v8668_v53  ;;  %v4391_v16 = vld [vmem:[#allocation2 + $0x78] sm:$0xf] }
 0x147   : > { %6781 = vmatprep.mubr.msk.bf16.mxu1 %vm1491_vm7, %v9463_v54  ;;  %6933 = vmatprep.mubr.msk.bf16.mxu0 %vm1491_vm7, %v7298_v48  ;;  %v2155_v32 = vrot.slane %v8167_v23, 5  ;;  %v8630_v57 = vsel %vm7857_vm15, %v6107_v11, %v2148_v62  ;;  %v4560_v48 = vshrl.u32 %v4385_v6, 16  ;;  %v9466_v14 = vcombine.low %v8402_v45, %v8414_v0  ;;  %v8653_v54 = vld [vmem:[#allocation2 + $0x64] sm:$0xf]  ;;  %v4388_v45 = vld [vmem:[#allocation2 + $0x6c] sm:$0xf] }
 0x148   : > { %9464 = vst [vmem:[#allocation13_spill] sm:$0xff] %v8630_v57  ;;  %v8634_v46 = vsel %vm7857_vm15, %v2150_v37, %v2151_v12  ;;  %v9467_v62 = vsel %vm7550_vm9, %v8540_v10, %v8524_v2  ;;  %v8649_v49 = vcombine.low %v4500_v27, %v4510_v5  ;;  %v9468_v0 = vcombine.low %v8409_v21, %v8437_v8  ;;  %v8682_v30 = vld [vmem:[#allocation2 + $0x7c] sm:$0xf]  ;;  %v8687_v27 = vld [vmem:[#allocation2 + $0x88] sm:$0xf]  ;;  %v7301_v8 = vld [vmem:[#allocation2 + $0xcc] sm:$0xff]  }
 0x149   : > { %9465 = vst [vmem:[#allocation14_spill] sm:$0xff] %v8634_v46  ;;  %v8647_v52 = vcombine.low %v9467_v62, %v4486_v20  ;;  %v8661_v1 = vcombine.low %v4524_v56, %v4534_v41  ;;  %v8678_v24 = vsel %vm7857_vm15, %v6108_v63, %v2155_v32  ;;  %v8680_v19 = vrot.slane %v2155_v32, 4  ;;  %9470 = vst [vmem:[#allocation16_spill] sm:$0xff] %v8682_v30  ;;  %v4394_v20 = vld [vmem:[#allocation2 + $0x84] sm:$0xf] }
 0x14a   : > { %v4562_v11 = vrot.slane %v4560_v48, 4  ;;  %v4565_v37 = vrot.slane %v4563_v44, 5  ;;  %v4569_v12 = vshll.u32 %v8653_v54, 16  ;;  %v4573_v50 = vshrl.u32 %v8653_v54, 16  ;;  %9471 = vst [vmem:[#allocation17_spill] sm:$0xff] %v8687_v27 }
 0x14b   : > { %v8690_v5 = vld [vmem:[#allocation2 + $0x68] sm:$0x1]  ;;  %v4584_v6 = vshrl.u32 %v4388_v45, 16  ;;  %v4587_v56 = vshll.u32 %v4388_v45, 16  ;;  %v4593_v41 = vshll.u32 %v8668_v53, 16  ;;  %v4597_v63 = vshrl.u32 %v8668_v53, 16 }
 0x14c   : > { %9472 = vst [vmem:[#allocation18_spill] sm:$0xff] %v8690_v5  ;;  %v4608_v32 = vshrl.u32 %v4391_v16, 16  ;;  %v4617_v48 = vshll.u32 %v8682_v30, 16  ;;  %v4621_v44 = vshrl.u32 %v8682_v30, 16  ;;  %v4635_v62 = vshll.u32 %v4394_v20, 16 }
 0x14d   : > { %v4566_v59 = vor.u32 %v4565_v37, %v4562_v11  ;;  %v8698_v26 = vrot.slane %v4569_v12, 5  ;;  %v4575_v45 = vrot.slane %v4573_v50, 4  ;;  %v4579_v2 = vshll.u32 %v8690_v5, 16  ;;  %v8701_v21 = vld [vmem:[#allocation2 + $0x74] sm:$0x1] }
 0x14e   : > { %6782 = vmatmul.mubr.msk.bf16.gmra.mrb[8].mxu1 %vm1491_vm7, %v9466_v14  ;;  %6934 = vmatmul.mubr.msk.bf16.gmra.mrb[24].mxu0 %vm1491_vm7, %v7299_v60  ;;  %v4611_v60 = vshll.u32 %v4391_v16, 16  ;;  %v4632_v14 = vshrl.u32 %v4394_v20, 16  ;;  %9473 = vst [vmem:[#allocation19_spill] sm:$0xff] %v8701_v21  ;;  %v9474_v16 = vcombine.low %v8425_v25, %v8441_v9  ;;  %v4586_v23 = vrot.slane %v4584_v6, 4  ;;  %v8715_v5 = vld [vmem:[#allocation2 + $0x94] sm:$0xf] }
 0x14f   : > { %6785 = vmatprep.mubr.msk.bf16.mxu1 %vm1491_vm7, %v9468_v0  ;;  %6937 = vmatprep.mubr.msk.bf16.mxu0 %vm1491_vm7, %v7300_v42  ;;  %v4641_v0 = vshll.u32 %v8687_v27, 16  ;;  %v4645_v42 = vshrl.u32 %v8687_v27, 16  ;;  %v4589_v20 = vrot.slane %v4587_v56, 5  ;;  %v8707_v10 = vrot.slane %v4593_v41, 5  ;;  %v4397_v27 = vld [vmem:[#allocation2 + $0x90] sm:$0xf] }
 0x150   : > { %v4599_v30 = vrot.slane %v4597_v63, 4  ;;  %v9475_v11 = vcombine.low %v8445_v39, %v8449_v15  ;;  %v4610_v37 = vrot.slane %v4608_v32, 4  ;;  %v4613_v12 = vrot.slane %v4611_v60, 5  ;;  %9476 = vst [vmem:[#allocation20_spill] sm:$0xff] %v8715_v5  ;;  %v8717_v25 = vld [vmem:[#allocation2 + $0x80] sm:$0x1] }
 0x151   : > { %v8713_v50 = vrot.slane %v4617_v48, 5  ;;  %v4623_v53 = vrot.slane %v4621_v44, 4  ;;  %v4634_v9 = vrot.slane %v4632_v14, 4  ;;  %v4637_v6 = vrot.slane %v4635_v62, 5  ;;  %v8725_v63 = vld [vmem:[#allocation2 + $0x8c] sm:$0x1] }
 0x152   : > { %v8719_v56 = vrot.slane %v4641_v0, 5  ;;  %v4647_v41 = vrot.slane %v4645_v42, 4  ;;  %v4576_v39 = vor.u32 %v4575_v45, %v8698_v26  ;;  %v8723_v15 = vrot.slane %v4579_v2, 5 }
 0x153   : > { %v4656_v32 = vshrl.u32 %v4397_v27, 16  ;;  %v4659_v60 = vshll.u32 %v4397_v27, 16  ;;  %v8729_v48 = vrot.slane %v4566_v59, 4  ;;  %v4603_v44 = vshll.u32 %v8701_v21, 16 }
 0x154   : > { %v4665_v14 = vshll.u32 %v8715_v5, 16  ;;  %v4669_v62 = vshrl.u32 %v8715_v5, 16  ;;  %v4590_v0 = vor.u32 %v4589_v20, %v4586_v23  ;;  %v4600_v2 = vor.u32 %v4599_v30, %v8707_v10 }
 0x155   : > { %v4614_v42 = vor.u32 %v4613_v12, %v4610_v37  ;;  %v4627_v45 = vshll.u32 %v8717_v25, 16  ;;  %v4624_v27 = vor.u32 %v4623_v53, %v8713_v50  ;;  %v4651_v59 = vshll.u32 %v8725_v63, 16 }
 0x156   : > { %6786 = vmatmul.mubr.msk.bf16.gmra.mrb[12].mxu1 %vm1491_vm7, %v9474_v16  ;;  %6938 = vmatmul.mubr.msk.bf16.gmra.mrb[28].mxu0 %vm1491_vm7, %v7301_v8  ;;  %v4400_v8 = vld [vmem:[#allocation2 + $0x9c] sm:$0xf]  ;;  %v4638_v16 = vor.u32 %v4637_v6, %v4634_v9  ;;  %v4661_v21 = vrot.slane %v4659_v60, 5  ;;  %v9477_v5 = vcombine.low %v8454_v47, %v8458_v31  ;;  %v4577_v23 = vrot.slane %v4576_v39, 4  ;;  %v8751_v39 = vld [vmem:[#allocation2 + $0xa0] sm:$0xf] }
 0x157   : > { %6789 = vmatprep.mubr.msk.bf16.mxu1 %vm1491_vm7, %v9475_v11  ;;  %6943 = vmatprep.mubr.msk.bf16.mxu0 %vm1491_vm7, %v8483_v13  ;;  %v4648_v13 = vor.u32 %v4647_v41, %v8719_v56  ;;  %v4658_v11 = vrot.slane %v4656_v32, 4  ;;  %v4680_v46 = vshrl.u32 %v4400_v8, 16  ;;  %v4683_v57 = vshll.u32 %v4400_v8, 16  ;;  %v8749_v32 = vld [vmem:[#allocation2 + $0x98] sm:$0x1] }
 0x158   : > { %v4605_v30 = vrot.slane %v4603_v44, 5  ;;  %v8743_v20 = vrot.slane %v4665_v14, 5  ;;  %v4671_v37 = vrot.slane %v4669_v62, 4  ;;  %v9478_v53 = vcombine.low %v8491_v7, %v8502_v22 }
 0x159   : > { %v4591_v12 = vrot.slane %v4590_v0, 4  ;;  %v4601_v9 = vrot.slane %v4600_v2, 4  ;;  %v4615_v6 = vrot.slane %v4614_v42, 4  ;;  %v4629_v41 = vrot.slane %v4627_v45, 5  ;;  %v8795_v42 = vld [vmem:[#allocation2 + $0xa4] sm:$0x1] }
 0x15a   : > { %v4625_v60 = vrot.slane %v4624_v27, 4  ;;  %v4639_v47 = vrot.slane %v4638_v16, 4  ;;  %v4649_v31 = vrot.slane %v4648_v13, 4  ;;  %v9479_v44 = vrot.slane %v8169_v35, 5 }
 0x15b   : > { %v4662_v22 = vor.u32 %v4661_v21, %v4658_v11  ;;  %v4682_v14 = vrot.slane %v4680_v46, 4  ;;  %v4685_v62 = vrot.slane %v4683_v57, 5  ;;  %v4582_v35 = vsel %vm7550_vm9, %v4577_v23, %v8723_v15  ;;  %v4403_v46 = vld [vmem:[#allocation2 + $0xa8] sm:$0xf] }
 0x15c   : > { %v8760_v7 = vsel %vm7857_vm15, %v8680_v19, %v9479_v44  ;;  %v4672_v19 = vor.u32 %v4671_v37, %v8743_v20  ;;  %v4675_v21 = vshll.u32 %v8749_v32, 16  ;;  %v4606_v57 = vsel %vm7550_vm9, %v4601_v9, %v4605_v30 }
 0x15d   : > { %v4620_v15 = vsel %vm7550_vm9, %v4615_v6, %v8713_v50  ;;  %v4630_v8 = vsel %vm7550_vm9, %v4625_v60, %v4629_v41  ;;  %v8793_v2 = vrot.slane %v4662_v22, 4  ;;  %v4686_v45 = vor.u32 %v4685_v62, %v4682_v14  ;;  %v8827_v6 = vld [vmem:[#allocation2 + $0xb0] sm:$0x1]  ;;  %v5099_v14 = vld [vmem:[#allocation2 + $0x60] sm:$0xe] }
 0x15e   : > { %6790 = vmatmul.mubr.msk.bf16.gmra.mrb[16].mxu1 %vm1491_vm7, %v9477_v5  ;;  %v4653_v5 = vrot.slane %v4651_v59, 5  ;;  %6944 = vmatmul.mubr.msk.bf16.vlgmr.msra.gmra.mrb[0].mxu0 %vm1491_vm7, %v8520_v33  ;;  %v4572_v33 = vsel %vm7550_vm9, %v8729_v48, %v8698_v26  ;;  %v4693_v26 = vshrl.u32 %v8751_v39, 16  ;;  %v8781_v48 = vld [vmem:[#allocation2 + $0xac] sm:$0xf]  ;;  %v4704_v27 = vshrl.u32 %v4403_v46, 16 }
 0x15f   : > { %6793 = vmatprep.mubr.msk.bf16.mxu1 %vm1491_vm7, %v9478_v53  ;;  %6976 = vmatpush3.bf16.msra.mxu0 %v8487_v18  ;;  %v4596_v18 = vsel %vm7550_vm9, %v4591_v12, %v8707_v10  ;;  %v4644_v10 = vsel %vm7550_vm9, %v4639_v47, %v8719_v56  ;;  %v4707_v16 = vshll.u32 %v4403_v46, 16  ;;  %v9480_v50 = vcombine.low %v8510_v29, %v8538_v36  ;;  %v5097_v53 = vld [vmem:[#allocation2 + $0x48] sm:$0xe]  ;;  %v9485_v46 = vld [vmem:[#allocation11_spill] sm:$0xff] }
 0x160   : > { %6947 = vmatprep.mubr.msk.bf16.mxu0 %vm1491_vm7, %v8647_v52  ;;  %v4689_v52 = vshll.u32 %v8751_v39, 16  ;;  %v4654_v0 = vsel %vm7550_vm9, %v4649_v31, %v4653_v5  ;;  %v9481_v56 = vsel %vm7550_vm9, %v8625_v61, %v8621_v58  ;;  %v9482_v13 = vsel %vm7550_vm9, %v8619_v4, %v8575_v17  ;;  %v5098_v31 = vld [vmem:[#allocation2 + $0x54] sm:$0xe] }
 0x161   : > { %v6296_v59 = vcombine.low %v9482_v13, %v9481_v56  ;;  %v4673_v11 = vrot.slane %v4672_v19, 4  ;;  %v4677_v23 = vrot.slane %v4675_v21, 5  ;;  %v4713_v30 = vshll.u32 %v8781_v48, 16  ;;  %v9484_v19 = vld [vmem:[#allocation12_spill] sm:$0xff] }
 0x162   : > { %v9483_v29 = vcombine.low %v8589_v28, %v8606_v38  ;;  %v6125_v36 = vcombine.low %v8678_v24, %v8760_v7  ;;  %v6297_v37 = vcombine.low %v4572_v33, %v4582_v35  ;;  %v8818_v58 = vrot.slane %v4689_v52, 5  ;;  %v8829_v28 = vld [vmem:[#allocation2 + $0xb4] sm:$0xf]  ;;  %v5100_v52 = vld [vmem:[#allocation2 + $0x6c] sm:$0xe] }
 0x163   : > { %v4695_v61 = vrot.slane %v4693_v26, 4  ;;  %v8820_v12 = vcombine.low %v4596_v18, %v4606_v57  ;;  %v8822_v17 = vcombine.low %v4620_v15, %v4630_v8  ;;  %v8824_v4 = vcombine.low %v4644_v10, %v4654_v0  ;;  %v8942_v7 = vld [vmem:[#allocation2 + $0xc4] sm:$0xf] }
 0x164   : > { %v4699_v9 = vshll.u32 %v8795_v42, 16  ;;  %v4668_v38 = vsel %vm7550_vm9, %v8793_v2, %v8743_v20  ;;  %v8837_v41 = vrot.slane %v4686_v45, 4  ;;  %v4706_v60 = vrot.slane %v4704_v27, 4  ;;  %v9487_v27 = vld [vmem:[#allocation13_spill] sm:$0xff] }
 0x165   : > { %v4709_v47 = vrot.slane %v4707_v16, 5  ;;  %v4678_v5 = vsel %vm7550_vm9, %v4673_v11, %v4677_v23  ;;  %v8843_v44 = vrot.slane %v4713_v30, 5  ;;  %v6327_v22 = vrot.slane %v5097_v53, 9  ;;  %v9488_v16 = vld [vmem:[#allocation14_spill] sm:$0xff]  ;;  %v9491_v11 = vld [vmem:[#allocation15_spill] sm:$0xff] }
 0x166   : > { %6794 = vmatmul.mubr.msk.bf16.gmra.mrb[20].mxu1 %vm1491_vm7, %v9480_v50  ;;  %6948 = vmatmul.mubr.msk.bf16.gmra.mrb[4].mxu0 %vm1491_vm7, %v8649_v49  ;;  %v4717_v49 = vshrl.u32 %v8781_v48, 16  ;;  %v4696_v62 = vor.u32 %v4695_v61, %v8818_v58  ;;  %v4723_v20 = vshll.u32 %v8827_v6, 16  ;;  %v4728_v33 = vshrl.u32 %v8829_v28, 16 }
 0x167   : > { %6797 = vmatprep.mubr.msk.bf16.mxu1 %vm1491_vm7, %v9483_v29  ;;  %6951 = vmatprep.mubr.msk.bf16.mxu0 %vm1491_vm7, %v8661_v1  ;;  %v5187_v35 = vrot.slane %v8513_v34, 5  ;;  %v5190_v21 = vrot.slane %v9484_v19, 5  ;;  %v6328_v1 = vrot.slane %v5098_v31, 9  ;;  %v5194_v18 = vrot.slane %v9485_v46, 5  ;;  %v9492_v31 = vld [vmem:[#allocation19_spill] sm:$0xff] }
 0x168   : > { %v5197_v57 = vrot.slane %v8573_v3, 5  ;;  %v4710_v26 = vor.u32 %v4709_v47, %v4706_v60  ;;  %v6329_v10 = vrot.slane %v5099_v14, 9  ;;  %v9486_v0 = vcombine.low %v8610_v40, %v8614_v55  ;;  %v9490_v40 = vld [vmem:[#allocation18_spill] sm:$0xff] }
 0x169   : > { %v8855_v15 = vsel %vm7857_vm15, %v6327_v22, %v5187_v35  ;;  %v5189_v8 = vrot.slane %v5187_v35, 4  ;;  %v4719_v34 = vrot.slane %v4717_v49, 4  ;;  %v8863_v2 = vsel %vm7857_vm15, %v6328_v1, %v5194_v18  ;;  %v8903_v35 = vld [vmem:[#allocation2 + $0xb8] sm:$0xf]  ;;  %v7302_v1 = vld [vmem:[#allocation2 + $0xc] sm:$0xff]  }
 0x16a   : > { %v5196_v45 = vrot.slane %v5194_v18, 4  ;;  %v5201_v3 = vrot.slane %v8653_v54, 5  ;;  %v9489_v50 = vcombine.low %v9487_v27, %v9488_v16  ;;  %v5204_v55 = vrot.slane %v9490_v40, 5 }
 0x16b   : > { %v8872_v56 = vsel %vm7857_vm15, %v5189_v8, %v5190_v21  ;;  %v6330_v13 = vrot.slane %v5100_v52, 9  ;;  %v5208_v23 = vrot.slane %v9491_v11, 5  ;;  %v5211_v49 = vrot.slane %v9492_v31, 5  ;;  %v2839_v21 = vld [vmem:[#allocation2 + $0x78] sm:$0xf] }
 0x16c   : > { %v6344_v30 = vcombine.low %v8855_v15, %v8872_v56  ;;  %v8880_v54 = vsel %vm7857_vm15, %v5196_v45, %v5197_v57  ;;  %v8884_v29 = vsel %vm7857_vm15, %v6329_v10, %v5201_v3  ;;  %v5203_v61 = vrot.slane %v5201_v3, 4  ;;  %v4409_v8 = vld [vmem:[#allocation2 + $0xc0] sm:$0xf]  ;;  %v5102_v3 = vld [vmem:[#allocation2 + $0x84] sm:$0xe] }
 0x16d   : > { %v6345_v53 = vcombine.low %v8863_v2, %v8880_v54  ;;  %v8891_v60 = vsel %vm7857_vm15, %v6330_v13, %v5208_v23  ;;  %v5210_v47 = vrot.slane %v5208_v23, 4  ;;  %v8895_v22 = vcombine.low %v4668_v38, %v4678_v5  ;;  %v8950_v31 = vld [vmem:[#allocation2 + $0xbc] sm:$0x1]  ;;  %v7371_v15 = vld [vmem:[#allocation2 + $0x94] sm:$0xf] }
 0x16e   : > { %6798 = vmatmul.mubr.msk.bf16.gmra.mrb[24].mxu1 %vm1491_vm7, %v9486_v0  ;;  %6952 = vmatmul.mubr.msk.bf16.gmra.mrb[8].mxu0 %vm1491_vm7, %v6296_v59  ;;  %v4692_v14 = vsel %vm7550_vm9, %v8837_v41, %v8818_v58  ;;  %v8901_v59 = vrot.slane %v4699_v9, 5  ;;  %v8907_v19 = vsel %vm7857_vm15, %v5203_v61, %v5204_v55  ;;  %v8909_v46 = vrot.slane %v4696_v62, 4  ;;  %v5101_v9 = vld [vmem:[#allocation2 + $0x78] sm:$0xe]  ;;  %v9499_v41 = vld [vmem:[#allocation20_spill] sm:$0xff] }
 0x16f   : > { %6801 = vmatprep.mubr.msk.bf16.mxu1 %vm1491_vm7, %v9489_v50  ;;  %6955 = vmatprep.mubr.msk.bf16.mxu0 %vm1491_vm7, %v6297_v37  ;;  %v4731_v37 = vshll.u32 %v8829_v28, 16  ;;  %v6346_v38 = vcombine.low %v8884_v29, %v8907_v19  ;;  %v8916_v5 = vsel %vm7857_vm15, %v5210_v47, %v5211_v49  ;;  %v8918_v18 = vrot.slane %v4710_v26, 4  ;;  %v9494_v26 = vld [vmem:[#allocation5_spill] sm:$0xff]  ;;  %v9495_v50 = vld [vmem:[#allocation16_spill] sm:$0xff]  ;;  %v2854_v29 = vld [vmem:[#allocation2 + $0xb4] sm:$0xf] }
 0x170   : > { %v8920_v57 = vrot.slane %v4723_v20, 5  ;;  %v8922_v52 = vrot.slane %v4728_v33, 4  ;;  %v6347_v62 = vcombine.low %v8891_v60, %v8916_v5  ;;  %v4720_v28 = vor.u32 %v4719_v34, %v8843_v44  ;;  %v9493_v33 = vld [vmem:[#allocation6_spill] sm:$0xff]  ;;  %v2857_v5 = vld [vmem:[#allocation2 + $0xc0] sm:$0xf] }
 0x171   : > { %v4737_v10 = vshll.u32 %v8903_v35, 16  ;;  %v3077_v0 = vshrl.u32 %v2839_v21, 16  ;;  %v3080_v45 = vshll.u32 %v2839_v21, 16  ;;  %v4741_v20 = vshrl.u32 %v8903_v35, 16 }
 0x172   : > { %v3099_v27 = vsel %vm7550_vm9, %v9494_v26, %v9493_v33  ;;  %v6331_v16 = vrot.slane %v5101_v9, 9  ;;  %v5215_v34 = vrot.slane %v9495_v50, 5  ;;  %v8939_v40 = vrot.slane %v4731_v37, 5  ;;  %v7303_v37 = vld [vmem:[#allocation2 + $0x18] sm:$0xff]  }
 0x173   : > { %v3079_v55 = vrot.slane %v3077_v0, 4  ;;  %v3082_v13 = vrot.slane %v3080_v45, 5  ;;  %v5218_v24 = vrot.slane %v8717_v25, 5  ;;  %v6332_v61 = vrot.slane %v5102_v3, 9 }
 0x174   : > { %v8946_v11 = vsel %vm7857_vm15, %v6331_v16, %v5215_v34  ;;  %v5217_v23 = vrot.slane %v5215_v34, 4  ;;  %v4721_v47 = vrot.slane %v4720_v28, 4  ;;  %v8952_v49 = vrot.slane %v4737_v10, 5  ;;  %v7304_v28 = vld [vmem:[#allocation2 + $0x24] sm:$0xff]  }
 0x175   : > { %v3083_v21 = vor.u32 %v3082_v13, %v3079_v55  ;;  %v4743_v9 = vrot.slane %v4741_v20, 4  ;;  %v4755_v0 = vshll.u32 %v4409_v8, 16  ;;  %v4761_v3 = vshll.u32 %v8942_v7, 16  ;;  %v8981_v34 = vld [vmem:[#allocation2 + $0xc8] sm:$0x1]  ;;  %v9497_v13 = vld [vmem:[#allocation4_spill] sm:$0xff] }
 0x176   : > { %6802 = vmatmul.mubr.msk.bf16.gmra.mrb[28].mxu1 %vm1491_vm7, %v6125_v36  ;;  %v4752_v36 = vshrl.u32 %v4409_v8, 16  ;;  %6956 = vmatmul.mubr.msk.bf16.gmra.mrb[12].mxu0 %vm1491_vm7, %v8820_v12  ;;  %v8959_v45 = vsel %vm7857_vm15, %v5217_v23, %v5218_v24  ;;  %v5225_v12 = vrot.slane %v8725_v63, 5  ;;  %v4765_v10 = vshrl.u32 %v8942_v7, 16  ;;  %v4412_v23 = vld [vmem:[#allocation2 + $0xcc] sm:$0xf] }
 0x177   : > { %6807 = vmatprep.mubr.msk.bf16.mxu1 %vm1491_vm7, %v7302_v1  ;;  %v9496_v1 = vld [vmem:[#allocation17_spill] sm:$0xff]  ;;  %6959 = vmatprep.mubr.msk.bf16.mxu0 %vm1491_vm7, %v8822_v17  ;;  %v3084_v33 = vrot.slane %v3083_v21, 4  ;;  %v6348_v26 = vcombine.low %v8946_v11, %v8959_v45  ;;  %v4702_v17 = vsel %vm7550_vm9, %v8909_v46, %v8901_v59  ;;  %v4747_v8 = vshll.u32 %v8950_v31, 16  ;;  %v7377_v11 = vld [vmem:[#allocation2 + $0xb0] sm:$0x1] }
 0x178   : > { %v5222_v25 = vrot.slane %v9496_v1, 5  ;;  %v4716_v16 = vsel %vm7550_vm9, %v8918_v18, %v8843_v44  ;;  %v4734_v50 = vor.u32 %v8939_v40, %v8922_v52  ;;  %v4754_v55 = vrot.slane %v4752_v36, 4  ;;  %v5103_v18 = vld [vmem:[#allocation2 + $0x90] sm:$0xe]  ;;  %v9498_v52 = vld [vmem:[#allocation3_spill] sm:$0xff] }
 0x179   : > { %v3089_v59 = vsel %vm7550_vm9, %v3084_v33, %v9497_v13  ;;  %v4726_v46 = vsel %vm7550_vm9, %v4721_v47, %v8920_v57  ;;  %v4757_v24 = vrot.slane %v4755_v0, 5  ;;  %v4744_v40 = vor.u32 %v4743_v9, %v8952_v49  ;;  %v9001_v1 = vld [vmem:[#allocation2 + $0xd0] sm:$0xf] }
 0x17a   : > { %v8973_v20 = vsel %vm7857_vm15, %v6332_v61, %v5222_v25  ;;  %v5224_v63 = vrot.slane %v5222_v25, 4  ;;  %v8990_v61 = vcombine.low %v3089_v59, %v3099_v27  ;;  %v8999_v36 = vrot.slane %v4761_v3, 5  ;;  %v7305_v3 = vld [vmem:[#allocation2 + $0x30] sm:$0xff]  }
 0x17b   : > { %v4767_v21 = vrot.slane %v4765_v10, 4  ;;  %v6302_v27 = vcombine.low %v4692_v14, %v4702_v17  ;;  %v4749_v47 = vrot.slane %v4747_v8, 5  ;;  %v4771_v25 = vshll.u32 %v8981_v34, 16  ;;  %v7306_v17 = vld [vmem:[#allocation2 + $0x3c] sm:$0xff]  }
 0x17c   : > { %v8994_v44 = vsel %vm7857_vm15, %v5224_v63, %v5225_v12  ;;  %v4776_v9 = vshrl.u32 %v4412_v23, 16  ;;  %v4779_v0 = vshll.u32 %v4412_v23, 16  ;;  %v6333_v12 = vrot.slane %v5103_v18, 9 }
 0x17d   : > { %v6349_v57 = vcombine.low %v8973_v20, %v8994_v44  ;;  %v4758_v10 = vor.u32 %v4757_v24, %v4754_v55  ;;  %v4785_v33 = vshll.u32 %v9001_v1, 16  ;;  %v4789_v58 = vshrl.u32 %v9001_v1, 16 }
 0x17e   : > { %6808 = vmatmul.mubr.msk.bf16.vlgmr.msra.gmra.mrb[0].mxu1 %vm1491_vm7, %v7303_v37  ;;  %6960 = vmatmul.mubr.msk.bf16.gmra.mrb[16].mxu0 %vm1491_vm7, %v8824_v4  ;;  %v6303_v37 = vcombine.low %v4716_v16, %v4726_v46  ;;  %v5229_v14 = vrot.slane %v9499_v41, 5  ;;  %v4735_v8 = vrot.slane %v4734_v50, 4  ;;  %v4745_v63 = vrot.slane %v4744_v40, 4 }
 0x17f   : > { %7010 = vmatpush3.bf16.msra.mxu1 %v9498_v52  ;;  %6811 = vmatprep.mubr.msk.bf16.mxu1 %vm1491_vm7, %v7304_v28  ;;  %v5104_v28 = vld [vmem:[#allocation2 + $0x9c] sm:$0xe]  ;;  %v4768_v4 = vor.u32 %v4767_v21, %v8999_v36  ;;  %v5232_v16 = vrot.slane %v8749_v32, 5  ;;  %v4773_v13 = vrot.slane %v4771_v25, 5  ;;  %v4778_v46 = vrot.slane %v4776_v9, 4 }
 0x180   : > { %6963 = vmatprep.mubr.msk.bf16.mxu0 %vm1491_vm7, %v8895_v22  ;;  %v9022_v59 = vsel %vm7857_vm15, %v6333_v12, %v5229_v14  ;;  %v5231_v22 = vrot.slane %v5229_v14, 4  ;;  %v6334_v55 = vrot.slane %v5104_v28, 9  ;;  %v4781_v24 = vrot.slane %v4779_v0, 5  ;;  %v9034_v25 = vld [vmem:[#allocation2 + $0xd4] sm:$0x1] }
 0x181   : > { %v5236_v23 = vrot.slane %v8751_v39, 5  ;;  %v5239_v18 = vrot.slane %v8795_v42, 5  ;;  %v4759_v50 = vrot.slane %v4758_v10, 4  ;;  %v9027_v52 = vrot.slane %v4785_v33, 5  ;;  %v7308_v14 = vld [vmem:[#allocation2 + $0x54] sm:$0xff]  }
 0x182   : > { %v4791_v40 = vrot.slane %v4789_v58, 4  ;;  %v9031_v32 = vsel %vm7857_vm15, %v5231_v22, %v5232_v16  ;;  %v4769_v21 = vrot.slane %v4768_v4, 4  ;;  %v4740_v0 = vsel %vm7550_vm9, %v4735_v8, %v8952_v49  ;;  %v5105_v49 = vld [vmem:[#allocation2 + $0xa8] sm:$0xe]  ;;  %v7363_v8 = vld [vmem:[#allocation2 + $0x1c] sm:$0xf] }
 0x183   : > { %v6350_v39 = vcombine.low %v9022_v59, %v9031_v32  ;;  %v9040_v42 = vsel %vm7857_vm15, %v6334_v55, %v5236_v23  ;;  %v5238_v9 = vrot.slane %v5236_v23, 4  ;;  %v4750_v12 = vsel %vm7550_vm9, %v4745_v63, %v4749_v47  ;;  %v5106_v22 = vld [vmem:[#allocation2 + $0xb4] sm:$0xe]  ;;  %v7380_v32 = vld [vmem:[#allocation2 + $0xc8] sm:$0x1] }
 0x184   : > { %v4782_v10 = vor.u32 %v4781_v24, %v4778_v46  ;;  %v4792_v33 = vor.u32 %v4791_v40, %v9027_v52  ;;  %v4795_v58 = vshll.u32 %v9034_v25, 16  ;;  %v4764_v47 = vsel %vm7550_vm9, %v4759_v50, %v8999_v36  ;;  %v7364_v40 = vld [vmem:[#allocation2 + $0x20] sm:$0x1] }
 0x185   : > { %v9050_v28 = vsel %vm7857_vm15, %v5238_v9, %v5239_v18  ;;  %v6304_v63 = vcombine.low %v4740_v0, %v4750_v12  ;;  %v6335_v16 = vrot.slane %v5105_v49, 9  ;;  %v5162_v36 = vrot.slane %v7364_v40, 5 }
 0x186   : > { %6812 = vmatmul.mubr.msk.bf16.gmra.mrb[4].mxu1 %vm1491_vm7, %v7305_v3  ;;  %6964 = vmatmul.mubr.msk.bf16.gmra.mrb[20].mxu0 %vm1491_vm7, %v6302_v27  ;;  %v7307_v3 = vld [vmem:[#allocation2 + $0x48] sm:$0xff]   ;;  %v5093_v27 = vld [vmem:[#allocation2 + $0x18] sm:$0xe]  ;;  %v6351_v41 = vcombine.low %v9040_v42, %v9050_v28  ;;  %v4783_v46 = vrot.slane %v4782_v10, 4  ;;  %v4793_v24 = vrot.slane %v4792_v33, 4  ;;  %v4797_v23 = vrot.slane %v4795_v58, 5 }
 0x187   : > { %6815 = vmatprep.mubr.msk.bf16.mxu1 %vm1491_vm7, %v7306_v17  ;;  %6967 = vmatprep.mubr.msk.bf16.mxu0 %vm1491_vm7, %v6303_v37  ;;  %v4774_v17 = vsel %vm7550_vm9, %v4769_v21, %v4773_v13  ;;  %v5159_v37 = vrot.slane %v7363_v8, 5  ;;  %v6323_v4 = vrot.slane %v5093_v27, 9  ;;  %v5243_v50 = vrot.slane %v8781_v48, 5  ;;  %v7365_v21 = vld [vmem:[#allocation2 + $0x28] sm:$0xf]  ;;  %v7309_v27 = vld [vmem:[#allocation2 + $0x60] sm:$0xff]  }
 0x188   : > { %v6305_v55 = vcombine.low %v4764_v47, %v4774_v17  ;;  %v5246_v13 = vrot.slane %v8827_v6, 5  ;;  %v5166_v9 = vrot.slane %v7365_v21, 5  ;;  %v6336_v0 = vrot.slane %v5106_v22, 9  ;;  %v5094_v10 = vld [vmem:[#allocation2 + $0x24] sm:$0xe]  ;;  %v7310_v47 = vld [vmem:[#allocation2 + $0x6c] sm:$0xff]  }
 0x189   : > { %v5161_v18 = vrot.slane %v5159_v37, 4  ;;  %v5250_v12 = vrot.slane %v8903_v35, 5  ;;  %v9072_v33 = vsel %vm7857_vm15, %v6335_v16, %v5243_v50  ;;  %v5245_v58 = vrot.slane %v5243_v50, 4  ;;  %v9500_v35 = vld [vmem:[#allocation7_spill] sm:$0xff]  ;;  %v5095_v8 = vld [vmem:[#allocation2 + $0x30] sm:$0xe] }
 0x18a   : > { %v4788_v48 = vsel %vm7550_vm9, %v4783_v46, %v9027_v52  ;;  %v4798_v6 = vsel %vm7550_vm9, %v4793_v24, %v4797_v23  ;;  %v5173_v49 = vrot.slane %v9500_v35, 5  ;;  %v5253_v52 = vrot.slane %v8950_v31, 5  ;;  %v7366_v22 = vld [vmem:[#allocation2 + $0x2c] sm:$0x1]  ;;  %v5096_v21 = vld [vmem:[#allocation2 + $0x3c] sm:$0xe] }
 0x18b   : > { %v5163_v17 = vsel %vm7857_vm15, %v5161_v18, %v5162_v36  ;;  %v5168_v16 = vrot.slane %v5166_v9, 4  ;;  %v6306_v24 = vcombine.low %v4788_v48, %v4798_v6  ;;  %v6325_v40 = vrot.slane %v5095_v8, 9  ;;  %v9501_v50 = vld [vmem:[#allocation9_spill] sm:$0xff]  ;;  %v9502_v35 = vld [vmem:[#allocation8_spill] sm:$0xff] }
 0x18c   : > { %v5175_v31 = vrot.slane %v5173_v49, 4  ;;  %v6326_v6 = vrot.slane %v5096_v21, 9  ;;  %v7312_v8 = vld [vmem:[#allocation2 + $0x84] sm:$0xff]   ;;  %v3134_v56 = vshll.u32 %v7371_v15, 16  ;;  %v3192_v45 = vshll.u32 %v7377_v11, 16 }
 0x18d   : > { %v5174_v48 = vsel %vm7857_vm15, %v6325_v40, %v5173_v49  ;;  %vm5893_vm0 = vcmask 1040384  }
 0x18e   : > { %6816 = vmatmul.mubr.msk.bf16.gmra.mrb[8].mxu1 %vm1491_vm7, %v7307_v3  ;;  %6968 = vmatmul.mubr.msk.bf16.gmra.mrb[24].mxu0 %vm1491_vm7, %v6304_v63  ;;  %v5160_v3 = vsel %vm7857_vm15, %v6323_v4, %v5159_v37  ;;  %v9085_v37 = vsel %vm7857_vm15, %v5245_v58, %v5246_v13  ;;  %v9089_v63 = vsel %vm7857_vm15, %v6336_v0, %v5250_v12  ;;  %v6324_v4 = vrot.slane %v5094_v10, 9  ;;  %v5107_v0 = vld [vmem:[#allocation2 + $0xc0] sm:$0xe]  ;;  %v5108_v58 = vld [vmem:[#allocation2 + $0xcc] sm:$0xe] }
 0x18f   : > { %6819 = vmatprep.mubr.msk.bf16.mxu1 %vm1491_vm7, %v7308_v14  ;;  %6971 = vmatprep.mubr.msk.bf16.mxu0 %vm1491_vm7, %v6305_v55  ;;  %v5252_v14 = vrot.slane %v5250_v12, 4  ;;  %v5169_v55 = vrot.slane %v7366_v22, 5  ;;  %v6352_v46 = vcombine.low %v9072_v33, %v9085_v37  ;;  %v6340_v18 = vcombine.low %v5160_v3, %v5163_v17  ;;  %v2836_v3 = vld [vmem:[#allocation2 + $0x6c] sm:$0xf] }
 0x190   : > { %v5176_v13 = vrot.slane %v9501_v50, 5  ;;  %v5167_v12 = vsel %vm7857_vm15, %v6324_v4, %v5166_v9  ;;  %v5260_v4 = vrot.slane %v8981_v34, 5  ;;  %v3056_v22 = vshll.u32 %v2836_v3, 16 }
 0x191   : > { %v9096_v23 = vsel %vm7857_vm15, %v5252_v14, %v5253_v52  ;;  %v5170_v10 = vsel %vm7857_vm15, %v5168_v16, %v5169_v55  ;;  %v5180_v14 = vrot.slane %v9502_v35, 5  ;;  %v5257_v52 = vrot.slane %v8942_v7, 5  ;;  %v9503_v7 = vld [vmem:[#allocation10_spill] sm:$0xff] }
 0x192   : > { %v6353_v36 = vcombine.low %v9089_v63, %v9096_v23  ;;  %v6341_v17 = vcombine.low %v5167_v12, %v5170_v10  ;;  %v5177_v9 = vsel %vm7857_vm15, %v5175_v31, %v5176_v13  ;;  %v3053_v16 = vshrl.u32 %v2836_v3, 16 }
 0x193   : > { %v6338_v55 = vrot.slane %v5108_v58, 9  ;;  %v5259_v21 = vrot.slane %v5257_v52, 4  ;;  %v6342_v31 = vcombine.low %v5174_v48, %v5177_v9  ;;  %v5182_v13 = vrot.slane %v5180_v14, 4 }
 0x194   : > { %v5267_v10 = vrot.slane %v9034_v25, 5  ;;  %v3055_v3 = vrot.slane %v3053_v16, 4  ;;  %v3058_v58 = vrot.slane %v3056_v22, 5  ;;  %v5181_v9 = vsel %vm7857_vm15, %v6326_v6, %v5180_v14  ;;  %v7369_v6 = vld [vmem:[#allocation2 + $0x88] sm:$0xf] }
 0x195   : > { %v3110_v14 = vshll.u32 %v7369_v6, 16  ;;  %v3114_v51 = vshrl.u32 %v7369_v6, 16 }
 0x196   : > { %6820 = vmatmul.mubr.msk.bf16.gmra.mrb[12].mxu1 %vm1491_vm7, %v7309_v27  ;;  %6972 = vmatmul.mubr.msk.bf16.gmra.mrb[28].mxu0 %vm1491_vm7, %v6306_v24  ;;  %v7311_v27 = vld [vmem:[#allocation2 + $0x78] sm:$0xff]   ;;  %v5264_v24 = vrot.slane %v9001_v1, 5  ;;  %v9126_v1 = vsel %vm7857_vm15, %v5259_v21, %v5260_v4  ;;  %v3059_v16 = vor.u32 %v3058_v58, %v3055_v3 }
 0x197   : > { %6823 = vmatprep.mubr.msk.bf16.mxu1 %vm1491_vm7, %v7310_v47  ;;  %6977 = vmatprep.mubr.msk.bf16.mxu0 %vm1491_vm7, %v6340_v18  ;;  %v6337_v47 = vrot.slane %v5107_v0, 9  ;;  %v7367_v18 = vld [vmem:[#allocation2 + $0x70] sm:$0xf]  ;;  %v5183_v0 = vrot.slane %v9503_v7, 5  ;;  %v7314_v4 = vld [vmem:[#allocation2 + $0x9c] sm:$0xff]   ;;  %v9154_v58 = vrot.slane %v3110_v14, 5 }
 0x198   : > { %v3062_v49 = vshll.u32 %v7367_v18, 16  ;;  %v3066_v40 = vshrl.u32 %v7367_v18, 16  ;;  %v5266_v34 = vrot.slane %v5264_v24, 4  ;;  %v9130_v12 = vsel %vm7857_vm15, %v6338_v55, %v5264_v24  ;;  %v7368_v24 = vld [vmem:[#allocation2 + $0x74] sm:$0x1] }
 0x199   : > { %v9119_v50 = vsel %vm7857_vm15, %v6337_v47, %v5257_v52  ;;  %v5184_v25 = vsel %vm7857_vm15, %v5182_v13, %v5183_v0  ;;  %v3072_v18 = vshll.u32 %v7368_v24, 16  ;;  %v3060_v21 = vrot.slane %v3059_v16, 4  ;;  %v7315_v0 = vld [vmem:[#allocation2 + $0xa8] sm:$0xff]  }
 0x19a   : > { %v3064_v48 = vrot.slane %v3062_v49, 5  ;;  %v3068_v35 = vrot.slane %v3066_v40, 4  ;;  %v9138_v47 = vsel %vm7857_vm15, %v5266_v34, %v5267_v10  ;;  %v6343_v22 = vcombine.low %v5181_v9, %v5184_v25  ;;  %v7316_v34 = vld [vmem:[#allocation2 + $0xb4] sm:$0xff]   ;;  %v2848_v25 = vld [vmem:[#allocation2 + $0x9c] sm:$0xf] }
 0x19b   : > { %v6355_v52 = vcombine.low %v9130_v12, %v9138_v47  ;;  %v3074_v7 = vrot.slane %v3072_v18, 5  ;;  %v7370_v16 = vld [vmem:[#allocation2 + $0x8c] sm:$0x1]  ;;  %v3152_v24 = vshll.u32 %v2848_v25, 16  ;;  %v7372_v18 = vld [vmem:[#allocation2 + $0xa0] sm:$0xf] }
 0x19c   : > { %v3069_v55 = vor.u32 %v3068_v35, %v3064_v48  ;;  %v3116_v35 = vrot.slane %v3114_v51, 4 }
 0x19e   : > { %6824 = vmatmul.mubr.msk.bf16.gmra.mrb[16].mxu1 %vm1491_vm7, %v7311_v27  ;;  %v6354_v27 = vcombine.low %v9119_v50, %v9126_v1  ;;  %6978 = vmatmul.mubr.msk.bf16.vlgmr.msra.gmra.mrb[0].mxu0 %vm1491_vm7, %v6341_v17  ;;  %v2842_v17 = vld [vmem:[#allocation2 + $0x84] sm:$0xf]  ;;  %v3070_v13 = vrot.slane %v3069_v55, 4  ;;  %v3149_v55 = vshrl.u32 %v2848_v25, 16 }
 0x19f   : > { %6827 = vmatprep.mubr.msk.bf16.mxu1 %vm1491_vm7, %v7312_v8  ;;  %v7313_v8 = vld [vmem:[#allocation2 + $0x90] sm:$0xff]   ;;  %6981 = vmatprep.mubr.msk.bf16.mxu0 %vm1491_vm7, %v6342_v31  ;;  %v3101_v49 = vshrl.u32 %v2842_v17, 16  ;;  %v3104_v40 = vshll.u32 %v2842_v17, 16 }
 0x1a0   : > { %v2845_v31 = vld [vmem:[#allocation2 + $0x90] sm:$0xf]  ;;  %v3075_v17 = vsel %vm7550_vm9, %v3070_v13, %v3074_v7  ;;  %v9167_v7 = vrot.slane %v3134_v56, 5  ;;  %v7375_v56 = vld [vmem:[#allocation2 + $0xac] sm:$0xf] }
 0x1a1   : > { %v3103_v10 = vrot.slane %v3101_v49, 4  ;;  %v3106_v3 = vrot.slane %v3104_v40, 5  ;;  %v3128_v9 = vshll.u32 %v2845_v31, 16  ;;  %v3158_v49 = vshll.u32 %v7372_v18, 16 }
 0x1a2   : > { %v3162_v40 = vshrl.u32 %v7372_v18, 16 }
 0x1a3   : > { %v3107_v6 = vor.u32 %v3106_v3, %v3103_v10  ;;  %v3130_v51 = vrot.slane %v3128_v9, 5  ;;  %v3154_v10 = vrot.slane %v3152_v24, 5  ;;  %v9173_v3 = vrot.slane %v3158_v49, 5  ;;  %v7373_v9 = vld [vmem:[#allocation2 + $0x98] sm:$0x1] }
 0x1a4   : > { %v3144_v25 = vshll.u32 %v7373_v9, 16 }
 0x1a5   : > { %v3108_v2 = vrot.slane %v3107_v6, 4  ;;  %v3197_v6 = vshrl.u32 %v2854_v29, 16 }
 0x1a6   : > { %6828 = vmatmul.mubr.msk.bf16.gmra.mrb[20].mxu1 %vm1491_vm7, %v7313_v8  ;;  %6982 = vmatmul.mubr.msk.bf16.gmra.mrb[4].mxu0 %vm1491_vm7, %v6343_v22  ;;  %v3125_v8 = vshrl.u32 %v2845_v31, 16  ;;  %v3120_v22 = vshll.u32 %v7370_v16, 16 }
 0x1a7   : > { %6831 = vmatprep.mubr.msk.bf16.mxu1 %vm1491_vm7, %v7314_v4  ;;  %6985 = vmatprep.mubr.msk.bf16.mxu0 %vm1491_vm7, %v6344_v30  ;;  %v3065_v4 = vsel %vm7550_vm9, %v3060_v21, %v3064_v48  ;;  %v3138_v30 = vshrl.u32 %v7371_v15, 16  ;;  %v3117_v48 = vor.u32 %v3116_v35, %v9154_v58  ;;  %v7317_v21 = vld [vmem:[#allocation2 + $0xc0] sm:$0xff]   ;;  %v3164_v35 = vrot.slane %v3162_v40, 4 }
 0x1a8   : > { %v3127_v14 = vrot.slane %v3125_v8, 4  ;;  %v6184_v31 = vcombine.low %v3065_v4, %v3075_v17  ;;  %v3122_v13 = vrot.slane %v3120_v22, 5  ;;  %v2851_v8 = vld [vmem:[#allocation2 + $0xa8] sm:$0xf]  ;;  %v7374_v17 = vld [vmem:[#allocation2 + $0xa4] sm:$0x1]  ;;  %v3113_v24 = vsel %vm7550_vm9, %v3108_v2, %v9154_v58 }
 0x1a9   : > { %v3118_v54 = vrot.slane %v3117_v48, 4  ;;  %v3168_v16 = vshll.u32 %v7374_v17, 16  ;;  %v3173_v22 = vshrl.u32 %v2851_v8, 16  ;;  %v3176_v15 = vshll.u32 %v2851_v8, 16 }
 0x1aa   : > { %v3146_v40 = vrot.slane %v3144_v25, 5  ;;  %v3200_v48 = vshll.u32 %v2854_v29, 16 }
 0x1ab   : > { %v3123_v18 = vsel %vm7550_vm9, %v3118_v54, %v3122_v13  ;;  %v3199_v54 = vrot.slane %v3197_v6, 4 }
 0x1ac   : > { %v6186_v2 = vcombine.low %v3113_v24, %v3123_v18 }
 0x1ae   : > { %6832 = vmatmul.mubr.msk.bf16.gmra.mrb[24].mxu1 %vm1491_vm7, %v7315_v0  ;;  %6986 = vmatmul.mubr.msk.bf16.gmra.mrb[8].mxu0 %vm1491_vm7, %v6345_v53  ;;  %v3140_v0 = vrot.slane %v3138_v30, 4  ;;  %v3131_v53 = vor.u32 %v3130_v51, %v3127_v14  ;;  %v3182_v30 = vshll.u32 %v7375_v56, 16  ;;  %v7376_v14 = vld [vmem:[#allocation2 + $0xb8] sm:$0xf] }
 0x1af   : > { %6835 = vmatprep.mubr.msk.bf16.mxu1 %vm1491_vm7, %v7316_v34  ;;  %6989 = vmatprep.mubr.msk.bf16.mxu0 %vm1491_vm7, %v6346_v38  ;;  %v3151_v34 = vrot.slane %v3149_v55, 4  ;;  %v3165_v38 = vor.u32 %v3164_v35, %v9173_v3  ;;  %v3186_v55 = vshrl.u32 %v7375_v56, 16  ;;  %v3206_v51 = vshll.u32 %v7376_v14, 16 }
 0x1b0   : > { %v3141_v4 = vor.u32 %v3140_v0, %v9167_v7  ;;  %v3132_v49 = vrot.slane %v3131_v53, 4  ;;  %v3170_v0 = vrot.slane %v3168_v16, 5  ;;  %v3184_v35 = vrot.slane %v3182_v30, 5  ;;  %v7379_v30 = vld [vmem:[#allocation2 + $0xbc] sm:$0x1] }
 0x1b1   : > { %v3155_v19 = vor.u32 %v3154_v10, %v3151_v34  ;;  %v3175_v34 = vrot.slane %v3173_v22, 4  ;;  %v3178_v10 = vrot.slane %v3176_v15, 5  ;;  %v3166_v13 = vrot.slane %v3165_v38, 4  ;;  %v7378_v15 = vld [vmem:[#allocation2 + $0xc4] sm:$0xf] }
 0x1b2   : > { %v3188_v8 = vrot.slane %v3186_v55, 4  ;;  %v3202_v53 = vrot.slane %v3200_v48, 5  ;;  %v3208_v9 = vrot.slane %v3206_v51, 5  ;;  %v3224_v22 = vshll.u32 %v2857_v5, 16 }
 0x1b3   : > { %v3156_v58 = vrot.slane %v3155_v19, 4  ;;  %v3179_v17 = vor.u32 %v3178_v10, %v3175_v34  ;;  %v3230_v29 = vshll.u32 %v7378_v15, 16  ;;  %v3234_v19 = vshrl.u32 %v7378_v15, 16 }
 0x1b4   : > { %v3189_v16 = vor.u32 %v3188_v8, %v3184_v35  ;;  %v3203_v38 = vor.u32 %v3202_v53, %v3199_v54  ;;  %v3226_v6 = vrot.slane %v3224_v22, 5 }
 0x1b5   : > { %v3180_v24 = vrot.slane %v3179_v17, 4  ;;  %v3232_v48 = vrot.slane %v3230_v29, 5 }
 0x1b6   : > { %6836 = vmatmul.mubr.msk.bf16.gmra.mrb[28].mxu1 %vm1491_vm7, %v7317_v21  ;;  %v3210_v21 = vshrl.u32 %v7376_v14, 16  ;;  %6990 = vmatmul.mubr.msk.bf16.gmra.mrb[12].mxu0 %vm1491_vm7, %v6347_v62  ;;  %v3137_v62 = vsel %vm7550_vm9, %v3132_v49, %v9167_v7  ;;  %v3221_v7 = vshrl.u32 %v2857_v5, 16  ;;  %v3190_v18 = vrot.slane %v3189_v16, 4 }
 0x1b7   : > { %6857 = vmatprep.mubr.msk.bf16.mxu1 %vm1491_vm7, %v6184_v31  ;;  %v3142_v31 = vrot.slane %v3141_v4, 4  ;;  %6993 = vmatprep.mubr.msk.bf16.mxu0 %vm1491_vm7, %v6348_v26  ;;  %v3161_v26 = vsel %vm7550_vm9, %v3156_v58, %v9173_v3  ;;  %v3171_v4 = vsel %vm7550_vm9, %v3166_v13, %v3170_v0  ;;  %v3194_v49 = vrot.slane %v3192_v45, 5 }
 0x1b8   : > { %v3212_v60 = vrot.slane %v3210_v21, 4  ;;  %v6188_v55 = vcombine.low %v3161_v26, %v3171_v4  ;;  %v3236_v14 = vrot.slane %v3234_v19, 4  ;;  %v3204_v51 = vrot.slane %v3203_v38, 4 }
 0x1b9   : > { %v3147_v25 = vsel %vm7550_vm9, %v3142_v31, %v3146_v40  ;;  %v3223_v40 = vrot.slane %v3221_v7, 4  ;;  %v3185_v20 = vsel %vm7550_vm9, %v3180_v24, %v3184_v35  ;;  %v3195_v44 = vsel %vm7550_vm9, %v3190_v18, %v3194_v49 }
 0x1ba   : > { %v3213_v56 = vor.u32 %v3212_v60, %v3208_v9  ;;  %v6187_v3 = vcombine.low %v3137_v62, %v3147_v25  ;;  %v3237_v59 = vor.u32 %v3236_v14, %v3232_v48  ;;  %v3209_v0 = vsel %vm7550_vm9, %v3204_v51, %v3208_v9 }
 0x1bb   : > { %v6189_v10 = vcombine.low %v3185_v20, %v3195_v44 }
 0x1bc   : > { %v3214_v21 = vrot.slane %v3213_v56, 4  ;;  %v3238_v35 = vrot.slane %v3237_v59, 4 }
 0x1be   : > { %6858 = vmatmul.mubr.msk.bf16.vlgmr.msra.gmra.mrb[16].mxu1 %vm1491_vm7, %v8990_v61  ;;  %v3216_v61 = vshll.u32 %v7379_v30, 16  ;;  %6994 = vmatmul.mubr.msk.bf16.gmra.mrb[16].mxu0 %vm1491_vm7, %v6349_v57  ;;  %v3227_v57 = vor.u32 %v3226_v6, %v3223_v40 }
 0x1bf   : > { %6861 = vmatprep.mubr.msk.bf16.mxu1 %vm1491_vm7, %v6186_v2  ;;  %6997 = vmatprep.mubr.msk.bf16.mxu0 %vm1491_vm7, %v6350_v39  ;;  %v3240_v39 = vshll.u32 %v7380_v32, 16 }
 0x1c0   : > { %v3218_v31 = vrot.slane %v3216_v61, 5  ;;  %v3228_v13 = vrot.slane %v3227_v57, 4 }
 0x1c1   : > { %v3242_v8 = vrot.slane %v3240_v39, 5 }
 0x1c2   : > { %v3219_v34 = vsel %vm7550_vm9, %v3214_v21, %v3218_v31  ;;  %v3233_v2 = vsel %vm7550_vm9, %v3228_v13, %v3232_v48 }
 0x1c3   : > { %v6190_v58 = vcombine.low %v3209_v0, %v3219_v34  ;;  %v3243_v42 = vsel %vm7550_vm9, %v3238_v35, %v3242_v8 }
 0x1c4   : > { %v6191_v28 = vcombine.low %v3233_v2, %v3243_v42 }
 0x1c6   : > { %6862 = vmatmul.mubr.msk.bf16.gmra.mrb[20].mxu1 %vm1491_vm7, %v6187_v3  ;;  %6998 = vmatmul.mubr.msk.bf16.gmra.mrb[20].mxu0 %vm1491_vm7, %v6351_v41 }
 0x1c7   : > { %6865 = vmatprep.mubr.msk.bf16.mxu1 %vm1491_vm7, %v6188_v55  ;;  %7001 = vmatprep.mubr.msk.bf16.mxu0 %vm1491_vm7, %v6352_v46 }
 0x1ce   : > { %6866 = vmatmul.mubr.msk.bf16.gmra.mrb[24].mxu1 %vm1491_vm7, %v6189_v10  ;;  %7002 = vmatmul.mubr.msk.bf16.gmra.mrb[24].mxu0 %vm1491_vm7, %v6353_v36 }
 0x1cf   : > { %6869 = vmatprep.mubr.msk.bf16.mxu1 %vm1491_vm7, %v6190_v58  ;;  %7005 = vmatprep.mubr.msk.bf16.mxu0 %vm1491_vm7, %v6354_v27 }
 0x1d6   : > { %6870 = vmatmul.mubr.msk.bf16.gmra.mrb[28].mxu1 %vm1491_vm7, %v6191_v28  ;;  %7006 = vmatmul.mubr.msk.bf16.gmra.mrb[28].mxu0 %vm1491_vm7, %v6355_v52 }
 0x251   : > { %v6809_v43 = vpop.f32.mrb[0].mxu1 }
 0x252   : > { %v2653_v41 = vpop.f32.mrb[1].mxu1 }
 0x253   : > { %v6810_v33 = vpop.f32.mrb[2].mxu1 }
 0x254   : > { %v2656_v37 = vpop.f32.mrb[3].mxu1 }
 0x259   : > { %v6813_v63 = vpop.f32.mrb[4].mxu1 }
 0x25a   : > { %v2669_v46 = vpop.f32.mrb[5].mxu1 }
 0x25b   : > { %v6814_v23 = vpop.f32.mrb[6].mxu1 }
 0x25c   : > { %v2672_v36 = vpop.f32.mrb[7].mxu1 }
 0x261   : > { %v9250_v54 = vpop.f32.mrb[8].mxu1 }
 0x262   : > { %v9252_v50 = vpop.f32.mrb[9].mxu1 }
 0x263   : > { %v9254_v1 = vpop.f32.mrb[10].mxu1 }
 0x264   : > { %v9256_v27 = vpop.f32.mrb[11].mxu1 }
 0x269   : > { %v9259_v12 = vpop.f32.mrb[12].mxu1 }
 0x26a   : > { %v9261_v47 = vpop.f32.mrb[13].mxu1 }
 0x26b   : > { %v9263_v52 = vpop.f32.mrb[14].mxu1 }
 0x26c   : > { %v9265_v53 = vpop.f32.mrb[15].mxu1 }
 0x271   : > { %v6979_v9 = vpop.f32.mrb[0].mxu0 }
 0x272   : > { %v7011_v60 = vadd.f32 %v6979_v9, %v6809_v43  ;;  %v5404_v5 = vpop.f32.mrb[1].mxu0 }
 0x273   : > { %v7012_v62 = vadd.f32 %v5404_v5, %v2653_v41  ;;  %v6980_v25 = vpop.f32.mrb[2].mxu0 }
 0x274   : > { %v6441_v11 = vpack.c.bf16 %v7011_v60, %v7011_v60  ;;  %v7013_v45 = vadd.f32 %v6980_v25, %v6810_v33  ;;  %v5407_v26 = vpop.f32.mrb[3].mxu0  ;;  %v5794_v7 = vmul.f32 %v7011_v60, %v7011_v60  ;;  %v5726_v61 = vsel %vm1491_vm7, %v7011_v60, 0.0 }
 0x275   : > { %v6439_v4 = vpack.c.bf16 %v7012_v62, %v7012_v62  ;;  %v5792_v17 = vmul.f32 %v7012_v62, %v7012_v62  ;;  %v7014_v16 = vadd.f32 %v5407_v26, %v2656_v37  ;;  %v5723_v15 = vsel %vm1491_vm7, %v7012_v62, 0.0 }
 0x276   : > { %5693 = vst.msk [vmem:[%s9270_s20 + $0x8] sm:$0xf] %vm238_vm1, %v6441_v11  ;;  %v6442_v22 = vpack.c.bf16 %v7013_v45, %v7013_v45  ;;  %v5795_v56 = vmul.f32 %v7013_v45, %v7013_v45  ;;  %v5827_v48 = vsel %vm1491_vm7, %v5794_v7, 0.0  ;;  %v5728_v21 = vsel %vm1491_vm7, %v7013_v45, 0.0 }
 0x277   : > { %5691 = vst.msk [vmem:[%s9270_s20] sm:$0xf] %vm238_vm1, %v6439_v4  ;;  %v6440_v29 = vpack.c.bf16 %v7014_v16, %v7014_v16  ;;  %v5724_v19 = vsel %vm1491_vm7, %v7014_v16, 0.0  ;;  %v5793_v38 = vmul.f32 %v7014_v16, %v7014_v16  ;;  %v5824_v3 = vsel %vm1491_vm7, %v5792_v17, 0.0 }
 0x278   : > { %5694 = vst.msk [vmem:[%s9270_s20 + $0xc] sm:$0xf] %vm238_vm1, %v6442_v22  ;;  %v5725_v30 = vadd.f32 %v5724_v19, %v5723_v15  ;;  %v5829_v31 = vsel %vm1491_vm7, %v5795_v56, 0.0 }
 0x279   : > { %5692 = vst.msk [vmem:[%s9270_s20 + $0x4] sm:$0xf] %vm238_vm1, %v6440_v29  ;;  %v5825_v55 = vsel %vm1491_vm7, %v5793_v38, 0.0  ;;  %v6983_v24 = vpop.f32.mrb[4].mxu0 }
 0x27a   : > { %v5727_v18 = vadd.f32 %v5726_v61, %v5725_v30  ;;  %v5826_v49 = vadd.f32 %v5825_v55, %v5824_v3  ;;  %v7015_v40 = vadd.f32 %v6983_v24, %v6813_v63  ;;  %v5420_v6 = vpop.f32.mrb[5].mxu0 }
 0x27b   : > { %v7016_v14 = vadd.f32 %v5420_v6, %v2669_v46  ;;  %v6984_v51 = vpop.f32.mrb[6].mxu0 }
 0x27c   : > { %v5828_v20 = vadd.f32 %v5827_v48, %v5826_v49  ;;  %v6445_v44 = vpack.c.bf16 %v7015_v40, %v7015_v40  ;;  %v5423_v57 = vpop.f32.mrb[7].mxu0  ;;  %v5729_v32 = vadd.f32 %v5728_v21, %v5727_v18  ;;  %v7017_v10 = vadd.f32 %v6984_v51, %v6814_v23 }
 0x27d   : > { %v6443_v59 = vpack.c.bf16 %v7016_v14, %v7016_v14  ;;  %v5730_v39 = vsel %vm1491_vm7, %v7016_v14, 0.0  ;;  %v5796_v0 = vmul.f32 %v7016_v14, %v7016_v14  ;;  %v7018_v58 = vadd.f32 %v5423_v57, %v2672_v36 }
 0x27e   : > { %5697 = vst.msk [vmem:[%s9270_s20 + $0x18] sm:$0xf] %vm238_vm1, %v6445_v44  ;;  %v5830_v34 = vadd.f32 %v5829_v31, %v5828_v20  ;;  %v5731_v13 = vadd.f32 %v5730_v39, %v5729_v32  ;;  %v5798_v8 = vmul.f32 %v7015_v40, %v7015_v40  ;;  %v6446_v42 = vpack.c.bf16 %v7017_v10, %v7017_v10 }
 0x27f   : > { %5695 = vst.msk [vmem:[%s9270_s20 + $0x10] sm:$0xf] %vm238_vm1, %v6443_v59  ;;  %v5831_v35 = vsel %vm1491_vm7, %v5796_v0, 0.0  ;;  %v6444_v28 = vpack.c.bf16 %v7018_v58, %v7018_v58  ;;  %v5732_v43 = vsel %vm1491_vm7, %v7018_v58, 0.0  ;;  %v5797_v41 = vmul.f32 %v7018_v58, %v7018_v58 }
 0x280   : > { %v5832_v2 = vadd.f32 %v5831_v35, %v5830_v34  ;;  %5698 = vst.msk [vmem:[%s9270_s20 + $0x1c] sm:$0xf] %vm238_vm1, %v6446_v42  ;;  %v5733_v37 = vadd.f32 %v5732_v43, %v5731_v13  ;;  %v5734_v23 = vsel %vm1491_vm7, %v7015_v40, 0.0  ;;  %v5799_v36 = vmul.f32 %v7017_v10, %v7017_v10 }
 0x281   : > { %v6987_v33 = vpop.f32.mrb[8].mxu0  ;;  %5696 = vst.msk [vmem:[%s9270_s20 + $0x14] sm:$0xf] %vm238_vm1, %v6444_v28  ;;  %v5833_v9 = vsel %vm1491_vm7, %v5797_v41, 0.0  ;;  %v5835_v62 = vsel %vm1491_vm7, %v5798_v8, 0.0 }
 0x282   : > { %v7019_v63 = vadd.f32 %v6987_v33, %v9250_v54  ;;  %v5436_v46 = vpop.f32.mrb[9].mxu0  ;;  %v5735_v25 = vadd.f32 %v5734_v23, %v5733_v37  ;;  %v5834_v11 = vadd.f32 %v5833_v9, %v5832_v2  ;;  %v5736_v54 = vsel %vm1491_vm7, %v7017_v10, 0.0 }
 0x283   : > { %v7020_v60 = vadd.f32 %v5436_v46, %v9252_v50  ;;  %v6988_v5 = vpop.f32.mrb[10].mxu0  ;;  %v5837_v29 = vsel %vm1491_vm7, %v5799_v36, 0.0 }
 0x284   : > { %v6449_v45 = vpack.c.bf16 %v7019_v63, %v7019_v63  ;;  %v5439_v26 = vpop.f32.mrb[11].mxu0  ;;  %v5836_v7 = vadd.f32 %v5835_v62, %v5834_v11  ;;  %v5737_v22 = vadd.f32 %v5736_v54, %v5735_v25  ;;  %v7021_v50 = vadd.f32 %v6988_v5, %v9254_v1 }
 0x285   : > { %v6447_v4 = vpack.c.bf16 %v7020_v60, %v7020_v60  ;;  %v5738_v17 = vsel %vm1491_vm7, %v7020_v60, 0.0  ;;  %v5800_v16 = vmul.f32 %v7020_v60, %v7020_v60  ;;  %v7022_v15 = vadd.f32 %v5439_v26, %v9256_v27 }
 0x286   : > { %5701 = vst.msk [vmem:[%s9270_s20 + $0x28] sm:$0xf] %vm238_vm1, %v6449_v45  ;;  %v5802_v38 = vmul.f32 %v7019_v63, %v7019_v63  ;;  %v5739_v56 = vadd.f32 %v5738_v17, %v5737_v22  ;;  %v5838_v30 = vadd.f32 %v5837_v29, %v5836_v7  ;;  %v6450_v61 = vpack.c.bf16 %v7021_v50, %v7021_v50 }
 0x287   : > { %5699 = vst.msk [vmem:[%s9270_s20 + $0x20] sm:$0xf] %vm238_vm1, %v6447_v4  ;;  %v5839_v19 = vsel %vm1491_vm7, %v5800_v16, 0.0  ;;  %v6448_v3 = vpack.c.bf16 %v7022_v15, %v7022_v15  ;;  %v5740_v55 = vsel %vm1491_vm7, %v7022_v15, 0.0  ;;  %v5801_v24 = vmul.f32 %v7022_v15, %v7022_v15 }
 0x288   : > { %v5840_v49 = vadd.f32 %v5839_v19, %v5838_v30  ;;  %5702 = vst.msk [vmem:[%s9270_s20 + $0x2c] sm:$0xf] %vm238_vm1, %v6450_v61  ;;  %v5741_v1 = vadd.f32 %v5740_v55, %v5739_v56  ;;  %v5742_v6 = vsel %vm1491_vm7, %v7019_v63, 0.0  ;;  %v5803_v48 = vmul.f32 %v7021_v50, %v7021_v50 }
 0x289   : > { %v6991_v18 = vpop.f32.mrb[12].mxu0  ;;  %5700 = vst.msk [vmem:[%s9270_s20 + $0x24] sm:$0xf] %vm238_vm1, %v6448_v3  ;;  %v5841_v14 = vsel %vm1491_vm7, %v5801_v24, 0.0  ;;  %v5843_v31 = vsel %vm1491_vm7, %v5802_v38, 0.0 }
 0x28a   : > { %v7023_v27 = vadd.f32 %v6991_v18, %v9259_v12  ;;  %v5452_v40 = vpop.f32.mrb[13].mxu0  ;;  %v5743_v20 = vadd.f32 %v5742_v6, %v5741_v1  ;;  %v5842_v44 = vadd.f32 %v5841_v14, %v5840_v49  ;;  %v5744_v12 = vsel %vm1491_vm7, %v7021_v50, 0.0 }
 0x28b   : > { %v7024_v51 = vadd.f32 %v5452_v40, %v9261_v47  ;;  %v6992_v21 = vpop.f32.mrb[14].mxu0  ;;  %v5845_v35 = vsel %vm1491_vm7, %v5803_v48, 0.0 }
 0x28c   : > { %v6453_v57 = vpack.c.bf16 %v7023_v27, %v7023_v27  ;;  %v5455_v59 = vpop.f32.mrb[15].mxu0  ;;  %v5844_v34 = vadd.f32 %v5843_v31, %v5842_v44  ;;  %v5745_v10 = vadd.f32 %v5744_v12, %v5743_v20  ;;  %v7025_v47 = vadd.f32 %v6992_v21, %v9263_v52 }
 0x28d   : > { %v6451_v32 = vpack.c.bf16 %v7024_v51, %v7024_v51  ;;  %v5746_v39 = vsel %vm1491_vm7, %v7024_v51, 0.0  ;;  %v5804_v0 = vmul.f32 %v7024_v51, %v7024_v51  ;;  %v7026_v58 = vadd.f32 %v5455_v59, %v9265_v53 }
 0x28e   : > { %5705 = vst.msk [vmem:[%s9270_s20 + $0x38] sm:$0xf] %vm238_vm1, %v6453_v57  ;;  %v5806_v42 = vmul.f32 %v7023_v27, %v7023_v27  ;;  %v5747_v28 = vadd.f32 %v5746_v39, %v5745_v10  ;;  %v5846_v43 = vadd.f32 %v5845_v35, %v5844_v34  ;;  %v6454_v41 = vpack.c.bf16 %v7025_v47, %v7025_v47 }
 0x28f   : > { %5703 = vst.msk [vmem:[%s9270_s20 + $0x30] sm:$0xf] %vm238_vm1, %v6451_v32  ;;  %v5847_v8 = vsel %vm1491_vm7, %v5804_v0, 0.0  ;;  %v6452_v37 = vpack.c.bf16 %v7026_v58, %v7026_v58  ;;  %v5748_v52 = vsel %vm1491_vm7, %v7026_v58, 0.0  ;;  %v5805_v63 = vmul.f32 %v7026_v58, %v7026_v58 }
 0x290   : > { %v5848_v23 = vadd.f32 %v5847_v8, %v5846_v43  ;;  %5706 = vst.msk [vmem:[%s9270_s20 + $0x3c] sm:$0xf] %vm238_vm1, %v6454_v41  ;;  %v5749_v36 = vadd.f32 %v5748_v52, %v5747_v28  ;;  %v5750_v5 = vsel %vm1491_vm7, %v7023_v27, 0.0  ;;  %v5807_v62 = vmul.f32 %v7025_v47, %v7025_v47 }
 0x291   : > { %v6859_v13 = vpop.f32.mrb[16].mxu1  ;;  %v6995_v53 = vpop.f32.mrb[16].mxu0  ;;  %5704 = vst.msk [vmem:[%s9270_s20 + $0x34] sm:$0xf] %vm238_vm1, %v6452_v37  ;;  %v5849_v25 = vsel %vm1491_vm7, %v5805_v63, 0.0  ;;  %v5851_v26 = vsel %vm1491_vm7, %v5806_v42, 0.0 }
 0x292   : > { %v3443_v2 = vpop.f32.mrb[17].mxu1  ;;  %v7027_v9 = vadd.f32 %v6995_v53, %v6859_v13  ;;  %v5468_v60 = vpop.f32.mrb[17].mxu0  ;;  %v5751_v54 = vadd.f32 %v5750_v5, %v5749_v36  ;;  %v5850_v4 = vadd.f32 %v5849_v25, %v5848_v23  ;;  %v5752_v7 = vsel %vm1491_vm7, %v7025_v47, 0.0 }
 0x293   : > { %v6860_v33 = vpop.f32.mrb[18].mxu1  ;;  %v7028_v11 = vadd.f32 %v5468_v60, %v3443_v2  ;;  %v6996_v45 = vpop.f32.mrb[18].mxu0  ;;  %v5853_v61 = vsel %vm1491_vm7, %v5807_v62, 0.0 }
 0x294   : > { %v3446_v46 = vpop.f32.mrb[19].mxu1  ;;  %v6457_v17 = vpack.c.bf16 %v7027_v9, %v7027_v9  ;;  %v5471_v16 = vpop.f32.mrb[19].mxu0  ;;  %v5852_v29 = vadd.f32 %v5851_v26, %v5850_v4  ;;  %v5753_v19 = vadd.f32 %v5752_v7, %v5751_v54  ;;  %v7029_v38 = vadd.f32 %v6996_v45, %v6860_v33 }
 0x295   : > { %v6455_v22 = vpack.c.bf16 %v7028_v11, %v7028_v11  ;;  %v5754_v50 = vsel %vm1491_vm7, %v7028_v11, 0.0  ;;  %v5808_v15 = vmul.f32 %v7028_v11, %v7028_v11  ;;  %v7030_v56 = vadd.f32 %v5471_v16, %v3446_v46 }
 0x296   : > { %5709 = vst.msk [vmem:[%s9270_s20 + $0x48] sm:$0xf] %vm238_vm1, %v6457_v17  ;;  %v5810_v24 = vmul.f32 %v7027_v9, %v7027_v9  ;;  %v5755_v18 = vadd.f32 %v5754_v50, %v5753_v19  ;;  %v5854_v49 = vadd.f32 %v5853_v61, %v5852_v29  ;;  %v6458_v1 = vpack.c.bf16 %v7029_v38, %v7029_v38 }
 0x297   : > { %5707 = vst.msk [vmem:[%s9270_s20 + $0x40] sm:$0xf] %vm238_vm1, %v6455_v22  ;;  %v5855_v3 = vsel %vm1491_vm7, %v5808_v15, 0.0  ;;  %v6456_v40 = vpack.c.bf16 %v7030_v56, %v7030_v56  ;;  %v5756_v6 = vsel %vm1491_vm7, %v7030_v56, 0.0  ;;  %v5809_v48 = vmul.f32 %v7030_v56, %v7030_v56 }
 0x298   : > { %v5856_v21 = vadd.f32 %v5855_v3, %v5854_v49  ;;  %5710 = vst.msk [vmem:[%s9270_s20 + $0x4c] sm:$0xf] %vm238_vm1, %v6458_v1  ;;  %v5757_v31 = vadd.f32 %v5756_v6, %v5755_v18  ;;  %v5758_v57 = vsel %vm1491_vm7, %v7027_v9, 0.0  ;;  %v5811_v59 = vmul.f32 %v7029_v38, %v7029_v38 }
 0x299   : > { %v6863_v30 = vpop.f32.mrb[20].mxu1  ;;  %v6999_v14 = vpop.f32.mrb[20].mxu0  ;;  %5708 = vst.msk [vmem:[%s9270_s20 + $0x44] sm:$0xf] %vm238_vm1, %v6456_v40  ;;  %v5857_v12 = vsel %vm1491_vm7, %v5809_v48, 0.0  ;;  %v5859_v0 = vsel %vm1491_vm7, %v5810_v24, 0.0 }
 0x29a   : > { %v3459_v55 = vpop.f32.mrb[21].mxu1  ;;  %v7031_v20 = vadd.f32 %v6999_v14, %v6863_v30  ;;  %v5484_v44 = vpop.f32.mrb[21].mxu0  ;;  %v5759_v34 = vadd.f32 %v5758_v57, %v5757_v31  ;;  %v5858_v10 = vadd.f32 %v5857_v12, %v5856_v21  ;;  %v5760_v13 = vsel %vm1491_vm7, %v7029_v38, 0.0 }
 0x29b   : > { %v6864_v27 = vpop.f32.mrb[22].mxu1  ;;  %v7032_v32 = vadd.f32 %v5484_v44, %v3459_v55  ;;  %v7000_v39 = vpop.f32.mrb[22].mxu0  ;;  %v5861_v37 = vsel %vm1491_vm7, %v5811_v59, 0.0 }
 0x29c   : > { %v3462_v51 = vpop.f32.mrb[23].mxu1  ;;  %v6461_v47 = vpack.c.bf16 %v7031_v20, %v7031_v20  ;;  %v5487_v58 = vpop.f32.mrb[23].mxu0  ;;  %v5860_v42 = vadd.f32 %v5859_v0, %v5858_v10  ;;  %v5761_v28 = vadd.f32 %v5760_v13, %v5759_v34  ;;  %v7033_v43 = vadd.f32 %v7000_v39, %v6864_v27 }
 0x29d   : > { %v6459_v35 = vpack.c.bf16 %v7032_v32, %v7032_v32  ;;  %v5762_v8 = vsel %vm1491_vm7, %v7032_v32, 0.0  ;;  %v5812_v2 = vmul.f32 %v7032_v32, %v7032_v32  ;;  %v7034_v41 = vadd.f32 %v5487_v58, %v3462_v51 }
 0x29e   : > { %5713 = vst.msk [vmem:[%s9270_s20 + $0x58] sm:$0xf] %vm238_vm1, %v6461_v47  ;;  %v5814_v53 = vmul.f32 %v7031_v20, %v7031_v20  ;;  %v5763_v46 = vadd.f32 %v5762_v8, %v5761_v28  ;;  %v5862_v23 = vadd.f32 %v5861_v37, %v5860_v42  ;;  %v6462_v36 = vpack.c.bf16 %v7033_v43, %v7033_v43 }
 0x29f   : > { %5711 = vst.msk [vmem:[%s9270_s20 + $0x50] sm:$0xf] %vm238_vm1, %v6459_v35  ;;  %v5863_v52 = vsel %vm1491_vm7, %v5812_v2, 0.0  ;;  %v6460_v60 = vpack.c.bf16 %v7034_v41, %v7034_v41  ;;  %v5764_v5 = vsel %vm1491_vm7, %v7034_v41, 0.0  ;;  %v5813_v62 = vmul.f32 %v7034_v41, %v7034_v41 }
 0x2a0   : > { %v5864_v45 = vadd.f32 %v5863_v52, %v5862_v23  ;;  %5714 = vst.msk [vmem:[%s9270_s20 + $0x5c] sm:$0xf] %vm238_vm1, %v6462_v36  ;;  %v5765_v26 = vadd.f32 %v5764_v5, %v5763_v46  ;;  %v5766_v17 = vsel %vm1491_vm7, %v7031_v20, 0.0  ;;  %v5815_v16 = vmul.f32 %v7033_v43, %v7033_v43 }
 0x2a1   : > { %v6867_v33 = vpop.f32.mrb[24].mxu1  ;;  %v7003_v25 = vpop.f32.mrb[24].mxu0  ;;  %5712 = vst.msk [vmem:[%s9270_s20 + $0x54] sm:$0xf] %vm238_vm1, %v6460_v60  ;;  %v5865_v7 = vsel %vm1491_vm7, %v5813_v62, 0.0  ;;  %v5867_v15 = vsel %vm1491_vm7, %v5814_v53, 0.0 }
 0x2a2   : > { %v3475_v63 = vpop.f32.mrb[25].mxu1  ;;  %v7035_v54 = vadd.f32 %v7003_v25, %v6867_v33  ;;  %v5500_v4 = vpop.f32.mrb[25].mxu0  ;;  %v5767_v29 = vadd.f32 %v5766_v17, %v5765_v26  ;;  %v5866_v19 = vadd.f32 %v5865_v7, %v5864_v45  ;;  %v5768_v30 = vsel %vm1491_vm7, %v7033_v43, 0.0 }
 0x2a3   : > { %v6868_v9 = vpop.f32.mrb[26].mxu1  ;;  %v7036_v22 = vadd.f32 %v5500_v4, %v3475_v63  ;;  %v7004_v50 = vpop.f32.mrb[26].mxu0  ;;  %v5869_v40 = vsel %vm1491_vm7, %v5815_v16, 0.0 }
 0x2a4   : > { %v3478_v11 = vpop.f32.mrb[27].mxu1  ;;  %v6465_v38 = vpack.c.bf16 %v7035_v54, %v7035_v54  ;;  %v5503_v56 = vpop.f32.mrb[27].mxu0  ;;  %v5868_v24 = vadd.f32 %v5867_v15, %v5866_v19  ;;  %v5769_v18 = vadd.f32 %v5768_v30, %v5767_v29  ;;  %v7037_v49 = vadd.f32 %v7004_v50, %v6868_v9 }
 0x2a5   : > { %v6463_v61 = vpack.c.bf16 %v7036_v22, %v7036_v22  ;;  %v5770_v3 = vsel %vm1491_vm7, %v7036_v22, 0.0  ;;  %v5816_v55 = vmul.f32 %v7036_v22, %v7036_v22  ;;  %v7038_v1 = vadd.f32 %v5503_v56, %v3478_v11 }
 0x2a6   : > { %5717 = vst.msk [vmem:[%s9270_s20 + $0x68] sm:$0xf] %vm238_vm1, %v6465_v38  ;;  %v5818_v14 = vmul.f32 %v7035_v54, %v7035_v54  ;;  %v5771_v51 = vadd.f32 %v5770_v3, %v5769_v18  ;;  %v5870_v21 = vadd.f32 %v5869_v40, %v5868_v24  ;;  %v6466_v31 = vpack.c.bf16 %v7037_v49, %v7037_v49 }
 0x2a7   : > { %5715 = vst.msk [vmem:[%s9270_s20 + $0x60] sm:$0xf] %vm238_vm1, %v6463_v61  ;;  %v5871_v6 = vsel %vm1491_vm7, %v5816_v55, 0.0  ;;  %v6464_v44 = vpack.c.bf16 %v7038_v1, %v7038_v1  ;;  %v5772_v57 = vsel %vm1491_vm7, %v7038_v1, 0.0  ;;  %v5817_v59 = vmul.f32 %v7038_v1, %v7038_v1 }
 0x2a8   : > { %v5872_v39 = vadd.f32 %v5871_v6, %v5870_v21  ;;  %5718 = vst.msk [vmem:[%s9270_s20 + $0x6c] sm:$0xf] %vm238_vm1, %v6466_v31  ;;  %v5773_v0 = vadd.f32 %v5772_v57, %v5771_v51  ;;  %v5774_v47 = vsel %vm1491_vm7, %v7035_v54, 0.0  ;;  %v5819_v58 = vmul.f32 %v7037_v49, %v7037_v49 }
 0x2a9   : > { %v6871_v27 = vpop.f32.mrb[28].mxu1  ;;  %v7007_v12 = vpop.f32.mrb[28].mxu0  ;;  %5716 = vst.msk [vmem:[%s9270_s20 + $0x64] sm:$0xf] %vm238_vm1, %v6464_v44  ;;  %v5873_v13 = vsel %vm1491_vm7, %v5817_v59, 0.0  ;;  %v5875_v2 = vsel %vm1491_vm7, %v5818_v14, 0.0 }
 0x2aa   : > { %v3491_v48 = vpop.f32.mrb[29].mxu1  ;;  %v7039_v34 = vadd.f32 %v7007_v12, %v6871_v27  ;;  %v5516_v10 = vpop.f32.mrb[29].mxu0  ;;  %v5775_v42 = vadd.f32 %v5774_v47, %v5773_v0  ;;  %v5874_v28 = vadd.f32 %v5873_v13, %v5872_v39  ;;  %v5776_v33 = vsel %vm1491_vm7, %v7037_v49, 0.0 }
 0x2ab   : > { %v6872_v20 = vpop.f32.mrb[30].mxu1  ;;  %v7040_v35 = vadd.f32 %v5516_v10, %v3491_v48  ;;  %v7008_v8 = vpop.f32.mrb[30].mxu0  ;;  %v5877_v9 = vsel %vm1491_vm7, %v5819_v58, 0.0 }
 0x2ac   : > { %v3494_v32 = vpop.f32.mrb[31].mxu1  ;;  %v6469_v43 = vpack.c.bf16 %v7039_v34, %v7039_v34  ;;  %v5519_v41 = vpop.f32.mrb[31].mxu0  ;;  %v5876_v53 = vadd.f32 %v5875_v2, %v5874_v28  ;;  %v5777_v46 = vadd.f32 %v5776_v33, %v5775_v42  ;;  %v7041_v23 = vadd.f32 %v7008_v8, %v6872_v20 }
 0x2ad   : > { %v6467_v37 = vpack.c.bf16 %v7040_v35, %v7040_v35  ;;  %v5778_v52 = vsel %vm1491_vm7, %v7040_v35, 0.0  ;;  %v5820_v63 = vmul.f32 %v7040_v35, %v7040_v35  ;;  %v7042_v36 = vadd.f32 %v5519_v41, %v3494_v32 }
 0x2ae   : > { %5721 = vst.msk [vmem:[%s9270_s20 + $0x78] sm:$0xf] %vm238_vm1, %v6469_v43  ;;  %v5779_v5 = vadd.f32 %v5778_v52, %v5777_v46  ;;  %v5878_v62 = vadd.f32 %v5877_v9, %v5876_v53  ;;  %v6470_v25 = vpack.c.bf16 %v7041_v23, %v7041_v23  ;;  %v5822_v11 = vmul.f32 %v7039_v34, %v7039_v34 }
 0x2af   : > { %5719 = vst.msk [vmem:[%s9270_s20 + $0x70] sm:$0xf] %vm238_vm1, %v6467_v37  ;;  %v5879_v60 = vsel %vm1491_vm7, %v5820_v63, 0.0  ;;  %v6468_v45 = vpack.c.bf16 %v7042_v36, %v7042_v36  ;;  %v5780_v26 = vsel %vm1491_vm7, %v7042_v36, 0.0  ;;  %v5821_v54 = vmul.f32 %v7042_v36, %v7042_v36 }
 0x2b0   : > { %v5880_v4 = vadd.f32 %v5879_v60, %v5878_v62  ;;  %5722 = vst.msk [vmem:[%s9270_s20 + $0x7c] sm:$0xf] %vm238_vm1, %v6470_v25  ;;  %v5781_v17 = vadd.f32 %v5780_v26, %v5779_v5  ;;  %v5782_v16 = vsel %vm1491_vm7, %v7039_v34, 0.0  ;;  %v5823_v7 = vmul.f32 %v7041_v23, %v7041_v23 }
 0x2b1   : > { %5720 = vst.msk [vmem:[%s9270_s20 + $0x74] sm:$0xf] %vm238_vm1, %v6468_v45  ;;  %v5881_v22 = vsel %vm1491_vm7, %v5821_v54, 0.0  ;;  %v5883_v29 = vsel %vm1491_vm7, %v5822_v11, 0.0  ;;  %v5784_v19 = vsel %vm1491_vm7, %v7041_v23, 0.0  ;;  %vm5895_vm1 = vcmask 58368  }
 0x2b2   : > { %v5783_v50 = vadd.f32 %v5782_v16, %v5781_v17  ;;  %v5882_v15 = vadd.f32 %v5881_v22, %v5880_v4  ;;  %v5885_v30 = vsel %vm1491_vm7, %v5823_v7, 0.0 }
 0x2b4   : > { %v5785_v38 = vadd.f32 %v5784_v19, %v5783_v50  ;;  %v5884_v56 = vadd.f32 %v5883_v29, %v5882_v15 }
 0x2b6   : > { %v5786_v61 = vrot.slane %v5785_v38, 4  ;;  %v5886_v3 = vadd.f32 %v5885_v30, %v5884_v56 }
 0x2b8   : > { %v5787_v55 = vadd.f32 %v5786_v61, %v5785_v38  ;;  %v5887_v24 = vrot.slane %v5886_v3, 4 }
 0x2ba   : > { %v5788_v18 = vrot.slane %v5787_v55, 2  ;;  %v5888_v49 = vadd.f32 %v5887_v24, %v5886_v3 }
 0x2bc   : > { %v5789_v1 = vadd.f32 %v5788_v18, %v5787_v55  ;;  %v5889_v27 = vrot.slane %v5888_v49, 2 }
 0x2be   : > { %v5790_v40 = vrot.slane %v5789_v1, 1  ;;  %v5890_v6 = vadd.f32 %v5889_v27, %v5888_v49 }
 0x2c0   : > { %v5891_v48 = vrot.slane %v5890_v6, 1  ;;  %v5791_v14 = vadd.f32 %v5790_v40, %v5789_v1 }
 0x2c2   : > { %v5892_v51 = vadd.f32 %v5891_v48, %v5890_v6 }
 0x2c4   : > { %v5894_v21 = vsel %vm5893_vm0, %v5791_v14, %v5892_v51 }
 0x2c5   : > { %5896 = vst.msk [vmem:[%s236_s23] sm:$0x3] %vm5895_vm1, %v5894_v21 }
 0x2c6 PF: > { %s16_s18 = sadd.s32 1, %s7387_s18  }
 0x2c7   : > { %p13_p5 = scmp.ge.s32.totalorder %s16_s18, 4  }
 0x2c9   :  { %15 = sbr.rel (!%p13_p5) target bundleno = 1 (0x1), region = 88 }

// kernel: basic_block_forward.3
= control target key start
LH: loop header
LB: loop body
LE: loop exit
PB: predicated region body
PF: predicated region fallthrough
CT: control target
= control target key end

     0   :  { %s8049_s21 = smov 0   ;;  %s10628_s0 = inlined_call_operand.vmem [shape: bf16[2,1,18,18,4], index: 0, kind: input, shape index: {}]   ;;  %s10629_s1 = inlined_call_operand.vmem [shape: bf16[9,4,8], index: 1, kind: input, shape index: {}]   ;;  %s10630_s2 = inlined_call_operand.vmem [shape: bf16[4,8], index: 2, kind: input, shape index: {}]   ;;  %s10631_s3 = inlined_call_operand.vmem [shape: bf16[2,16,16,8], index: 3, kind: output, shape index: {0}]   ;;  %s10632_s4 = inlined_call_operand.vmem [shape: f32[2,8,8], index: 4, kind: output, shape index: {1}]   ;;  %s10633_s5 = inlined_call_operand.vmem [shape: bf16[512,8], index: 5, kind: output, shape index: {2}]   ;;  %s10634_s6 = inlined_call_operand.vmem [shape: f32[2,8,8], index: 6, kind: output, shape index: {3}]  }
   0x1 LB: > { %s8055_s22 = sadd.s32 4294967295, %s8012_s21   ;;  %p6362_p0 = scmp.ge.s32.totalorder %s8012_s21, 1  ;;  %s8012_s21 = sphi %s8049_s21, %s17_s21  }
   0x2   : > { %p219_p1 = scmp.lt.s32.totalorder %s8012_s21, 3 }
   0x4   : > { %p220_p2 = pnand %p6362_p0, %p219_p1 }
   0x6   : > { %223 = sbr.rel (%p220_p2) target bundleno = 694 (0x2b6), region = 32 }
   0xd   : > { %vm822_vm0 = vcmask 1041408   ;;  %v6597_v0 = vld [vmem:[%s10629_s1 + $0x8] sm:$0x3]  ;;  %v6370_v1 = vld [vmem:[%s10629_s1 + $0x2] sm:$0x3]  ;;  %p262_p3 = scmp.lt.s32.totalorder %s8055_s22, 1 }
   0xe   : > { %7887 = vmatprep.subr.msk.bf16.mxu0 %vm822_vm0, %v6597_v0  ;;  %7883 = vmatprep.subr.msk.bf16.mxu1 %vm822_vm0, %v6370_v1  ;;  %v2626_v2 = vsel %vm822_vm0, %v6597_v0, 0  ;;  %v824_v3 = vsel %vm822_vm0, %v6370_v1, 0  ;;  %v6662_v4 = vld [vmem:[%s10629_s1 + $0xa] sm:$0x3]  ;;  %v319_v5 = vld [vmem:[%s10629_s1] sm:$0x3] }
   0xf   : > { %7424 = vmatpush3.bf16.msra.mxu0 %v2626_v2  ;;  %7288 = vmatpush3.bf16.msra.mxu1 %v824_v3  ;;  %s8071_s27 = scalar_select %p262_p3, %s8055_s22, 1  ;;  %vm336_vm1 = vsmask.f32 3328  ;;  %vm337_vm2 = vsmask.f32 7440  ;;  %vm773_vm3 = vcmask 31744  }
  0x10   : > { %7888 = vmatprep.subr.msk.bf16.mxu0 %vm822_vm0, %v6662_v4  ;;  %7884 = vmatprep.subr.msk.bf16.mxu1 %vm822_vm0, %v319_v5  ;;  %vm8103_vm4 = vmor %vm336_vm1, %vm337_vm2  ;;  %v10654_v30 = vmov 0  ;;  %v8109_v35 = vsel %vm822_vm0, %v6662_v4, 0  ;;  %v8112_v39 = vsel %vm822_vm0, %v319_v5, 0  ;;  %vm1327_vm5 = vcmask 1042432   ;;  %s6367_s26 = sshll.u32 %s8055_s22, 5 }
  0x11   : > { %s7893_s8 = smul.u32 216, %s8071_s27  ;;  %v10655_v30 = vsel %vm8103_vm4, 4294967295, %v10654_v30  ;;  %vm1328_vm6 = vcmask 1046532   ;;  %p277_p4 = scmp.lt.s32.totalorder %s6367_s26, 63  ;;  %vm5007_vm8 = vcmask 64512   ;;  %vm4974_vm9 = vcmask 60416  }
  0x12   : > { %10656 = vst [vmem:[#allocation2_spill] sm:$0xff] %v10655_v30  ;;  %vm8504_vm7 = vmor %vm1327_vm5, %vm1328_vm6  ;;  %s7052_s7 = sshll.u32 %s8071_s27, 7  ;;  %vm5178_vm10 = vcmask 1040384   ;;  %vm5180_vm11 = vcmask 58368  }
  0x13   : > { %s8085_s11 = scalar_lea.vmem %s10628_s0, %s7893_s8  ;;  %s10711_s26 = smov (!%p277_p4, %s6367_s26), 63 }
  0x14   : > { %v287_v6 = vld [vmem:[%s8085_s11] sm:$0xf]  ;;  %v288_v7 = vld [vmem:[%s8085_s11 + $0x4] sm:$0xf]  ;;  %v320_v8 = vld [vmem:[%s8085_s11 + $0x8] sm:$0x1]  ;;  %s10097_s10 = scalar_lea.vmem %s10631_s3, %s7052_s7 }
  0x15   : > { %v340_v9 = vshrl.u32 %v287_v6, 16  ;;  %v343_v10 = vshll.u32 %v287_v6, 16  ;;  %v349_v11 = vshll.u32 %v288_v7, 16  ;;  %v353_v12 = vshrl.u32 %v288_v7, 16  ;;  %v6549_v13 = vld [vmem:[%s8085_s11 + $0xc] sm:$0xf] }
  0x16   : > { %v359_v14 = vshll.u32 %v320_v8, 16  ;;  %v8092_v15 = vld [vmem:[%s8085_s11 + $0x10] sm:$0xf]  ;;  %v8095_v16 = vld [vmem:[%s8085_s11 + $0x14] sm:$0x1]  ;;  %v2144_v22 = vshrl.u32 %v6549_v13, 16 }
  0x17   : > { %v342_v17 = vrot.slane %v340_v9, 4  ;;  %v345_v18 = vrot.slane %v343_v10, 5  ;;  %v351_v19 = vrot.slane %v349_v11, 5  ;;  %v355_v20 = vrot.slane %v353_v12, 4  ;;  %v289_v29 = vld [vmem:[%s8085_s11 + $0xc] sm:$0xf] }
  0x18   : > { %v361_v21 = vrot.slane %v359_v14, 5  ;;  %v2147_v23 = vshll.u32 %v6549_v13, 16  ;;  %v2153_v24 = vshll.u32 %v8092_v15, 16  ;;  %v2157_v27 = vshrl.u32 %v8092_v15, 16  ;;  %v290_v34 = vld [vmem:[%s8085_s11 + $0x10] sm:$0xf] }
  0x19   : > { %v346_v25 = vor.u32 %v345_v18, %v342_v17  ;;  %v356_v26 = vor.u32 %v355_v20, %v351_v19  ;;  %v2163_v28 = vshll.u32 %v8095_v16, 16  ;;  %v2146_v31 = vrot.slane %v2144_v22, 4  ;;  %v321_v42 = vld [vmem:[%s8085_s11 + $0x14] sm:$0x1]  ;;  %v6552_v53 = vld [vmem:[%s8085_s11 + $0x18] sm:$0xf] }
  0x1a   : > { %v2149_v32 = vrot.slane %v2147_v23, 5  ;;  %v2155_v33 = vrot.slane %v2153_v24, 5  ;;  %v2159_v38 = vrot.slane %v2157_v27, 4  ;;  %v364_v43 = vshrl.u32 %v289_v29, 16  ;;  %v8121_v58 = vld [vmem:[%s8085_s11 + $0x1c] sm:$0xf] }
  0x1b   : > { %v347_v36 = vrot.slane %v346_v25, 4  ;;  %v357_v37 = vrot.slane %v356_v26, 4  ;;  %v2165_v41 = vrot.slane %v2163_v28, 5  ;;  %v367_v44 = vshll.u32 %v289_v29, 16  ;;  %v8129_v63 = vld [vmem:[%s8085_s11 + $0x20] sm:$0x1] }
  0x1c   : > { %v2150_v40 = vor.u32 %v2149_v32, %v2146_v31  ;;  %v2160_v47 = vor.u32 %v2159_v38, %v2155_v33  ;;  %v373_v48 = vshll.u32 %v290_v34, 16  ;;  %v366_v51 = vrot.slane %v364_v43, 4  ;;  %v291_v12 = vld [vmem:[%s8085_s11 + $0x18] sm:$0xf]  ;;  %v322_v26 = vld [vmem:[%s8085_s11 + $0x20] sm:$0x1] }
  0x1d   : > { %v352_v45 = vsel %vm8103_vm4, %v347_v36, %v351_v19  ;;  %v362_v46 = vsel %vm8103_vm4, %v357_v37, %v361_v21  ;;  %v369_v52 = vrot.slane %v367_v44, 5  ;;  %v377_v56 = vshrl.u32 %v290_v34, 16  ;;  %v292_v19 = vld [vmem:[%s8085_s11 + $0x1c] sm:$0xf]  ;;  %v6555_v34 = vld [vmem:[%s8085_s11 + $0x24] sm:$0xf] }
  0x1e   : > { %v6371_v49 = vcombine.low %v352_v45, %v362_v46  ;;  %v2151_v50 = vrot.slane %v2150_v40, 4  ;;  %v2161_v54 = vrot.slane %v2160_v47, 4  ;;  %v375_v55 = vrot.slane %v373_v48, 5  ;;  %v6557_v48 = vld [vmem:[%s8085_s11 + $0x2c] sm:$0x1]  ;;  %s6368_s28 = sshll.u32 %s10711_s26, 2 }
  0x1f   : > { %v383_v57 = vshll.u32 %v321_v42, 16  ;;  %v370_v62 = vor.u32 %v369_v52, %v366_v51  ;;  %v379_v1 = vrot.slane %v377_v56, 4  ;;  %v2168_v3 = vshrl.u32 %v6552_v53, 16  ;;  %v8471_v23 = vld [vmem:[%s8085_s11 + $0xbc] sm:$0x1]  ;;  %s10085_s22 = scalar_lea.vmem %s10633_s5, %s6368_s28 }
  0x20   : > { %7289 = vmatprep.mubr.msk.bf16.mxu1 %vm773_vm3, %v6371_v49  ;;  %v2156_v59 = vsel %vm8103_vm4, %v2151_v50, %v2155_v33  ;;  %v2166_v0 = vsel %vm8103_vm4, %v2161_v54, %v2165_v41  ;;  %v2171_v6 = vshll.u32 %v6552_v53, 16  ;;  %v2177_v7 = vshll.u32 %v8121_v58, 16  ;;  %v6556_v41 = vld [vmem:[%s8085_s11 + $0x28] sm:$0xf]  ;;  %10659 = vst [vmem:[#allocation5_spill] sm:$0xff] %v8471_v23 }
  0x21   : > { %v385_v2 = vrot.slane %v383_v57, 5  ;;  %v6598_v4 = vcombine.low %v2156_v59, %v2166_v0  ;;  %v371_v5 = vrot.slane %v370_v62, 4  ;;  %v380_v8 = vor.u32 %v379_v1, %v375_v55  ;;  %v294_v0 = vld [vmem:[%s8085_s11 + $0x28] sm:$0xf] }
  0x22   : > { %v2170_v9 = vrot.slane %v2168_v3, 4  ;;  %v2181_v10 = vshrl.u32 %v8121_v58, 16  ;;  %v2187_v11 = vshll.u32 %v8129_v63, 16  ;;  %v2173_v14 = vrot.slane %v2171_v6, 5  ;;  %v323_v6 = vld [vmem:[%s8085_s11 + $0x2c] sm:$0x1] }
  0x23   : > { %7425 = vmatprep.mubr.msk.bf16.mxu0 %vm773_vm3, %v6598_v4  ;;  %v376_v13 = vsel %vm8103_vm4, %v371_v5, %v375_v55  ;;  %v2179_v17 = vrot.slane %v2177_v7, 5  ;;  %v10635_v18 = vrot.slane %v8121_v58, 5  ;;  %v381_v20 = vrot.slane %v380_v8, 4  ;;  %v293_v55 = vld [vmem:[%s8085_s11 + $0x24] sm:$0xf] }
  0x24   : > { %v2183_v21 = vrot.slane %v2181_v10, 4  ;;  %v2189_v22 = vrot.slane %v2187_v11, 5  ;;  %v2174_v24 = vor.u32 %v2173_v14, %v2170_v9  ;;  %v388_v27 = vshrl.u32 %v291_v12, 16 }
  0x25   : > { %v8145_v25 = vrot.slane %v10635_v18, 4  ;;  %v391_v28 = vshll.u32 %v291_v12, 16  ;;  %v386_v29 = vsel %vm8103_vm4, %v381_v20, %v385_v2  ;;  %v397_v32 = vshll.u32 %v292_v19, 16 }
  0x26   : > { %v2184_v31 = vor.u32 %v2183_v21, %v2179_v17  ;;  %v401_v33 = vshrl.u32 %v292_v19, 16  ;;  %v6372_v36 = vcombine.low %v376_v13, %v386_v29  ;;  %v2175_v37 = vrot.slane %v2174_v24, 4  ;;  %v6558_v13 = vld [vmem:[%s8085_s11 + $0x30] sm:$0xf]  ;;  %v6559_v21 = vld [vmem:[%s8085_s11 + $0x34] sm:$0xf] }
  0x27   : > { %v390_v38 = vrot.slane %v388_v27, 4  ;;  %v393_v40 = vrot.slane %v391_v28, 5  ;;  %v399_v43 = vrot.slane %v397_v32, 5  ;;  %v407_v45 = vshll.u32 %v322_v26, 16  ;;  %v6560_v29 = vld [vmem:[%s8085_s11 + $0x38] sm:$0x1] }
  0x28   : > { %v2185_v42 = vrot.slane %v2184_v31, 4  ;;  %v403_v44 = vrot.slane %v401_v33, 4  ;;  %7290 = vmatmul.mubr.msk.bf16.vlgmr.msra.gmra.mrb[0].mxu1 %vm773_vm3, %v6372_v36  ;;  %v2180_v46 = vsel %vm8103_vm4, %v2175_v37, %v2179_v17  ;;  %v2192_v49 = vshrl.u32 %v6555_v34, 16 }
  0x29   : > { %v394_v47 = vor.u32 %v393_v40, %v390_v38  ;;  %v2195_v50 = vshll.u32 %v6555_v34, 16  ;;  %7322 = vmatpush3.bf16.msra.mxu1 %v8112_v39  ;;  %v409_v53 = vrot.slane %v407_v45, 5  ;;  %v2201_v54 = vshll.u32 %v6556_v41, 16 }
  0x2a   : > { %v2190_v51 = vsel %vm8103_vm4, %v2185_v42, %v2189_v22  ;;  %v404_v52 = vor.u32 %v403_v44, %v399_v43  ;;  %v2194_v59 = vrot.slane %v2192_v49, 4  ;;  %v2205_v3 = vshrl.u32 %v6556_v41, 16 }
  0x2b   : > { %v6599_v56 = vcombine.low %v2180_v46, %v2190_v51  ;;  %v395_v57 = vrot.slane %v394_v47, 4  ;;  %v2197_v62 = vrot.slane %v2195_v50, 5  ;;  %v2203_v2 = vrot.slane %v2201_v54, 5 }
  0x2c   : > { %v405_v1 = vrot.slane %v404_v52, 4  ;;  %v2211_v4 = vshll.u32 %v6557_v48, 16  ;;  %v412_v7 = vshrl.u32 %v293_v55, 16  ;;  %v415_v8 = vshll.u32 %v293_v55, 16  ;;  %v296_v48 = vld [vmem:[%s8085_s11 + $0x34] sm:$0xf] }
  0x2d   : > { %7426 = vmatmul.mubr.msk.bf16.vlgmr.msra.gmra.mrb[0].mxu0 %vm773_vm3, %v6599_v56  ;;  %v400_v39 = vsel %vm8103_vm4, %v395_v57, %v399_v43  ;;  %v2198_v5 = vor.u32 %v2197_v62, %v2194_v59  ;;  %v2207_v10 = vrot.slane %v2205_v3, 4  ;;  %v421_v12 = vshll.u32 %v294_v0, 16  ;;  %v295_v43 = vld [vmem:[%s8085_s11 + $0x30] sm:$0xf] }
  0x2e   : > { %7458 = vmatpush3.bf16.msra.mxu0 %v8109_v35  ;;  %v410_v9 = vsel %vm8103_vm4, %v405_v1, %v409_v53  ;;  %v2213_v11 = vrot.slane %v2211_v4, 5  ;;  %v414_v19 = vrot.slane %v412_v7, 4  ;;  %v417_v20 = vrot.slane %v415_v8, 5  ;;  %v324_v53 = vld [vmem:[%s8085_s11 + $0x38] sm:$0x1] }
  0x2f   : > { %v6373_v14 = vcombine.low %v400_v39, %v410_v9  ;;  %v2199_v17 = vrot.slane %v2198_v5, 4  ;;  %v2208_v22 = vor.u32 %v2207_v10, %v2203_v2  ;;  %v423_v24 = vrot.slane %v421_v12, 5 }
  0x30   : > { %v425_v26 = vshrl.u32 %v294_v0, 16  ;;  %v431_v27 = vshll.u32 %v323_v6, 16  ;;  %v418_v28 = vor.u32 %v417_v20, %v414_v19  ;;  %v2216_v31 = vshrl.u32 %v6558_v13, 16  ;;  %v6562_v6 = vld [vmem:[%s8085_s11 + $0x40] sm:$0xf] }
  0x31   : > { %7293 = vmatprep.mubr.msk.bf16.mxu1 %vm773_vm3, %v6373_v14  ;;  %v2204_v35 = vsel %vm8103_vm4, %v2199_v17, %v2203_v2  ;;  %v2219_v32 = vshll.u32 %v6558_v13, 16  ;;  %v2209_v33 = vrot.slane %v2208_v22, 4  ;;  %v2225_v37 = vshll.u32 %v6559_v21, 16  ;;  %v6561_v2 = vld [vmem:[%s8085_s11 + $0x3c] sm:$0xf] }
  0x32   : > { %v427_v34 = vrot.slane %v425_v26, 4  ;;  %v433_v36 = vrot.slane %v431_v27, 5  ;;  %v419_v38 = vrot.slane %v418_v28, 4  ;;  %v2218_v40 = vrot.slane %v2216_v31, 4  ;;  %v6563_v14 = vld [vmem:[%s8085_s11 + $0x44] sm:$0x1] }
  0x33   : > { %v2221_v41 = vrot.slane %v2219_v32, 5  ;;  %v2229_v42 = vshrl.u32 %v6559_v21, 16  ;;  %v2214_v44 = vsel %vm8103_vm4, %v2209_v33, %v2213_v11  ;;  %v2227_v46 = vrot.slane %v2225_v37, 5 }
  0x34   : > { %v428_v45 = vor.u32 %v427_v34, %v423_v24  ;;  %v2235_v47 = vshll.u32 %v6560_v29, 16  ;;  %v6600_v49 = vcombine.low %v2204_v35, %v2214_v44  ;;  %v424_v50 = vsel %vm8103_vm4, %v419_v38, %v423_v24  ;;  %v297_v24 = vld [vmem:[%s8085_s11 + $0x3c] sm:$0xf]  ;;  %v298_v29 = vld [vmem:[%s8085_s11 + $0x40] sm:$0xf] }
  0x35   : > { %v2222_v51 = vor.u32 %v2221_v41, %v2218_v40  ;;  %v2231_v52 = vrot.slane %v2229_v42, 4  ;;  %v436_v56 = vshrl.u32 %v295_v43, 16  ;;  %v439_v57 = vshll.u32 %v295_v43, 16  ;;  %v325_v44 = vld [vmem:[%s8085_s11 + $0x44] sm:$0x1] }
  0x36   : > { %v429_v54 = vrot.slane %v428_v45, 4  ;;  %v2237_v55 = vrot.slane %v2235_v47, 5  ;;  %7429 = vmatprep.mubr.msk.bf16.mxu0 %vm773_vm3, %v6600_v49  ;;  %v445_v0 = vshll.u32 %v296_v48, 16  ;;  %v449_v1 = vshrl.u32 %v296_v48, 16 }
  0x37   : > { %v2223_v59 = vrot.slane %v2222_v51, 4  ;;  %v2232_v62 = vor.u32 %v2231_v52, %v2227_v46  ;;  %v438_v4 = vrot.slane %v436_v56, 4  ;;  %v441_v39 = vrot.slane %v439_v57, 5  ;;  %v6565_v51 = vld [vmem:[%s8085_s11 + $0x4c] sm:$0xf] }
  0x38   : > { %v434_v3 = vsel %vm8103_vm4, %v429_v54, %v433_v36  ;;  %v455_v5 = vshll.u32 %v324_v53, 16  ;;  %v447_v10 = vrot.slane %v445_v0, 5  ;;  %v451_v12 = vrot.slane %v449_v1, 4 }
  0x39   : > { %v6374_v7 = vcombine.low %v424_v50, %v434_v3  ;;  %v2228_v8 = vsel %vm8103_vm4, %v2223_v59, %v2227_v46  ;;  %v2233_v9 = vrot.slane %v2232_v62, 4  ;;  %v442_v11 = vor.u32 %v441_v39, %v438_v4  ;;  %v6564_v46 = vld [vmem:[%s8085_s11 + $0x48] sm:$0xf] }
  0x3a   : > { %v457_v13 = vrot.slane %v455_v5, 5  ;;  %v2240_v17 = vshrl.u32 %v6561_v2, 16  ;;  %v2243_v20 = vshll.u32 %v6561_v2, 16  ;;  %v2249_v21 = vshll.u32 %v6562_v6, 16  ;;  %v6566_v2 = vld [vmem:[%s8085_s11 + $0x50] sm:$0x1] }
  0x3b   : > { %7294 = vmatmul.mubr.msk.bf16.gmra.mrb[4].mxu1 %vm773_vm3, %v6374_v7  ;;  %v2238_v19 = vsel %vm8103_vm4, %v2233_v9, %v2237_v55  ;;  %v2253_v22 = vshrl.u32 %v6562_v6, 16  ;;  %v443_v27 = vrot.slane %v442_v11, 4  ;;  %v452_v35 = vor.u32 %v451_v12, %v447_v10  ;;  %v299_v39 = vld [vmem:[%s8085_s11 + $0x48] sm:$0xf]  ;;  %v300_v9 = vld [vmem:[%s8085_s11 + $0x4c] sm:$0xf] }
  0x3c   : > { %v6601_v26 = vcombine.low %v2228_v8, %v2238_v19  ;;  %v2242_v28 = vrot.slane %v2240_v17, 4  ;;  %v2245_v31 = vrot.slane %v2243_v20, 5  ;;  %v2251_v32 = vrot.slane %v2249_v21, 5  ;;  %v326_v20 = vld [vmem:[%s8085_s11 + $0x50] sm:$0x1] }
  0x3d   : > { %v2255_v33 = vrot.slane %v2253_v22, 4  ;;  %v2259_v34 = vshll.u32 %v6563_v14, 16  ;;  %v448_v36 = vsel %vm8103_vm4, %v443_v27, %v447_v10  ;;  %v453_v37 = vrot.slane %v452_v35, 4  ;;  %v6567_v35 = vld [vmem:[%s8085_s11 + $0x54] sm:$0xf] }
  0x3e   : > { %7430 = vmatmul.mubr.msk.bf16.gmra.mrb[4].mxu0 %vm773_vm3, %v6601_v26  ;;  %v460_v38 = vshrl.u32 %v297_v24, 16  ;;  %v463_v40 = vshll.u32 %v297_v24, 16  ;;  %v2246_v41 = vor.u32 %v2245_v31, %v2242_v28  ;;  %v469_v45 = vshll.u32 %v298_v29, 16 }
  0x3f   : > { %v2256_v42 = vor.u32 %v2255_v33, %v2251_v32  ;;  %v2261_v43 = vrot.slane %v2259_v34, 5  ;;  %v458_v47 = vsel %vm8103_vm4, %v453_v37, %v457_v13  ;;  %v473_v50 = vshrl.u32 %v298_v29, 16 }
  0x40   : > { %v462_v48 = vrot.slane %v460_v38, 4  ;;  %v465_v49 = vrot.slane %v463_v40, 5  ;;  %v6375_v52 = vcombine.low %v448_v36, %v458_v47  ;;  %v2247_v53 = vrot.slane %v2246_v41, 4  ;;  %v6568_v38 = vld [vmem:[%s8085_s11 + $0x58] sm:$0xf] }
  0x41   : > { %v2257_v54 = vrot.slane %v2256_v42, 4  ;;  %v471_v55 = vrot.slane %v469_v45, 5  ;;  %v475_v57 = vrot.slane %v473_v50, 4  ;;  %v479_v59 = vshll.u32 %v325_v44, 16  ;;  %v6569_v47 = vld [vmem:[%s8085_s11 + $0x5c] sm:$0x1] }
  0x42   : > { %v466_v56 = vor.u32 %v465_v49, %v462_v48  ;;  %v2264_v62 = vshrl.u32 %v6564_v46, 16  ;;  %7297 = vmatprep.mubr.msk.bf16.mxu1 %vm773_vm3, %v6375_v52  ;;  %v2252_v0 = vsel %vm8103_vm4, %v2247_v53, %v2251_v32  ;;  %v2267_v3 = vshll.u32 %v6564_v46, 16  ;;  %v301_v53 = vld [vmem:[%s8085_s11 + $0x54] sm:$0xf] }
  0x43   : > { %v2262_v1 = vsel %vm8103_vm4, %v2257_v54, %v2261_v43  ;;  %v2273_v4 = vshll.u32 %v6565_v51, 16  ;;  %v476_v7 = vor.u32 %v475_v57, %v471_v55  ;;  %v481_v8 = vrot.slane %v479_v59, 5  ;;  %v302_v59 = vld [vmem:[%s8085_s11 + $0x58] sm:$0xf] }
  0x44   : > { %v6602_v5 = vcombine.low %v2252_v0, %v2262_v1  ;;  %v467_v6 = vrot.slane %v466_v56, 4  ;;  %v2266_v10 = vrot.slane %v2264_v62, 4  ;;  %v2269_v11 = vrot.slane %v2267_v3, 5 }
  0x45   : > { %v2275_v12 = vrot.slane %v2273_v4, 5  ;;  %v2277_v13 = vshrl.u32 %v6565_v51, 16  ;;  %v477_v17 = vrot.slane %v476_v7, 4  ;;  %v2283_v19 = vshll.u32 %v6566_v2, 16 }
  0x46   : > { %7433 = vmatprep.mubr.msk.bf16.mxu0 %vm773_vm3, %v6602_v5  ;;  %v472_v14 = vsel %vm8103_vm4, %v467_v6, %v471_v55  ;;  %v484_v21 = vshrl.u32 %v299_v39, 16  ;;  %v2270_v22 = vor.u32 %v2269_v11, %v2266_v10  ;;  %v487_v26 = vshll.u32 %v299_v39, 16  ;;  %v327_v5 = vld [vmem:[%s8085_s11 + $0x5c] sm:$0x1]  ;;  %v6570_v11 = vld [vmem:[%s8085_s11 + $0x60] sm:$0xf] }
  0x47   : > { %v2279_v24 = vrot.slane %v2277_v13, 4  ;;  %v493_v27 = vshll.u32 %v300_v9, 16  ;;  %v482_v28 = vsel %vm8103_vm4, %v477_v17, %v481_v8  ;;  %v2285_v29 = vrot.slane %v2283_v19, 5  ;;  %v6571_v19 = vld [vmem:[%s8085_s11 + $0x64] sm:$0xf] }
  0x48   : > { %v486_v31 = vrot.slane %v484_v21, 4  ;;  %v497_v32 = vshrl.u32 %v300_v9, 16  ;;  %v6376_v33 = vcombine.low %v472_v14, %v482_v28  ;;  %v2271_v34 = vrot.slane %v2270_v22, 4 }
  0x49   : > { %v2280_v36 = vor.u32 %v2279_v24, %v2275_v12  ;;  %v489_v37 = vrot.slane %v487_v26, 5  ;;  %v495_v40 = vrot.slane %v493_v27, 5  ;;  %v503_v42 = vshll.u32 %v326_v20, 16 }
  0x4a   : > { %v499_v41 = vrot.slane %v497_v32, 4  ;;  %v2288_v43 = vshrl.u32 %v6567_v35, 16  ;;  %7298 = vmatmul.mubr.msk.bf16.gmra.mrb[8].mxu1 %vm773_vm3, %v6376_v33  ;;  %v2276_v44 = vsel %vm8103_vm4, %v2271_v34, %v2275_v12  ;;  %v2291_v48 = vshll.u32 %v6567_v35, 16  ;;  %v6572_v35 = vld [vmem:[%s8085_s11 + $0x68] sm:$0x1] }
  0x4b   : > { %v2281_v45 = vrot.slane %v2280_v36, 4  ;;  %v490_v46 = vor.u32 %v489_v37, %v486_v31  ;;  %v505_v50 = vrot.slane %v503_v42, 5  ;;  %v2297_v52 = vshll.u32 %v6568_v38, 16  ;;  %v303_v36 = vld [vmem:[%s8085_s11 + $0x60] sm:$0xf] }
  0x4c   : > { %v500_v49 = vor.u32 %v499_v41, %v495_v40  ;;  %v2290_v51 = vrot.slane %v2288_v43, 4  ;;  %v2293_v56 = vrot.slane %v2291_v48, 5  ;;  %v2301_v57 = vshrl.u32 %v6568_v38, 16  ;;  %v8242_v42 = vld [vmem:[%s8085_s11 + $0x64] sm:$0xf] }
  0x4d   : > { %v2286_v54 = vsel %vm8103_vm4, %v2281_v45, %v2285_v29  ;;  %v491_v55 = vrot.slane %v490_v46, 4  ;;  %v2299_v1 = vrot.slane %v2297_v52, 5  ;;  %v2307_v2 = vshll.u32 %v6569_v47, 16 }
  0x4e   : > { %v6603_v62 = vcombine.low %v2276_v44, %v2286_v54  ;;  %v501_v0 = vrot.slane %v500_v49, 4  ;;  %v2294_v4 = vor.u32 %v2293_v56, %v2290_v51  ;;  %v2303_v39 = vrot.slane %v2301_v57, 4 }
  0x4f   : > { %v496_v3 = vsel %vm8103_vm4, %v491_v55, %v495_v40  ;;  %v508_v6 = vshrl.u32 %v301_v53, 16  ;;  %v2309_v8 = vrot.slane %v2307_v2, 5  ;;  %v511_v9 = vshll.u32 %v301_v53, 16  ;;  %v328_v53 = vld [vmem:[%s8085_s11 + $0x68] sm:$0x1] }
  0x50   : > { %7434 = vmatmul.mubr.msk.bf16.gmra.mrb[8].mxu0 %vm773_vm3, %v6603_v62  ;;  %v506_v7 = vsel %vm8103_vm4, %v501_v0, %v505_v50  ;;  %v517_v10 = vshll.u32 %v302_v59, 16  ;;  %v2295_v13 = vrot.slane %v2294_v4, 4  ;;  %v2304_v14 = vor.u32 %v2303_v39, %v2299_v1  ;;  %v6573_v0 = vld [vmem:[%s8085_s11 + $0x6c] sm:$0xf]  ;;  %v8254_v39 = vld [vmem:[%s8085_s11 + $0x70] sm:$0xf] }
  0x51   : > { %v6377_v12 = vcombine.low %v496_v3, %v506_v7  ;;  %v510_v17 = vrot.slane %v508_v6, 4  ;;  %v513_v20 = vrot.slane %v511_v9, 5  ;;  %v521_v22 = vshrl.u32 %v302_v59, 16  ;;  %v8259_v9 = vld [vmem:[%s8085_s11 + $0x74] sm:$0x1] }
  0x52   : > { %v519_v21 = vrot.slane %v517_v10, 5  ;;  %v527_v24 = vshll.u32 %v327_v5, 16  ;;  %v2300_v26 = vsel %vm8103_vm4, %v2295_v13, %v2299_v1  ;;  %v2305_v27 = vrot.slane %v2304_v14, 4  ;;  %v8264_v14 = vld [vmem:[%s10629_s1 + $0xc] sm:$0x3] }
  0x53   : > { %7301 = vmatprep.mubr.msk.bf16.mxu1 %vm773_vm3, %v6377_v12  ;;  %v2312_v28 = vshrl.u32 %v6570_v11, 16  ;;  %v2315_v29 = vshll.u32 %v6570_v11, 16  ;;  %v514_v31 = vor.u32 %v513_v20, %v510_v17  ;;  %v523_v32 = vrot.slane %v521_v22, 4  ;;  %v305_v22 = vld [vmem:[%s8085_s11 + $0x6c] sm:$0xf]  ;;  %7889 = vmatprep.subr.msk.bf16.mxu0 %vm822_vm0, %v8264_v14 }
  0x54   : > { %v529_v33 = vrot.slane %v527_v24, 5  ;;  %v2321_v34 = vshll.u32 %v6571_v19, 16  ;;  %v2310_v37 = vsel %vm8103_vm4, %v2305_v27, %v2309_v8  ;;  %v2325_v41 = vshrl.u32 %v6571_v19, 16 }
  0x55   : > { %v2314_v38 = vrot.slane %v2312_v28, 4  ;;  %v2317_v40 = vrot.slane %v2315_v29, 5  ;;  %v6604_v43 = vcombine.low %v2300_v26, %v2310_v37  ;;  %v515_v44 = vrot.slane %v514_v31, 4  ;;  %v306_v28 = vld [vmem:[%s8085_s11 + $0x70] sm:$0xf] }
  0x56   : > { %v524_v45 = vor.u32 %v523_v32, %v519_v21  ;;  %v2323_v46 = vrot.slane %v2321_v34, 5  ;;  %v2327_v48 = vrot.slane %v2325_v41, 4  ;;  %v2331_v49 = vshll.u32 %v6572_v35, 16  ;;  %v8278_v29 = vld [vmem:[%s10629_s1 + $0x4] sm:$0x3] }
  0x57   : > { %v2318_v47 = vor.u32 %v2317_v40, %v2314_v38  ;;  %v532_v50 = vshrl.u32 %v303_v36, 16  ;;  %7437 = vmatprep.mubr.msk.bf16.mxu0 %vm773_vm3, %v6604_v43  ;;  %v520_v51 = vsel %vm8103_vm4, %v515_v44, %v519_v21  ;;  %v535_v54 = vshll.u32 %v303_v36, 16  ;;  %7885 = vmatprep.subr.msk.bf16.mxu1 %vm822_vm0, %v8278_v29 }
  0x58   : > { %v525_v52 = vrot.slane %v524_v45, 4  ;;  %v541_v55 = vshll.u32 %v8242_v42, 16  ;;  %v2328_v57 = vor.u32 %v2327_v48, %v2323_v46  ;;  %v2333_v59 = vrot.slane %v2331_v49, 5  ;;  %v329_v45 = vld [vmem:[%s8085_s11 + $0x74] sm:$0x1] }
  0x59   : > { %v2319_v56 = vrot.slane %v2318_v47, 4  ;;  %v534_v62 = vrot.slane %v532_v50, 4  ;;  %v537_v2 = vrot.slane %v535_v54, 5  ;;  %v545_v4 = vshrl.u32 %v8242_v42, 16  ;;  %v6576_v47 = vld [vmem:[%s8085_s11 + $0x78] sm:$0xf] }
  0x5a   : > { %v530_v1 = vsel %vm8103_vm4, %v525_v52, %v529_v33  ;;  %v543_v3 = vrot.slane %v541_v55, 5  ;;  %v2329_v7 = vrot.slane %v2328_v57, 4  ;;  %v551_v8 = vshll.u32 %v328_v53, 16  ;;  %v8291_v52 = vld [vmem:[%s8085_s11 + $0x7c] sm:$0xf] }
  0x5b   : > { %v6378_v5 = vcombine.low %v520_v51, %v530_v1  ;;  %v2324_v6 = vsel %vm8103_vm4, %v2319_v56, %v2323_v46  ;;  %v538_v10 = vor.u32 %v537_v2, %v534_v62  ;;  %v547_v11 = vrot.slane %v545_v4, 4 }
  0x5c   : > { %v2336_v12 = vshrl.u32 %v6573_v0, 16  ;;  %v2339_v13 = vshll.u32 %v6573_v0, 16  ;;  %v2334_v17 = vsel %vm8103_vm4, %v2329_v7, %v2333_v59  ;;  %v553_v19 = vrot.slane %v551_v8, 5 }
  0x5d   : > { %7302 = vmatmul.mubr.msk.bf16.gmra.mrb[12].mxu1 %vm773_vm3, %v6378_v5  ;;  %v2345_v20 = vshll.u32 %v8254_v39, 16  ;;  %v2349_v21 = vshrl.u32 %v8254_v39, 16  ;;  %v6605_v24 = vcombine.low %v2324_v6, %v2334_v17  ;;  %v539_v26 = vrot.slane %v538_v10, 4  ;;  %v8303_v6 = vld [vmem:[%s8085_s11 + $0x78] sm:$0xf] }
  0x5e   : > { %v548_v27 = vor.u32 %v547_v11, %v543_v3  ;;  %v2338_v35 = vrot.slane %v2336_v12, 4  ;;  %v2341_v31 = vrot.slane %v2339_v13, 5  ;;  %v2355_v34 = vshll.u32 %v8259_v9, 16  ;;  %v8306_v12 = vld [vmem:[%s8085_s11 + $0x7c] sm:$0xf] }
  0x5f   : > { %v2347_v32 = vrot.slane %v2345_v20, 5  ;;  %v2351_v33 = vrot.slane %v2349_v21, 4  ;;  %7438 = vmatmul.mubr.msk.bf16.gmra.mrb[12].mxu0 %vm773_vm3, %v6605_v24  ;;  %v544_v36 = vsel %vm8103_vm4, %v539_v26, %v543_v3  ;;  %v556_v38 = vshrl.u32 %v305_v22, 16  ;;  %v8299_v3 = vld [vmem:[%s8085_s11 + $0x80] sm:$0x1] }
  0x60   : > { %v549_v37 = vrot.slane %v548_v27, 4  ;;  %v559_v40 = vshll.u32 %v305_v22, 16  ;;  %v2342_v41 = vor.u32 %v2341_v31, %v2338_v35  ;;  %v2357_v44 = vrot.slane %v2355_v34, 5  ;;  %v330_v21 = vld [vmem:[%s8085_s11 + $0x80] sm:$0x1] }
  0x61   : > { %v2352_v43 = vor.u32 %v2351_v33, %v2347_v32  ;;  %v565_v46 = vshll.u32 %v306_v28, 16  ;;  %v558_v49 = vrot.slane %v556_v38, 4  ;;  %v569_v51 = vshrl.u32 %v306_v28, 16  ;;  %v6579_v35 = vld [vmem:[%s8085_s11 + $0x84] sm:$0xf] }
  0x62   : > { %v554_v48 = vsel %vm8103_vm4, %v549_v37, %v553_v19  ;;  %v561_v50 = vrot.slane %v559_v40, 5  ;;  %v2343_v54 = vrot.slane %v2342_v41, 4  ;;  %v575_v62 = vshll.u32 %v329_v45, 16  ;;  %v8319_v34 = vld [vmem:[%s8085_s11 + $0x88] sm:$0xf] }
  0x63   : > { %v6379_v53 = vcombine.low %v544_v36, %v554_v48  ;;  %v2353_v55 = vrot.slane %v2352_v43, 4  ;;  %v567_v56 = vrot.slane %v565_v46, 5  ;;  %v571_v59 = vrot.slane %v569_v51, 4  ;;  %v8325_v46 = vld [vmem:[%s8085_s11 + $0x8c] sm:$0x1] }
  0x64   : > { %v562_v57 = vor.u32 %v561_v50, %v558_v49  ;;  %v2360_v0 = vshrl.u32 %v6576_v47, 16  ;;  %v2348_v1 = vsel %vm8103_vm4, %v2343_v54, %v2347_v32  ;;  %v2363_v4 = vshll.u32 %v6576_v47, 16  ;;  %v8328_v51 = vld [vmem:[%s8085_s11 + $0x84] sm:$0xf] }
  0x65   : > { %7305 = vmatprep.mubr.msk.bf16.mxu1 %vm773_vm3, %v6379_v53  ;;  %v2358_v2 = vsel %vm8103_vm4, %v2353_v55, %v2357_v44  ;;  %v2369_v5 = vshll.u32 %v8291_v52, 16  ;;  %v572_v10 = vor.u32 %v571_v59, %v567_v56  ;;  %v577_v11 = vrot.slane %v575_v62, 5 }
  0x66   : > { %v6606_v7 = vcombine.low %v2348_v1, %v2358_v2  ;;  %v563_v8 = vrot.slane %v562_v57, 4  ;;  %v2362_v13 = vrot.slane %v2360_v0, 4  ;;  %v2365_v17 = vrot.slane %v2363_v4, 5  ;;  %v8335_v1 = vld [vmem:[%s8085_s11 + $0x88] sm:$0xf] }
  0x67   : > { %v2371_v19 = vrot.slane %v2369_v5, 5  ;;  %v2373_v20 = vshrl.u32 %v8291_v52, 16  ;;  %v573_v24 = vrot.slane %v572_v10, 4  ;;  %v2379_v26 = vshll.u32 %v8299_v3, 16 }
  0x68   : > { %7441 = vmatprep.mubr.msk.bf16.mxu0 %vm773_vm3, %v6606_v7  ;;  %v568_v22 = vsel %vm8103_vm4, %v563_v8, %v567_v56  ;;  %v580_v27 = vshrl.u32 %v8303_v6, 16  ;;  %v2366_v28 = vor.u32 %v2365_v17, %v2362_v13  ;;  %v583_v32 = vshll.u32 %v8303_v6, 16  ;;  %v331_v8 = vld [vmem:[%s8085_s11 + $0x8c] sm:$0x1] }
  0x69   : > { %v2375_v31 = vrot.slane %v2373_v20, 4  ;;  %v589_v33 = vshll.u32 %v8306_v12, 16  ;;  %v578_v36 = vsel %vm8103_vm4, %v573_v24, %v577_v11  ;;  %v2381_v37 = vrot.slane %v2379_v26, 5  ;;  %v8347_v26 = vld [vmem:[%s8085_s11 + $0x94] sm:$0xf] }
  0x6a   : > { %v582_v38 = vrot.slane %v580_v27, 4  ;;  %v593_v40 = vshrl.u32 %v8306_v12, 16  ;;  %v6380_v41 = vcombine.low %v568_v22, %v578_v36  ;;  %v2367_v43 = vrot.slane %v2366_v28, 4 }
  0x6b   : > { %v2376_v44 = vor.u32 %v2375_v31, %v2371_v19  ;;  %v585_v45 = vrot.slane %v583_v32, 5  ;;  %v591_v47 = vrot.slane %v589_v33, 5  ;;  %v599_v49 = vshll.u32 %v330_v21, 16 }
  0x6c   : > { %v595_v48 = vrot.slane %v593_v40, 4  ;;  %v2384_v50 = vshrl.u32 %v6579_v35, 16  ;;  %7306 = vmatmul.mubr.msk.bf16.gmra.mrb[16].mxu1 %vm773_vm3, %v6380_v41  ;;  %v2372_v53 = vsel %vm8103_vm4, %v2367_v43, %v2371_v19  ;;  %v2387_v56 = vshll.u32 %v6579_v35, 16  ;;  %v6582_v19 = vld [vmem:[%s8085_s11 + $0x90] sm:$0xf] }
  0x6d   : > { %v2377_v54 = vrot.slane %v2376_v44, 4  ;;  %v586_v55 = vor.u32 %v585_v45, %v582_v38  ;;  %v601_v59 = vrot.slane %v599_v49, 5  ;;  %v2393_v0 = vshll.u32 %v8319_v34, 16  ;;  %v8356_v44 = vld [vmem:[%s8085_s11 + $0x98] sm:$0x1] }
  0x6e   : > { %v596_v57 = vor.u32 %v595_v48, %v591_v47  ;;  %v2386_v62 = vrot.slane %v2384_v50, 4  ;;  %v2389_v5 = vrot.slane %v2387_v56, 5  ;;  %v2397_v7 = vshrl.u32 %v8319_v34, 16  ;;  %v8359_v45 = vld [vmem:[%s8085_s11 + $0x90] sm:$0xf] }
  0x6f   : > { %v2382_v2 = vsel %vm8103_vm4, %v2377_v54, %v2381_v37  ;;  %v587_v4 = vrot.slane %v586_v55, 4  ;;  %v2395_v13 = vrot.slane %v2393_v0, 5  ;;  %v2403_v17 = vshll.u32 %v8325_v46, 16 }
  0x70   : > { %v6607_v10 = vcombine.low %v2372_v53, %v2382_v2  ;;  %v597_v11 = vrot.slane %v596_v57, 4  ;;  %v2390_v21 = vor.u32 %v2389_v5, %v2386_v62  ;;  %v2399_v22 = vrot.slane %v2397_v7, 4  ;;  %v8366_v57 = vld [vmem:[%s8085_s11 + $0x94] sm:$0xf] }
  0x71   : > { %v592_v20 = vsel %vm8103_vm4, %v587_v4, %v591_v47  ;;  %v604_v24 = vshrl.u32 %v8328_v51, 16  ;;  %v2405_v35 = vrot.slane %v2403_v17, 5  ;;  %v607_v28 = vshll.u32 %v8328_v51, 16 }
  0x72   : > { %7442 = vmatmul.mubr.msk.bf16.gmra.mrb[16].mxu0 %vm773_vm3, %v6607_v10  ;;  %v602_v27 = vsel %vm8103_vm4, %v597_v11, %v601_v59  ;;  %v613_v31 = vshll.u32 %v8335_v1, 16  ;;  %v2391_v33 = vrot.slane %v2390_v21, 4  ;;  %v2400_v36 = vor.u32 %v2399_v22, %v2395_v13  ;;  %v332_v10 = vld [vmem:[%s8085_s11 + $0x98] sm:$0x1] }
  0x73   : > { %v6381_v32 = vcombine.low %v592_v20, %v602_v27  ;;  %v606_v37 = vrot.slane %v604_v24, 4  ;;  %v609_v38 = vrot.slane %v607_v28, 5  ;;  %v617_v41 = vshrl.u32 %v8335_v1, 16  ;;  %v6585_v20 = vld [vmem:[%s8085_s11 + $0x9c] sm:$0xf] }
  0x74   : > { %v615_v40 = vrot.slane %v613_v31, 5  ;;  %v623_v43 = vshll.u32 %v331_v8, 16  ;;  %v2396_v47 = vsel %vm8103_vm4, %v2391_v33, %v2395_v13  ;;  %v2401_v48 = vrot.slane %v2400_v36, 4 }
  0x75   : > { %7309 = vmatprep.mubr.msk.bf16.mxu1 %vm773_vm3, %v6381_v32  ;;  %v2408_v49 = vshrl.u32 %v6582_v19, 16  ;;  %v2411_v50 = vshll.u32 %v6582_v19, 16  ;;  %v610_v53 = vor.u32 %v609_v38, %v606_v37  ;;  %v619_v54 = vrot.slane %v617_v41, 4  ;;  %v8387_v41 = vld [vmem:[%s8085_s11 + $0xa4] sm:$0x1] }
  0x76   : > { %v625_v55 = vrot.slane %v623_v43, 5  ;;  %v2417_v56 = vshll.u32 %v8347_v26, 16  ;;  %v2406_v59 = vsel %vm8103_vm4, %v2401_v48, %v2405_v35  ;;  %v2421_v2 = vshrl.u32 %v8347_v26, 16  ;;  %v8381_v35 = vld [vmem:[%s8085_s11 + $0xa0] sm:$0xf] }
  0x77   : > { %v2410_v62 = vrot.slane %v2408_v49, 4  ;;  %v2413_v0 = vrot.slane %v2411_v50, 5  ;;  %v6608_v4 = vcombine.low %v2396_v47, %v2406_v59  ;;  %v611_v5 = vrot.slane %v610_v53, 4  ;;  %v8392_v50 = vld [vmem:[%s8085_s11 + $0x9c] sm:$0xf] }
  0x78   : > { %v620_v7 = vor.u32 %v619_v54, %v615_v40  ;;  %v2419_v8 = vrot.slane %v2417_v56, 5  ;;  %v2423_v13 = vrot.slane %v2421_v2, 4  ;;  %v2427_v17 = vshll.u32 %v8356_v44, 16 }
  0x79   : > { %v2414_v11 = vor.u32 %v2413_v0, %v2410_v62  ;;  %v628_v19 = vshrl.u32 %v8359_v45, 16  ;;  %7445 = vmatprep.mubr.msk.bf16.mxu0 %vm773_vm3, %v6608_v4  ;;  %v616_v21 = vsel %vm8103_vm4, %v611_v5, %v615_v40  ;;  %v631_v24 = vshll.u32 %v8359_v45, 16 }
  0x7a   : > { %v621_v22 = vrot.slane %v620_v7, 4  ;;  %v637_v27 = vshll.u32 %v8366_v57, 16  ;;  %v2424_v31 = vor.u32 %v2423_v13, %v2419_v8  ;;  %v2429_v32 = vrot.slane %v2427_v17, 5 }
  0x7b   : > { %v2415_v28 = vrot.slane %v2414_v11, 4  ;;  %v630_v33 = vrot.slane %v628_v19, 4  ;;  %v633_v37 = vrot.slane %v631_v24, 5  ;;  %v641_v40 = vshrl.u32 %v8366_v57, 16 }
  0x7c   : > { %v626_v36 = vsel %vm8103_vm4, %v621_v22, %v625_v55  ;;  %v639_v38 = vrot.slane %v637_v27, 5  ;;  %v2425_v48 = vrot.slane %v2424_v31, 4  ;;  %v647_v49 = vshll.u32 %v332_v10, 16  ;;  %v8395_v55 = vld [vmem:[%s8085_s11 + $0xa0] sm:$0xf] }
  0x7d   : > { %v6382_v43 = vcombine.low %v616_v21, %v626_v36  ;;  %v2420_v47 = vsel %vm8103_vm4, %v2415_v28, %v2419_v8  ;;  %v634_v53 = vor.u32 %v633_v37, %v630_v33  ;;  %v643_v54 = vrot.slane %v641_v40, 4  ;;  %v6588_v21 = vld [vmem:[%s8085_s11 + $0xa8] sm:$0xf] }
  0x7e   : > { %v2432_v56 = vshrl.u32 %v6585_v20, 16  ;;  %v2435_v59 = vshll.u32 %v6585_v20, 16  ;;  %v2430_v62 = vsel %vm8103_vm4, %v2425_v48, %v2429_v32  ;;  %v649_v0 = vrot.slane %v647_v49, 5  ;;  %v8404_v20 = vld [vmem:[%s8085_s11 + $0xa4] sm:$0x1] }
  0x7f   : > { %7310 = vmatmul.mubr.msk.bf16.gmra.mrb[20].mxu1 %vm773_vm3, %v6382_v43  ;;  %v2441_v2 = vshll.u32 %v8381_v35, 16  ;;  %v2445_v4 = vshrl.u32 %v8381_v35, 16  ;;  %v6609_v5 = vcombine.low %v2420_v47, %v2430_v62  ;;  %v635_v7 = vrot.slane %v634_v53, 4  ;;  %10657 = vst [vmem:[#allocation3_spill] sm:$0xff] %v8404_v20  ;;  %v8417_v47 = vld [vmem:[%s8085_s11 + $0xac] sm:$0xf] }
  0x80   : > { %v644_v8 = vor.u32 %v643_v54, %v639_v38  ;;  %v2434_v10 = vrot.slane %v2432_v56, 4  ;;  %v2437_v11 = vrot.slane %v2435_v59, 5  ;;  %v2451_v19 = vshll.u32 %v8387_v41, 16  ;;  %v8420_v56 = vld [vmem:[%s8085_s11 + $0xb0] sm:$0x1] }
  0x81   : > { %v2443_v13 = vrot.slane %v2441_v2, 5  ;;  %v2447_v17 = vrot.slane %v2445_v4, 4  ;;  %7446 = vmatmul.mubr.msk.bf16.gmra.mrb[20].mxu0 %vm773_vm3, %v6609_v5  ;;  %v640_v22 = vsel %vm8103_vm4, %v635_v7, %v639_v38  ;;  %v652_v27 = vshrl.u32 %v8392_v50, 16  ;;  %v8423_v59 = vld [vmem:[%s8085_s11 + $0xa8] sm:$0xf] }
  0x82   : > { %v645_v24 = vrot.slane %v644_v8, 4  ;;  %v655_v28 = vshll.u32 %v8392_v50, 16  ;;  %v2438_v31 = vor.u32 %v2437_v11, %v2434_v10  ;;  %v2453_v33 = vrot.slane %v2451_v19, 5  ;;  %v8427_v5 = vld [vmem:[%s8085_s11 + $0xac] sm:$0xf] }
  0x83   : > { %v2448_v32 = vor.u32 %v2447_v17, %v2443_v13  ;;  %v661_v36 = vshll.u32 %v8395_v55, 16  ;;  %v654_v40 = vrot.slane %v652_v27, 4  ;;  %v665_v38 = vshrl.u32 %v8395_v55, 16 }
  0x84   : > { %v650_v37 = vsel %vm8103_vm4, %v645_v24, %v649_v0  ;;  %v657_v43 = vrot.slane %v655_v28, 5  ;;  %v2439_v49 = vrot.slane %v2438_v31, 4  ;;  %v671_v4 = vshll.u32 %v8404_v20, 16  ;;  %v8651_v20 = vld [vmem:[%s8085_s11 + $0x60] sm:$0xf] }
  0x85   : > { %v6383_v48 = vcombine.low %v640_v22, %v650_v37  ;;  %v2449_v53 = vrot.slane %v2448_v32, 4  ;;  %v663_v54 = vrot.slane %v661_v36, 5  ;;  %v667_v2 = vrot.slane %v665_v38, 4  ;;  %v8437_v36 = vld [vmem:[%s8085_s11 + $0xb0] sm:$0x1] }
  0x86   : > { %v658_v62 = vor.u32 %v657_v43, %v654_v40  ;;  %v2456_v0 = vshrl.u32 %v6588_v21, 16  ;;  %v2444_v7 = vsel %vm8103_vm4, %v2439_v49, %v2443_v13  ;;  %v2459_v10 = vshll.u32 %v6588_v21, 16  ;;  %10658 = vst [vmem:[#allocation4_spill] sm:$0xff] %v8437_v36  ;;  %v6591_v37 = vld [vmem:[%s8085_s11 + $0xb4] sm:$0xf] }
  0x87   : > { %7313 = vmatprep.mubr.msk.bf16.mxu1 %vm773_vm3, %v6383_v48  ;;  %v2454_v8 = vsel %vm8103_vm4, %v2449_v53, %v2453_v33  ;;  %v2465_v11 = vshll.u32 %v8417_v47, 16  ;;  %v668_v22 = vor.u32 %v667_v2, %v663_v54  ;;  %v673_v24 = vrot.slane %v671_v4, 5  ;;  %v8451_v4 = vld [vmem:[%s8085_s11 + $0xb8] sm:$0xf] }
  0x88   : > { %v6610_v17 = vcombine.low %v2444_v7, %v2454_v8  ;;  %v659_v19 = vrot.slane %v658_v62, 4  ;;  %v2458_v27 = vrot.slane %v2456_v0, 4  ;;  %v2461_v28 = vrot.slane %v2459_v10, 5 }
  0x89   : > { %v2467_v31 = vrot.slane %v2465_v11, 5  ;;  %v2469_v32 = vshrl.u32 %v8417_v47, 16  ;;  %v669_v21 = vrot.slane %v668_v22, 4  ;;  %v2475_v33 = vshll.u32 %v8420_v56, 16  ;;  %v8454_v11 = vld [vmem:[%s8085_s11 + $0xbc] sm:$0x1] }
  0x8a   : > { %7449 = vmatprep.mubr.msk.bf16.mxu0 %vm773_vm3, %v6610_v17  ;;  %v664_v13 = vsel %vm8103_vm4, %v659_v19, %v663_v54  ;;  %v676_v40 = vshrl.u32 %v8423_v59, 16  ;;  %v2462_v43 = vor.u32 %v2461_v28, %v2458_v27  ;;  %v679_v48 = vshll.u32 %v8423_v59, 16 }
  0x8b   : > { %v2471_v38 = vrot.slane %v2469_v32, 4  ;;  %v685_v49 = vshll.u32 %v8427_v5, 16  ;;  %v674_v53 = vsel %vm8103_vm4, %v669_v21, %v673_v24  ;;  %v2477_v62 = vrot.slane %v2475_v33, 5  ;;  %v8458_v24 = vld [vmem:[%s8085_s11 + $0xb4] sm:$0xf] }
  0x8c   : > { %v678_v2 = vrot.slane %v676_v40, 4  ;;  %v689_v54 = vshrl.u32 %v8427_v5, 16  ;;  %v6384_v0 = vcombine.low %v664_v13, %v674_v53  ;;  %v2463_v7 = vrot.slane %v2462_v43, 4  ;;  %v8464_v33 = vld [vmem:[%s8085_s11 + $0xb8] sm:$0xf] }
  0x8d   : > { %v2472_v8 = vor.u32 %v2471_v38, %v2467_v31  ;;  %v681_v10 = vrot.slane %v679_v48, 5  ;;  %v687_v17 = vrot.slane %v685_v49, 5  ;;  %v695_v22 = vshll.u32 %v8437_v36, 16 }
  0x8e   : > { %v691_v19 = vrot.slane %v689_v54, 4  ;;  %v2480_v27 = vshrl.u32 %v6591_v37, 16  ;;  %7314 = vmatmul.mubr.msk.bf16.gmra.mrb[24].mxu1 %vm773_vm3, %v6384_v0  ;;  %v2468_v28 = vsel %vm8103_vm4, %v2463_v7, %v2467_v31  ;;  %v2483_v21 = vshll.u32 %v6591_v37, 16 }
  0x8f   : > { %v2473_v32 = vrot.slane %v2472_v8, 4  ;;  %v682_v13 = vor.u32 %v681_v10, %v678_v2  ;;  %v697_v43 = vrot.slane %v695_v22, 5  ;;  %v2489_v48 = vshll.u32 %v8451_v4, 16 }
  0x90   : > { %v692_v40 = vor.u32 %v691_v19, %v687_v17  ;;  %v2482_v38 = vrot.slane %v2480_v27, 4  ;;  %v2485_v54 = vrot.slane %v2483_v21, 5  ;;  %v2493_v0 = vshrl.u32 %v8451_v4, 16 }
  0x91   : > { %v2478_v49 = vsel %vm8103_vm4, %v2473_v32, %v2477_v62  ;;  %v683_v53 = vrot.slane %v682_v13, 4  ;;  %v2491_v37 = vrot.slane %v2489_v48, 5  ;;  %v2499_v7 = vshll.u32 %v8454_v11, 16  ;;  %v6594_v13 = vld [vmem:[%s8085_s11 + $0xc0] sm:$0xf] }
  0x92   : > { %v6611_v31 = vcombine.low %v2468_v28, %v2478_v49  ;;  %v693_v2 = vrot.slane %v692_v40, 4  ;;  %v2486_v10 = vor.u32 %v2485_v54, %v2482_v38  ;;  %v2495_v19 = vrot.slane %v2493_v0, 4  ;;  %v8484_v38 = vld [vmem:[%s8085_s11 + $0xc4] sm:$0xf] }
  0x93   : > { %v688_v8 = vsel %vm8103_vm4, %v683_v53, %v687_v17  ;;  %v700_v62 = vshrl.u32 %v8458_v24, 16  ;;  %v2501_v27 = vrot.slane %v2499_v7, 5  ;;  %v703_v28 = vshll.u32 %v8458_v24, 16 }
  0x94   : > { %7450 = vmatmul.mubr.msk.bf16.gmra.mrb[24].mxu0 %vm773_vm3, %v6611_v31  ;;  %v698_v22 = vsel %vm8103_vm4, %v693_v2, %v697_v43  ;;  %v709_v32 = vshll.u32 %v8464_v33, 16  ;;  %v2487_v40 = vrot.slane %v2486_v10, 4  ;;  %v2496_v48 = vor.u32 %v2495_v19, %v2491_v37  ;;  %v8489_v43 = vld [vmem:[%s8085_s11 + $0xc8] sm:$0x1] }
  0x95   : > { %v6385_v21 = vcombine.low %v688_v8, %v698_v22  ;;  %v702_v17 = vrot.slane %v700_v62, 4  ;;  %v705_v49 = vrot.slane %v703_v28, 5  ;;  %v713_v54 = vshrl.u32 %v8464_v33, 16  ;;  %v6630_v28 = vld [vmem:[%s8085_s11 + $0xc] sm:$0xe] }
  0x96   : > { %v711_v53 = vrot.slane %v709_v32, 5  ;;  %v719_v0 = vshll.u32 %v8471_v23, 16  ;;  %v2492_v31 = vsel %vm8103_vm4, %v2487_v40, %v2491_v37  ;;  %v2497_v2 = vrot.slane %v2496_v48, 4 }
  0x97   : > { %7317 = vmatprep.mubr.msk.bf16.mxu1 %vm773_vm3, %v6385_v21  ;;  %v2504_v7 = vshrl.u32 %v6594_v13, 16  ;;  %v2507_v8 = vshll.u32 %v6594_v13, 16  ;;  %v706_v10 = vor.u32 %v705_v49, %v702_v17  ;;  %v715_v19 = vrot.slane %v713_v54, 4  ;;  %v6631_v21 = vld [vmem:[%s8085_s11 + $0x18] sm:$0xe] }
  0x98   : > { %v721_v62 = vrot.slane %v719_v0, 5  ;;  %v2513_v22 = vshll.u32 %v8484_v38, 16  ;;  %v2502_v32 = vsel %vm8103_vm4, %v2497_v2, %v2501_v27  ;;  %v2517_v60 = vshrl.u32 %v8484_v38, 16 }
  0x99   : > { %v2506_v18 = vrot.slane %v2504_v7, 4  ;;  %v2509_v61 = vrot.slane %v2507_v8, 5  ;;  %v6612_v23 = vcombine.low %v2492_v31, %v2502_v32  ;;  %v707_v36 = vrot.slane %v706_v10, 4  ;;  %v6632_v32 = vld [vmem:[%s8085_s11 + $0x24] sm:$0xe] }
  0x9a   : > { %v716_v37 = vor.u32 %v715_v19, %v711_v53  ;;  %v2515_v40 = vrot.slane %v2513_v22, 5  ;;  %v2519_v48 = vrot.slane %v2517_v60, 4  ;;  %v2523_v17 = vshll.u32 %v8489_v43, 16 }
  0x9b   : > { %v2510_v13 = vor.u32 %v2509_v61, %v2506_v18  ;;  %7453 = vmatprep.mubr.msk.bf16.mxu0 %vm773_vm3, %v6612_v23  ;;  %v712_v27 = vsel %vm8103_vm4, %v707_v36, %v711_v53  ;;  %v6646_v61 = vrot.slane %v6630_v28, 9  ;;  %v7950_v18 = vld [vmem:[%s8085_s11] sm:$0xf]  ;;  %v8512_v23 = vld [vmem:[%s8085_s11 + $0x4] sm:$0xf]  ;;  %v10662_v53 = vrot.slane %v8092_v15, 5 }
  0x9c   : > { %v717_v49 = vrot.slane %v716_v37, 4  ;;  %v2520_v0 = vor.u32 %v2519_v48, %v2515_v40  ;;  %v2525_v31 = vrot.slane %v2523_v17, 5  ;;  %v6403_v36 = vcombine.low %v7950_v18, %v8512_v23 }
  0x9d   : > { %v2511_v54 = vrot.slane %v2510_v13, 4  ;;  %v2889_v7 = vrot.slane %v10662_v53, 4  ;;  %v6647_v8 = vrot.slane %v6631_v21, 9  ;;  %v10663_v28 = vmov %v10662_v53  ;;  %v7956_v53 = vld [vmem:[%s8085_s11 + $0x34] sm:$0xf] }
  0x9e   : > { %v722_v60 = vsel %vm8103_vm4, %v717_v49, %v721_v62  ;;  %v2521_v22 = vrot.slane %v2520_v0, 4  ;;  %v2888_v62 = vsel %vm8504_vm7, %v6646_v61, %v10663_v28  ;;  %v10664_v37 = vrot.slane %v8095_v16, 5  ;;  %v7952_v49 = vld [vmem:[%s8085_s11 + $0x28] sm:$0xf] }
  0x9f   : > { %v6386_v10 = vcombine.low %v712_v27, %v722_v60  ;;  %v2516_v19 = vsel %vm8103_vm4, %v2511_v54, %v2515_v40  ;;  %v10665_v21 = vrot.slane %v8121_v58, 5  ;;  %v10666_v40 = vrot.slane %v8129_v63, 5  ;;  %v8547_v60 = vld [vmem:[%s8085_s11 + $0x10] sm:$0xf] }
  0xa0   : > { %v2891_v13 = vsel %vm8504_vm7, %v2889_v7, %v10664_v37  ;;  %v2526_v16 = vsel %vm8103_vm4, %v2521_v22, %v2525_v31  ;;  %v6648_v63 = vrot.slane %v6632_v32, 9  ;;  %v2901_v54 = vrot.slane %v7952_v49, 5  ;;  %v7954_v31 = vld [vmem:[%s8085_s11 + $0xc] sm:$0xf]  ;;  %v7959_v32 = vld [vmem:[%s8085_s11 + $0x40] sm:$0xf] }
  0xa1   : > { %v2895_v48 = vsel %vm8504_vm7, %v6647_v8, %v10665_v21  ;;  %v2898_v15 = vsel %vm8504_vm7, %v8145_v25, %v10666_v40  ;;  %7318 = vmatmul.mubr.msk.bf16.gmra.mrb[28].mxu1 %vm773_vm3, %v6386_v10  ;;  %v6663_v17 = vcombine.low %v2888_v62, %v2891_v13  ;;  %v6613_v27 = vcombine.low %v2516_v19, %v2526_v16  ;;  %v7953_v25 = vld [vmem:[%s8085_s11 + $0x2c] sm:$0x1]  ;;  %v6634_v8 = vld [vmem:[%s8085_s11 + $0x3c] sm:$0xe]  ;;  %v7957_v10 = vld [vmem:[%s8085_s11 + $0x18] sm:$0xf] }
  0xa2   : > { %v6664_v58 = vcombine.low %v2895_v48, %v2898_v15  ;;  %7323 = vmatprep.mubr.msk.bf16.mxu1 %vm773_vm3, %v6403_v36  ;;  %v2904_v0 = vrot.slane %v7953_v25, 5  ;;  %v2903_v61 = vrot.slane %v2901_v54, 4  ;;  %v6404_v18 = vcombine.low %v7954_v31, %v8547_v60  ;;  %v6633_v36 = vld [vmem:[%s8085_s11 + $0x30] sm:$0xe]  ;;  %v8555_v19 = vld [vmem:[%s8085_s11 + $0x1c] sm:$0xf] }
  0xa3   : > { %7454 = vmatmul.mubr.msk.bf16.gmra.mrb[28].mxu0 %vm773_vm3, %v6613_v27  ;;  %v2908_v7 = vrot.slane %v7956_v53, 5  ;;  %v6405_v22 = vcombine.low %v7957_v10, %v8555_v19  ;;  %v2902_v28 = vsel %vm8504_vm7, %v6648_v63, %v2901_v54  ;;  %v2915_v37 = vrot.slane %v7959_v32, 5  ;;  %v7960_v40 = vld [vmem:[%s8085_s11 + $0x38] sm:$0x1]  ;;  %v6635_v16 = vld [vmem:[%s8085_s11 + $0x48] sm:$0xe] }
  0xa4   : > { %7459 = vmatprep.mubr.msk.bf16.mxu0 %vm773_vm3, %v6663_v17  ;;  %v2905_v62 = vsel %vm8504_vm7, %v2903_v61, %v2904_v0  ;;  %v1541_v13 = vsel %vm822_vm0, %v8278_v29, 0  ;;  %v3455_v21 = vsel %vm822_vm0, %v8264_v14, 0  ;;  %v6649_v48 = vrot.slane %v6633_v36, 9  ;;  %v8572_v17 = vld [vmem:[%s10629_s1 + $0x6] sm:$0x3] }
  0xa5   : > { %v2911_v15 = vrot.slane %v7960_v40, 5  ;;  %10667 = vst [vmem:[#allocation6_spill] sm:$0xff] %v8572_v17  ;;  %v6665_v27 = vcombine.low %v2902_v28, %v2905_v62  ;;  %v2910_v29 = vrot.slane %v2908_v7, 4  ;;  %v6650_v63 = vrot.slane %v6634_v8, 9  ;;  %v7961_v49 = vld [vmem:[%s8085_s11 + $0x4c] sm:$0xf] }
  0xa6   : > { %v2922_v14 = vrot.slane %v7961_v49, 5  ;;  %v2917_v54 = vrot.slane %v2915_v37, 4  ;;  %v7962_v25 = vld [vmem:[%s8085_s11 + $0x44] sm:$0x1]  ;;  %v6636_v61 = vld [vmem:[%s8085_s11 + $0x54] sm:$0xe] }
  0xa7   : > { %v2918_v0 = vrot.slane %v7962_v25, 5  ;;  %v7963_v31 = vld [vmem:[%s8085_s11 + $0x58] sm:$0xf]  ;;  %v7964_v53 = vld [vmem:[%s8085_s11 + $0x24] sm:$0xf]  ;;  %v2912_v28 = vsel %vm8504_vm7, %v2910_v29, %v2911_v15  ;;  %v6651_v62 = vrot.slane %v6635_v16, 9 }
  0xa8   : > { %v2929_v36 = vrot.slane %v7963_v31, 5  ;;  %v8590_v8 = vld [vmem:[%s8085_s11 + $0x28] sm:$0xf]  ;;  %v2924_v32 = vrot.slane %v2922_v14, 4  ;;  %v7967_v40 = vld [vmem:[%s8085_s11 + $0x30] sm:$0xf] }
  0xa9   : > { %7324 = vmatmul.mubr.msk.bf16.vlgmr.msra.gmra.mrb[0].mxu1 %vm773_vm3, %v6404_v18  ;;  %v8583_v18 = vld [vmem:[%s10629_s1 + $0xe] sm:$0x3]  ;;  %v6406_v10 = vcombine.low %v7964_v53, %v8590_v8  ;;  %v8601_v49 = vld [vmem:[%s8085_s11 + $0x34] sm:$0xf]  ;;  %v6652_v15 = vrot.slane %v6636_v61, 9 }
  0xaa   : > { %7356 = vmatpush3.bf16.msra.mxu1 %v1541_v13  ;;  %7327 = vmatprep.mubr.msk.bf16.mxu1 %vm773_vm3, %v6405_v22  ;;  %10668 = vst [vmem:[#allocation7_spill] sm:$0xff] %v8583_v18  ;;  %v2909_v22 = vsel %vm8504_vm7, %v6649_v48, %v2908_v7  ;;  %v6407_v7 = vcombine.low %v7967_v40, %v8601_v49  ;;  %v2931_v16 = vrot.slane %v2929_v36, 4  ;;  %v6641_v25 = vld [vmem:[%s8085_s11 + $0x90] sm:$0xe]  ;;  %v7970_v53 = vld [vmem:[%s8085_s11 + $0x3c] sm:$0xf] }
  0xab   : > { %7886 = vmatprep.subr.msk.bf16.mxu1 %vm822_vm0, %v8572_v17  ;;  %7460 = vmatmul.mubr.msk.bf16.vlgmr.msra.gmra.mrb[0].mxu0 %vm773_vm3, %v6664_v58  ;;  %v7966_v58 = vld [vmem:[%s8085_s11 + $0x50] sm:$0x1]  ;;  %v2919_v48 = vsel %vm8504_vm7, %v2917_v54, %v2918_v0  ;;  %v6666_v31 = vcombine.low %v2909_v22, %v2912_v28  ;;  %v2923_v0 = vsel %vm8504_vm7, %v6651_v62, %v2922_v14  ;;  %v7972_v22 = vld [vmem:[%s8085_s11 + $0x64] sm:$0xf]  ;;  %v8627_v40 = vld [vmem:[%s8085_s11 + $0x6c] sm:$0xe] }
  0xac   : > { %7492 = vmatpush3.bf16.msra.mxu0 %v3455_v21  ;;  %7463 = vmatprep.mubr.msk.bf16.mxu0 %vm773_vm3, %v6665_v27  ;;  %v2925_v13 = vrot.slane %v7966_v58, 5  ;;  %v2916_v21 = vsel %vm8504_vm7, %v6650_v63, %v2915_v37  ;;  %v7969_v27 = vld [vmem:[%s8085_s11 + $0x5c] sm:$0x1]  ;;  %v8614_v58 = vld [vmem:[%s8085_s11 + $0x40] sm:$0xf]  ;;  %v2936_v28 = vrot.slane %v7972_v22, 5 }
  0xad   : > { %7890 = vmatprep.subr.msk.bf16.mxu0 %vm822_vm0, %v8583_v18  ;;  %v2932_v29 = vrot.slane %v7969_v27, 5  ;;  %v6408_v37 = vcombine.low %v7970_v53, %v8614_v58  ;;  %v8618_v63 = vld [vmem:[%s8085_s11 + $0x60] sm:$0xe]  ;;  %v6667_v54 = vcombine.low %v2916_v21, %v2919_v48  ;;  %v7973_v27 = vld [vmem:[%s8085_s11 + $0x48] sm:$0xf]  ;;  %v2930_v21 = vsel %vm8504_vm7, %v6652_v15, %v2929_v36 }
  0xae   : > { %v2926_v61 = vsel %vm8504_vm7, %v2924_v32, %v2925_v13  ;;  %v8632_v53 = vld [vmem:[%s8085_s11 + $0x4c] sm:$0xf]  ;;  %v8638_v14 = vld [vmem:[%s8085_s11 + $0x54] sm:$0xf]  ;;  %v8641_v62 = vld [vmem:[%s8085_s11 + $0x58] sm:$0xf] }
  0xaf   : > { %10669 = vst [vmem:[#allocation8_spill] sm:$0xff] %v8632_v53  ;;  %v6657_v13 = vrot.slane %v6641_v25, 9  ;;  %v6642_v48 = vld [vmem:[%s8085_s11 + $0x9c] sm:$0xe]  ;;  %v6653_v22 = vrot.slane %v8618_v63, 9  ;;  %v6668_v15 = vcombine.low %v2923_v0, %v2926_v61  ;;  %v6654_v32 = vrot.slane %v8627_v40, 9 }
  0xb0   : > { %v2964_v25 = vrot.slane %v8347_v26, 5  ;;  %v2967_v18 = vrot.slane %v8356_v44, 5  ;;  %v6658_v63 = vrot.slane %v6642_v48, 9  ;;  %v2974_v17 = vrot.slane %v8387_v41, 5  ;;  %v6644_v36 = vld [vmem:[%s8085_s11 + $0xb4] sm:$0xe] }
  0xb1   : > { %7328 = vmatmul.mubr.msk.bf16.gmra.mrb[4].mxu1 %vm773_vm3, %v6406_v10  ;;  %v6409_v10 = vcombine.low %v7973_v27, %v8632_v53  ;;  %v7977_v27 = vld [vmem:[%s8085_s11 + $0x68] sm:$0x1]  ;;  %v2978_v40 = vrot.slane %v8417_v47, 5 }
  0xb2   : > { %7331 = vmatprep.mubr.msk.bf16.mxu1 %vm773_vm3, %v6407_v7  ;;  %v2933_v7 = vsel %vm8504_vm7, %v2931_v16, %v2932_v29  ;;  %v2939_v30 = vrot.slane %v7977_v27, 5  ;;  %v6643_v16 = vld [vmem:[%s8085_s11 + $0xa8] sm:$0xe]  ;;  %v2938_v29 = vrot.slane %v2936_v28, 4  ;;  %v2971_v27 = vrot.slane %v8381_v35, 5 }
  0xb3   : > { %7464 = vmatmul.mubr.msk.bf16.gmra.mrb[4].mxu0 %vm773_vm3, %v6666_v31  ;;  %v6669_v53 = vcombine.low %v2930_v21, %v2933_v7  ;;  %v2943_v31 = vrot.slane %v8254_v39, 5  ;;  %v8667_v0 = vsel %vm8504_vm7, %v6657_v13, %v2964_v25  ;;  %v2966_v26 = vrot.slane %v2964_v25, 4  ;;  %v6645_v13 = vld [vmem:[%s8085_s11 + $0xc0] sm:$0xe] }
  0xb4   : > { %7467 = vmatprep.mubr.msk.bf16.mxu0 %vm773_vm3, %v6667_v54  ;;  %v8671_v44 = vsel %vm8504_vm7, %v6658_v63, %v2971_v27  ;;  %v2973_v54 = vrot.slane %v2971_v27, 4  ;;  %v6659_v61 = vrot.slane %v6643_v16, 9  ;;  %v2946_v35 = vrot.slane %v8259_v9, 5 }
  0xb5   : > { %v8677_v41 = vsel %vm8504_vm7, %v2966_v26, %v2967_v18  ;;  %v2981_v39 = vrot.slane %v8420_v56, 5  ;;  %v6660_v21 = vrot.slane %v6644_v36, 9  ;;  %v2980_v47 = vrot.slane %v2978_v40, 4 }
  0xb6   : > { %v6674_v48 = vcombine.low %v8667_v0, %v8677_v41  ;;  %v8686_v7 = vsel %vm8504_vm7, %v2973_v54, %v2974_v17  ;;  %v8690_v9 = vsel %vm8504_vm7, %v6659_v61, %v2978_v40  ;;  %v2945_v18 = vrot.slane %v2943_v31, 4 }
  0xb7   : > { %v6675_v56 = vcombine.low %v8671_v44, %v8686_v7  ;;  %v2988_v36 = vrot.slane %v8454_v11, 5  ;;  %v8699_v25 = vsel %vm8504_vm7, %v2980_v47, %v2981_v39  ;;  %v6661_v17 = vrot.slane %v6645_v13, 9  ;;  %v6639_v44 = vld [vmem:[%s8085_s11 + $0x78] sm:$0xe] }
  0xb8   : > { %v2992_v16 = vrot.slane %v8484_v38, 5  ;;  %v2995_v63 = vrot.slane %v8489_v43, 5  ;;  %v2940_v38 = vsel %vm8504_vm7, %v2938_v29, %v2939_v30  ;;  %v2950_v43 = vrot.slane %v8291_v52, 5  ;;  %v6640_v30 = vld [vmem:[%s8085_s11 + $0x84] sm:$0xe] }
  0xb9   : > { %7332 = vmatmul.mubr.msk.bf16.gmra.mrb[8].mxu1 %vm773_vm3, %v6408_v37  ;;  %v2985_v37 = vrot.slane %v8451_v4, 5  ;;  %v6676_v4 = vcombine.low %v8690_v9, %v8699_v25  ;;  %v2947_v26 = vsel %vm8504_vm7, %v2945_v18, %v2946_v35  ;;  %v2957_v54 = vrot.slane %v8319_v34, 5  ;;  %v8753_v18 = vld [vmem:[%s8085_s11 + $0x70] sm:$0xf] }
  0xba   : > { %7335 = vmatprep.mubr.msk.bf16.mxu1 %vm773_vm3, %v6409_v10  ;;  %v2937_v10 = vsel %vm8504_vm7, %v6653_v22, %v2936_v28  ;;  %v2994_v28 = vrot.slane %v2992_v16, 4  ;;  %v2944_v22 = vsel %vm8504_vm7, %v6654_v32, %v2943_v31  ;;  %v10670_v34 = vcombine.low %v8638_v14, %v8641_v62  ;;  %v7979_v14 = vld [vmem:[%s8085_s11 + $0x6c] sm:$0xf] }
  0xbb   : > { %7468 = vmatmul.mubr.msk.bf16.gmra.mrb[8].mxu0 %vm773_vm3, %v6668_v15  ;;  %v8710_v11 = vsel %vm8504_vm7, %v6660_v21, %v2985_v37  ;;  %v2987_v27 = vrot.slane %v2985_v37, 4  ;;  %v8718_v15 = vsel %vm8504_vm7, %v6661_v17, %v2992_v16  ;;  %v6670_v32 = vcombine.low %v2937_v10, %v2940_v38  ;;  %v7982_v38 = vld [vmem:[%s8085_s11 + $0x14] sm:$0x1] }
  0xbc   : > { %7471 = vmatprep.mubr.msk.bf16.mxu0 %vm773_vm3, %v6669_v53  ;;  %v8735_v29 = vsel %vm8504_vm7, %v2994_v28, %v2995_v63  ;;  %v6671_v61 = vcombine.low %v2944_v22, %v2947_v26  ;;  %v6655_v40 = vrot.slane %v6639_v44, 9  ;;  %v2952_v35 = vrot.slane %v2950_v43, 4  ;;  %v1282_v22 = vld [vmem:[%s8085_s11 + $0x24] sm:$0xe] }
  0xbd   : > { %v8728_v53 = vsel %vm8504_vm7, %v2987_v27, %v2988_v36  ;;  %v6678_v31 = vcombine.low %v8718_v15, %v8735_v29  ;;  %v2953_v39 = vrot.slane %v8299_v3, 5  ;;  %v10671_v21 = vcombine.low %v8651_v20, %v8242_v42  ;;  %v1279_v27 = vld [vmem:[%s8085_s11] sm:$0xe]  ;;  %v1289_v29 = vld [vmem:[%s8085_s11 + $0x78] sm:$0xe] }
  0xbe   : > { %v6677_v52 = vcombine.low %v8710_v11, %v8728_v53  ;;  %v6656_v13 = vrot.slane %v6640_v30, 9  ;;  %v2959_v7 = vrot.slane %v2957_v54, 4  ;;  %v2960_v47 = vrot.slane %v8325_v46, 5  ;;  %v7985_v11 = vld [vmem:[%s8085_s11 + $0x38] sm:$0x1] }
  0xbf   : > { %v6412_v37 = vcombine.low %v7979_v14, %v8753_v18  ;;  %v2951_v3 = vsel %vm8504_vm7, %v6655_v40, %v2950_v43  ;;  %v2954_v42 = vsel %vm8504_vm7, %v2952_v35, %v2953_v39  ;;  %v6413_v20 = vcombine.low %v8303_v6, %v8306_v12  ;;  %v10672_v14 = vld [vmem:[#allocation8_spill] sm:$0xff] }
  0xc0   : > { %v2958_v46 = vsel %vm8504_vm7, %v6656_v13, %v2957_v54  ;;  %v2961_v36 = vsel %vm8504_vm7, %v2959_v7, %v2960_v47  ;;  %v6672_v17 = vcombine.low %v2951_v3, %v2954_v42  ;;  %v6414_v6 = vcombine.low %v8328_v51, %v8335_v1  ;;  %v1280_v1 = vld [vmem:[%s8085_s11 + $0xc] sm:$0xe]  ;;  %v1283_v54 = vld [vmem:[%s8085_s11 + $0x30] sm:$0xe]  ;;  %v10673_v42 = vld [vmem:[#allocation6_spill] sm:$0xff] }
  0xc1   : > { %7336 = vmatmul.mubr.msk.bf16.gmra.mrb[12].mxu1 %vm773_vm3, %v10670_v34  ;;  %v6673_v16 = vcombine.low %v2958_v46, %v2961_v36  ;;  %v6415_v12 = vcombine.low %v8359_v45, %v8366_v57  ;;  %v1332_v63 = vrot.slane %v8512_v23, 5  ;;  %v1339_v10 = vrot.slane %v8547_v60, 5  ;;  %v1281_v23 = vld [vmem:[%s8085_s11 + $0x18] sm:$0xe]  ;;  %v7981_v60 = vld [vmem:[%s8085_s11 + $0x8] sm:$0x1] }
  0xc2   : > { %7339 = vmatprep.mubr.msk.bf16.mxu1 %vm773_vm3, %v10671_v21  ;;  %v6416_v51 = vcombine.low %v8392_v50, %v8395_v55  ;;  %v1346_v45 = vrot.slane %v8555_v19, 5  ;;  %v6417_v57 = vcombine.low %v8423_v59, %v8427_v5  ;;  %v1335_v0 = vrot.slane %v7981_v60, 5  ;;  %v7983_v19 = vld [vmem:[%s8085_s11 + $0x20] sm:$0x1]  ;;  %v1284_v21 = vld [vmem:[%s8085_s11 + $0x3c] sm:$0xe] }
  0xc3   : > { %7472 = vmatmul.mubr.msk.bf16.gmra.mrb[12].mxu0 %vm773_vm3, %v6670_v32  ;;  %v6435_v41 = vrot.slane %v1279_v27, 9  ;;  %v1342_v43 = vrot.slane %v7982_v38, 5  ;;  %v6436_v28 = vrot.slane %v1280_v1, 9  ;;  %v6437_v50 = vrot.slane %v1281_v23, 9  ;;  %v1286_v46 = vld [vmem:[%s8085_s11 + $0x54] sm:$0xe] }
  0xc4   : > { %7475 = vmatprep.mubr.msk.bf16.mxu0 %vm773_vm3, %v6671_v61  ;;  %v1348_v26 = vrot.slane %v1346_v45, 4  ;;  %v1349_v44 = vrot.slane %v7983_v19, 5  ;;  %v1353_v59 = vrot.slane %v8590_v8, 5  ;;  %v1360_v30 = vrot.slane %v8601_v49, 5  ;;  %v7984_v49 = vld [vmem:[%s8085_s11 + $0x2c] sm:$0x1] }
  0xc5   : > { %v6418_v32 = vcombine.low %v8458_v24, %v8464_v33  ;;  %v1333_v34 = vsel %vm8504_vm7, %v6435_v41, %v1332_v63  ;;  %v6438_v40 = vrot.slane %v1282_v22, 9  ;;  %v8812_v8 = vsel %vm8504_vm7, %v6436_v28, %v1339_v10  ;;  %v7918_v27 = vld [vmem:[%s8085_s11 + $0x18] sm:$0xff]   ;;  %v7987_v1 = vld [vmem:[%s8085_s11 + $0x44] sm:$0x1]  ;;  %v1288_v22 = vld [vmem:[%s8085_s11 + $0x6c] sm:$0xe] }
  0xc6   : > { %v1356_v35 = vrot.slane %v7984_v49, 5  ;;  %v6439_v39 = vrot.slane %v1283_v54, 9  ;;  %v8825_v9 = vsel %vm8504_vm7, %v6437_v50, %v1346_v45  ;;  %v8829_v25 = vsel %vm8504_vm7, %v1348_v26, %v1349_v44 }
  0xc7   : > { %v1367_v13 = vrot.slane %v8614_v58, 5  ;;  %v1362_v47 = vrot.slane %v1360_v30, 4  ;;  %v1363_v53 = vrot.slane %v7985_v11, 5  ;;  %v8844_v58 = vsel %vm8504_vm7, %v6438_v40, %v1353_v59 }
  0xc8   : > { %v1381_v36 = vrot.slane %v8641_v62, 5  ;;  %v1370_v45 = vrot.slane %v7987_v1, 5  ;;  %v1395_v50 = vrot.slane %v8753_v18, 5 }
  0xc9   : > { %7340 = vmatmul.mubr.msk.bf16.gmra.mrb[16].mxu1 %vm773_vm3, %v6412_v37  ;;  %v1374_v37 = vrot.slane %v10672_v14, 5  ;;  %v8866_v23 = vsel %vm8504_vm7, %v1362_v47, %v1363_v53  ;;  %v7993_v47 = vld [vmem:[%s8085_s11 + $0x74] sm:$0x1]  ;;  %v1291_v53 = vld [vmem:[%s8085_s11 + $0x90] sm:$0xe] }
  0xca   : > { %7343 = vmatprep.mubr.msk.bf16.mxu1 %vm773_vm3, %v6413_v20  ;;  %v8840_v20 = vsel %vm822_vm0, %v10673_v42, 0  ;;  %v1383_v38 = vrot.slane %v1381_v36, 4  ;;  %v1398_v11 = vrot.slane %v7993_v47, 5  ;;  %v7994_v42 = vld [vmem:[%s8085_s11 + $0x80] sm:$0x1] }
  0xcb   : > { %7476 = vmatmul.mubr.msk.bf16.gmra.mrb[16].mxu0 %vm773_vm3, %v6672_v17  ;;  %v6454_v17 = vcombine.low %v8825_v9, %v8829_v25  ;;  %v1376_v60 = vrot.slane %v1374_v37, 4 }
  0xcc   : > { %7479 = vmatprep.mubr.msk.bf16.mxu0 %vm773_vm3, %v6673_v16  ;;  %v8852_v16 = vsel %vm8504_vm7, %v6439_v39, %v1360_v30  ;;  %v6444_v39 = vrot.slane %v1288_v22, 9 }
  0xcd   : > { %v6456_v18 = vcombine.low %v8852_v16, %v8866_v23  ;;  %v9048_v16 = vld [vmem:[%s8085_s11 + $0x2c] sm:$0x1] }
  0xce   : > { %v8953_v9 = vsel %vm8504_vm7, %v6444_v39, %v1395_v50 }
  0xd1   : > { %7344 = vmatmul.mubr.msk.bf16.gmra.mrb[20].mxu1 %vm773_vm3, %v6414_v6  ;;  %v6440_v6 = vrot.slane %v1284_v21, 9 }
  0xd2   : > { %7347 = vmatprep.mubr.msk.bf16.mxu1 %vm773_vm3, %v6415_v12  ;;  %v1287_v12 = vld [vmem:[%s8085_s11 + $0x60] sm:$0xe] }
  0xd3   : > { %7480 = vmatmul.mubr.msk.bf16.gmra.mrb[20].mxu0 %vm773_vm3, %v6674_v48  ;;  %v1334_v48 = vrot.slane %v1332_v63, 4  ;;  %v7986_v63 = vld [vmem:[%s8085_s11 + $0x64] sm:$0xf]  ;;  %v8880_v19 = vsel %vm8504_vm7, %v6440_v6, %v1367_v13  ;;  %v8926_v6 = vld [vmem:[%s10630_s2] sm:$0x3] }
  0xd4   : > { %7483 = vmatprep.mubr.msk.bf16.mxu0 %vm773_vm3, %v6675_v56  ;;  %v1341_v56 = vrot.slane %v1339_v10, 4  ;;  %v1388_v10 = vrot.slane %v7986_v63, 5 }
  0xd5   : > { %v1336_v61 = vsel %vm8504_vm7, %v1334_v48, %v1335_v0  ;;  %v7988_v0 = vld [vmem:[%s8085_s11 + $0x50] sm:$0x1]  ;;  %v6442_v48 = vrot.slane %v1286_v46, 9  ;;  %v1405_v46 = vrot.slane %v7994_v42, 5  ;;  %v10675_v42 = vld [vmem:[#allocation3_spill] sm:$0xff] }
  0xd6   : > { %v8816_v24 = vsel %vm8504_vm7, %v1341_v56, %v1342_v43  ;;  %v6452_v7 = vcombine.low %v1333_v34, %v1336_v61  ;;  %v1377_v41 = vrot.slane %v7988_v0, 5  ;;  %v7989_v43 = vld [vmem:[%s8085_s11 + $0x5c] sm:$0x1]  ;;  %v6443_v56 = vrot.slane %v1287_v12, 9  ;;  %v7992_v34 = vld [vmem:[%s8085_s11 + $0x88] sm:$0xf] }
  0xd7   : > { %v6453_v3 = vcombine.low %v8812_v8, %v8816_v24  ;;  %v1384_v28 = vrot.slane %v7989_v43, 5  ;;  %v1390_v44 = vrot.slane %v1388_v10, 4  ;;  %v1409_v61 = vrot.slane %v7992_v34, 5  ;;  %v6760_v0 = vld [vmem:[%s8085_s11 + $0x18] sm:$0xf] }
  0xd8   : > { %v8900_v49 = vsel %vm8504_vm7, %v1376_v60, %v1377_v41  ;;  %v8960_v41 = vld [vmem:[%s8085_s11 + $0x1c] sm:$0xf]  ;;  %v3702_v34 = vshll.u32 %v6760_v0, 16 }
  0xd9   : > { %7348 = vmatmul.mubr.msk.bf16.gmra.mrb[24].mxu1 %vm773_vm3, %v6416_v51  ;;  %v1369_v51 = vrot.slane %v1367_v13, 4  ;;  %v8909_v21 = vsel %vm8504_vm7, %v1383_v38, %v1384_v28  ;;  %v8913_v13 = vsel %vm8504_vm7, %v6443_v56, %v1388_v10  ;;  %v1411_v63 = vrot.slane %v1409_v61, 4  ;;  %v7995_v10 = vld [vmem:[%s8085_s11 + $0x8c] sm:$0x1]  ;;  %v7997_v28 = vld [vmem:[%s8085_s11 + $0x98] sm:$0x1] }
  0xda   : > { %7351 = vmatprep.mubr.msk.bf16.mxu1 %vm773_vm3, %v6417_v57  ;;  %v1419_v56 = vrot.slane %v7997_v28, 5  ;;  %v3712_v39 = vshrl.u32 %v8960_v41, 16 }
  0xdb   : > { %7484 = vmatmul.mubr.msk.bf16.gmra.mrb[24].mxu0 %vm773_vm3, %v6676_v4  ;;  %v1355_v4 = vrot.slane %v1353_v59, 4  ;;  %v7990_v59 = vld [vmem:[%s8085_s11 + $0x68] sm:$0x1]  ;;  %v8888_v15 = vsel %vm8504_vm7, %v1369_v51, %v1370_v45  ;;  %v7996_v51 = vld [vmem:[%s8085_s11 + $0x94] sm:$0xf] }
  0xdc   : > { %7487 = vmatprep.mubr.msk.bf16.mxu0 %vm773_vm3, %v6677_v52  ;;  %v1285_v52 = vld [vmem:[%s8085_s11 + $0x48] sm:$0xe]  ;;  %v1391_v54 = vrot.slane %v7990_v59, 5  ;;  %v1416_v1 = vrot.slane %v7996_v51, 5  ;;  %v1292_v45 = vld [vmem:[%s8085_s11 + $0x9c] sm:$0xe]  ;;  %v6457_v8 = vcombine.low %v8880_v19, %v8888_v15 }
  0xdd   : > { %v8860_v62 = vsel %vm8504_vm7, %v1355_v4, %v1356_v35  ;;  %v6441_v57 = vrot.slane %v1285_v52, 9  ;;  %v8904_v35 = vsel %vm8504_vm7, %v6442_v48, %v1381_v36  ;;  %v7919_v4 = vld [vmem:[%s8085_s11 + $0x24] sm:$0xff]   ;;  %v7920_v52 = vld [vmem:[%s8085_s11 + $0x30] sm:$0xff]   ;;  %v6448_v22 = vrot.slane %v1292_v45, 9 }
  0xde   : > { %v6455_v26 = vcombine.low %v8844_v58, %v8860_v62  ;;  %v8920_v14 = vsel %vm8504_vm7, %v1390_v44, %v1391_v54  ;;  %v8965_v48 = vld [vmem:[%s10629_s1 + $0x10] sm:$0x3]  ;;  %v8981_v44 = vld [vmem:[%s8085_s11 + $0x28] sm:$0xf]  ;;  %v9037_v58 = vld [vmem:[%s8085_s11 + $0xb4] sm:$0xe] }
  0xdf   : > { %v8896_v40 = vsel %vm8504_vm7, %v6441_v57, %v1374_v37  ;;  %v6445_v37 = vrot.slane %v1289_v29, 9  ;;  %v10674_v57 = vld [vmem:[#allocation7_spill] sm:$0xff]  ;;  %v1418_v29 = vrot.slane %v1416_v1, 4  ;;  %v3732_v47 = vshll.u32 %v8981_v44, 16  ;;  %v6766_v51 = vld [vmem:[%s8085_s11 + $0x30] sm:$0xf] }
  0xe0   : > { %v4181_v60 = vsel %vm822_vm0, %v10674_v57, 0  ;;  %v6458_v24 = vcombine.low %v8896_v40, %v8900_v49  ;;  %v3714_v57 = vrot.slane %v3712_v39, 4  ;;  %v3747_v23 = vshrl.u32 %v6766_v51, 16 }
  0xe1   : > { %7352 = vmatmul.mubr.msk.bf16.gmra.mrb[28].mxu1 %vm773_vm3, %v6418_v32  ;;  %v1290_v32 = vld [vmem:[%s8085_s11 + $0x84] sm:$0xe]  ;;  %v9044_v28 = vrot.slane %v3732_v47, 5  ;;  %v6450_v39 = vrot.slane %v9037_v58, 9 }
  0xe2   : > { %7357 = vmatprep.mubr.msk.bf16.mxu1 %vm773_vm3, %v6452_v7  ;;  %v1397_v7 = vrot.slane %v1395_v50, 4  ;;  %v6446_v36 = vrot.slane %v1290_v32, 9  ;;  %v6763_v50 = vld [vmem:[%s8085_s11 + $0x24] sm:$0xf]  ;;  %v3699_v32 = vshrl.u32 %v6760_v0, 16 }
  0xe3   : > { %7488 = vmatmul.mubr.msk.bf16.gmra.mrb[28].mxu0 %vm773_vm3, %v6678_v31  ;;  %v7991_v31 = vld [vmem:[%s8085_s11 + $0x7c] sm:$0xf] }
  0xe4   : > { %7493 = vmatprep.mubr.msk.bf16.mxu0 %vm773_vm3, %v7918_v27  ;;  %v1402_v30 = vrot.slane %v7991_v31, 5  ;;  %v1412_v27 = vrot.slane %v7995_v10, 5  ;;  %v8957_v25 = vsel %vm8504_vm7, %v1397_v7, %v1398_v11  ;;  %v8976_v43 = vsel %vm8504_vm7, %v6446_v36, %v1409_v61  ;;  %v7921_v11 = vld [vmem:[%s8085_s11 + $0x3c] sm:$0xff]   ;;  %v7922_v36 = vld [vmem:[%s8085_s11 + $0x48] sm:$0xff]  }
  0xe5   : > { %v1423_v31 = vrot.slane %v8395_v55, 5  ;;  %v3708_v61 = vshll.u32 %v8960_v41, 16  ;;  %v3726_v7 = vshll.u32 %v6763_v50, 16  ;;  %v3736_v55 = vshrl.u32 %v8981_v44, 16 }
  0xe6   : > { %v1404_v12 = vrot.slane %v1402_v30, 4  ;;  %v8972_v38 = vsel %vm8504_vm7, %v6445_v37, %v1402_v30  ;;  %v8990_v54 = vsel %vm8504_vm7, %v1411_v63, %v1412_v27  ;;  %v8994_v30 = vld [vmem:[%s8085_s11 + $0xa8] sm:$0xe]  ;;  %v9021_v63 = vsel %vm8504_vm7, %v1418_v29, %v1419_v56 }
  0xe7   : > { %v9025_v10 = vsel %vm8504_vm7, %v6448_v22, %v1423_v31  ;;  %v6449_v27 = vrot.slane %v8994_v30, 9  ;;  %v3701_v62 = vrot.slane %v3699_v32, 4  ;;  %v9039_v45 = vrot.slane %v3708_v61, 5 }
  0xe8   : > { %v8986_v59 = vsel %vm8504_vm7, %v1404_v12, %v1405_v46  ;;  %v1426_v46 = vrot.slane %v10675_v42, 5  ;;  %v3738_v56 = vrot.slane %v3736_v55, 4  ;;  %v1425_v30 = vrot.slane %v1423_v31, 4  ;;  %v6769_v55 = vld [vmem:[%s8085_s11 + $0x3c] sm:$0xf] }
  0xe9   : > { %7358 = vmatmul.mubr.msk.bf16.vlgmr.msra.gmra.mrb[0].mxu1 %vm773_vm3, %v6453_v3  ;;  %v6459_v3 = vcombine.low %v8904_v35, %v8909_v21  ;;  %v1430_v32 = vrot.slane %v8427_v5, 5  ;;  %v3715_v42 = vor.u32 %v3714_v57, %v9039_v45  ;;  %v3742_v31 = vshll.u32 %v9048_v16, 16  ;;  %v9066_v5 = vld [vmem:[%s8085_s11 + $0x38] sm:$0x1] }
  0xea   : > { %7390 = vmatpush3.bf16.msra.mxu1 %v8840_v20  ;;  %7361 = vmatprep.mubr.msk.bf16.mxu1 %vm773_vm3, %v6454_v17  ;;  %v6460_v20 = vcombine.low %v8913_v13, %v8920_v14  ;;  %v6447_v17 = vrot.slane %v1291_v53, 9  ;;  %v6461_v53 = vcombine.low %v8953_v9, %v8957_v25  ;;  %10677 = vst [vmem:[#allocation8_spill] sm:$0xff] %v9066_v5  ;;  %v10678_v57 = vld [vmem:[#allocation5_spill] sm:$0xff]  ;;  %v9154_v13 = vsel %vm822_vm0, %v8965_v48, 0 }
  0xeb   : > { %7892 = vmatprep.subr.msk.bf16.mxu1 %vm822_vm0, %v8926_v6  ;;  %7494 = vmatmul.mubr.msk.bf16.vlgmr.msra.gmra.mrb[0].mxu0 %vm773_vm3, %v7919_v4  ;;  %v3723_v4 = vshrl.u32 %v6763_v50, 16  ;;  %v9086_v19 = vsel %vm8504_vm7, %v6449_v27, %v1430_v32  ;;  %v1432_v15 = vrot.slane %v1430_v32, 4  ;;  %v9097_v32 = vld [vmem:[%s8085_s11 + $0x44] sm:$0x1]  ;;  %v9158_v14 = vsel %vm822_vm0, %v8926_v6, 0 }
  0xec   : > { %7526 = vmatpush3.bf16.msra.mxu0 %v4181_v60  ;;  %7497 = vmatprep.mubr.msk.bf16.mxu0 %vm773_vm3, %v7920_v52  ;;  %v6462_v52 = vcombine.low %v8972_v38, %v8986_v59  ;;  %v9009_v37 = vsel %vm8504_vm7, %v6447_v17, %v1416_v1  ;;  %v9030_v1 = vld [vmem:[%s8085_s11 + $0x34] sm:$0xf]  ;;  %v9042_v60 = vld [vmem:[%s8085_s11 + $0x20] sm:$0x1]  ;;  %v3728_v17 = vrot.slane %v3726_v7, 5  ;;  %10680 = vst [vmem:[#allocation7_spill] sm:$0xff] %v9097_v32 }
  0xed   : > { %7891 = vmatprep.subr.msk.bf16.mxu0 %vm822_vm0, %v8965_v48  ;;  %v3725_v0 = vrot.slane %v3723_v4, 4  ;;  %v3756_v22 = vshll.u32 %v9030_v1, 16  ;;  %v3760_v50 = vshrl.u32 %v9030_v1, 16  ;;  %v1437_v4 = vrot.slane %v8464_v33, 5  ;;  %v6784_v12 = vld [vmem:[%s8085_s11 + $0x78] sm:$0xf] }
  0xee   : > { %v3718_v47 = vshll.u32 %v9042_v60, 16  ;;  %v9228_v38 = vld [vmem:[%s8085_s11 + $0x5c] sm:$0x1] }
  0xef   : > { %v9068_v29 = vrot.slane %v3756_v22, 5  ;;  %v3762_v33 = vrot.slane %v3760_v50, 4  ;;  %v3716_v22 = vrot.slane %v3715_v42, 4  ;;  %v3744_v50 = vrot.slane %v3742_v31, 5  ;;  %10688 = vst [vmem:[#allocation11_spill] sm:$0xff] %v9228_v38 }
  0xf1   : > { %7362 = vmatmul.mubr.msk.bf16.gmra.mrb[4].mxu1 %vm773_vm3, %v6455_v26  ;;  %v3704_v26 = vrot.slane %v3702_v34, 5  ;;  %v10676_v34 = vld [vmem:[#allocation4_spill] sm:$0xff]  ;;  %v3763_v27 = vor.u32 %v3762_v33, %v9068_v29 }
  0xf2   : > { %7365 = vmatprep.mubr.msk.bf16.mxu1 %vm773_vm3, %v6456_v18  ;;  %v3750_v18 = vshll.u32 %v6766_v51, 16  ;;  %v1433_v61 = vrot.slane %v10676_v34, 5  ;;  %v3739_v51 = vor.u32 %v3738_v56, %v9044_v28  ;;  %v3749_v34 = vrot.slane %v3747_v23, 4 }
  0xf3   : > { %7498 = vmatmul.mubr.msk.bf16.gmra.mrb[4].mxu0 %vm773_vm3, %v7921_v11  ;;  %v3705_v7 = vor.u32 %v3704_v26, %v3701_v62  ;;  %v7923_v11 = vld [vmem:[%s8085_s11 + $0x54] sm:$0xff]   ;;  %v7924_v62 = vld [vmem:[%s8085_s11 + $0x60] sm:$0xff]   ;;  %v9077_v26 = vsel %vm8504_vm7, %v1425_v30, %v1426_v46  ;;  %v3774_v56 = vshll.u32 %v6769_v55, 16  ;;  %v3720_v23 = vrot.slane %v3718_v47, 5 }
  0xf4   : > { %7501 = vmatprep.mubr.msk.bf16.mxu0 %vm773_vm3, %v7922_v36  ;;  %v3729_v36 = vor.u32 %v3728_v17, %v3725_v0  ;;  %v3752_v58 = vrot.slane %v3750_v18, 5  ;;  %v1440_v0 = vrot.slane %v10678_v57, 5  ;;  %v3771_v17 = vshrl.u32 %v6769_v55, 16  ;;  %v9089_v18 = vld [vmem:[%s8085_s11 + $0x40] sm:$0xf] }
  0xf5   : > { %10679 = vst [vmem:[#allocation6_spill] sm:$0xff] %v9089_v18  ;;  %v3706_v46 = vrot.slane %v3705_v7, 4  ;;  %v3766_v30 = vshll.u32 %v9066_v5, 16  ;;  %v6772_v55 = vld [vmem:[%s8085_s11 + $0x48] sm:$0xf]  ;;  %v3740_v49 = vrot.slane %v3739_v51, 4  ;;  %v3721_v57 = vsel %vm8103_vm4, %v3716_v22, %v3720_v23 }
  0xf6   : > { %v3730_v40 = vrot.slane %v3729_v36, 4  ;;  %v3773_v47 = vrot.slane %v3771_v17, 4  ;;  %v3776_v7 = vrot.slane %v3774_v56, 5  ;;  %v3780_v42 = vshll.u32 %v9089_v18, 16  ;;  %v7925_v56 = vld [vmem:[%s8085_s11 + $0x6c] sm:$0xff]  }
  0xf7   : > { %v3784_v31 = vshrl.u32 %v9089_v18, 16  ;;  %v9107_v36 = vsel %vm8504_vm7, %v6450_v39, %v1437_v4  ;;  %v3795_v51 = vshrl.u32 %v6772_v55, 16  ;;  %v9118_v17 = vrot.slane %v3766_v30, 5  ;;  %v7927_v30 = vld [vmem:[%s8085_s11 + $0x84] sm:$0xff]  }
  0xf8   : > { %v3735_v39 = vsel %vm8103_vm4, %v3730_v40, %v9044_v28  ;;  %v3777_v23 = vor.u32 %v3776_v7, %v3773_v47  ;;  %v10690_v5 = vcombine.low %v9009_v37, %v9021_v63 }
  0xf9   : > { %7366 = vmatmul.mubr.msk.bf16.gmra.mrb[8].mxu1 %vm773_vm3, %v6457_v8  ;;  %v1439_v8 = vrot.slane %v1437_v4, 4  ;;  %v3745_v4 = vsel %vm8103_vm4, %v3740_v49, %v3744_v50  ;;  %v3786_v28 = vrot.slane %v3784_v31, 4  ;;  %v3797_v21 = vrot.slane %v3795_v51, 4  ;;  %v9186_v31 = vld [vmem:[%s8085_s11 + $0x64] sm:$0xf] }
  0xfa   : > { %7369 = vmatprep.mubr.msk.bf16.mxu1 %vm773_vm3, %v6458_v24  ;;  %v3753_v24 = vor.u32 %v3752_v58, %v3749_v34  ;;  %v3798_v34 = vshll.u32 %v6772_v55, 16  ;;  %v9164_v40 = vcombine.low %v3735_v39, %v3745_v4  ;;  %v9181_v47 = vrot.slane %v3777_v23, 4  ;;  %10684 = vst [vmem:[#allocation5_spill] sm:$0xff] %v9186_v31  ;;  %v6781_v51 = vld [vmem:[%s8085_s11 + $0x6c] sm:$0xf] }
  0xfb   : > { %7502 = vmatmul.mubr.msk.bf16.gmra.mrb[8].mxu0 %vm773_vm3, %v7923_v11  ;;  %v9103_v11 = vsel %vm8504_vm7, %v1432_v15, %v1433_v61  ;;  %v9111_v58 = vsel %vm8504_vm7, %v1439_v8, %v1440_v0  ;;  %v9121_v61 = vld [vmem:[%s8085_s11 + $0x4c] sm:$0xf]  ;;  %v3790_v15 = vshll.u32 %v9097_v32, 16  ;;  %v9137_v8 = vrot.slane %v3763_v27, 4  ;;  %v6778_v27 = vld [vmem:[%s8085_s11 + $0x60] sm:$0xf] }
  0xfc   : > { %7505 = vmatprep.mubr.msk.bf16.mxu0 %vm773_vm3, %v7924_v62  ;;  %v3711_v62 = vsel %vm8103_vm4, %v3706_v46, %v9039_v45  ;;  %10682 = vst [vmem:[#allocation3_spill] sm:$0xff] %v9121_v61  ;;  %v9129_v0 = vrot.slane %v3753_v24, 4  ;;  %v7926_v45 = vld [vmem:[%s8085_s11 + $0x78] sm:$0xff]   ;;  %v9139_v46 = vrot.slane %v3780_v42, 5  ;;  %v3800_v22 = vrot.slane %v3798_v34, 5 }
  0xfd   : > { %v9162_v55 = vcombine.low %v3711_v62, %v3721_v57  ;;  %v9170_v48 = vrot.slane %v3790_v15, 5  ;;  %v9173_v24 = vld [vmem:[%s8085_s11 + $0x58] sm:$0xf]  ;;  %v3808_v42 = vshrl.u32 %v9121_v61, 16  ;;  %v9190_v34 = vld [vmem:[%s8085_s11 + $0x50] sm:$0x1] }
  0xfe   : > { %10683 = vst [vmem:[#allocation4_spill] sm:$0xff] %v9173_v24  ;;  %v3787_v7 = vor.u32 %v3786_v28, %v9139_v46  ;;  %10685 = vst [vmem:[#allocation2_spill] sm:$0xff] %v9190_v34  ;;  %v3801_v62 = vor.u32 %v3800_v22, %v3797_v21  ;;  %v3828_v4 = vshll.u32 %v9173_v24, 16  ;;  %v3832_v15 = vshrl.u32 %v9173_v24, 16  ;;  %v9197_v28 = vld [vmem:[%s8085_s11 + $0x70] sm:$0xf] }
  0xff   : > { %v3846_v23 = vshll.u32 %v6778_v27, 16  ;;  %10686 = vst [vmem:[#allocation9_spill] sm:$0xff] %v9197_v28  ;;  %v3852_v49 = vshll.u32 %v9186_v31, 16  ;;  %v3856_v6 = vshrl.u32 %v9186_v31, 16  ;;  %v3867_v50 = vshrl.u32 %v6781_v51, 16  ;;  %v7928_v22 = vld [vmem:[%s8085_s11 + $0x90] sm:$0xff]  }
 0x100   : > { %v3870_v21 = vshll.u32 %v6781_v51, 16  ;;  %v3814_v35 = vshll.u32 %v9190_v34, 16  ;;  %v3880_v51 = vshrl.u32 %v9197_v28, 16  ;;  %v9224_v24 = vld [vmem:[%s8085_s11 + $0x7c] sm:$0xf] }
 0x101   : > { %7370 = vmatmul.mubr.msk.bf16.gmra.mrb[12].mxu1 %vm773_vm3, %v6459_v3  ;;  %v3804_v3 = vshll.u32 %v9121_v61, 16  ;;  %10687 = vst [vmem:[#allocation10_spill] sm:$0xff] %v9224_v24  ;;  %v9230_v59 = vrot.slane %v3852_v49, 5  ;;  %v9249_v61 = vld [vmem:[%s8085_s11 + $0x74] sm:$0x1]  ;;  %v7929_v32 = vld [vmem:[%s8085_s11 + $0x9c] sm:$0xff]  }
 0x102   : > { %7373 = vmatprep.mubr.msk.bf16.mxu1 %vm773_vm3, %v6460_v20  ;;  %v6775_v20 = vld [vmem:[%s8085_s11 + $0x54] sm:$0xf]  ;;  %v3882_v49 = vrot.slane %v3880_v51, 4 }
 0x103   : > { %7506 = vmatmul.mubr.msk.bf16.gmra.mrb[12].mxu0 %vm773_vm3, %v7925_v56  ;;  %v9192_v57 = vrot.slane %v3804_v3, 5  ;;  %v3819_v56 = vshrl.u32 %v6775_v20, 16  ;;  %v3822_v39 = vshll.u32 %v6775_v20, 16  ;;  %v9211_v20 = vrot.slane %v3787_v7, 4 }
 0x104   : > { %7509 = vmatprep.mubr.msk.bf16.mxu0 %vm773_vm3, %v7926_v45  ;;  %v3843_v45 = vshrl.u32 %v6778_v27, 16  ;;  %v3810_v27 = vrot.slane %v3808_v42, 4  ;;  %v9221_v3 = vrot.slane %v3828_v4, 5  ;;  %v3834_v7 = vrot.slane %v3832_v15, 4 }
 0x105   : > { %v3821_v9 = vrot.slane %v3819_v56, 4  ;;  %v3824_v25 = vrot.slane %v3822_v39, 5  ;;  %v3848_v42 = vrot.slane %v3846_v23, 5  ;;  %v3869_v56 = vrot.slane %v3867_v50, 4 }
 0x106   : > { %v3845_v31 = vrot.slane %v3843_v45, 4  ;;  %v3872_v39 = vrot.slane %v3870_v21, 5  ;;  %v9233_v4 = vrot.slane %v3801_v62, 4  ;;  %v9235_v15 = vrot.slane %v3814_v35, 5  ;;  %v9238_v45 = vld [vmem:[%s8085_s11 + $0x68] sm:$0x1] }
 0x107   : > { %v3891_v23 = vshrl.u32 %v6784_v12, 16  ;;  %v3904_v50 = vshrl.u32 %v9224_v24, 16  ;;  %v6787_v21 = vld [vmem:[%s8085_s11 + $0x84] sm:$0xf]  ;;  %v3825_v34 = vor.u32 %v3824_v25, %v3821_v9  ;;  %v3835_v62 = vor.u32 %v3834_v7, %v9221_v3 }
 0x108   : > { %v3838_v35 = vshll.u32 %v9228_v38, 16  ;;  %v3862_v51 = vshll.u32 %v9238_v45, 16  ;;  %v3873_v18 = vor.u32 %v3872_v39, %v3869_v56  ;;  %v3915_v7 = vshrl.u32 %v6787_v21, 16 }
 0x109   : > { %7374 = vmatmul.mubr.msk.bf16.gmra.mrb[16].mxu1 %vm773_vm3, %v6461_v53  ;;  %v3876_v53 = vshll.u32 %v9197_v28, 16  ;;  %v3893_v9 = vrot.slane %v3891_v23, 4  ;;  %v3918_v38 = vshll.u32 %v6787_v21, 16  ;;  %v3836_v56 = vrot.slane %v3835_v62, 4  ;;  %v9268_v23 = vld [vmem:[%s8085_s11 + $0x80] sm:$0x1] }
 0x10a   : > { %7377 = vmatprep.mubr.msk.bf16.mxu1 %vm773_vm3, %v6462_v52  ;;  %v3858_v52 = vrot.slane %v3856_v6, 4  ;;  %v3900_v6 = vshll.u32 %v9224_v24, 16  ;;  %v10689_v24 = vcombine.low %v8976_v43, %v8990_v54  ;;  %v3906_v43 = vrot.slane %v3904_v50, 4 }
 0x10b   : > { %7510 = vmatmul.mubr.msk.bf16.gmra.mrb[16].mxu0 %vm773_vm3, %v7927_v30  ;;  %v3894_v30 = vshll.u32 %v6784_v12, 16  ;;  %v9240_v28 = vrot.slane %v3876_v53, 5  ;;  %v3849_v12 = vor.u32 %v3848_v42, %v3845_v31  ;;  %v3886_v42 = vshll.u32 %v9249_v61, 16 }
 0x10c   : > { %7513 = vmatprep.mubr.msk.bf16.mxu0 %vm773_vm3, %v7928_v22  ;;  %v3811_v22 = vor.u32 %v3810_v27, %v9192_v57  ;;  %v3859_v53 = vor.u32 %v3858_v52, %v9230_v59  ;;  %v7930_v27 = vld [vmem:[%s8085_s11 + $0xa8] sm:$0xff]   ;;  %v9265_v52 = vrot.slane %v3900_v6, 5  ;;  %v3840_v39 = vrot.slane %v3838_v35, 5 }
 0x10d   : > { %v3896_v25 = vrot.slane %v3894_v30, 5  ;;  %v3883_v31 = vor.u32 %v3882_v49, %v9240_v28  ;;  %v3793_v37 = vsel %vm8103_vm4, %v9211_v20, %v9170_v48  ;;  %v3850_v63 = vrot.slane %v3849_v12, 4  ;;  %v9277_v6 = vld [vmem:[%s8085_s11 + $0x88] sm:$0xf]  ;;  %v9282_v20 = vld [vmem:[%s8085_s11 + $0x8c] sm:$0x1] }
 0x10e   : > { %v3812_v54 = vrot.slane %v3811_v22, 4  ;;  %v3864_v30 = vrot.slane %v3862_v51, 5  ;;  %v3917_v50 = vrot.slane %v3915_v7, 4  ;;  %v3920_v21 = vrot.slane %v3918_v38, 5  ;;  %v7931_v51 = vld [vmem:[%s8085_s11 + $0xb4] sm:$0xff]  }
 0x10f   : > { %v3897_v49 = vor.u32 %v3896_v25, %v3893_v9  ;;  %v3884_v22 = vrot.slane %v3883_v31, 4  ;;  %v3907_v62 = vor.u32 %v3906_v43, %v9265_v52  ;;  %v3910_v48 = vshll.u32 %v9268_v23, 16 }
 0x110   : > { %v3807_v35 = vsel %vm8103_vm4, %v9233_v4, %v9192_v57  ;;  %v3841_v12 = vsel %vm8103_vm4, %v3836_v56, %v3840_v39  ;;  %v3924_v4 = vshll.u32 %v9277_v6, 16  ;;  %v10691_v9 = vcombine.low %v9025_v10, %v9077_v26 }
 0x111   : > { %7378 = vmatmul.mubr.msk.bf16.gmra.mrb[20].mxu1 %vm773_vm3, %v10689_v24  ;;  %v3826_v24 = vrot.slane %v3825_v34, 4  ;;  %v3874_v34 = vrot.slane %v3873_v18, 4  ;;  %v3817_v18 = vsel %vm8103_vm4, %v3812_v54, %v9235_v15  ;;  %v3928_v15 = vshrl.u32 %v9277_v6, 16 }
 0x112   : > { %7381 = vmatprep.mubr.msk.bf16.mxu1 %vm773_vm3, %v10690_v5  ;;  %v3860_v5 = vrot.slane %v3859_v53, 4  ;;  %v6790_v53 = vld [vmem:[%s8085_s11 + $0x90] sm:$0xf]  ;;  %v3921_v7 = vor.u32 %v3920_v21, %v3917_v50  ;;  %v3934_v31 = vshll.u32 %v9282_v20, 16  ;;  %v3908_v26 = vrot.slane %v3907_v62, 4 }
 0x113   : > { %7514 = vmatmul.mubr.msk.bf16.gmra.mrb[20].mxu0 %vm773_vm3, %v7929_v32  ;;  %v3888_v32 = vrot.slane %v3886_v42, 5  ;;  %v3831_v38 = vsel %vm8103_vm4, %v3826_v24, %v9221_v3  ;;  %v7932_v3 = vld [vmem:[%s8085_s11 + $0xc0] sm:$0xff]   ;;  %v3879_v25 = vsel %vm8103_vm4, %v3874_v34, %v9240_v28  ;;  %v10692_v42 = vcombine.low %v9086_v19, %v9103_v11  ;;  %v6796_v50 = vld [vmem:[%s8085_s11 + $0xa8] sm:$0xf]  ;;  %v6797_v21 = vld [vmem:[%s8085_s11 + $0xac] sm:$0xf] }
 0x114   : > { %7517 = vmatprep.mubr.msk.bf16.mxu0 %vm773_vm3, %v7930_v27  ;;  %v3855_v27 = vsel %vm8103_vm4, %v3850_v63, %v9230_v59  ;;  %v3865_v57 = vsel %vm8103_vm4, %v3860_v5, %v3864_v30  ;;  %v3898_v59 = vrot.slane %v3897_v49, 4  ;;  %v3912_v43 = vrot.slane %v3910_v48, 5 }
 0x115   : > { %v3889_v10 = vsel %vm8103_vm4, %v3884_v22, %v3888_v32  ;;  %v3939_v54 = vshrl.u32 %v6790_v53, 16  ;;  %v10693_v28 = vsel %vm8103_vm4, %v9137_v8, %v9118_v17  ;;  %v10694_v24 = vsel %vm8103_vm4, %v9129_v0, %v9068_v29  ;;  %v9344_v17 = vld [vmem:[%s8085_s11 + $0x94] sm:$0xf]  ;;  %v6793_v8 = vld [vmem:[%s8085_s11 + $0x9c] sm:$0xf]  ;;  %v7934_v22 = vld [vmem:[%s8085_s11 + $0xc] sm:$0xff]  }
 0x116   : > { %v9330_v19 = vcombine.low %v10694_v24, %v10693_v28  ;;  %v10695_v11 = vsel %vm8103_vm4, %v9181_v47, %v9139_v46  ;;  %v9339_v39 = vcombine.low %v3807_v35, %v3817_v18  ;;  %v9341_v63 = vcombine.low %v3831_v38, %v3841_v12  ;;  %v6799_v18 = vld [vmem:[%s8085_s11 + $0xb4] sm:$0xf]  ;;  %v9391_v28 = vld [vmem:[%s8085_s11 + $0xa4] sm:$0x1] }
 0x117   : > { %v9337_v56 = vcombine.low %v10695_v11, %v3793_v37  ;;  %v9348_v29 = vcombine.low %v3855_v27, %v3865_v57  ;;  %v9350_v0 = vrot.slane %v3924_v4, 5  ;;  %v3930_v46 = vrot.slane %v3928_v15, 4  ;;  %v9353_v37 = vld [vmem:[%s8085_s11 + $0xa0] sm:$0xf]  ;;  %v7933_v27 = vld [vmem:[%s8085_s11 + $0xcc] sm:$0xff]  }
 0x118   : > { %v3942_v47 = vshll.u32 %v6790_v53, 16  ;;  %v9356_v5 = vcombine.low %v3879_v25, %v3889_v10  ;;  %v3903_v30 = vsel %vm8103_vm4, %v3898_v59, %v9265_v52  ;;  %v9361_v34 = vrot.slane %v3921_v7, 4  ;;  %v9385_v25 = vld [vmem:[%s8085_s11 + $0x98] sm:$0x1] }
 0x119   : > { %7382 = vmatmul.mubr.msk.bf16.gmra.mrb[24].mxu1 %vm773_vm3, %v10691_v9  ;;  %v9363_v49 = vrot.slane %v3934_v31, 5  ;;  %v3913_v32 = vsel %vm8103_vm4, %v3908_v26, %v3912_v43  ;;  %v9370_v62 = vrot.slane %v3939_v54, 4  ;;  %v3948_v48 = vshll.u32 %v9344_v17, 16 }
 0x11a   : > { %7385 = vmatprep.mubr.msk.bf16.mxu1 %vm773_vm3, %v10692_v42  ;;  %v3952_v35 = vshrl.u32 %v9344_v17, 16  ;;  %v3963_v52 = vshrl.u32 %v6793_v8, 16  ;;  %v3966_v38 = vshll.u32 %v6793_v8, 16  ;;  %v3972_v12 = vshll.u32 %v9353_v37, 16  ;;  %v7935_v8 = vld [vmem:[%s8085_s11 + $0x18] sm:$0xff]  }
 0x11b   : > { %7518 = vmatmul.mubr.msk.bf16.gmra.mrb[24].mxu0 %vm773_vm3, %v7931_v51  ;;  %v3976_v53 = vshrl.u32 %v9353_v37, 16  ;;  %v6800_v51 = vld [vmem:[%s8085_s11 + $0xb8] sm:$0xf]  ;;  %v3931_v57 = vor.u32 %v3930_v46, %v9350_v0  ;;  %v3944_v4 = vrot.slane %v3942_v47, 5  ;;  %v3987_v15 = vshrl.u32 %v6796_v50, 16 }
 0x11c   : > { %7521 = vmatprep.mubr.msk.bf16.mxu0 %vm773_vm3, %v7932_v3  ;;  %v3990_v9 = vshll.u32 %v6796_v50, 16  ;;  %v10696_v3 = vcombine.low %v9107_v36, %v9111_v58  ;;  %v3996_v59 = vshll.u32 %v6797_v21, 16  ;;  %v4000_v7 = vshrl.u32 %v6797_v21, 16  ;;  %v6798_v50 = vld [vmem:[%s8085_s11 + $0xb0] sm:$0x1] }
 0x11d   : > { %v4011_v31 = vshrl.u32 %v6799_v18, 16  ;;  %v4014_v42 = vshll.u32 %v6799_v18, 16  ;;  %v9388_v10 = vrot.slane %v3948_v48, 5  ;;  %v3954_v26 = vrot.slane %v3952_v35, 4  ;;  %v6801_v18 = vld [vmem:[%s8085_s11 + $0xbc] sm:$0x1] }
 0x11e   : > { %v4020_v43 = vshll.u32 %v6800_v51, 16  ;;  %v4024_v54 = vshrl.u32 %v6800_v51, 16  ;;  %v3965_v36 = vrot.slane %v3963_v52, 4  ;;  %v3968_v58 = vrot.slane %v3966_v38, 5 }
 0x11f   : > { %v9393_v24 = vrot.slane %v3972_v12, 5  ;;  %v3978_v11 = vrot.slane %v3976_v53, 4  ;;  %v9397_v46 = vcombine.low %v3903_v30, %v3913_v32  ;;  %v3958_v47 = vshll.u32 %v9385_v25, 16  ;;  %v7936_v12 = vld [vmem:[%s8085_s11 + $0x24] sm:$0xff]  }
 0x120   : > { %v3989_v21 = vrot.slane %v3987_v15, 4  ;;  %v9403_v48 = vrot.slane %v3996_v59, 5  ;;  %v4002_v35 = vrot.slane %v4000_v7, 4  ;;  %v4013_v52 = vrot.slane %v4011_v31, 4 }
 0x121   : > { %7386 = vmatmul.mubr.msk.bf16.gmra.mrb[28].mxu1 %vm773_vm3, %v10696_v3  ;;  %v4016_v38 = vrot.slane %v4014_v42, 5  ;;  %v9407_v53 = vrot.slane %v3931_v57, 4  ;;  %v3945_v30 = vor.u32 %v3944_v4, %v9370_v62  ;;  %v9410_v32 = vrot.slane %v4020_v43, 5 }
 0x122   : > { %7391 = vmatprep.mubr.msk.bf16.mxu1 %vm773_vm3, %v7934_v22  ;;  %v3992_v22 = vrot.slane %v3990_v9, 5  ;;  %v4026_v51 = vrot.slane %v4024_v54, 4  ;;  %v3955_v15 = vor.u32 %v3954_v26, %v9388_v10  ;;  %v3969_v9 = vor.u32 %v3968_v58, %v3965_v36  ;;  %v6803_v26 = vld [vmem:[%s8085_s11 + $0xc4] sm:$0xf] }
 0x123   : > { %7522 = vmatmul.mubr.msk.bf16.gmra.mrb[28].mxu0 %vm773_vm3, %v7933_v27  ;;  %v6802_v27 = vld [vmem:[%s8085_s11 + $0xc0] sm:$0xf]  ;;  %v3982_v3 = vshll.u32 %v9391_v28, 16  ;;  %v3927_v57 = vsel %vm8103_vm4, %v9361_v34, %v9350_v0  ;;  %v9420_v59 = vrot.slane %v3958_v47, 5  ;;  %v4006_v4 = vshll.u32 %v6798_v50, 16 }
 0x124   : > { %7527 = vmatprep.mubr.msk.bf16.mxu0 %vm773_vm3, %v9162_v55  ;;  %v3979_v55 = vor.u32 %v3978_v11, %v9393_v24  ;;  %v3993_v62 = vor.u32 %v3992_v22, %v3989_v21  ;;  %v4003_v7 = vor.u32 %v4002_v35, %v9403_v48  ;;  %v4017_v31 = vor.u32 %v4016_v38, %v4013_v52  ;;  %v6805_v22 = vld [vmem:[%s8085_s11 + $0xcc] sm:$0xf]  ;;  %v7937_v38 = vld [vmem:[%s8085_s11 + $0x30] sm:$0xff]  }
 0x125   : > { %v4030_v42 = vshll.u32 %v6801_v18, 16  ;;  %v4035_v43 = vshrl.u32 %v6802_v27, 16  ;;  %v3937_v54 = vsel %vm8103_vm4, %v9407_v53, %v9363_v49  ;;  %v3946_v36 = vrot.slane %v3945_v30, 4  ;;  %v6806_v49 = vld [vmem:[%s8085_s11 + $0xd0] sm:$0xf] }
 0x126   : > { %v4027_v58 = vor.u32 %v4026_v51, %v9410_v32  ;;  %v4038_v11 = vshll.u32 %v6802_v27, 16  ;;  %v3970_v47 = vrot.slane %v3969_v9, 4  ;;  %v3980_v50 = vrot.slane %v3979_v55, 4  ;;  %v6804_v9 = vld [vmem:[%s8085_s11 + $0xc8] sm:$0x1] }
 0x127   : > { %v3984_v21 = vrot.slane %v3982_v3, 5  ;;  %v4008_v35 = vrot.slane %v4006_v4, 5  ;;  %v4044_v18 = vshll.u32 %v6803_v26, 16  ;;  %v4048_v52 = vshrl.u32 %v6803_v26, 16 }
 0x128   : > { %v4004_v53 = vrot.slane %v4003_v7, 4  ;;  %v4018_v30 = vrot.slane %v4017_v31, 4  ;;  %v4032_v51 = vrot.slane %v4030_v42, 5  ;;  %v4037_v27 = vrot.slane %v4035_v43, 4  ;;  %v6938_v43 = vld [vmem:[%s8085_s11 + $0xc] sm:$0xf] }
 0x129   : > { %7392 = vmatmul.mubr.msk.bf16.vlgmr.msra.gmra.mrb[0].mxu1 %vm773_vm3, %v7935_v8  ;;  %v3956_v8 = vrot.slane %v3955_v15, 4  ;;  %v4028_v15 = vrot.slane %v4027_v58, 4  ;;  %v4059_v55 = vshrl.u32 %v6805_v22, 16  ;;  %v4062_v3 = vshll.u32 %v6805_v22, 16  ;;  %v6939_v58 = vld [vmem:[%s8085_s11 + $0x10] sm:$0xf] }
 0x12a   : > { %7594 = vmatpush3.bf16.msra.mxu1 %v9158_v14  ;;  %7395 = vmatprep.mubr.msk.bf16.mxu1 %vm773_vm3, %v7936_v12  ;;  %v3994_v14 = vrot.slane %v3993_v62, 4  ;;  %v7938_v12 = vld [vmem:[%s8085_s11 + $0x3c] sm:$0xff]   ;;  %v4068_v62 = vshll.u32 %v6806_v49, 16  ;;  %v4072_v4 = vshrl.u32 %v6806_v49, 16  ;;  %v3975_v7 = vsel %vm8103_vm4, %v3970_v47, %v9393_v24  ;;  %v6807_v47 = vld [vmem:[%s8085_s11 + $0xd4] sm:$0x1] }
 0x12b   : > { %7528 = vmatmul.mubr.msk.bf16.vlgmr.msra.gmra.mrb[0].mxu0 %vm773_vm3, %v9164_v40  ;;  %v4040_v40 = vrot.slane %v4038_v11, 5  ;;  %v3985_v31 = vsel %vm8103_vm4, %v3980_v50, %v3984_v21  ;;  %v9453_v42 = vrot.slane %v4044_v18, 5  ;;  %v4050_v26 = vrot.slane %v4048_v52, 4 }
 0x12c   : > { %7560 = vmatpush3.bf16.msra.mxu0 %v9154_v13  ;;  %7531 = vmatprep.mubr.msk.bf16.mxu0 %vm773_vm3, %v9330_v19  ;;  %v3951_v13 = vsel %vm8103_vm4, %v3946_v36, %v9388_v10  ;;  %v3961_v19 = vsel %vm8103_vm4, %v3956_v8, %v9420_v59  ;;  %v3999_v10 = vsel %vm8103_vm4, %v3994_v14, %v9403_v48  ;;  %v4054_v36 = vshll.u32 %v6804_v9, 16 }
 0x12d   : > { %v4009_v59 = vsel %vm8103_vm4, %v4004_v53, %v4008_v35  ;;  %v4023_v24 = vsel %vm8103_vm4, %v4018_v30, %v9410_v32  ;;  %v4033_v11 = vsel %vm8103_vm4, %v4028_v15, %v4032_v51  ;;  %v4041_v8 = vor.u32 %v4040_v40, %v4037_v27  ;;  %v6941_v27 = vld [vmem:[%s8085_s11 + $0x18] sm:$0xf] }
 0x12e   : > { %v4061_v50 = vrot.slane %v4059_v55, 4  ;;  %v4064_v48 = vrot.slane %v4062_v3, 5  ;;  %v9470_v21 = vrot.slane %v4068_v62, 5  ;;  %v4074_v22 = vrot.slane %v4072_v4, 4  ;;  %v6942_v3 = vld [vmem:[%s8085_s11 + $0x1c] sm:$0xf] }
 0x12f   : > { %v5231_v14 = vshrl.u32 %v6938_v43, 16  ;;  %v5234_v35 = vshll.u32 %v6938_v43, 16  ;;  %v9479_v32 = vcombine.low %v3927_v57, %v3937_v54  ;;  %v4051_v18 = vor.u32 %v4050_v26, %v9453_v42  ;;  %v6842_v43 = vld [vmem:[%s8085_s11 + $0x24] sm:$0xe] }
 0x130   : > { %v5240_v52 = vshll.u32 %v6939_v58, 16  ;;  %v5244_v49 = vshrl.u32 %v6939_v58, 16  ;;  %v9488_v53 = vcombine.low %v3975_v7, %v3985_v31  ;;  %v9490_v0 = vcombine.low %v3999_v10, %v4009_v59 }
 0x131   : > { %7396 = vmatmul.mubr.msk.bf16.gmra.mrb[4].mxu1 %vm773_vm3, %v7937_v38  ;;  %v7939_v38 = vld [vmem:[%s8085_s11 + $0x48] sm:$0xff]   ;;  %v4078_v34 = vshll.u32 %v6807_v47, 16  ;;  %v9492_v57 = vcombine.low %v4023_v24, %v4033_v11  ;;  %v9494_v54 = vrot.slane %v4041_v8, 4  ;;  %v9496_v30 = vrot.slane %v4054_v36, 5 }
 0x132   : > { %7399 = vmatprep.mubr.msk.bf16.mxu1 %vm773_vm3, %v7938_v12  ;;  %v7940_v12 = vld [vmem:[%s8085_s11 + $0x54] sm:$0xff]   ;;  %v4065_v51 = vor.u32 %v4064_v48, %v4061_v50  ;;  %v4075_v15 = vor.u32 %v4074_v22, %v9470_v21  ;;  %v4442_v9 = vrot.slane %v8960_v41, 5  ;;  %v5233_v40 = vrot.slane %v5231_v14, 4 }
 0x133   : > { %7532 = vmatmul.mubr.msk.bf16.gmra.mrb[4].mxu0 %vm773_vm3, %v9337_v56  ;;  %v9486_v56 = vcombine.low %v3951_v13, %v3961_v19  ;;  %v5236_v55 = vrot.slane %v5234_v35, 5  ;;  %v4052_v13 = vrot.slane %v4051_v18, 4  ;;  %v6940_v19 = vld [vmem:[%s8085_s11 + $0x14] sm:$0x1]  ;;  %v9504_v62 = vrot.slane %v5240_v52, 5 }
 0x134   : > { %7535 = vmatprep.mubr.msk.bf16.mxu0 %vm773_vm3, %v9339_v39  ;;  %v6841_v39 = vld [vmem:[%s8085_s11 + $0x18] sm:$0xe]  ;;  %v5246_v4 = vrot.slane %v5244_v49, 4  ;;  %v4449_v7 = vrot.slane %v8981_v44, 5  ;;  %v4080_v31 = vrot.slane %v4078_v34, 5  ;;  %v5255_v10 = vshrl.u32 %v6941_v27, 16 }
 0x135   : > { %v6857_v26 = vrot.slane %v6841_v39, 9  ;;  %v5258_v59 = vshll.u32 %v6941_v27, 16  ;;  %v4066_v41 = vrot.slane %v4065_v51, 4  ;;  %v4445_v24 = vrot.slane %v9042_v60, 5  ;;  %v7941_v60 = vld [vmem:[%s8085_s11 + $0x60] sm:$0xff]  }
 0x136   : > { %v5264_v36 = vshll.u32 %v6942_v3, 16  ;;  %v5268_v58 = vshrl.u32 %v6942_v3, 16  ;;  %v4076_v11 = vrot.slane %v4075_v15, 4  ;;  %v4444_v8 = vrot.slane %v4442_v9, 4  ;;  %v6943_v18 = vld [vmem:[%s8085_s11 + $0x20] sm:$0x1] }
 0x137   : > { %v5237_v44 = vor.u32 %v5236_v55, %v5233_v40  ;;  %v5250_v47 = vshll.u32 %v6940_v19, 16  ;;  %v5247_v50 = vor.u32 %v5246_v4, %v9504_v62  ;;  %v6858_v48 = vrot.slane %v6842_v43, 9  ;;  %v6944_v34 = vld [vmem:[%s8085_s11 + $0x24] sm:$0xf]  ;;  %v6945_v27 = vld [vmem:[%s8085_s11 + $0x28] sm:$0xf] }
 0x138   : > { %v4451_v22 = vrot.slane %v4449_v7, 4  ;;  %v4452_v14 = vrot.slane %v9048_v16, 5  ;;  %v4047_v35 = vsel %vm8103_vm4, %v9494_v54, %v9453_v42  ;;  %v5257_v52 = vrot.slane %v5255_v10, 4  ;;  %v7943_v10 = vld [vmem:[%s8085_s11 + $0x78] sm:$0xff]  }
 0x139   : > { %7400 = vmatmul.mubr.msk.bf16.gmra.mrb[8].mxu1 %vm773_vm3, %v7939_v38  ;;  %v5260_v49 = vrot.slane %v5258_v59, 5  ;;  %v7942_v38 = vld [vmem:[%s8085_s11 + $0x6c] sm:$0xff]   ;;  %v4071_v16 = vsel %vm8103_vm4, %v4066_v41, %v9470_v21  ;;  %v5270_v42 = vrot.slane %v5268_v58, 4  ;;  %v4081_v54 = vsel %vm8103_vm4, %v4076_v11, %v4080_v31 }
 0x13a   : > { %7403 = vmatprep.mubr.msk.bf16.mxu1 %vm773_vm3, %v7940_v12  ;;  %v9534_v12 = vrot.slane %v5264_v36, 5  ;;  %v9543_v51 = vrot.slane %v5237_v44, 4  ;;  %v9545_v39 = vrot.slane %v5250_v47, 5  ;;  %v6843_v21 = vld [vmem:[%s8085_s11 + $0x30] sm:$0xe]  ;;  %v9549_v15 = vrot.slane %v5247_v50, 4 }
 0x13b   : > { %7536 = vmatmul.mubr.msk.bf16.gmra.mrb[8].mxu0 %vm773_vm3, %v9341_v63  ;;  %v4057_v63 = vsel %vm8103_vm4, %v4052_v13, %v9496_v30  ;;  %v9541_v30 = vsel %vm8504_vm7, %v4444_v8, %v4445_v24  ;;  %v9557_v40 = vsel %vm8504_vm7, %v4451_v22, %v4452_v14  ;;  %v5274_v55 = vshll.u32 %v6943_v18, 16  ;;  %v6947_v36 = vld [vmem:[%s8085_s11 + $0x30] sm:$0xf]  ;;  %v6948_v50 = vld [vmem:[%s8085_s11 + $0x34] sm:$0xf] }
 0x13c   : > { %7539 = vmatprep.mubr.msk.bf16.mxu0 %vm773_vm3, %v9348_v29  ;;  %v9532_v29 = vsel %vm8504_vm7, %v6857_v26, %v4442_v9  ;;  %v9553_v9 = vsel %vm8504_vm7, %v6858_v48, %v4449_v7  ;;  %v5261_v3 = vor.u32 %v5260_v49, %v5257_v52  ;;  %v4456_v13 = vrot.slane %v9030_v1, 5  ;;  %v10697_v44 = vld [vmem:[#allocation8_spill] sm:$0xff]  ;;  %v6950_v48 = vld [vmem:[%s8085_s11 + $0x3c] sm:$0xf]  ;;  %v6946_v52 = vld [vmem:[%s8085_s11 + $0x2c] sm:$0x1] }
 0x13d   : > { %v5279_v19 = vshrl.u32 %v6944_v34, 16  ;;  %v5282_v4 = vshll.u32 %v6944_v34, 16  ;;  %v5271_v31 = vor.u32 %v5270_v42, %v9534_v12  ;;  %v6859_v7 = vrot.slane %v6843_v21, 9 }
 0x13e   : > { %v5288_v26 = vshll.u32 %v6945_v27, 16  ;;  %v5292_v43 = vshrl.u32 %v6945_v27, 16  ;;  %v9564_v59 = vcombine.low %v4047_v35, %v4057_v63  ;;  %v9566_v41 = vcombine.low %v4071_v16, %v4081_v54  ;;  %v7944_v35 = vld [vmem:[%s8085_s11 + $0x84] sm:$0xff]   ;;  %v6844_v16 = vld [vmem:[%s8085_s11 + $0x3c] sm:$0xe] }
 0x13f   : > { %v6874_v1 = vcombine.low %v9532_v29, %v9541_v30  ;;  %v5243_v24 = vsel %vm8103_vm4, %v9543_v51, %v9504_v62  ;;  %v5253_v58 = vsel %vm8103_vm4, %v9549_v15, %v9545_v39  ;;  %v6875_v11 = vcombine.low %v9553_v9, %v9557_v40 }
 0x140   : > { %v5276_v8 = vrot.slane %v5274_v55, 5  ;;  %v4459_v47 = vrot.slane %v10697_v44, 5  ;;  %v5262_v62 = vrot.slane %v5261_v3, 4  ;;  %v5281_v22 = vrot.slane %v5279_v19, 4 }
 0x141   : > { %7404 = vmatmul.mubr.msk.bf16.gmra.mrb[12].mxu1 %vm773_vm3, %v7941_v60  ;;  %v5284_v14 = vrot.slane %v5282_v4, 5  ;;  %v6951_v60 = vld [vmem:[%s8085_s11 + $0x40] sm:$0xf]  ;;  %v5272_v63 = vrot.slane %v5271_v31, 4  ;;  %v9592_v18 = vsel %vm8504_vm7, %v6859_v7, %v4456_v13  ;;  %v9595_v49 = vrot.slane %v5288_v26, 5 }
 0x142   : > { %7407 = vmatprep.mubr.msk.bf16.mxu1 %vm773_vm3, %v7942_v38  ;;  %v5294_v38 = vrot.slane %v5292_v43, 4  ;;  %v5303_v42 = vshrl.u32 %v6947_v36, 16  ;;  %v5306_v34 = vshll.u32 %v6947_v36, 16  ;;  %v5312_v54 = vshll.u32 %v6948_v50, 16  ;;  %v10698_v7 = vld [vmem:[#allocation6_spill] sm:$0xff] }
 0x143   : > { %7540 = vmatmul.mubr.msk.bf16.gmra.mrb[12].mxu0 %vm773_vm3, %v9356_v5  ;;  %v4458_v5 = vrot.slane %v4456_v13, 4  ;;  %v5327_v51 = vshrl.u32 %v6950_v48, 16  ;;  %v5330_v39 = vshll.u32 %v6950_v48, 16  ;;  %v5336_v21 = vshll.u32 %v6951_v60, 16  ;;  %v6949_v43 = vld [vmem:[%s8085_s11 + $0x38] sm:$0x1] }
 0x144   : > { %7543 = vmatprep.mubr.msk.bf16.mxu0 %vm773_vm3, %v9397_v46  ;;  %v5316_v46 = vshrl.u32 %v6948_v50, 16  ;;  %v5340_v27 = vshrl.u32 %v6951_v60, 16  ;;  %v5267_v15 = vsel %vm8103_vm4, %v5262_v62, %v9534_v12  ;;  %v5285_v3 = vor.u32 %v5284_v14, %v5281_v22  ;;  %v7945_v62 = vld [vmem:[%s8085_s11 + $0x90] sm:$0xff]   ;;  %v6952_v60 = vld [vmem:[%s8085_s11 + $0x44] sm:$0x1] }
 0x145   : > { %v9604_v55 = vsel %vm8504_vm7, %v4458_v5, %v4459_v47  ;;  %v5298_v13 = vshll.u32 %v6946_v52, 16  ;;  %v5277_v19 = vsel %vm8103_vm4, %v5272_v63, %v5276_v8  ;;  %v5295_v4 = vor.u32 %v5294_v38, %v9595_v49  ;;  %v6953_v38 = vld [vmem:[%s8085_s11 + $0x48] sm:$0xf] }
 0x146   : > { %v6860_v31 = vrot.slane %v6844_v16, 9  ;;  %v4463_v26 = vrot.slane %v10698_v7, 5  ;;  %v5305_v12 = vrot.slane %v5303_v42, 4  ;;  %v9612_v36 = vrot.slane %v5312_v54, 5  ;;  %v6845_v54 = vld [vmem:[%s8085_s11 + $0x48] sm:$0xe] }
 0x147   : > { %v5318_v44 = vrot.slane %v5316_v46, 4  ;;  %v5329_v47 = vrot.slane %v5327_v51, 4  ;;  %v5332_v50 = vrot.slane %v5330_v39, 5  ;;  %v9616_v8 = vrot.slane %v5336_v21, 5  ;;  %v10700_v46 = vld [vmem:[#allocation3_spill] sm:$0xff] }
 0x148   : > { %v5342_v48 = vrot.slane %v5340_v27, 4  ;;  %v9621_v5 = vcombine.low %v5243_v24, %v5253_v58  ;;  %v9623_v22 = vcombine.low %v5267_v15, %v5277_v19  ;;  %v6876_v14 = vcombine.low %v9592_v18, %v9604_v55  ;;  %v6954_v39 = vld [vmem:[%s8085_s11 + $0x4c] sm:$0xf]  ;;  %v6846_v19 = vld [vmem:[%s8085_s11 + $0x54] sm:$0xe] }
 0x149   : > { %7408 = vmatmul.mubr.msk.bf16.gmra.mrb[16].mxu1 %vm773_vm3, %v7943_v10  ;;  %v5308_v10 = vrot.slane %v5306_v34, 5  ;;  %v9631_v63 = vrot.slane %v5298_v13, 5  ;;  %v9635_v52 = vsel %vm8504_vm7, %v6860_v31, %v4463_v26  ;;  %v5322_v58 = vshll.u32 %v6949_v43, 16  ;;  %v10701_v31 = vld [vmem:[#allocation4_spill] sm:$0xff]  ;;  %v6967_v18 = vld [vmem:[%s8085_s11 + $0x80] sm:$0x1] }
 0x14a   : > { %7411 = vmatprep.mubr.msk.bf16.mxu1 %vm773_vm3, %v7944_v35  ;;  %v7946_v35 = vld [vmem:[%s8085_s11 + $0x9c] sm:$0xff]   ;;  %v4465_v16 = vrot.slane %v4463_v26, 4  ;;  %v5319_v34 = vor.u32 %v5318_v44, %v9612_v36  ;;  %v4470_v51 = vrot.slane %v10700_v46, 5  ;;  %v9643_v21 = vrot.slane %v5295_v4, 4 }
 0x14b   : > { %7544 = vmatmul.mubr.msk.bf16.gmra.mrb[16].mxu0 %vm773_vm3, %v9479_v32  ;;  %v9627_v32 = vrot.slane %v5285_v3, 4  ;;  %v5309_v42 = vor.u32 %v5308_v10, %v5305_v12  ;;  %v5333_v27 = vor.u32 %v5332_v50, %v5329_v47  ;;  %v5343_v15 = vor.u32 %v5342_v48, %v9616_v8 }
 0x14c   : > { %7547 = vmatprep.mubr.msk.bf16.mxu0 %vm773_vm3, %v9486_v56  ;;  %v10699_v56 = vld [vmem:[#allocation7_spill] sm:$0xff]  ;;  %v5346_v3 = vshll.u32 %v6952_v60, 16  ;;  %v4477_v7 = vrot.slane %v10701_v31, 5  ;;  %v5351_v26 = vshrl.u32 %v6953_v38, 16  ;;  %v5354_v43 = vshll.u32 %v6953_v38, 16 }
 0x14d   : > { %v4466_v24 = vrot.slane %v10699_v56, 5  ;;  %v5291_v13 = vsel %vm8103_vm4, %v9627_v32, %v9595_v49  ;;  %v5324_v4 = vrot.slane %v5322_v58, 5  ;;  %v6861_v12 = vrot.slane %v6845_v54, 9  ;;  %v7948_v58 = vld [vmem:[%s8085_s11 + $0xb4] sm:$0xff]  }
 0x14e   : > { %v5360_v10 = vshll.u32 %v6954_v39, 16  ;;  %v5364_v44 = vshrl.u32 %v6954_v39, 16  ;;  %v5310_v47 = vrot.slane %v5309_v42, 4  ;;  %v5320_v50 = vrot.slane %v5319_v34, 4  ;;  %v10703_v34 = vld [vmem:[#allocation11_spill] sm:$0xff] }
 0x14f   : > { %v4472_v48 = vrot.slane %v4470_v51, 4  ;;  %v5334_v49 = vrot.slane %v5333_v27, 4  ;;  %v5344_v32 = vrot.slane %v5343_v15, 4  ;;  %v5348_v56 = vrot.slane %v5346_v3, 5  ;;  %v6955_v15 = vld [vmem:[%s8085_s11 + $0x50] sm:$0x1] }
 0x150   : > { %v6862_v38 = vrot.slane %v6846_v19, 9  ;;  %v4479_v42 = vrot.slane %v4477_v7, 4  ;;  %v4480_v54 = vrot.slane %v10703_v34, 5  ;;  %v5353_v46 = vrot.slane %v5351_v26, 4  ;;  %v6956_v19 = vld [vmem:[%s8085_s11 + $0x54] sm:$0xf] }
 0x151   : > { %7412 = vmatmul.mubr.msk.bf16.gmra.mrb[20].mxu1 %vm773_vm3, %v7945_v62  ;;  %v10702_v62 = vld [vmem:[#allocation2_spill] sm:$0xff]  ;;  %v5356_v39 = vrot.slane %v5354_v43, 5  ;;  %v9668_v27 = vsel %vm8504_vm7, %v4465_v16, %v4466_v24  ;;  %v5366_v3 = vrot.slane %v5364_v44, 4  ;;  %v5315_v31 = vsel %vm8103_vm4, %v5310_v47, %v9612_v36  ;;  %v6957_v24 = vld [vmem:[%s8085_s11 + $0x58] sm:$0xf] }
 0x152   : > { %7415 = vmatprep.mubr.msk.bf16.mxu1 %vm773_vm3, %v7946_v35  ;;  %v4473_v60 = vrot.slane %v10702_v62, 5  ;;  %v7947_v35 = vld [vmem:[%s8085_s11 + $0xa8] sm:$0xff]   ;;  %v5325_v26 = vsel %vm8103_vm4, %v5320_v50, %v5324_v4  ;;  %v9681_v43 = vsel %vm8504_vm7, %v6861_v12, %v4470_v51  ;;  %v5349_v36 = vsel %vm8103_vm4, %v5344_v32, %v5348_v56  ;;  %v6847_v51 = vld [vmem:[%s8085_s11 + $0x60] sm:$0xe]  ;;  %v6958_v34 = vld [vmem:[%s8085_s11 + $0x5c] sm:$0x1] }
 0x153   : > { %7548 = vmatmul.mubr.msk.bf16.gmra.mrb[20].mxu0 %vm773_vm3, %v9488_v53  ;;  %v5301_v53 = vsel %vm8103_vm4, %v9643_v21, %v9631_v63  ;;  %v10704_v63 = vld [vmem:[#allocation5_spill] sm:$0xff]  ;;  %v9696_v4 = vsel %vm8504_vm7, %v6862_v38, %v4477_v7  ;;  %v9702_v12 = vsel %vm8504_vm7, %v4479_v42, %v4480_v54  ;;  %v5357_v44 = vor.u32 %v5356_v39, %v5353_v46  ;;  %v6959_v54 = vld [vmem:[%s8085_s11 + $0x60] sm:$0xf]  ;;  %v6960_v46 = vld [vmem:[%s8085_s11 + $0x64] sm:$0xf] }
 0x154   : > { %7551 = vmatprep.mubr.msk.bf16.mxu0 %vm773_vm3, %v9490_v0  ;;  %v9671_v0 = vrot.slane %v5360_v10, 5  ;;  %v4484_v21 = vrot.slane %v10704_v63, 5  ;;  %v9687_v16 = vsel %vm8504_vm7, %v4472_v48, %v4473_v60  ;;  %v5339_v10 = vsel %vm8103_vm4, %v5334_v49, %v9616_v8  ;;  %v6963_v63 = vld [vmem:[%s8085_s11 + $0x70] sm:$0xf] }
 0x155   : > { %v5370_v47 = vshll.u32 %v6955_v15, 16  ;;  %v5375_v50 = vshrl.u32 %v6956_v19, 16  ;;  %v5378_v48 = vshll.u32 %v6956_v19, 16  ;;  %v5384_v7 = vshll.u32 %v6957_v24, 16  ;;  %v6962_v15 = vld [vmem:[%s8085_s11 + $0x6c] sm:$0xf] }
 0x156   : > { %v5367_v8 = vor.u32 %v5366_v3, %v9671_v0  ;;  %v5388_v62 = vshrl.u32 %v6957_v24, 16  ;;  %v6877_v60 = vcombine.low %v9635_v52, %v9668_v27  ;;  %v6863_v49 = vrot.slane %v6847_v51, 9  ;;  %v6848_v51 = vld [vmem:[%s8085_s11 + $0x6c] sm:$0xe] }
 0x157   : > { %v4486_v32 = vrot.slane %v4484_v21, 4  ;;  %v4487_v56 = vrot.slane %v9238_v45, 5  ;;  %v9711_v38 = vcombine.low %v5291_v13, %v5301_v53  ;;  %v9717_v42 = vcombine.low %v5339_v10, %v5349_v36  ;;  %v7949_v45 = vld [vmem:[%s8085_s11 + $0xc0] sm:$0xff]  }
 0x158   : > { %v5358_v13 = vrot.slane %v5357_v44, 4  ;;  %v5372_v39 = vrot.slane %v5370_v47, 5  ;;  %v5377_v53 = vrot.slane %v5375_v50, 4  ;;  %v5368_v3 = vrot.slane %v5367_v8, 4 }
 0x159   : > { %7416 = vmatmul.mubr.msk.bf16.gmra.mrb[24].mxu1 %vm773_vm3, %v7947_v35  ;;  %v9713_v35 = vcombine.low %v5315_v31, %v5325_v26  ;;  %v5380_v19 = vrot.slane %v5378_v48, 5  ;;  %v9728_v31 = vrot.slane %v5384_v7, 5  ;;  %v5390_v26 = vrot.slane %v5388_v62, 4 }
 0x15a   : > { %7419 = vmatprep.mubr.msk.bf16.mxu1 %vm773_vm3, %v7948_v58  ;;  %v9733_v24 = vsel %vm8504_vm7, %v6863_v49, %v4484_v21  ;;  %v5399_v10 = vshrl.u32 %v6959_v54, 16  ;;  %v5402_v36 = vshll.u32 %v6959_v54, 16  ;;  %v5408_v44 = vshll.u32 %v6960_v46, 16  ;;  %v10705_v54 = vld [vmem:[#allocation9_spill] sm:$0xff] }
 0x15b   : > { %7552 = vmatmul.mubr.msk.bf16.gmra.mrb[24].mxu0 %vm773_vm3, %v9492_v57  ;;  %v5412_v47 = vshrl.u32 %v6960_v46, 16  ;;  %v5423_v50 = vshrl.u32 %v6962_v15, 16  ;;  %v5426_v8 = vshll.u32 %v6962_v15, 16  ;;  %v5363_v48 = vsel %vm8103_vm4, %v5358_v13, %v9671_v0  ;;  %v6849_v57 = vld [vmem:[%s8085_s11 + $0x78] sm:$0xe] }
 0x15c   : > { %7555 = vmatprep.mubr.msk.bf16.mxu0 %vm773_vm3, %v9564_v59  ;;  %v9737_v59 = vsel %vm8504_vm7, %v4486_v32, %v4487_v56  ;;  %v5394_v21 = vshll.u32 %v6958_v34, 16  ;;  %v5432_v7 = vshll.u32 %v6963_v63, 16  ;;  %v5436_v62 = vshrl.u32 %v6963_v63, 16  ;;  %v6961_v34 = vld [vmem:[%s8085_s11 + $0x68] sm:$0x1] }
 0x15d   : > { %v5373_v49 = vsel %vm8103_vm4, %v5368_v3, %v5372_v39  ;;  %v5381_v32 = vor.u32 %v5380_v19, %v5377_v53  ;;  %v5391_v56 = vor.u32 %v5390_v26, %v9728_v31  ;;  %v4491_v46 = vrot.slane %v10705_v54, 5  ;;  %v6965_v19 = vld [vmem:[%s8085_s11 + $0x78] sm:$0xf] }
 0x15e   : > { %v6864_v0 = vrot.slane %v6848_v51, 9  ;;  %v5401_v13 = vrot.slane %v5399_v10, 4  ;;  %v5404_v15 = vrot.slane %v5402_v36, 5  ;;  %v5414_v39 = vrot.slane %v5412_v47, 4 }
 0x15f   : > { %v5425_v53 = vrot.slane %v5423_v50, 4  ;;  %v5428_v3 = vrot.slane %v5426_v8, 5  ;;  %v9762_v26 = vcombine.low %v5363_v48, %v5373_v49  ;;  %v5396_v63 = vrot.slane %v5394_v21, 5  ;;  %v6964_v50 = vld [vmem:[%s8085_s11 + $0x74] sm:$0x1]  ;;  %v10706_v48 = vld [vmem:[#allocation10_spill] sm:$0xff] }
 0x160   : > { %v9764_v10 = vrot.slane %v5432_v7, 5  ;;  %v5438_v36 = vrot.slane %v5436_v62, 4  ;;  %v5382_v51 = vrot.slane %v5381_v32, 4  ;;  %v4493_v54 = vrot.slane %v4491_v46, 4 }
 0x161   : > { %7420 = vmatmul.mubr.msk.bf16.gmra.mrb[28].mxu1 %vm773_vm3, %v7949_v45  ;;  %v4494_v47 = vrot.slane %v9249_v61, 5  ;;  %v5405_v8 = vor.u32 %v5404_v15, %v5401_v13  ;;  %v5418_v45 = vshll.u32 %v6961_v34, 16  ;;  %v5447_v58 = vshrl.u32 %v6965_v19, 16 }
 0x162   : > { %7595 = vmatprep.mubr.msk.bf16.mxu1 %vm773_vm3, %v9621_v5  ;;  %v9755_v5 = vrot.slane %v5408_v44, 5  ;;  %v5392_v44 = vrot.slane %v5391_v56, 4  ;;  %v5450_v29 = vshll.u32 %v6965_v19, 16  ;;  %v9772_v30 = vsel %vm8504_vm7, %v6864_v0, %v4491_v46  ;;  %v6968_v19 = vld [vmem:[%s8085_s11 + $0x84] sm:$0xf] }
 0x163   : > { %7556 = vmatmul.mubr.msk.bf16.gmra.mrb[28].mxu0 %vm773_vm3, %v9566_v41  ;;  %v6966_v41 = vld [vmem:[%s8085_s11 + $0x7c] sm:$0xf]  ;;  %v4498_v21 = vrot.slane %v10706_v48, 5  ;;  %v5429_v7 = vor.u32 %v5428_v3, %v5425_v53  ;;  %v5439_v61 = vor.u32 %v5438_v36, %v9764_v10  ;;  %v5442_v62 = vshll.u32 %v6964_v50, 16 }
 0x164   : > { %7561 = vmatprep.mubr.msk.bf16.mxu0 %vm773_vm3, %v6874_v1  ;;  %v5415_v1 = vor.u32 %v5414_v39, %v9755_v5  ;;  %v5456_v49 = vshll.u32 %v6966_v41, 16  ;;  %v5460_v32 = vshrl.u32 %v6966_v41, 16  ;;  %v5387_v56 = vsel %vm8103_vm4, %v5382_v51, %v9728_v31  ;;  %v6969_v41 = vld [vmem:[%s8085_s11 + $0x88] sm:$0xf] }
 0x165   : > { %v5397_v46 = vsel %vm8103_vm4, %v5392_v44, %v5396_v63  ;;  %v6865_v0 = vrot.slane %v6849_v57, 9  ;;  %v5406_v34 = vrot.slane %v5405_v8, 4  ;;  %v5420_v13 = vrot.slane %v5418_v45, 5  ;;  %v6850_v45 = vld [vmem:[%s8085_s11 + $0x84] sm:$0xe] }
 0x166   : > { %v5449_v15 = vrot.slane %v5447_v58, 4  ;;  %v5452_v39 = vrot.slane %v5450_v29, 5  ;;  %v4500_v31 = vrot.slane %v4498_v21, 4  ;;  %v4501_v53 = vrot.slane %v9268_v23, 5  ;;  %v6851_v8 = vld [vmem:[%s8085_s11 + $0x90] sm:$0xe] }
 0x167   : > { %v5430_v3 = vrot.slane %v5429_v7, 4  ;;  %v5440_v58 = vrot.slane %v5439_v61, 4  ;;  %v5444_v57 = vrot.slane %v5442_v62, 5  ;;  %v9801_v63 = vrot.slane %v5456_v49, 5 }
 0x168   : > { %v5462_v9 = vrot.slane %v5460_v32, 4  ;;  %v6992_v40 = vcombine.low %v5387_v56, %v5397_v46  ;;  %v9807_v23 = vsel %vm8504_vm7, %v6865_v0, %v4498_v21  ;;  %v4505_v36 = vrot.slane %v9277_v6, 5  ;;  %v6971_v56 = vld [vmem:[%s8085_s11 + $0x90] sm:$0xf]  ;;  %v6972_v0 = vld [vmem:[%s8085_s11 + $0x94] sm:$0xf] }
 0x169   : > { %7596 = vmatmul.mubr.msk.bf16.vlgmr.msra.gmra.mrb[32].mxu1 %vm773_vm3, %v9623_v22  ;;  %v9788_v22 = vsel %vm8504_vm7, %v4493_v54, %v4494_v47  ;;  %v5411_v55 = vsel %vm8103_vm4, %v5406_v34, %v9755_v5  ;;  %v5471_v51 = vshrl.u32 %v6968_v19, 16  ;;  %v5474_v44 = vshll.u32 %v6968_v19, 16 }
 0x16a   : > { %7599 = vmatprep.mubr.msk.bf16.mxu1 %vm773_vm3, %v9711_v38  ;;  %v5416_v38 = vrot.slane %v5415_v1, 4  ;;  %v9819_v47 = vsel %vm8504_vm7, %v4500_v31, %v4501_v53  ;;  %v5435_v6 = vsel %vm8103_vm4, %v5430_v3, %v9764_v10  ;;  %v6866_v50 = vrot.slane %v6850_v45, 9  ;;  %v6975_v3 = vld [vmem:[%s8085_s11 + $0xa0] sm:$0xf] }
 0x16b   : > { %7562 = vmatmul.mubr.msk.bf16.vlgmr.msra.gmra.mrb[0].mxu0 %vm773_vm3, %v6875_v11  ;;  %v6881_v11 = vcombine.low %v9772_v30, %v9788_v22  ;;  %v5445_v5 = vsel %vm8103_vm4, %v5440_v58, %v5444_v57  ;;  %v5463_v29 = vor.u32 %v5462_v9, %v9801_v63  ;;  %v5466_v1 = vshll.u32 %v6967_v18, 16  ;;  %v6852_v57 = vld [vmem:[%s8085_s11 + $0x9c] sm:$0xe] }
 0x16c   : > { %7565 = vmatprep.mubr.msk.bf16.mxu0 %vm773_vm3, %v6876_v14  ;;  %v5453_v14 = vor.u32 %v5452_v39, %v5449_v15  ;;  %v5421_v54 = vsel %vm8103_vm4, %v5416_v38, %v5420_v13  ;;  %v4512_v48 = vrot.slane %v9344_v17, 5  ;;  %v4507_v21 = vrot.slane %v4505_v36, 4  ;;  %v6974_v15 = vld [vmem:[%s8085_s11 + $0x9c] sm:$0xf] }
 0x16d   : > { %v4508_v10 = vrot.slane %v9282_v20, 5  ;;  %v5480_v7 = vshll.u32 %v6969_v41, 16  ;;  %v5484_v61 = vshrl.u32 %v6969_v41, 16  ;;  %v5473_v49 = vrot.slane %v5471_v51, 4 }
 0x16e   : > { %v5454_v62 = vrot.slane %v5453_v14, 4  ;;  %v5476_v32 = vrot.slane %v5474_v44, 5  ;;  %v9839_v17 = vcombine.low %v5411_v55, %v5421_v54  ;;  %v9843_v20 = vcombine.low %v5435_v6, %v5445_v5 }
 0x16f   : > { %v9847_v46 = vsel %vm8504_vm7, %v6866_v50, %v4505_v36  ;;  %v10707_v34 = vcombine.low %v9681_v43, %v9687_v16  ;;  %v5464_v52 = vrot.slane %v5463_v29, 4  ;;  %v5468_v27 = vrot.slane %v5466_v1, 5  ;;  %v6973_v29 = vld [vmem:[%s8085_s11 + $0x98] sm:$0x1] }
 0x170   : > { %v4515_v13 = vrot.slane %v9385_v25, 5  ;;  %v9856_v39 = vrot.slane %v5480_v7, 5  ;;  %v5486_v38 = vrot.slane %v5484_v61, 4  ;;  %v5495_v31 = vshrl.u32 %v6971_v56, 16  ;;  %v6970_v25 = vld [vmem:[%s8085_s11 + $0x8c] sm:$0x1] }
 0x171   : > { %7600 = vmatmul.mubr.msk.bf16.gmra.mrb[36].mxu1 %vm773_vm3, %v9713_v35  ;;  %v6867_v35 = vrot.slane %v6851_v8, 9  ;;  %v5498_v53 = vshll.u32 %v6971_v56, 16  ;;  %v9861_v19 = vsel %vm8504_vm7, %v4507_v21, %v4508_v10  ;;  %v5459_v43 = vsel %vm8103_vm4, %v5454_v62, %v9801_v63  ;;  %v6976_v62 = vld [vmem:[%s8085_s11 + $0xa4] sm:$0x1] }
 0x172   : > { %7603 = vmatprep.mubr.msk.bf16.mxu1 %vm773_vm3, %v9717_v42  ;;  %v6882_v42 = vcombine.low %v9807_v23, %v9819_v47  ;;  %v5477_v58 = vor.u32 %v5476_v32, %v5473_v49  ;;  %v5504_v45 = vshll.u32 %v6972_v0, 16  ;;  %v5508_v9 = vshrl.u32 %v6972_v0, 16 }
 0x173   : > { %7566 = vmatmul.mubr.msk.bf16.gmra.mrb[4].mxu0 %vm773_vm3, %v6877_v60  ;;  %v4514_v60 = vrot.slane %v4512_v48, 4  ;;  %v9868_v16 = vsel %vm8504_vm7, %v6867_v35, %v4512_v48  ;;  %v5519_v36 = vshrl.u32 %v6974_v15, 16  ;;  %v5522_v18 = vshll.u32 %v6974_v15, 16  ;;  %v6977_v35 = vld [vmem:[%s8085_s11 + $0xa8] sm:$0xf] }
 0x174   : > { %7569 = vmatprep.mubr.msk.bf16.mxu0 %vm773_vm3, %v10707_v34  ;;  %v5469_v55 = vsel %vm8103_vm4, %v5464_v52, %v5468_v27  ;;  %v5528_v14 = vshll.u32 %v6975_v3, 16  ;;  %v5532_v41 = vshrl.u32 %v6975_v3, 16  ;;  %v5487_v51 = vor.u32 %v5486_v38, %v9856_v39  ;;  %v6978_v34 = vld [vmem:[%s8085_s11 + $0xac] sm:$0xf] }
 0x175   : > { %v9878_v63 = vsel %vm8504_vm7, %v4514_v60, %v4515_v13  ;;  %v5490_v44 = vshll.u32 %v6970_v25, 16  ;;  %v5497_v54 = vrot.slane %v5495_v31, 4  ;;  %v5500_v6 = vrot.slane %v5498_v53, 5  ;;  %v6980_v31 = vld [vmem:[%s8085_s11 + $0xb4] sm:$0xf] }
 0x176   : > { %v5478_v50 = vrot.slane %v5477_v58, 4  ;;  %v6868_v8 = vrot.slane %v6852_v57, 9  ;;  %v4519_v5 = vrot.slane %v9353_v37, 5  ;;  %v10708_v1 = vcombine.low %v9696_v4, %v9702_v12  ;;  %v6981_v53 = vld [vmem:[%s8085_s11 + $0xb8] sm:$0xf] }
 0x177   : > { %v5510_v48 = vrot.slane %v5508_v9, 4  ;;  %v5521_v21 = vrot.slane %v5519_v36, 4  ;;  %v5524_v10 = vrot.slane %v5522_v18, 5  ;;  %v10709_v7 = vcombine.low %v9733_v24, %v9737_v59  ;;  %v6853_v36 = vld [vmem:[%s8085_s11 + $0xa8] sm:$0xe] }
 0x178   : > { %v9896_v61 = vcombine.low %v5459_v43, %v5469_v55  ;;  %v6884_v37 = vcombine.low %v9868_v16, %v9878_v63  ;;  %v9901_v4 = vrot.slane %v5528_v14, 5  ;;  %v5534_v12 = vrot.slane %v5532_v41, 4 }
 0x179   : > { %7604 = vmatmul.mubr.msk.bf16.gmra.mrb[40].mxu1 %vm773_vm3, %v9762_v26  ;;  %v6883_v26 = vcombine.low %v9847_v46, %v9861_v19  ;;  %v5488_v49 = vrot.slane %v5487_v51, 4  ;;  %v5492_v32 = vrot.slane %v5490_v44, 5  ;;  %v5501_v56 = vor.u32 %v5500_v6, %v5497_v54  ;;  %v8001_v46 = vld [vmem:[%s8085_s11 + $0xc4] sm:$0xf] }
 0x17a   : > { %7607 = vmatprep.mubr.msk.bf16.mxu1 %vm773_vm3, %v6992_v40  ;;  %v9890_v40 = vrot.slane %v5504_v45, 5  ;;  %v5514_v0 = vshll.u32 %v6973_v29, 16  ;;  %v5483_v24 = vsel %vm8103_vm4, %v5478_v50, %v9856_v39  ;;  %v9910_v59 = vsel %vm8504_vm7, %v6868_v8, %v4519_v5  ;;  %v7998_v45 = vld [vmem:[%s8085_s11 + $0xac] sm:$0xf] }
 0x17b   : > { %7570 = vmatmul.mubr.msk.bf16.gmra.mrb[8].mxu0 %vm773_vm3, %v10708_v1  ;;  %v4521_v52 = vrot.slane %v4519_v5, 4  ;;  %v4522_v27 = vrot.slane %v9391_v28, 5  ;;  %v5525_v13 = vor.u32 %v5524_v10, %v5521_v21  ;;  %v5538_v15 = vshll.u32 %v6976_v62, 16  ;;  %v7999_v5 = vld [vmem:[%s8085_s11 + $0xb0] sm:$0x1] }
 0x17c   : > { %7573 = vmatprep.mubr.msk.bf16.mxu0 %vm773_vm3, %v10709_v7  ;;  %v5511_v60 = vor.u32 %v5510_v48, %v9890_v40  ;;  %v5543_v38 = vshrl.u32 %v6977_v35, 16  ;;  %v5535_v39 = vor.u32 %v5534_v12, %v9901_v4  ;;  %v5546_v3 = vshll.u32 %v6977_v35, 16  ;;  %v6979_v1 = vld [vmem:[%s8085_s11 + $0xb0] sm:$0x1]  ;;  %v6983_v48 = vld [vmem:[%s8085_s11 + $0xc0] sm:$0xf] }
 0x17d   : > { %v5552_v43 = vshll.u32 %v6978_v34, 16  ;;  %v5556_v25 = vshrl.u32 %v6978_v34, 16  ;;  %v5493_v28 = vsel %vm8103_vm4, %v5488_v49, %v5492_v32  ;;  %v5502_v58 = vrot.slane %v5501_v56, 4  ;;  %v6984_v10 = vld [vmem:[%s8085_s11 + $0xc4] sm:$0xf] }
 0x17e   : > { %v5516_v57 = vrot.slane %v5514_v0, 5  ;;  %v4526_v9 = vrot.slane %v7998_v45, 5  ;;  %v5567_v18 = vshrl.u32 %v6980_v31, 16  ;;  %v5570_v55 = vshll.u32 %v6980_v31, 16  ;;  %v6982_v49 = vld [vmem:[%s8085_s11 + $0xbc] sm:$0x1] }
 0x17f   : > { %v5580_v14 = vshrl.u32 %v6981_v53, 16  ;;  %v5526_v41 = vrot.slane %v5525_v13, 4  ;;  %v5540_v51 = vrot.slane %v5538_v15, 5  ;;  %v5545_v44 = vrot.slane %v5543_v38, 4 }
 0x180   : > { %v5536_v54 = vrot.slane %v5535_v39, 4  ;;  %v5548_v6 = vrot.slane %v5546_v3, 5  ;;  %v9933_v50 = vrot.slane %v5552_v43, 5  ;;  %v5558_v8 = vrot.slane %v5556_v25, 4  ;;  %v6854_v3 = vld [vmem:[%s8085_s11 + $0xb4] sm:$0xe] }
 0x181   : > { %7608 = vmatmul.mubr.msk.bf16.gmra.mrb[44].mxu1 %vm773_vm3, %v9839_v17  ;;  %v5576_v17 = vshll.u32 %v6981_v53, 16  ;;  %v6996_v30 = vcombine.low %v5483_v24, %v5493_v28  ;;  %v9937_v22 = vsel %vm8504_vm7, %v4521_v52, %v4522_v27  ;;  %v4529_v29 = vrot.slane %v7999_v5, 5  ;;  %v8000_v53 = vld [vmem:[%s8085_s11 + $0xb8] sm:$0xf] }
 0x182   : > { %7611 = vmatprep.mubr.msk.bf16.mxu1 %vm773_vm3, %v9843_v20  ;;  %v5512_v20 = vrot.slane %v5511_v60, 4  ;;  %v5569_v23 = vrot.slane %v5567_v18, 4  ;;  %v5572_v47 = vrot.slane %v5570_v55, 5  ;;  %v5582_v21 = vrot.slane %v5580_v14, 4  ;;  %v6985_v18 = vld [vmem:[%s8085_s11 + $0xc8] sm:$0x1] }
 0x183   : > { %7574 = vmatmul.mubr.msk.bf16.gmra.mrb[12].mxu0 %vm773_vm3, %v6881_v11  ;;  %v6869_v11 = vrot.slane %v6853_v36, 9  ;;  %v5507_v7 = vsel %vm8103_vm4, %v5502_v58, %v9890_v40  ;;  %v4528_v12 = vrot.slane %v4526_v9, 4  ;;  %v5531_v35 = vsel %vm8103_vm4, %v5526_v41, %v9901_v4 }
 0x184   : > { %7577 = vmatprep.mubr.msk.bf16.mxu0 %vm773_vm3, %v6882_v42  ;;  %v9942_v42 = vrot.slane %v5576_v17, 5  ;;  %v5517_v62 = vsel %vm8103_vm4, %v5512_v20, %v5516_v57  ;;  %v5541_v32 = vsel %vm8103_vm4, %v5536_v54, %v5540_v51  ;;  %v5549_v56 = vor.u32 %v5548_v6, %v5545_v44  ;;  %v8002_v20 = vld [vmem:[%s8085_s11 + $0xbc] sm:$0x1]  ;;  %v8003_v6 = vld [vmem:[%s8085_s11 + $0xc8] sm:$0x1] }
 0x185   : > { %v5559_v0 = vor.u32 %v5558_v8, %v9933_v50  ;;  %v5562_v40 = vshll.u32 %v6979_v1, 16  ;;  %v5591_v34 = vshrl.u32 %v6983_v48, 16  ;;  %v5594_v24 = vshll.u32 %v6983_v48, 16 }
 0x186   : > { %v5600_v52 = vshll.u32 %v6984_v10, 16  ;;  %v5604_v27 = vshrl.u32 %v6984_v10, 16  ;;  %v4527_v4 = vsel %vm8504_vm7, %v6869_v11, %v4526_v9  ;;  %v5583_v60 = vor.u32 %v5582_v21, %v9942_v42 }
 0x187   : > { %v5586_v13 = vshll.u32 %v6982_v49, 16  ;;  %v6997_v15 = vcombine.low %v5507_v7, %v5517_v62  ;;  %v4530_v38 = vsel %vm8504_vm7, %v4528_v12, %v4529_v29  ;;  %v6998_v31 = vcombine.low %v5531_v35, %v5541_v32  ;;  %v6856_v7 = vld [vmem:[%s8085_s11 + $0xcc] sm:$0xe] }
 0x188   : > { %v4533_v39 = vrot.slane %v8000_v53, 5  ;;  %v5550_v43 = vrot.slane %v5549_v56, 4  ;;  %v5560_v25 = vrot.slane %v5559_v0, 4  ;;  %v5564_v28 = vrot.slane %v5562_v40, 5  ;;  %v8005_v40 = vld [vmem:[%s8085_s11 + $0xd4] sm:$0x1] }
 0x189   : > { %7612 = vmatmul.mubr.msk.bf16.gmra.mrb[48].mxu1 %vm773_vm3, %v9896_v61  ;;  %v5573_v61 = vor.u32 %v5572_v47, %v5569_v23  ;;  %v4540_v19 = vrot.slane %v8001_v46, 5  ;;  %v5593_v58 = vrot.slane %v5591_v34, 4  ;;  %v5596_v57 = vrot.slane %v5594_v24, 5 }
 0x18a   : > { %7615 = vmatprep.mubr.msk.bf16.mxu1 %vm773_vm3, %v6996_v30  ;;  %v5602_v45 = vrot.slane %v5600_v52, 5  ;;  %v5606_v9 = vrot.slane %v5604_v27, 4  ;;  %v6885_v36 = vcombine.low %v9910_v59, %v9937_v22  ;;  %v5584_v63 = vrot.slane %v5583_v60, 4 }
 0x18b   : > { %7578 = vmatmul.mubr.msk.bf16.gmra.mrb[16].mxu0 %vm773_vm3, %v6883_v26  ;;  %v6855_v26 = vld [vmem:[%s8085_s11 + $0xc0] sm:$0xe]  ;;  %v5574_v16 = vrot.slane %v5573_v61, 4  ;;  %v6886_v55 = vcombine.low %v4527_v4, %v4530_v38  ;;  %v6870_v17 = vrot.slane %v6854_v3, 9  ;;  %v4535_v14 = vrot.slane %v4533_v39, 4 }
 0x18c   : > { %7581 = vmatprep.mubr.msk.bf16.mxu0 %vm773_vm3, %v6884_v37  ;;  %v5588_v37 = vrot.slane %v5586_v13, 5  ;;  %v4536_v41 = vrot.slane %v8002_v20, 5  ;;  %v5555_v51 = vsel %vm8103_vm4, %v5550_v43, %v9933_v50  ;;  %v6871_v44 = vrot.slane %v6855_v26, 9 }
 0x18d   : > { %v4542_v54 = vrot.slane %v4540_v19, 4  ;;  %v4543_v59 = vrot.slane %v8003_v6, 5  ;;  %v5565_v8 = vsel %vm8103_vm4, %v5560_v25, %v5564_v28  ;;  %v5597_v30 = vor.u32 %v5596_v57, %v5593_v58 }
 0x18e   : > { %v5607_v22 = vor.u32 %v5606_v9, %v5602_v45  ;;  %v5610_v11 = vshll.u32 %v6985_v18, 16  ;;  %v5579_v5 = vsel %vm8103_vm4, %v5574_v16, %v9942_v42  ;;  %v5589_v50 = vsel %vm8103_vm4, %v5584_v63, %v5588_v37  ;;  %v8004_v42 = vld [vmem:[%s8085_s11 + $0xd0] sm:$0xf]  ;;  %s6366_s11 = sshll.u32 %s8071_s27, 3 }
 0x18f   : > { %v4534_v29 = vsel %vm8504_vm7, %v6870_v17, %v4533_v39  ;;  %v4537_v1 = vsel %vm8504_vm7, %v4535_v14, %v4536_v41  ;;  %v6999_v48 = vcombine.low %v5555_v51, %v5565_v8  ;;  %v4541_v23 = vsel %vm8504_vm7, %v6871_v44, %v4540_v19  ;;  %s275_s14 = scalar_lea.vmem %s10632_s4, %s6366_s11  ;;  %s285_s17 = scalar_lea.vmem %s10634_s6, %s6366_s11 }
 0x190   : > { %v4544_v47 = vsel %vm8504_vm7, %v4542_v54, %v4543_v59  ;;  %v4547_v21 = vrot.slane %v8004_v42, 5  ;;  %v7000_v10 = vcombine.low %v5579_v5, %v5589_v50  ;;  %v5598_v62 = vrot.slane %v5597_v30, 4 }
 0x191   : > { %7616 = vmatmul.mubr.msk.bf16.gmra.mrb[52].mxu1 %vm773_vm3, %v6997_v15  ;;  %v5608_v12 = vrot.slane %v5607_v22, 4  ;;  %v5612_v35 = vrot.slane %v5610_v11, 5  ;;  %v6887_v49 = vcombine.low %v4534_v29, %v4537_v1  ;;  %v6888_v32 = vcombine.low %v4541_v23, %v4544_v47 }
 0x192   : > { %7619 = vmatprep.mubr.msk.bf16.mxu1 %vm773_vm3, %v6998_v31  ;;  %v6872_v56 = vrot.slane %v6856_v7, 9  ;;  %v4549_v0 = vrot.slane %v4547_v21, 4  ;;  %v4550_v34 = vrot.slane %v8005_v40, 5  ;;  %v5603_v24 = vsel %vm8103_vm4, %v5598_v62, %v5602_v45 }
 0x193   : > { %7582 = vmatmul.mubr.msk.bf16.gmra.mrb[20].mxu0 %vm773_vm3, %v6885_v36  ;;  %v5613_v52 = vsel %vm8103_vm4, %v5608_v12, %v5612_v35 }
 0x194   : > { %7585 = vmatprep.mubr.msk.bf16.mxu0 %vm773_vm3, %v6886_v55  ;;  %v4548_v27 = vsel %vm8504_vm7, %v6872_v56, %v4547_v21  ;;  %v4551_v4 = vsel %vm8504_vm7, %v4549_v0, %v4550_v34  ;;  %v7001_v61 = vcombine.low %v5603_v24, %v5613_v52 }
 0x195   : > { %v6889_v60 = vcombine.low %v4548_v27, %v4551_v4 }
 0x199   : > { %7620 = vmatmul.mubr.msk.bf16.gmra.mrb[56].mxu1 %vm773_vm3, %v6999_v48 }
 0x19a   : > { %7623 = vmatprep.mubr.msk.bf16.mxu1 %vm773_vm3, %v7000_v10 }
 0x19b   : > { %7586 = vmatmul.mubr.msk.bf16.gmra.mrb[24].mxu0 %vm773_vm3, %v6887_v49 }
 0x19c   : > { %7589 = vmatprep.mubr.msk.bf16.mxu0 %vm773_vm3, %v6888_v32 }
 0x1a1   : > { %7624 = vmatmul.mubr.msk.bf16.gmra.mrb[60].mxu1 %vm773_vm3, %v7001_v61 }
 0x1a3   : > { %7590 = vmatmul.mubr.msk.bf16.gmra.mrb[28].mxu0 %vm773_vm3, %v6889_v60 }
 0x1fc   : > { %v7393_v13 = vpop.f32.mrb[0].mxu1 }
 0x1fd   : > { %v1936_v15 = vpop.f32.mrb[1].mxu1 }
 0x1fe   : > { %v10021_v33 = vpop.f32.mrb[2].mxu1 }
 0x1ff   : > { %v10023_v38 = vpop.f32.mrb[3].mxu1 }
 0x204   : > { %v10025_v31 = vpop.f32.mrb[4].mxu1 }
 0x205   : > { %v10027_v53 = vpop.f32.mrb[5].mxu1 }
 0x206   : > { %v10029_v39 = vpop.f32.mrb[6].mxu1 }
 0x207   : > { %v10031_v2 = vpop.f32.mrb[7].mxu1 }
 0x20c   : > { %v10033_v3 = vpop.f32.mrb[8].mxu1 }
 0x20d   : > { %v10035_v43 = vpop.f32.mrb[9].mxu1 }
 0x20e   : > { %v10037_v25 = vpop.f32.mrb[10].mxu1 }
 0x20f   : > { %v10039_v28 = vpop.f32.mrb[11].mxu1 }
 0x214   : > { %v10041_v46 = vpop.f32.mrb[12].mxu1 }
 0x215   : > { %v10043_v19 = vpop.f32.mrb[13].mxu1 }
 0x216   : > { %v10045_v26 = vpop.f32.mrb[14].mxu1 }
 0x217   : > { %v10047_v58 = vpop.f32.mrb[15].mxu1 }
 0x21c   : > { %v10049_v57 = vpop.f32.mrb[16].mxu1 }
 0x21d   : > { %v10051_v45 = vpop.f32.mrb[17].mxu1 }
 0x21e   : > { %v10053_v9 = vpop.f32.mrb[18].mxu1 }
 0x21f   : > { %v10055_v36 = vpop.f32.mrb[19].mxu1 }
 0x224   : > { %v10057_v16 = vpop.f32.mrb[20].mxu1 }
 0x225   : > { %v10059_v63 = vpop.f32.mrb[21].mxu1 }
 0x226   : > { %v10061_v37 = vpop.f32.mrb[22].mxu1 }
 0x227   : > { %v10063_v18 = vpop.f32.mrb[23].mxu1 }
 0x22c   : > { %v10065_v55 = vpop.f32.mrb[24].mxu1 }
 0x22d   : > { %v10067_v17 = vpop.f32.mrb[25].mxu1 }
 0x22e   : > { %v10069_v14 = vpop.f32.mrb[26].mxu1 }
 0x22f   : > { %v10072_v20 = vpop.f32.mrb[27].mxu1 }
 0x234   : > { %v10074_v41 = vpop.f32.mrb[28].mxu1 }
 0x235   : > { %v10076_v51 = vpop.f32.mrb[29].mxu1 }
 0x236   : > { %v10078_v44 = vpop.f32.mrb[30].mxu1 }
 0x237   : > { %v10080_v54 = vpop.f32.mrb[31].mxu1 }
 0x23c   : > { %v7597_v6 = vpop.f32.mrb[32].mxu1 }
 0x23d   : > { %v7087_v59 = vpack.c.bf16 %v7597_v6, %v7597_v6  ;;  %v6106_v8 = vmul.f32 %v7597_v6, %v7597_v6  ;;  %v5748_v30 = vpop.f32.mrb[33].mxu1  ;;  %v6038_v7 = vsel %vm5007_vm8, %v7597_v6, 0.0 }
 0x23e   : > { %v7085_v22 = vpack.c.bf16 %v5748_v30, %v5748_v30  ;;  %v6035_v11 = vsel %vm5007_vm8, %v5748_v30, 0.0  ;;  %v7598_v5 = vpop.f32.mrb[34].mxu1  ;;  %v7563_v50 = vpop.f32.mrb[0].mxu0  ;;  %v6104_v29 = vmul.f32 %v5748_v30, %v5748_v30 }
 0x23f   : > { %6005 = vst.msk [vmem:[%s10085_s22 + $0x8] sm:$0xf] %vm4974_vm9, %v7087_v59  ;;  %v7088_v1 = vpack.c.bf16 %v7598_v5, %v7598_v5  ;;  %v5751_v48 = vpop.f32.mrb[35].mxu1  ;;  %v7627_v23 = vadd.f32 %v7563_v50, %v7393_v13  ;;  %v4687_v47 = vpop.f32.mrb[1].mxu0  ;;  %v6107_v42 = vmul.f32 %v7598_v5, %v7598_v5  ;;  %v6139_v62 = vsel %vm5007_vm8, %v6106_v8, 0.0 }
 0x240   : > { %6003 = vst.msk [vmem:[%s10085_s22] sm:$0xf] %vm4974_vm9, %v7085_v22  ;;  %v7086_v21 = vpack.c.bf16 %v5751_v48, %v5751_v48  ;;  %v6036_v10 = vsel %vm5007_vm8, %v5751_v48, 0.0  ;;  %v7628_v12 = vadd.f32 %v4687_v47, %v1936_v15  ;;  %v7564_v35 = vpop.f32.mrb[2].mxu0  ;;  %v6040_v0 = vsel %vm5007_vm8, %v7598_v5, 0.0 }
 0x241   : > { %6006 = vst.msk [vmem:[%s10085_s22 + $0xc] sm:$0xf] %vm4974_vm9, %v7088_v1  ;;  %v6037_v49 = vadd.f32 %v6036_v10, %v6035_v11  ;;  %v7055_v32 = vpack.c.bf16 %v7627_v23, %v7627_v23  ;;  %v7629_v56 = vadd.f32 %v7564_v35, %v10021_v33  ;;  %v4690_v40 = vpop.f32.mrb[3].mxu0  ;;  %v6105_v34 = vmul.f32 %v5751_v48, %v5751_v48 }
 0x242   : > { %6004 = vst.msk [vmem:[%s10085_s22 + $0x4] sm:$0xf] %vm4974_vm9, %v7086_v21  ;;  %v7053_v24 = vpack.c.bf16 %v7628_v12, %v7628_v12  ;;  %v5077_v52 = vmul.f32 %v7628_v12, %v7628_v12  ;;  %v6136_v27 = vsel %vm5007_vm8, %v6104_v29, 0.0  ;;  %v7630_v4 = vadd.f32 %v4690_v40, %v10023_v38 }
 0x243   : > { %4977 = vst.msk [vmem:[%s10097_s10 + $0x8] sm:$0xf] %vm4974_vm9, %v7055_v32  ;;  %v5011_v61 = vsel %vm5007_vm8, %v7627_v23, 0.0  ;;  %v5079_v60 = vmul.f32 %v7627_v23, %v7627_v23  ;;  %v7056_v13 = vpack.c.bf16 %v7629_v56, %v7629_v56  ;;  %v6141_v15 = vsel %vm5007_vm8, %v6107_v42, 0.0 }
 0x244   : > { %v7601_v33 = vpop.f32.mrb[36].mxu1  ;;  %4975 = vst.msk [vmem:[%s10097_s10] sm:$0xf] %vm4974_vm9, %v7053_v24  ;;  %v5008_v6 = vsel %vm5007_vm8, %v7628_v12, 0.0  ;;  %v7054_v59 = vpack.c.bf16 %v7630_v4, %v7630_v4  ;;  %v5009_v8 = vsel %vm5007_vm8, %v7630_v4, 0.0  ;;  %v5078_v30 = vmul.f32 %v7630_v4, %v7630_v4 }
 0x245   : > { %v5764_v22 = vpop.f32.mrb[37].mxu1  ;;  %4978 = vst.msk [vmem:[%s10097_s10 + $0xc] sm:$0xf] %vm4974_vm9, %v7056_v13  ;;  %v5080_v38 = vmul.f32 %v7629_v56, %v7629_v56  ;;  %v5010_v11 = vadd.f32 %v5009_v8, %v5008_v6  ;;  %v6039_v5 = vadd.f32 %v6038_v7, %v6037_v49  ;;  %v6137_v50 = vsel %vm5007_vm8, %v6105_v34, 0.0 }
 0x246   : > { %v10120_v29 = vpop.f32.mrb[38].mxu1  ;;  %v5109_v1 = vsel %vm5007_vm8, %v5077_v52, 0.0  ;;  %4976 = vst.msk [vmem:[%s10097_s10 + $0x4] sm:$0xf] %vm4974_vm9, %v7054_v59  ;;  %v5110_v48 = vsel %vm5007_vm8, %v5078_v30, 0.0  ;;  %v6138_v23 = vadd.f32 %v6137_v50, %v6136_v27  ;;  %v7567_v47 = vpop.f32.mrb[4].mxu0  ;;  %v7091_v42 = vpack.c.bf16 %v7601_v33, %v7601_v33 }
 0x247   : > { %v10126_v21 = vpop.f32.mrb[39].mxu1  ;;  %v5112_v10 = vsel %vm5007_vm8, %v5079_v60, 0.0  ;;  %v5012_v12 = vadd.f32 %v5011_v61, %v5010_v11  ;;  %v5111_v7 = vadd.f32 %v5110_v48, %v5109_v1  ;;  %v7631_v35 = vadd.f32 %v7567_v47, %v10025_v31  ;;  %v4703_v49 = vpop.f32.mrb[5].mxu0 }
 0x248   : > { %v6140_v32 = vadd.f32 %v6139_v62, %v6138_v23  ;;  %6009 = vst.msk [vmem:[%s10085_s22 + $0x18] sm:$0xf] %vm4974_vm9, %v7091_v42  ;;  %v7632_v40 = vadd.f32 %v4703_v49, %v10027_v53  ;;  %v7089_v34 = vpack.c.bf16 %v5764_v22, %v5764_v22  ;;  %v6041_v24 = vadd.f32 %v6040_v0, %v6039_v5  ;;  %v7568_v52 = vpop.f32.mrb[6].mxu0 }
 0x249   : > { %v5013_v27 = vsel %vm5007_vm8, %v7629_v56, 0.0  ;;  %v5114_v4 = vsel %vm5007_vm8, %v5080_v38, 0.0  ;;  %v5113_v61 = vadd.f32 %v5112_v10, %v5111_v7  ;;  %v7059_v60 = vpack.c.bf16 %v7631_v35, %v7631_v35  ;;  %v4706_v13 = vpop.f32.mrb[7].mxu0 }
 0x24a   : > { %v6110_v31 = vmul.f32 %v7601_v33, %v7601_v33  ;;  %v7057_v6 = vpack.c.bf16 %v7632_v40, %v7632_v40  ;;  %v5014_v59 = vadd.f32 %v5013_v27, %v5012_v12  ;;  %v5015_v62 = vsel %vm5007_vm8, %v7632_v40, 0.0  ;;  %6007 = vst.msk [vmem:[%s10085_s22 + $0x10] sm:$0xf] %vm4974_vm9, %v7089_v34 }
 0x24b   : > { %4981 = vst.msk [vmem:[%s10097_s10 + $0x18] sm:$0xf] %vm4974_vm9, %v7059_v60  ;;  %v5083_v53 = vmul.f32 %v7631_v35, %v7631_v35  ;;  %v5081_v0 = vmul.f32 %v7632_v40, %v7632_v40  ;;  %v5115_v8 = vadd.f32 %v5114_v4, %v5113_v61  ;;  %v6042_v56 = vsel %vm5007_vm8, %v5764_v22, 0.0 }
 0x24c   : > { %v10141_v30 = vpop.f32.mrb[40].mxu1  ;;  %4979 = vst.msk [vmem:[%s10097_s10 + $0x10] sm:$0xf] %vm4974_vm9, %v7057_v6  ;;  %v5016_v38 = vadd.f32 %v5015_v62, %v5014_v59  ;;  %v6043_v11 = vadd.f32 %v6042_v56, %v6041_v24  ;;  %v6108_v5 = vmul.f32 %v5764_v22, %v5764_v22  ;;  %v6142_v50 = vadd.f32 %v6141_v15, %v6140_v32 }
 0x24d   : > { %v10145_v1 = vpop.f32.mrb[41].mxu1  ;;  %v6046_v48 = vsel %vm5007_vm8, %v7601_v33, 0.0  ;;  %v5116_v23 = vsel %vm5007_vm8, %v5081_v0, 0.0  ;;  %v7633_v47 = vadd.f32 %v7568_v52, %v10029_v39  ;;  %v7092_v42 = vpack.c.bf16 %v10120_v29, %v10120_v29 }
 0x24e   : > { %v10152_v10 = vpop.f32.mrb[42].mxu1  ;;  %v5019_v12 = vsel %vm5007_vm8, %v7631_v35, 0.0  ;;  %v5117_v7 = vadd.f32 %v5116_v23, %v5115_v8  ;;  %v6143_v15 = vsel %vm5007_vm8, %v6108_v5, 0.0  ;;  %v7634_v22 = vadd.f32 %v4706_v13, %v10031_v2  ;;  %v7571_v49 = vpop.f32.mrb[8].mxu0 }
 0x24f   : > { %v10157_v32 = vpop.f32.mrb[43].mxu1  ;;  %v5120_v33 = vsel %vm5007_vm8, %v5083_v53, 0.0  ;;  %v6147_v39 = vsel %vm5007_vm8, %v6110_v31, 0.0  ;;  %v6144_v40 = vadd.f32 %v6143_v15, %v6142_v50  ;;  %v7060_v34 = vpack.c.bf16 %v7633_v47, %v7633_v47  ;;  %6010 = vst.msk [vmem:[%s10085_s22 + $0x1c] sm:$0xf] %vm4974_vm9, %v7092_v42  ;;  %v4719_v24 = vpop.f32.mrb[9].mxu0 }
 0x250   : > { %v6111_v35 = vmul.f32 %v10120_v29, %v10120_v29  ;;  %v7058_v52 = vpack.c.bf16 %v7634_v22, %v7634_v22  ;;  %v5017_v27 = vsel %vm5007_vm8, %v7634_v22, 0.0  ;;  %v5082_v2 = vmul.f32 %v7634_v22, %v7634_v22  ;;  %v7572_v4 = vpop.f32.mrb[10].mxu0 }
 0x251   : > { %4982 = vst.msk [vmem:[%s10097_s10 + $0x1c] sm:$0xf] %vm4974_vm9, %v7060_v34  ;;  %v5084_v61 = vmul.f32 %v7633_v47, %v7633_v47  ;;  %v5018_v60 = vadd.f32 %v5017_v27, %v5016_v38  ;;  %v7090_v13 = vpack.c.bf16 %v10126_v21, %v10126_v21  ;;  %v6044_v31 = vsel %vm5007_vm8, %v10126_v21, 0.0  ;;  %v4722_v6 = vpop.f32.mrb[11].mxu0 }
 0x252   : > { %4980 = vst.msk [vmem:[%s10097_s10 + $0x14] sm:$0xf] %vm4974_vm9, %v7058_v52  ;;  %v5118_v59 = vsel %vm5007_vm8, %v5082_v2, 0.0  ;;  %v6045_v62 = vadd.f32 %v6044_v31, %v6043_v11  ;;  %v6109_v53 = vmul.f32 %v10126_v21, %v10126_v21  ;;  %v7635_v0 = vadd.f32 %v7571_v49, %v10033_v3 }
 0x253   : > { %v6048_v8 = vsel %vm5007_vm8, %v10120_v29, 0.0  ;;  %v5020_v56 = vadd.f32 %v5019_v12, %v5018_v60  ;;  %v5119_v38 = vadd.f32 %v5118_v59, %v5117_v7  ;;  %6008 = vst.msk [vmem:[%s10085_s22 + $0x14] sm:$0xf] %vm4974_vm9, %v7090_v13  ;;  %v7095_v5 = vpack.c.bf16 %v10141_v30, %v10141_v30 }
 0x254   : > { %v10184_v50 = vpop.f32.mrb[44].mxu1  ;;  %v5021_v11 = vsel %vm5007_vm8, %v7633_v47, 0.0  ;;  %v6047_v23 = vadd.f32 %v6046_v48, %v6045_v62  ;;  %v6145_v21 = vsel %vm5007_vm8, %v6109_v53, 0.0  ;;  %v7063_v3 = vpack.c.bf16 %v7635_v0, %v7635_v0 }
 0x255   : > { %v10188_v42 = vpop.f32.mrb[45].mxu1  ;;  %v5122_v29 = vsel %vm5007_vm8, %v5084_v61, 0.0  ;;  %v6149_v12 = vsel %vm5007_vm8, %v6111_v35, 0.0  ;;  %v5121_v7 = vadd.f32 %v5120_v33, %v5119_v38  ;;  %v6146_v15 = vadd.f32 %v6145_v21, %v6144_v40  ;;  %6013 = vst.msk [vmem:[%s10085_s22 + $0x28] sm:$0xf] %vm4974_vm9, %v7095_v5 }
 0x256   : > { %v10194_v22 = vpop.f32.mrb[46].mxu1  ;;  %4985 = vst.msk [vmem:[%s10097_s10 + $0x28] sm:$0xf] %vm4974_vm9, %v7063_v3  ;;  %v7636_v48 = vadd.f32 %v4719_v24, %v10035_v43  ;;  %v5022_v47 = vadd.f32 %v5021_v11, %v5020_v56  ;;  %v7093_v49 = vpack.c.bf16 %v10145_v1, %v10145_v1  ;;  %v6049_v34 = vadd.f32 %v6048_v8, %v6047_v23  ;;  %v7575_v52 = vpop.f32.mrb[12].mxu0 }
 0x257   : > { %v10201_v27 = vpop.f32.mrb[47].mxu1  ;;  %v6148_v35 = vadd.f32 %v6147_v39, %v6146_v15  ;;  %v5087_v33 = vmul.f32 %v7635_v0, %v7635_v0  ;;  %v6114_v40 = vmul.f32 %v10141_v30, %v10141_v30  ;;  %v5123_v2 = vadd.f32 %v5122_v29, %v5121_v7  ;;  %v10205_v61 = vpop.f32.mrb[13].mxu0 }
 0x258   : > { %v7061_v60 = vpack.c.bf16 %v7636_v48, %v7636_v48  ;;  %v5023_v43 = vsel %vm5007_vm8, %v7636_v48, 0.0  ;;  %v5085_v24 = vmul.f32 %v7636_v48, %v7636_v48  ;;  %6011 = vst.msk [vmem:[%s10085_s22 + $0x20] sm:$0xf] %vm4974_vm9, %v7093_v49  ;;  %v6050_v13 = vsel %vm5007_vm8, %v10145_v1, 0.0  ;;  %v10212_v31 = vpop.f32.mrb[14].mxu0 }
 0x259   : > { %v5024_v39 = vadd.f32 %v5023_v43, %v5022_v47  ;;  %v6051_v59 = vadd.f32 %v6050_v13, %v6049_v34  ;;  %v6112_v62 = vmul.f32 %v10145_v1, %v10145_v1  ;;  %v6150_v53 = vadd.f32 %v6149_v12, %v6148_v35  ;;  %v10216_v8 = vpop.f32.mrb[15].mxu0 }
 0x25a   : > { %v6054_v56 = vsel %vm5007_vm8, %v10141_v30, 0.0  ;;  %4983 = vst.msk [vmem:[%s10097_s10 + $0x20] sm:$0xf] %vm4974_vm9, %v7061_v60  ;;  %v5124_v38 = vsel %vm5007_vm8, %v5085_v24, 0.0  ;;  %v7637_v5 = vadd.f32 %v7572_v4, %v10037_v25  ;;  %v7096_v11 = vpack.c.bf16 %v10152_v10, %v10152_v10 }
 0x25b   : > { %v5027_v23 = vsel %vm5007_vm8, %v7635_v0, 0.0  ;;  %v5125_v1 = vadd.f32 %v5124_v38, %v5123_v2  ;;  %v6151_v21 = vsel %vm5007_vm8, %v6112_v62, 0.0  ;;  %v7638_v3 = vadd.f32 %v4722_v6, %v10039_v28 }
 0x25c   : > { %v10229_v29 = vpop.f32.mrb[48].mxu1  ;;  %v5128_v30 = vsel %vm5007_vm8, %v5087_v33, 0.0  ;;  %v6155_v12 = vsel %vm5007_vm8, %v6114_v40, 0.0  ;;  %v6152_v7 = vadd.f32 %v6151_v21, %v6150_v53  ;;  %v7064_v25 = vpack.c.bf16 %v7637_v5, %v7637_v5  ;;  %6014 = vst.msk [vmem:[%s10085_s22 + $0x2c] sm:$0xf] %vm4974_vm9, %v7096_v11 }
 0x25d   : > { %v10235_v4 = vpop.f32.mrb[49].mxu1  ;;  %v6115_v0 = vmul.f32 %v10152_v10, %v10152_v10  ;;  %v7062_v15 = vpack.c.bf16 %v7638_v3, %v7638_v3  ;;  %v5025_v48 = vsel %vm5007_vm8, %v7638_v3, 0.0  ;;  %v5086_v28 = vmul.f32 %v7638_v3, %v7638_v3 }
 0x25e   : > { %v10240_v6 = vpop.f32.mrb[50].mxu1  ;;  %4986 = vst.msk [vmem:[%s10097_s10 + $0x2c] sm:$0xf] %vm4974_vm9, %v7064_v25  ;;  %v5088_v47 = vmul.f32 %v7637_v5, %v7637_v5  ;;  %v5026_v49 = vadd.f32 %v5025_v48, %v5024_v39  ;;  %v7094_v34 = vpack.c.bf16 %v10157_v32, %v10157_v32  ;;  %v6052_v35 = vsel %vm5007_vm8, %v10157_v32, 0.0  ;;  %v10248_v33 = vpop.f32.mrb[16].mxu0 }
 0x25f   : > { %v10250_v40 = vpop.f32.mrb[51].mxu1  ;;  %4984 = vst.msk [vmem:[%s10097_s10 + $0x24] sm:$0xf] %vm4974_vm9, %v7062_v15  ;;  %v5126_v2 = vsel %vm5007_vm8, %v5086_v28, 0.0  ;;  %v6053_v60 = vadd.f32 %v6052_v35, %v6051_v59  ;;  %v6113_v43 = vmul.f32 %v10157_v32, %v10157_v32  ;;  %v7639_v24 = vadd.f32 %v7575_v52, %v10041_v46  ;;  %v10258_v13 = vpop.f32.mrb[17].mxu0 }
 0x260   : > { %v6056_v39 = vsel %vm5007_vm8, %v10152_v10, 0.0  ;;  %v5028_v62 = vadd.f32 %v5027_v23, %v5026_v49  ;;  %v5127_v53 = vadd.f32 %v5126_v2, %v5125_v1  ;;  %6012 = vst.msk [vmem:[%s10085_s22 + $0x24] sm:$0xf] %vm4974_vm9, %v7094_v34  ;;  %v7099_v38 = vpack.c.bf16 %v10184_v50, %v10184_v50  ;;  %v10266_v59 = vpop.f32.mrb[18].mxu0 }
 0x261   : > { %v5029_v32 = vsel %vm5007_vm8, %v7637_v5, 0.0  ;;  %v6055_v11 = vadd.f32 %v6054_v56, %v6053_v60  ;;  %v6153_v46 = vsel %vm5007_vm8, %v6113_v43, 0.0  ;;  %v7067_v52 = vpack.c.bf16 %v7639_v24, %v7639_v24  ;;  %v10270_v21 = vpop.f32.mrb[19].mxu0 }
 0x262   : > { %v5130_v10 = vsel %vm5007_vm8, %v5088_v47, 0.0  ;;  %v6157_v23 = vsel %vm5007_vm8, %v6115_v0, 0.0  ;;  %v5129_v1 = vadd.f32 %v5128_v30, %v5127_v53  ;;  %v6154_v3 = vadd.f32 %v6153_v46, %v6152_v7  ;;  %6017 = vst.msk [vmem:[%s10085_s22 + $0x38] sm:$0xf] %vm4974_vm9, %v7099_v38 }
 0x263   : > { %4989 = vst.msk [vmem:[%s10097_s10 + $0x38] sm:$0xf] %vm4974_vm9, %v7067_v52  ;;  %v7640_v5 = vadd.f32 %v10205_v61, %v10043_v19  ;;  %v5030_v56 = vadd.f32 %v5029_v32, %v5028_v62  ;;  %v7097_v25 = vpack.c.bf16 %v10188_v42, %v10188_v42  ;;  %v6057_v15 = vadd.f32 %v6056_v39, %v6055_v11 }
 0x264   : > { %v10282_v48 = vpop.f32.mrb[52].mxu1  ;;  %v6156_v28 = vadd.f32 %v6155_v12, %v6154_v3  ;;  %v5091_v47 = vmul.f32 %v7639_v24, %v7639_v24  ;;  %v6118_v30 = vmul.f32 %v10184_v50, %v10184_v50  ;;  %v5131_v7 = vadd.f32 %v5130_v10, %v5129_v1 }
 0x265   : > { %v10286_v0 = vpop.f32.mrb[53].mxu1  ;;  %v7065_v49 = vpack.c.bf16 %v7640_v5, %v7640_v5  ;;  %v5031_v34 = vsel %vm5007_vm8, %v7640_v5, 0.0  ;;  %v5089_v19 = vmul.f32 %v7640_v5, %v7640_v5  ;;  %6015 = vst.msk [vmem:[%s10085_s22 + $0x30] sm:$0xf] %vm4974_vm9, %v7097_v25  ;;  %v6058_v61 = vsel %vm5007_vm8, %v10188_v42, 0.0 }
 0x266   : > { %v10293_v35 = vpop.f32.mrb[54].mxu1  ;;  %v5032_v12 = vadd.f32 %v5031_v34, %v5030_v56  ;;  %v6059_v2 = vadd.f32 %v6058_v61, %v6057_v15  ;;  %v6116_v60 = vmul.f32 %v10188_v42, %v10188_v42  ;;  %v6158_v43 = vadd.f32 %v6157_v23, %v6156_v28  ;;  %v10297_v39 = vpop.f32.mrb[20].mxu0 }
 0x267   : > { %v10299_v62 = vpop.f32.mrb[55].mxu1  ;;  %v6062_v53 = vsel %vm5007_vm8, %v10184_v50, 0.0  ;;  %4987 = vst.msk [vmem:[%s10097_s10 + $0x30] sm:$0xf] %vm4974_vm9, %v7065_v49  ;;  %v5132_v38 = vsel %vm5007_vm8, %v5089_v19, 0.0  ;;  %v7641_v32 = vadd.f32 %v10212_v31, %v10045_v26  ;;  %v7100_v11 = vpack.c.bf16 %v10194_v22, %v10194_v22  ;;  %v10310_v42 = vpop.f32.mrb[21].mxu0 }
 0x268   : > { %v5035_v46 = vsel %vm5007_vm8, %v7639_v24, 0.0  ;;  %v5133_v52 = vadd.f32 %v5132_v38, %v5131_v7  ;;  %v6159_v10 = vsel %vm5007_vm8, %v6116_v60, 0.0  ;;  %v7642_v50 = vadd.f32 %v10216_v8, %v10047_v58  ;;  %v10316_v23 = vpop.f32.mrb[22].mxu0 }
 0x269   : > { %v5136_v1 = vsel %vm5007_vm8, %v5091_v47, 0.0  ;;  %v6163_v26 = vsel %vm5007_vm8, %v6118_v30, 0.0  ;;  %v6160_v31 = vadd.f32 %v6159_v10, %v6158_v43  ;;  %v7068_v3 = vpack.c.bf16 %v7641_v32, %v7641_v32  ;;  %6018 = vst.msk [vmem:[%s10085_s22 + $0x3c] sm:$0xf] %vm4974_vm9, %v7100_v11  ;;  %v10322_v5 = vpop.f32.mrb[23].mxu0 }
 0x26a   : > { %v6119_v24 = vmul.f32 %v10194_v22, %v10194_v22  ;;  %v7066_v56 = vpack.c.bf16 %v7642_v50, %v7642_v50  ;;  %v5033_v25 = vsel %vm5007_vm8, %v7642_v50, 0.0  ;;  %v5090_v58 = vmul.f32 %v7642_v50, %v7642_v50 }
 0x26b   : > { %4990 = vst.msk [vmem:[%s10097_s10 + $0x3c] sm:$0xf] %vm4974_vm9, %v7068_v3  ;;  %v5092_v8 = vmul.f32 %v7641_v32, %v7641_v32  ;;  %v5034_v15 = vadd.f32 %v5033_v25, %v5032_v12  ;;  %v7098_v28 = vpack.c.bf16 %v10201_v27, %v10201_v27  ;;  %v6060_v47 = vsel %vm5007_vm8, %v10201_v27, 0.0 }
 0x26c   : > { %v10333_v30 = vpop.f32.mrb[56].mxu1  ;;  %4988 = vst.msk [vmem:[%s10097_s10 + $0x34] sm:$0xf] %vm4974_vm9, %v7066_v56  ;;  %v5134_v7 = vsel %vm5007_vm8, %v5090_v58, 0.0  ;;  %v6061_v49 = vadd.f32 %v6060_v47, %v6059_v2  ;;  %v6117_v34 = vmul.f32 %v10201_v27, %v10201_v27  ;;  %v7643_v19 = vadd.f32 %v10248_v33, %v10049_v57 }
 0x26d   : > { %v10342_v61 = vpop.f32.mrb[57].mxu1  ;;  %v6064_v12 = vsel %vm5007_vm8, %v10194_v22, 0.0  ;;  %v5036_v60 = vadd.f32 %v5035_v46, %v5034_v15  ;;  %v5135_v43 = vadd.f32 %v5134_v7, %v5133_v52  ;;  %6016 = vst.msk [vmem:[%s10085_s22 + $0x34] sm:$0xf] %vm4974_vm9, %v7098_v28  ;;  %v7103_v2 = vpack.c.bf16 %v10229_v29, %v10229_v29 }
 0x26e   : > { %v10350_v38 = vpop.f32.mrb[58].mxu1  ;;  %v5037_v27 = vsel %vm5007_vm8, %v7641_v32, 0.0  ;;  %v6063_v11 = vadd.f32 %v6062_v53, %v6061_v49  ;;  %v6161_v57 = vsel %vm5007_vm8, %v6117_v34, 0.0  ;;  %v7071_v33 = vpack.c.bf16 %v7643_v19, %v7643_v19  ;;  %v10354_v10 = vpop.f32.mrb[24].mxu0 }
 0x26f   : > { %v10356_v22 = vpop.f32.mrb[59].mxu1  ;;  %v5138_v46 = vsel %vm5007_vm8, %v5092_v8, 0.0  ;;  %v6165_v52 = vsel %vm5007_vm8, %v6119_v24, 0.0  ;;  %v5137_v50 = vadd.f32 %v5136_v1, %v5135_v43  ;;  %v6162_v3 = vadd.f32 %v6161_v57, %v6160_v31  ;;  %6021 = vst.msk [vmem:[%s10085_s22 + $0x48] sm:$0xf] %vm4974_vm9, %v7103_v2  ;;  %v10362_v56 = vpop.f32.mrb[25].mxu0 }
 0x270   : > { %4993 = vst.msk [vmem:[%s10097_s10 + $0x48] sm:$0xf] %vm4974_vm9, %v7071_v33  ;;  %v7644_v53 = vadd.f32 %v10258_v13, %v10051_v45  ;;  %v5038_v32 = vadd.f32 %v5037_v27, %v5036_v60  ;;  %v7101_v25 = vpack.c.bf16 %v10235_v4, %v10235_v4  ;;  %v6065_v58 = vadd.f32 %v6064_v12, %v6063_v11  ;;  %v10370_v8 = vpop.f32.mrb[26].mxu0 }
 0x271   : > { %v6164_v24 = vadd.f32 %v6163_v26, %v6162_v3  ;;  %v5095_v1 = vmul.f32 %v7643_v19, %v7643_v19  ;;  %v6122_v31 = vmul.f32 %v10229_v29, %v10229_v29  ;;  %v5139_v15 = vadd.f32 %v5138_v46, %v5137_v50  ;;  %v10374_v28 = vpop.f32.mrb[27].mxu0 }
 0x272   : > { %v7069_v47 = vpack.c.bf16 %v7644_v53, %v7644_v53  ;;  %v5039_v7 = vsel %vm5007_vm8, %v7644_v53, 0.0  ;;  %v5093_v45 = vmul.f32 %v7644_v53, %v7644_v53  ;;  %6019 = vst.msk [vmem:[%s10085_s22 + $0x40] sm:$0xf] %vm4974_vm9, %v7101_v25  ;;  %v6066_v13 = vsel %vm5007_vm8, %v10235_v4, 0.0 }
 0x273   : > { %v5040_v49 = vadd.f32 %v5039_v7, %v5038_v32  ;;  %v6067_v34 = vadd.f32 %v6066_v13, %v6065_v58  ;;  %v6120_v26 = vmul.f32 %v10235_v4, %v10235_v4  ;;  %v6166_v12 = vadd.f32 %v6165_v52, %v6164_v24 }
 0x274   : > { %v10383_v60 = vpop.f32.mrb[60].mxu1  ;;  %v6070_v43 = vsel %vm5007_vm8, %v10229_v29, 0.0  ;;  %4991 = vst.msk [vmem:[%s10097_s10 + $0x40] sm:$0xf] %vm4974_vm9, %v7069_v47  ;;  %v5140_v2 = vsel %vm5007_vm8, %v5093_v45, 0.0  ;;  %v7645_v27 = vadd.f32 %v10266_v59, %v10053_v9  ;;  %v7104_v11 = vpack.c.bf16 %v10240_v6, %v10240_v6 }
 0x275   : > { %v10394_v57 = vpop.f32.mrb[61].mxu1  ;;  %v5043_v4 = vsel %vm5007_vm8, %v7643_v19, 0.0  ;;  %v5141_v33 = vadd.f32 %v5140_v2, %v5139_v15  ;;  %v6167_v46 = vsel %vm5007_vm8, %v6120_v26, 0.0  ;;  %v7646_v29 = vadd.f32 %v10270_v21, %v10055_v36 }
 0x276   : > { %v10400_v52 = vpop.f32.mrb[62].mxu1  ;;  %v5144_v50 = vsel %vm5007_vm8, %v5095_v1, 0.0  ;;  %v6171_v9 = vsel %vm5007_vm8, %v6122_v31, 0.0  ;;  %v6168_v59 = vadd.f32 %v6167_v46, %v6166_v12  ;;  %v7072_v3 = vpack.c.bf16 %v7645_v27, %v7645_v27  ;;  %6022 = vst.msk [vmem:[%s10085_s22 + $0x4c] sm:$0xf] %vm4974_vm9, %v7104_v11  ;;  %v10406_v53 = vpop.f32.mrb[28].mxu0 }
 0x277   : > { %v10408_v19 = vpop.f32.mrb[63].mxu1  ;;  %v6123_v32 = vmul.f32 %v10240_v6, %v10240_v6  ;;  %v7070_v25 = vpack.c.bf16 %v7646_v29, %v7646_v29  ;;  %v5041_v36 = vsel %vm5007_vm8, %v7646_v29, 0.0  ;;  %v5094_v21 = vmul.f32 %v7646_v29, %v7646_v29  ;;  %v10413_v58 = vpop.f32.mrb[29].mxu0 }
 0x278   : > { %4994 = vst.msk [vmem:[%s10097_s10 + $0x4c] sm:$0xf] %vm4974_vm9, %v7072_v3  ;;  %v5096_v24 = vmul.f32 %v7645_v27, %v7645_v27  ;;  %v5042_v1 = vadd.f32 %v5041_v36, %v5040_v49  ;;  %v7102_v31 = vpack.c.bf16 %v10250_v40, %v10250_v40  ;;  %v6068_v15 = vsel %vm5007_vm8, %v10250_v40, 0.0  ;;  %v10421_v47 = vpop.f32.mrb[30].mxu0 }
 0x279   : > { %4992 = vst.msk [vmem:[%s10097_s10 + $0x44] sm:$0xf] %vm4974_vm9, %v7070_v25  ;;  %v5142_v7 = vsel %vm5007_vm8, %v5094_v21, 0.0  ;;  %v6069_v45 = vadd.f32 %v6068_v15, %v6067_v34  ;;  %v6121_v13 = vmul.f32 %v10250_v40, %v10250_v40  ;;  %v7647_v49 = vadd.f32 %v10297_v39, %v10057_v16  ;;  %v10430_v26 = vpop.f32.mrb[31].mxu0 }
 0x27a   : > { %v6072_v12 = vsel %vm5007_vm8, %v10240_v6, 0.0  ;;  %v5044_v2 = vadd.f32 %v5043_v4, %v5042_v1  ;;  %v5143_v11 = vadd.f32 %v5142_v7, %v5141_v33  ;;  %6020 = vst.msk [vmem:[%s10085_s22 + $0x44] sm:$0xf] %vm4974_vm9, %v7102_v31  ;;  %v7107_v34 = vpack.c.bf16 %v10282_v48, %v10282_v48 }
 0x27b   : > { %v5045_v46 = vsel %vm5007_vm8, %v7645_v27, 0.0  ;;  %v6071_v40 = vadd.f32 %v6070_v43, %v6069_v45  ;;  %v6169_v29 = vsel %vm5007_vm8, %v6121_v13, 0.0  ;;  %v7075_v3 = vpack.c.bf16 %v7647_v49, %v7647_v49 }
 0x27c   : > { %v5146_v16 = vsel %vm5007_vm8, %v5096_v24, 0.0  ;;  %v6173_v39 = vsel %vm5007_vm8, %v6123_v32, 0.0  ;;  %v5145_v25 = vadd.f32 %v5144_v50, %v5143_v11  ;;  %v6170_v6 = vadd.f32 %v6169_v29, %v6168_v59  ;;  %6025 = vst.msk [vmem:[%s10085_s22 + $0x58] sm:$0xf] %vm4974_vm9, %v7107_v34 }
 0x27d   : > { %4997 = vst.msk [vmem:[%s10097_s10 + $0x58] sm:$0xf] %vm4974_vm9, %v7075_v3  ;;  %v7648_v4 = vadd.f32 %v10310_v42, %v10059_v63  ;;  %v5046_v33 = vadd.f32 %v5045_v46, %v5044_v2  ;;  %v7105_v43 = vpack.c.bf16 %v10286_v0, %v10286_v0  ;;  %v6073_v27 = vadd.f32 %v6072_v12, %v6071_v40 }
 0x27e   : > { %v6172_v36 = vadd.f32 %v6171_v9, %v6170_v6  ;;  %v5099_v21 = vmul.f32 %v7647_v49, %v7647_v49  ;;  %v6126_v32 = vmul.f32 %v10282_v48, %v10282_v48  ;;  %v5147_v50 = vadd.f32 %v5146_v16, %v5145_v25 }
 0x27f   : > { %v7073_v59 = vpack.c.bf16 %v7648_v4, %v7648_v4  ;;  %v5047_v24 = vsel %vm5007_vm8, %v7648_v4, 0.0  ;;  %v5097_v1 = vmul.f32 %v7648_v4, %v7648_v4  ;;  %6023 = vst.msk [vmem:[%s10085_s22 + $0x50] sm:$0xf] %vm4974_vm9, %v7105_v43  ;;  %v6074_v63 = vsel %vm5007_vm8, %v10286_v0, 0.0 }
 0x280   : > { %v5048_v42 = vadd.f32 %v5047_v24, %v5046_v33  ;;  %v6075_v31 = vadd.f32 %v6074_v63, %v6073_v27  ;;  %v6124_v9 = vmul.f32 %v10286_v0, %v10286_v0  ;;  %v6174_v15 = vadd.f32 %v6173_v39, %v6172_v36 }
 0x281   : > { %v6078_v7 = vsel %vm5007_vm8, %v10282_v48, 0.0  ;;  %4995 = vst.msk [vmem:[%s10097_s10 + $0x50] sm:$0xf] %vm4974_vm9, %v7073_v59  ;;  %v5148_v45 = vsel %vm5007_vm8, %v5097_v1, 0.0  ;;  %v7649_v13 = vadd.f32 %v10316_v23, %v10061_v37  ;;  %v7108_v12 = vpack.c.bf16 %v10293_v35, %v10293_v35 }
 0x282   : > { %v5051_v2 = vsel %vm5007_vm8, %v7647_v49, 0.0  ;;  %v5149_v11 = vadd.f32 %v5148_v45, %v5147_v50  ;;  %v6175_v0 = vsel %vm5007_vm8, %v6124_v9, 0.0  ;;  %v7650_v48 = vadd.f32 %v10322_v5, %v10063_v18 }
 0x283   : > { %v5152_v34 = vsel %vm5007_vm8, %v5099_v21, 0.0  ;;  %v6179_v46 = vsel %vm5007_vm8, %v6126_v32, 0.0  ;;  %v6176_v40 = vadd.f32 %v6175_v0, %v6174_v15  ;;  %v7076_v29 = vpack.c.bf16 %v7649_v13, %v7649_v13  ;;  %6026 = vst.msk [vmem:[%s10085_s22 + $0x5c] sm:$0xf] %vm4974_vm9, %v7108_v12 }
 0x284   : > { %v6127_v37 = vmul.f32 %v10293_v35, %v10293_v35  ;;  %v7074_v23 = vpack.c.bf16 %v7650_v48, %v7650_v48  ;;  %v5049_v49 = vsel %vm5007_vm8, %v7650_v48, 0.0  ;;  %v5098_v3 = vmul.f32 %v7650_v48, %v7650_v48 }
 0x285   : > { %4998 = vst.msk [vmem:[%s10097_s10 + $0x5c] sm:$0xf] %vm4974_vm9, %v7076_v29  ;;  %v5100_v16 = vmul.f32 %v7649_v13, %v7649_v13  ;;  %v5050_v18 = vadd.f32 %v5049_v49, %v5048_v42  ;;  %v7106_v5 = vpack.c.bf16 %v10299_v62, %v10299_v62  ;;  %v6076_v39 = vsel %vm5007_vm8, %v10299_v62, 0.0 }
 0x286   : > { %4996 = vst.msk [vmem:[%s10097_s10 + $0x54] sm:$0xf] %vm4974_vm9, %v7074_v23  ;;  %v5150_v25 = vsel %vm5007_vm8, %v5098_v3, 0.0  ;;  %v6077_v6 = vadd.f32 %v6076_v39, %v6075_v31  ;;  %v6125_v4 = vmul.f32 %v10299_v62, %v10299_v62  ;;  %v7651_v33 = vadd.f32 %v10354_v10, %v10065_v55 }
 0x287   : > { %v6080_v43 = vsel %vm5007_vm8, %v10293_v35, 0.0  ;;  %v5052_v27 = vadd.f32 %v5051_v2, %v5050_v18  ;;  %v5151_v36 = vadd.f32 %v5150_v25, %v5149_v11  ;;  %6024 = vst.msk [vmem:[%s10085_s22 + $0x54] sm:$0xf] %vm4974_vm9, %v7106_v5  ;;  %v7111_v21 = vpack.c.bf16 %v10333_v30, %v10333_v30 }
 0x288   : > { %v5053_v32 = vsel %vm5007_vm8, %v7649_v13, 0.0  ;;  %v6079_v50 = vadd.f32 %v6078_v7, %v6077_v6  ;;  %v6177_v59 = vsel %vm5007_vm8, %v6125_v4, 0.0  ;;  %v7079_v62 = vpack.c.bf16 %v7651_v33, %v7651_v33 }
 0x289   : > { %v5154_v24 = vsel %vm5007_vm8, %v5100_v16, 0.0  ;;  %v6181_v55 = vsel %vm5007_vm8, %v6127_v37, 0.0  ;;  %v5153_v10 = vadd.f32 %v5152_v34, %v5151_v36  ;;  %v6178_v35 = vadd.f32 %v6177_v59, %v6176_v40  ;;  %6029 = vst.msk [vmem:[%s10085_s22 + $0x68] sm:$0xf] %vm4974_vm9, %v7111_v21 }
 0x28a   : > { %5001 = vst.msk [vmem:[%s10097_s10 + $0x68] sm:$0xf] %vm4974_vm9, %v7079_v62  ;;  %v7652_v1 = vadd.f32 %v10362_v56, %v10067_v17  ;;  %v5054_v63 = vadd.f32 %v5053_v32, %v5052_v27  ;;  %v7109_v42 = vpack.c.bf16 %v10342_v61, %v10342_v61  ;;  %v6081_v31 = vadd.f32 %v6080_v43, %v6079_v50 }
 0x28b   : > { %v6180_v9 = vadd.f32 %v6179_v46, %v6178_v35  ;;  %v5103_v15 = vmul.f32 %v7651_v33, %v7651_v33  ;;  %v6130_v7 = vmul.f32 %v10333_v30, %v10333_v30  ;;  %v5155_v45 = vadd.f32 %v5154_v24, %v5153_v10 }
 0x28c   : > { %v7077_v13 = vpack.c.bf16 %v7652_v1, %v7652_v1  ;;  %v5055_v12 = vsel %vm5007_vm8, %v7652_v1, 0.0  ;;  %v5101_v2 = vmul.f32 %v7652_v1, %v7652_v1  ;;  %6027 = vst.msk [vmem:[%s10085_s22 + $0x60] sm:$0xf] %vm4974_vm9, %v7109_v42  ;;  %v6082_v17 = vsel %vm5007_vm8, %v10342_v61, 0.0 }
 0x28d   : > { %v5056_v56 = vadd.f32 %v5055_v12, %v5054_v63  ;;  %v6083_v11 = vadd.f32 %v6082_v17, %v6081_v31  ;;  %v6128_v0 = vmul.f32 %v10342_v61, %v10342_v61  ;;  %v6182_v48 = vadd.f32 %v6181_v55, %v6180_v9 }
 0x28e   : > { %4999 = vst.msk [vmem:[%s10097_s10 + $0x60] sm:$0xf] %vm4974_vm9, %v7077_v13  ;;  %v5156_v34 = vsel %vm5007_vm8, %v5101_v2, 0.0  ;;  %v7653_v46 = vadd.f32 %v10370_v8, %v10069_v14  ;;  %v7112_v40 = vpack.c.bf16 %v10350_v38, %v10350_v38  ;;  %v6086_v29 = vsel %vm5007_vm8, %v10333_v30, 0.0 }
 0x28f   : > { %v5157_v37 = vadd.f32 %v5156_v34, %v5155_v45  ;;  %v6183_v23 = vsel %vm5007_vm8, %v6128_v0, 0.0  ;;  %v7654_v61 = vadd.f32 %v10374_v28, %v10072_v20  ;;  %v5059_v49 = vsel %vm5007_vm8, %v7651_v33, 0.0 }
 0x290   : > { %v5160_v3 = vsel %vm5007_vm8, %v5103_v15, 0.0  ;;  %v6184_v16 = vadd.f32 %v6183_v23, %v6182_v48  ;;  %v7080_v18 = vpack.c.bf16 %v7653_v46, %v7653_v46  ;;  %6030 = vst.msk [vmem:[%s10085_s22 + $0x6c] sm:$0xf] %vm4974_vm9, %v7112_v40  ;;  %v6187_v14 = vsel %vm5007_vm8, %v6130_v7, 0.0 }
 0x291   : > { %v7078_v8 = vpack.c.bf16 %v7654_v61, %v7654_v61  ;;  %v5057_v30 = vsel %vm5007_vm8, %v7654_v61, 0.0  ;;  %v5102_v5 = vmul.f32 %v7654_v61, %v7654_v61  ;;  %v5104_v39 = vmul.f32 %v7653_v46, %v7653_v46 }
 0x292   : > { %5002 = vst.msk [vmem:[%s10097_s10 + $0x6c] sm:$0xf] %vm4974_vm9, %v7080_v18  ;;  %v5058_v25 = vadd.f32 %v5057_v30, %v5056_v56  ;;  %v7110_v20 = vpack.c.bf16 %v10356_v22, %v10356_v22  ;;  %v6084_v28 = vsel %vm5007_vm8, %v10356_v22, 0.0  ;;  %v6129_v33 = vmul.f32 %v10356_v22, %v10356_v22 }
 0x293   : > { %5000 = vst.msk [vmem:[%s10097_s10 + $0x64] sm:$0xf] %vm4974_vm9, %v7078_v8  ;;  %v5158_v6 = vsel %vm5007_vm8, %v5102_v5, 0.0  ;;  %v6085_v4 = vadd.f32 %v6084_v28, %v6083_v11  ;;  %v7655_v43 = vadd.f32 %v10406_v53, %v10074_v41  ;;  %v6131_v27 = vmul.f32 %v10350_v38, %v10350_v38 }
 0x294   : > { %v5060_v36 = vadd.f32 %v5059_v49, %v5058_v25  ;;  %v5159_v21 = vadd.f32 %v5158_v6, %v5157_v37  ;;  %6028 = vst.msk [vmem:[%s10085_s22 + $0x64] sm:$0xf] %vm4974_vm9, %v7110_v20  ;;  %v7115_v32 = vpack.c.bf16 %v10383_v60, %v10383_v60  ;;  %v6088_v50 = vsel %vm5007_vm8, %v10350_v38, 0.0 }
 0x295   : > { %v6087_v59 = vadd.f32 %v6086_v29, %v6085_v4  ;;  %v6185_v22 = vsel %vm5007_vm8, %v6129_v33, 0.0  ;;  %v7083_v62 = vpack.c.bf16 %v7655_v43, %v7655_v43  ;;  %v5061_v24 = vsel %vm5007_vm8, %v7653_v46, 0.0 }
 0x296   : > { %v5162_v41 = vsel %vm5007_vm8, %v5104_v39, 0.0  ;;  %v5161_v53 = vadd.f32 %v5160_v3, %v5159_v21  ;;  %v6186_v55 = vadd.f32 %v6185_v22, %v6184_v16  ;;  %6033 = vst.msk [vmem:[%s10085_s22 + $0x78] sm:$0xf] %vm4974_vm9, %v7115_v32  ;;  %v7656_v10 = vadd.f32 %v10413_v58, %v10076_v51 }
 0x297   : > { %5005 = vst.msk [vmem:[%s10097_s10 + $0x78] sm:$0xf] %vm4974_vm9, %v7083_v62  ;;  %v5062_v38 = vadd.f32 %v5061_v24, %v5060_v36  ;;  %v7113_v35 = vpack.c.bf16 %v10394_v57, %v10394_v57  ;;  %v6089_v1 = vadd.f32 %v6088_v50, %v6087_v59  ;;  %v6189_v63 = vsel %vm5007_vm8, %v6131_v27, 0.0 }
 0x298   : > { %v6188_v42 = vadd.f32 %v6187_v14, %v6186_v55  ;;  %v5163_v31 = vadd.f32 %v5162_v41, %v5161_v53  ;;  %v7081_v9 = vpack.c.bf16 %v7656_v10, %v7656_v10  ;;  %v5063_v15 = vsel %vm5007_vm8, %v7656_v10, 0.0 }
 0x299   : > { %v5105_v7 = vmul.f32 %v7656_v10, %v7656_v10  ;;  %6031 = vst.msk [vmem:[%s10085_s22 + $0x70] sm:$0xf] %vm4974_vm9, %v7113_v35  ;;  %v6090_v51 = vsel %vm5007_vm8, %v10394_v57, 0.0  ;;  %v5064_v58 = vadd.f32 %v5063_v15, %v5062_v38  ;;  %v6132_v13 = vmul.f32 %v10394_v57, %v10394_v57 }
 0x29a   : > { %v6091_v45 = vadd.f32 %v6090_v51, %v6089_v1  ;;  %v6190_v12 = vadd.f32 %v6189_v63, %v6188_v42  ;;  %5003 = vst.msk [vmem:[%s10097_s10 + $0x70] sm:$0xf] %vm4974_vm9, %v7081_v9  ;;  %v7657_v17 = vadd.f32 %v10421_v47, %v10078_v44  ;;  %v7116_v56 = vpack.c.bf16 %v10400_v52, %v10400_v52 }
 0x29b   : > { %v5164_v2 = vsel %vm5007_vm8, %v5105_v7, 0.0  ;;  %v6191_v0 = vsel %vm5007_vm8, %v6132_v13, 0.0  ;;  %v7658_v48 = vadd.f32 %v10430_v26, %v10080_v54  ;;  %v5107_v57 = vmul.f32 %v7655_v43, %v7655_v43 }
 0x29c   : > { %v5165_v11 = vadd.f32 %v5164_v2, %v5163_v31  ;;  %v6192_v34 = vadd.f32 %v6191_v0, %v6190_v12  ;;  %v7084_v46 = vpack.c.bf16 %v7657_v17, %v7657_v17  ;;  %6034 = vst.msk [vmem:[%s10085_s22 + $0x7c] sm:$0xf] %vm4974_vm9, %v7116_v56  ;;  %v5067_v40 = vsel %vm5007_vm8, %v7655_v43, 0.0 }
 0x29d   : > { %v7082_v29 = vpack.c.bf16 %v7658_v48, %v7658_v48  ;;  %v5065_v44 = vsel %vm5007_vm8, %v7658_v48, 0.0  ;;  %v5106_v47 = vmul.f32 %v7658_v48, %v7658_v48  ;;  %v6134_v37 = vmul.f32 %v10383_v60, %v10383_v60 }
 0x29e   : > { %5006 = vst.msk [vmem:[%s10097_s10 + $0x7c] sm:$0xf] %vm4974_vm9, %v7084_v46  ;;  %v5066_v23 = vadd.f32 %v5065_v44, %v5064_v58  ;;  %v7114_v54 = vpack.c.bf16 %v10408_v19, %v10408_v19  ;;  %v6092_v26 = vsel %vm5007_vm8, %v10408_v19, 0.0  ;;  %v5108_v61 = vmul.f32 %v7657_v17, %v7657_v17 }
 0x29f   : > { %5004 = vst.msk [vmem:[%s10097_s10 + $0x74] sm:$0xf] %vm4974_vm9, %v7082_v29  ;;  %v5166_v49 = vsel %vm5007_vm8, %v5106_v47, 0.0  ;;  %v6093_v3 = vadd.f32 %v6092_v26, %v6091_v45  ;;  %v6133_v16 = vmul.f32 %v10408_v19, %v10408_v19  ;;  %v5168_v18 = vsel %vm5007_vm8, %v5107_v57, 0.0 }
 0x2a0   : > { %v6094_v14 = vsel %vm5007_vm8, %v10383_v60, 0.0  ;;  %v5068_v8 = vadd.f32 %v5067_v40, %v5066_v23  ;;  %v5167_v30 = vadd.f32 %v5166_v49, %v5165_v11  ;;  %6032 = vst.msk [vmem:[%s10085_s22 + $0x74] sm:$0xf] %vm4974_vm9, %v7114_v54  ;;  %v5069_v5 = vsel %vm5007_vm8, %v7657_v17, 0.0 }
 0x2a1   : > { %v6135_v39 = vmul.f32 %v10400_v52, %v10400_v52  ;;  %v6095_v25 = vadd.f32 %v6094_v14, %v6093_v3  ;;  %v6193_v20 = vsel %vm5007_vm8, %v6133_v16, 0.0  ;;  %v6096_v19 = vsel %vm5007_vm8, %v10400_v52, 0.0 }
 0x2a2   : > { %v5070_v28 = vadd.f32 %v5069_v5, %v5068_v8  ;;  %v5169_v6 = vadd.f32 %v5168_v18, %v5167_v30  ;;  %v6194_v4 = vadd.f32 %v6193_v20, %v6192_v34  ;;  %v6195_v60 = vsel %vm5007_vm8, %v6134_v37, 0.0 }
 0x2a3   : > { %v5170_v33 = vsel %vm5007_vm8, %v5108_v61, 0.0  ;;  %v6097_v43 = vadd.f32 %v6096_v19, %v6095_v25  ;;  %v6197_v32 = vsel %vm5007_vm8, %v6135_v39, 0.0 }
 0x2a4   : > { %v5071_v27 = vrot.slane %v5070_v28, 4  ;;  %v5171_v36 = vadd.f32 %v5170_v33, %v5169_v6  ;;  %v6196_v21 = vadd.f32 %v6195_v60, %v6194_v4 }
 0x2a5   : > { %v6098_v50 = vrot.slane %v6097_v43, 4 }
 0x2a6   : > { %v5072_v59 = vadd.f32 %v5071_v27, %v5070_v28  ;;  %v5172_v22 = vrot.slane %v5171_v36, 4  ;;  %v6198_v62 = vadd.f32 %v6197_v32, %v6196_v21 }
 0x2a7   : > { %v6099_v24 = vadd.f32 %v6098_v50, %v6097_v43 }
 0x2a8   : > { %v5073_v52 = vrot.slane %v5072_v59, 2  ;;  %v5173_v41 = vadd.f32 %v5172_v22, %v5171_v36  ;;  %v6199_v53 = vrot.slane %v6198_v62, 4 }
 0x2a9   : > { %v6100_v55 = vrot.slane %v6099_v24, 2 }
 0x2aa   : > { %v5074_v10 = vadd.f32 %v5073_v52, %v5072_v59  ;;  %v5174_v38 = vrot.slane %v5173_v41, 2  ;;  %v6200_v35 = vadd.f32 %v6199_v53, %v6198_v62 }
 0x2ab   : > { %v6101_v1 = vadd.f32 %v6100_v55, %v6099_v24 }
 0x2ac   : > { %v5075_v63 = vrot.slane %v5074_v10, 1  ;;  %v5175_v42 = vadd.f32 %v5174_v38, %v5173_v41  ;;  %v6201_v31 = vrot.slane %v6200_v35, 2 }
 0x2ad   : > { %v6102_v15 = vrot.slane %v6101_v1, 1 }
 0x2ae   : > { %v5176_v9 = vrot.slane %v5175_v42, 1  ;;  %v6202_v7 = vadd.f32 %v6201_v31, %v6200_v35  ;;  %v5076_v51 = vadd.f32 %v5075_v63, %v5074_v10 }
 0x2af   : > { %v6103_v12 = vadd.f32 %v6102_v15, %v6101_v1 }
 0x2b0   : > { %v5177_v58 = vadd.f32 %v5176_v9, %v5175_v42  ;;  %v6203_v45 = vrot.slane %v6202_v7, 1 }
 0x2b2   : > { %v5179_v13 = vsel %vm5178_vm10, %v5076_v51, %v5177_v58  ;;  %v6204_v2 = vadd.f32 %v6203_v45, %v6202_v7 }
 0x2b3   : > { %5181 = vst.msk [vmem:[%s275_s14] sm:$0x3] %vm5180_vm11, %v5179_v13 }
 0x2b4   : > { %v6205_v17 = vsel %vm5178_vm10, %v6103_v12, %v6204_v2 }
 0x2b5   : > { %6206 = vst.msk [vmem:[%s285_s17] sm:$0x3] %vm5180_vm11, %v6205_v17 }
 0x2b6 PF: > { %s17_s21 = sadd.s32 1, %s8012_s21  }
 0x2b7   : > { %p14_p5 = scmp.ge.s32.totalorder %s17_s21, 4  }
 0x2b9   :  { %16 = sbr.rel (!%p14_p5) target bundleno = 1 (0x1), region = 108 }

</bundles_post_ra>
